<compile_context>
chip_gen: v5e
topology: v5e:2x2
jax: 0.10.0
libtpu: 0.0.40
codegen_flags: <defaults>
</compile_context>

<pallas_src>
import jax
import jax.numpy as jnp
from jax import lax
from jax.experimental import pallas as pl
from jax.experimental.pallas import tpu as pltpu


# --------------------------- fused forward kernel ----------------------------
def _build_fused_kernel(T, B, E, H, V, num_layer):
    """Embedding gather + num_layer wavefronted LSTM layers + linear + softmax."""

    def kernel(*refs):
        x_idx_ref = refs[0]                         # (T*B, 1) int32, time-major rows
        emb_ref = refs[1]                           # (V, E)   bf16
        lyr = refs[2:2 + 3 * num_layer]             # (wih, whh, bias) per layer
        wout_ref = refs[2 + 3 * num_layer]          # (H, V)   bf16
        bout_ref = refs[3 + 3 * num_layer]          # (1, V)   f32
        out_ref = refs[4 + 3 * num_layer]           # (T*B, V) f32, time-major rows
        gx_sc, seq_sc = refs[5 + 3 * num_layer:]

        # ---- embedding gather on the MXU: one-hot @ table (exact row select) ----
        ids = x_idx_ref[...]                                         # (T*B, 1) i32
        iota = lax.broadcasted_iota(jnp.int32, (T * B, V), 1)
        onehot = jnp.where(iota == ids, 1.0, 0.0).astype(jnp.bfloat16)
        x_bf = jnp.dot(onehot, emb_ref[...],
                       preferred_element_type=jnp.float32).astype(jnp.bfloat16)

        # ---- layer-0 input projection hoisted out of the recurrence ----
        # Weights/biases arrive with i/f/o gate columns pre-scaled by 0.5 so the
        # per-step nonlinearity is a single tanh over the whole (B, 4H) slab.
        gx_sc[...] = (jnp.dot(x_bf, lyr[0][...],
                              preferred_element_type=jnp.float32) + lyr[2][...])

        def cell(gates, c_prev):
            y = jnp.tanh(gates)                      # ONE EUP dispatch over (B, 4H)
            i_g = y[:, 0 * H:1 * H] * 0.5 + 0.5      # == sigmoid(unscaled gate)
            f_g = y[:, 1 * H:2 * H] * 0.5 + 0.5
            g_g = y[:, 2 * H:3 * H]                  # == tanh(unscaled gate)
            o_g = y[:, 3 * H:4 * H] * 0.5 + 0.5
            c_new = f_g * c_prev + i_g * g_g
            h_new = (o_g * jnp.tanh(c_new)).astype(jnp.bfloat16)
            return h_new, c_new

        # ---- wavefront recurrence: layer l handles time step s - l at wave s ----
        h = [jnp.zeros((B, H), jnp.bfloat16) for _ in range(num_layer)]
        c = [jnp.zeros((B, H), jnp.float32) for _ in range(num_layer)]

        for s in range(T + num_layer - 1):           # T=8 -> full unroll is fine
            h_prev = list(h)                         # carries entering this wave
            for l in range(num_layer):
                t = s - l
                if t < 0 or t >= T:
                    continue
                wih_ref, whh_ref, b_ref = lyr[3 * l], lyr[3 * l + 1], lyr[3 * l + 2]
                rec = jnp.dot(h_prev[l], whh_ref[...],
                              preferred_element_type=jnp.float32)
                if l == 0:
                    # gx read has no dep on the carry -> off the critical chain.
                    gates = gx_sc[t * B:(t + 1) * B, :] + rec
                else:
                    gates = (rec + b_ref[...]
                             + jnp.dot(h_prev[l - 1], wih_ref[...],
                                       preferred_element_type=jnp.float32))
                h[l], c[l] = cell(gates, c[l])
                if l == num_layer - 1:
                    # (t, b)-major bf16 store; B=2 rows == one packed sublane.
                    seq_sc[t * B:(t + 1) * B, :] = h[l]

        # ---- fused output projection + softmax over all T*B rows at once ----
        logits = (jnp.dot(seq_sc[...], wout_ref[...],
                          preferred_element_type=jnp.float32) + bout_ref[...])
        m = jnp.max(logits, axis=-1, keepdims=True)
        e = jnp.exp(logits - m)
        out_ref[...] = e / jnp.sum(e, axis=-1, keepdims=True)   # exact normalize

    return kernel


# ------------------------------ forward wrapper -------------------------------
@jax.jit
def lstm_with_embedding_forward(x_idx, kparams):
    """x_idx: (B, T) int32 token ids -> (B, T, num_word) f32 probabilities."""
    B, T = x_idx.shape
    H = kparams["whh"][0].shape[0]
    E = kparams["emb"].shape[1]
    V = kparams["lin_w_t"].shape[1]
    num_layer = len(kparams["wih"])

    # Time-major row ids: row r = t*B + b holds x_idx[b, t].
    ids_tm = x_idx.T.reshape(T * B, 1).astype(jnp.int32)

    args = [ids_tm, kparams["emb"]]
    for l in range(num_layer):
        args += [kparams["wih"][l], kparams["whh"][l], kparams["bias"][l]]
    args += [kparams["lin_w_t"], kparams["lin_b"]]

    probs_tm = pl.pallas_call(
        _build_fused_kernel(T, B, E, H, V, num_layer),
        out_shape=jax.ShapeDtypeStruct((T * B, V), jnp.float32),
        # Gridless: every input / output is a whole-array VMEM block (<2 MiB).
        scratch_shapes=[
            pltpu.VMEM((T * B, 4 * H), jnp.float32),   # layer-0 gate pre-acts
            pltpu.VMEM((T * B, H), jnp.bfloat16),      # last-layer h, (t,b)-major
        ],
    )(*args)
    # 16 KiB (t,b)->(b,t) reorder done here, off the kernel's critical path.
    return probs_tm.reshape(T, B, V).transpose(1, 0, 2)


# ------------------------------ parameter setup -------------------------------
def init_params(key, num_word, embedding_size, num_layer):
    """PyTorch-layout f32 parameters (used by the pure-JAX reference)."""
    H = embedding_size
    k_emb, key = jax.random.split(key)
    params = {"emb_weight": jax.random.normal(
        k_emb, (num_word, embedding_size), dtype=jnp.float32)}
    bound = 1.0 / float(H) ** 0.5
    layers = []
    for layer in range(num_layer):
        in_dim = embedding_size if layer == 0 else H
        key, k1, k2, k3, k4 = jax.random.split(key, 5)
        layers.append({
            "w_ih": jax.random.uniform(k1, (4 * H, in_dim), jnp.float32, -bound, bound),
            "w_hh": jax.random.uniform(k2, (4 * H, H), jnp.float32, -bound, bound),
            "b_ih": jax.random.uniform(k3, (4 * H,), jnp.float32, -bound, bound),
            "b_hh": jax.random.uniform(k4, (4 * H,), jnp.float32, -bound, bound),
        })
    params["layers"] = layers
    key, k_w, k_b = jax.random.split(key, 3)
    params["lin_w"] = jax.random.uniform(k_w, (num_word, H), jnp.float32, -bound, bound)
    params["lin_b"] = jax.random.uniform(k_b, (num_word,), jnp.float32, -bound, bound)
    return params


def prepare_kernel_params(params):
    """Kernel layout: transposed bf16 weights with the sigmoid-gate (i,f,o)
    columns pre-scaled by 0.5 (exact), f32 combined biases scaled the same way,
    bf16 embedding table, bf16 transposed output projection."""
    H = params["layers"][0]["w_hh"].shape[1]
    V = params["lin_w"].shape[0]
    ones = jnp.ones((H,), jnp.float32)
    # PyTorch gate order (i, f, g, o): halve i/f/o so sigmoid(z)=0.5*tanh(z/2)+0.5
    gscale = jnp.concatenate([0.5 * ones, 0.5 * ones, ones, 0.5 * ones])   # (4H,)

    def prep_mat(w):   # torch (4H, in) -> kernel (in, 4H) bf16, i/f/o halved
        return (w.T * gscale[None, :]).astype(jnp.bfloat16)

    return {
        "emb": params["emb_weight"].astype(jnp.bfloat16),                   # (V, E)
        "wih": [prep_mat(l["w_ih"]) for l in params["layers"]],             # (in,4H)
        "whh": [prep_mat(l["w_hh"]) for l in params["layers"]],             # (H, 4H)
        "bias": [((l["b_ih"] + l["b_hh"]) * gscale).reshape(1, -1)
                 for l in params["layers"]],                                # (1, 4H)
        "lin_w_t": params["lin_w"].T.astype(jnp.bfloat16),                  # (H, V)
        "lin_b": params["lin_b"].reshape(1, V),                             # (1, V)
    }


# ------------------------------ pure-JAX reference ----------------------------
def reference_forward(x_idx, params):
    x = jnp.take(params["emb_weight"], x_idx, axis=0)          # (B, T, E)
    B = x.shape[0]
    h_seq = x
    for layer in params["layers"]:
        w_ih, w_hh = layer["w_ih"], layer["w_hh"]
        b = layer["b_ih"] + layer["b_hh"]
        Hh = w_hh.shape[1]

        def step(carry, x_t, w_ih=w_ih, w_hh=w_hh, b=b):
            h_p, c_p = carry
            gates = x_t @ w_ih.T + h_p @ w_hh.T + b
            i_g, f_g, g_g, o_g = jnp.split(gates, 4, axis=-1)
            i_g, f_g, o_g = (jax.nn.sigmoid(i_g), jax.nn.sigmoid(f_g),
                             jax.nn.sigmoid(o_g))
            g_g = jnp.tanh(g_g)
            c_n = f_g * c_p + i_g * g_g
            h_n = o_g * jnp.tanh(c_n)
            return (h_n, c_n), h_n

        init = (jnp.zeros((B, Hh), jnp.float32), jnp.zeros((B, Hh), jnp.float32))
        _, hs = lax.scan(step, init, jnp.swapaxes(h_seq, 0, 1))  # (T, B, H)
        h_seq = jnp.swapaxes(hs, 0, 1)
    logits = h_seq @ params["lin_w"].T + params["lin_b"]
    return jax.nn.softmax(logits, axis=-1)


# ------------------------------------ main ------------------------------------
if __name__ == "__main__":
    num_word = 256
    embedding_size = 128      # hidden_size == embedding_size in the module
    num_layer = 2
    B, T = 2, 8

    key = jax.random.PRNGKey(0)
    k_params, k_idx = jax.random.split(key)
    params = init_params(k_params, num_word, embedding_size, num_layer)
    kparams = prepare_kernel_params(params)
    x_idx = jax.random.randint(k_idx, (B, T), 0, num_word, dtype=jnp.int32)

    out = jax.block_until_ready(lstm_with_embedding_forward(x_idx, kparams))

    assert out.shape == (B, T, num_word)
    assert out.dtype == jnp.float32
    # softmax rows sum to 1 (exact division in kernel)
    assert bool(jnp.allclose(jnp.sum(out, axis=-1), 1.0, atol=1e-3))
    # matches pure-JAX f32 reference up to bf16-matmul drift
    ref = reference_forward(x_idx, params)
    assert bool(jnp.allclose(out, ref, rtol=2e-1, atol=1e-3))

    print("KERNEL_OK")
</pallas_src>

<mosaic_0001>
module attributes {stable_mosaic.version = 11 : i64} {
  func.func @kernel(%arg0: memref<16x1xi32, #tpu.memory_space<vmem>>, %arg1: memref<256x128xbf16, #tpu.memory_space<vmem>>, %arg2: memref<128x512xbf16, #tpu.memory_space<vmem>>, %arg3: memref<128x512xbf16, #tpu.memory_space<vmem>>, %arg4: memref<1x512xf32, #tpu.memory_space<vmem>>, %arg5: memref<128x512xbf16, #tpu.memory_space<vmem>>, %arg6: memref<128x512xbf16, #tpu.memory_space<vmem>>, %arg7: memref<1x512xf32, #tpu.memory_space<vmem>>, %arg8: memref<128x256xbf16, #tpu.memory_space<vmem>>, %arg9: memref<1x256xf32, #tpu.memory_space<vmem>>, %arg10: memref<16x256xf32, #tpu.memory_space<vmem>>, %arg11: memref<16x512xf32, #tpu.memory_space<vmem>>, %arg12: memref<16x128xbf16, #tpu.memory_space<vmem>>) attributes {dimension_semantics = [], scalar_prefetch = 0 : i64, scratch_operands = 2 : i64, tpu.core_type = #tpu.core_type<tc>} {
    %c0 = arith.constant 0 : index
    %c0_0 = arith.constant 0 : index
    %0 = vector.load %arg0[%c0, %c0_0] : memref<16x1xi32, #tpu.memory_space<vmem>>, vector<16x1xi32>
    %1 = tpu.iota {dimensions = array<i32: 1>} : vector<16x256xi32>
    %2 = vector.broadcast %0 : vector<16x1xi32> to vector<16x256xi32>
    %3 = arith.cmpi eq, %1, %2 : vector<16x256xi32>
    %cst = arith.constant 1.000000e+00 : f32
    %cst_1 = arith.constant 0.000000e+00 : f32
    %4 = vector.broadcast %cst : f32 to vector<16x256xf32>
    %5 = vector.broadcast %cst_1 : f32 to vector<16x256xf32>
    %6 = arith.select %3, %4, %5 : vector<16x256xi1>, vector<16x256xf32>
    %7 = arith.truncf %6 : vector<16x256xf32> to vector<16x256xbf16>
    %c0_2 = arith.constant 0 : index
    %c0_3 = arith.constant 0 : index
    %8 = vector.load %arg1[%c0_2, %c0_3] : memref<256x128xbf16, #tpu.memory_space<vmem>>, vector<256x128xbf16>
    %cst_4 = arith.constant dense<0.000000e+00> : vector<16x128xf32>
    %9 = tpu.matmul %7, %8, %cst_4 {dimension_numbers = #tpu.dot_dimension_numbers<[1], [0], [0], [1], [0, 0, 1, 1], [], []>} : vector<16x256xbf16>, vector<256x128xbf16>, vector<16x128xf32> -> vector<16x128xf32>
    %10 = arith.truncf %9 : vector<16x128xf32> to vector<16x128xbf16>
    %c0_5 = arith.constant 0 : index
    %c0_6 = arith.constant 0 : index
    %11 = vector.load %arg2[%c0_5, %c0_6] : memref<128x512xbf16, #tpu.memory_space<vmem>>, vector<128x512xbf16>
    %cst_7 = arith.constant dense<0.000000e+00> : vector<16x512xf32>
    %12 = tpu.matmul %10, %11, %cst_7 {dimension_numbers = #tpu.dot_dimension_numbers<[1], [0], [0], [1], [0, 0, 1, 1], [], []>} : vector<16x128xbf16>, vector<128x512xbf16>, vector<16x512xf32> -> vector<16x512xf32>
    %c0_8 = arith.constant 0 : index
    %c0_9 = arith.constant 0 : index
    %13 = vector.load %arg4[%c0_8, %c0_9] : memref<1x512xf32, #tpu.memory_space<vmem>>, vector<1x512xf32>
    %14 = vector.broadcast %13 : vector<1x512xf32> to vector<16x512xf32>
    %15 = arith.addf %12, %14 : vector<16x512xf32>
    %c0_10 = arith.constant 0 : index
    %c0_11 = arith.constant 0 : index
    %16 = vector.load %arg11[%c0_10, %c0_11] : memref<16x512xf32, #tpu.memory_space<vmem>>, vector<16x512xf32>
    tpu.vector_store %arg11[%c0_10, %c0_11], %15 {strides = array<i32>} : memref<16x512xf32, #tpu.memory_space<vmem>>, vector<16x512xf32>,
    %cst_12 = arith.constant 0.000000e+00 : bf16
    %17 = vector.broadcast %cst_12 : bf16 to vector<2x128xbf16>
    %cst_13 = arith.constant 0.000000e+00 : bf16
    %18 = vector.broadcast %cst_13 : bf16 to vector<2x128xbf16>
    %cst_14 = arith.constant 0.000000e+00 : f32
    %19 = vector.broadcast %cst_14 : f32 to vector<2x128xf32>
    %cst_15 = arith.constant 0.000000e+00 : f32
    %20 = vector.broadcast %cst_15 : f32 to vector<2x128xf32>
    %c0_16 = arith.constant 0 : index
    %c0_17 = arith.constant 0 : index
    %21 = vector.load %arg3[%c0_16, %c0_17] : memref<128x512xbf16, #tpu.memory_space<vmem>>, vector<128x512xbf16>
    %cst_18 = arith.constant dense<0.000000e+00> : vector<2x512xf32>
    %22 = tpu.matmul %17, %21, %cst_18 {dimension_numbers = #tpu.dot_dimension_numbers<[1], [0], [0], [1], [0, 0, 1, 1], [], []>} : vector<2x128xbf16>, vector<128x512xbf16>, vector<2x512xf32> -> vector<2x512xf32>
    %c0_19 = arith.constant 0 : index
    %c0_20 = arith.constant 0 : index
    %23 = vector.load %arg11[%c0_19, %c0_20] : memref<16x512xf32, #tpu.memory_space<vmem>>, vector<2x512xf32>
    %24 = arith.addf %23, %22 : vector<2x512xf32>
    %25 = math.tanh %24 : vector<2x512xf32>
    %26 = vector.extract_strided_slice %25 {offsets = [0, 0], sizes = [2, 128], strides = [1, 1]} : vector<2x512xf32> to vector<2x128xf32>
    %cst_21 = arith.constant 5.000000e-01 : f32
    %27 = vector.broadcast %cst_21 : f32 to vector<2x128xf32>
    %28 = arith.mulf %26, %27 : vector<2x128xf32>
    %cst_22 = arith.constant 5.000000e-01 : f32
    %29 = vector.broadcast %cst_22 : f32 to vector<2x128xf32>
    %30 = arith.addf %28, %29 : vector<2x128xf32>
    %31 = vector.extract_strided_slice %25 {offsets = [0, 128], sizes = [2, 128], strides = [1, 1]} : vector<2x512xf32> to vector<2x128xf32>
    %cst_23 = arith.constant 5.000000e-01 : f32
    %32 = vector.broadcast %cst_23 : f32 to vector<2x128xf32>
    %33 = arith.mulf %31, %32 : vector<2x128xf32>
    %cst_24 = arith.constant 5.000000e-01 : f32
    %34 = vector.broadcast %cst_24 : f32 to vector<2x128xf32>
    %35 = arith.addf %33, %34 : vector<2x128xf32>
    %36 = vector.extract_strided_slice %25 {offsets = [0, 256], sizes = [2, 128], strides = [1, 1]} : vector<2x512xf32> to vector<2x128xf32>
    %37 = vector.extract_strided_slice %25 {offsets = [0, 384], sizes = [2, 128], strides = [1, 1]} : vector<2x512xf32> to vector<2x128xf32>
    %cst_25 = arith.constant 5.000000e-01 : f32
    %38 = vector.broadcast %cst_25 : f32 to vector<2x128xf32>
    %39 = arith.mulf %37, %38 : vector<2x128xf32>
    %cst_26 = arith.constant 5.000000e-01 : f32
    %40 = vector.broadcast %cst_26 : f32 to vector<2x128xf32>
    %41 = arith.addf %39, %40 : vector<2x128xf32>
    %42 = arith.mulf %35, %19 : vector<2x128xf32>
    %43 = arith.mulf %30, %36 : vector<2x128xf32>
    %44 = arith.addf %42, %43 : vector<2x128xf32>
    %45 = math.tanh %44 : vector<2x128xf32>
    %46 = arith.mulf %41, %45 : vector<2x128xf32>
    %47 = arith.truncf %46 : vector<2x128xf32> to vector<2x128xbf16>
    %c0_27 = arith.constant 0 : index
    %c0_28 = arith.constant 0 : index
    %48 = vector.load %arg3[%c0_27, %c0_28] : memref<128x512xbf16, #tpu.memory_space<vmem>>, vector<128x512xbf16>
    %cst_29 = arith.constant dense<0.000000e+00> : vector<2x512xf32>
    %49 = tpu.matmul %47, %48, %cst_29 {dimension_numbers = #tpu.dot_dimension_numbers<[1], [0], [0], [1], [0, 0, 1, 1], [], []>} : vector<2x128xbf16>, vector<128x512xbf16>, vector<2x512xf32> -> vector<2x512xf32>
    %c2 = arith.constant 2 : index
    %c0_30 = arith.constant 0 : index
    %50 = vector.load %arg11[%c2, %c0_30] : memref<16x512xf32, #tpu.memory_space<vmem>>, vector<2x512xf32>
    %51 = arith.addf %50, %49 : vector<2x512xf32>
    %52 = math.tanh %51 : vector<2x512xf32>
    %53 = vector.extract_strided_slice %52 {offsets = [0, 0], sizes = [2, 128], strides = [1, 1]} : vector<2x512xf32> to vector<2x128xf32>
    %cst_31 = arith.constant 5.000000e-01 : f32
    %54 = vector.broadcast %cst_31 : f32 to vector<2x128xf32>
    %55 = arith.mulf %53, %54 : vector<2x128xf32>
    %cst_32 = arith.constant 5.000000e-01 : f32
    %56 = vector.broadcast %cst_32 : f32 to vector<2x128xf32>
    %57 = arith.addf %55, %56 : vector<2x128xf32>
    %58 = vector.extract_strided_slice %52 {offsets = [0, 128], sizes = [2, 128], strides = [1, 1]} : vector<2x512xf32> to vector<2x128xf32>
    %cst_33 = arith.constant 5.000000e-01 : f32
    %59 = vector.broadcast %cst_33 : f32 to vector<2x128xf32>
    %60 = arith.mulf %58, %59 : vector<2x128xf32>
    %cst_34 = arith.constant 5.000000e-01 : f32
    %61 = vector.broadcast %cst_34 : f32 to vector<2x128xf32>
    %62 = arith.addf %60, %61 : vector<2x128xf32>
    %63 = vector.extract_strided_slice %52 {offsets = [0, 256], sizes = [2, 128], strides = [1, 1]} : vector<2x512xf32> to vector<2x128xf32>
    %64 = vector.extract_strided_slice %52 {offsets = [0, 384], sizes = [2, 128], strides = [1, 1]} : vector<2x512xf32> to vector<2x128xf32>
    %cst_35 = arith.constant 5.000000e-01 : f32
    %65 = vector.broadcast %cst_35 : f32 to vector<2x128xf32>
    %66 = arith.mulf %64, %65 : vector<2x128xf32>
    %cst_36 = arith.constant 5.000000e-01 : f32
    %67 = vector.broadcast %cst_36 : f32 to vector<2x128xf32>
    %68 = arith.addf %66, %67 : vector<2x128xf32>
    %69 = arith.mulf %62, %44 : vector<2x128xf32>
    %70 = arith.mulf %57, %63 : vector<2x128xf32>
    %71 = arith.addf %69, %70 : vector<2x128xf32>
    %72 = math.tanh %71 : vector<2x128xf32>
    %73 = arith.mulf %68, %72 : vector<2x128xf32>
    %74 = arith.truncf %73 : vector<2x128xf32> to vector<2x128xbf16>
    %c0_37 = arith.constant 0 : index
    %c0_38 = arith.constant 0 : index
    %75 = vector.load %arg6[%c0_37, %c0_38] : memref<128x512xbf16, #tpu.memory_space<vmem>>, vector<128x512xbf16>
    %cst_39 = arith.constant dense<0.000000e+00> : vector<2x512xf32>
    %76 = tpu.matmul %18, %75, %cst_39 {dimension_numbers = #tpu.dot_dimension_numbers<[1], [0], [0], [1], [0, 0, 1, 1], [], []>} : vector<2x128xbf16>, vector<128x512xbf16>, vector<2x512xf32> -> vector<2x512xf32>
    %c0_40 = arith.constant 0 : index
    %c0_41 = arith.constant 0 : index
    %77 = vector.load %arg7[%c0_40, %c0_41] : memref<1x512xf32, #tpu.memory_space<vmem>>, vector<1x512xf32>
    %78 = vector.broadcast %77 : vector<1x512xf32> to vector<2x512xf32>
    %79 = arith.addf %76, %78 : vector<2x512xf32>
    %c0_42 = arith.constant 0 : index
    %c0_43 = arith.constant 0 : index
    %80 = vector.load %arg5[%c0_42, %c0_43] : memref<128x512xbf16, #tpu.memory_space<vmem>>, vector<128x512xbf16>
    %cst_44 = arith.constant dense<0.000000e+00> : vector<2x512xf32>
    %81 = tpu.matmul %47, %80, %cst_44 {dimension_numbers = #tpu.dot_dimension_numbers<[1], [0], [0], [1], [0, 0, 1, 1], [], []>} : vector<2x128xbf16>, vector<128x512xbf16>, vector<2x512xf32> -> vector<2x512xf32>
    %82 = arith.addf %79, %81 : vector<2x512xf32>
    %83 = math.tanh %82 : vector<2x512xf32>
    %84 = vector.extract_strided_slice %83 {offsets = [0, 0], sizes = [2, 128], strides = [1, 1]} : vector<2x512xf32> to vector<2x128xf32>
    %cst_45 = arith.constant 5.000000e-01 : f32
    %85 = vector.broadcast %cst_45 : f32 to vector<2x128xf32>
    %86 = arith.mulf %84, %85 : vector<2x128xf32>
    %cst_46 = arith.constant 5.000000e-01 : f32
    %87 = vector.broadcast %cst_46 : f32 to vector<2x128xf32>
    %88 = arith.addf %86, %87 : vector<2x128xf32>
    %89 = vector.extract_strided_slice %83 {offsets = [0, 128], sizes = [2, 128], strides = [1, 1]} : vector<2x512xf32> to vector<2x128xf32>
    %cst_47 = arith.constant 5.000000e-01 : f32
    %90 = vector.broadcast %cst_47 : f32 to vector<2x128xf32>
    %91 = arith.mulf %89, %90 : vector<2x128xf32>
    %cst_48 = arith.constant 5.000000e-01 : f32
    %92 = vector.broadcast %cst_48 : f32 to vector<2x128xf32>
    %93 = arith.addf %91, %92 : vector<2x128xf32>
    %94 = vector.extract_strided_slice %83 {offsets = [0, 256], sizes = [2, 128], strides = [1, 1]} : vector<2x512xf32> to vector<2x128xf32>
    %95 = vector.extract_strided_slice %83 {offsets = [0, 384], sizes = [2, 128], strides = [1, 1]} : vector<2x512xf32> to vector<2x128xf32>
    %cst_49 = arith.constant 5.000000e-01 : f32
    %96 = vector.broadcast %cst_49 : f32 to vector<2x128xf32>
    %97 = arith.mulf %95, %96 : vector<2x128xf32>
    %cst_50 = arith.constant 5.000000e-01 : f32
    %98 = vector.broadcast %cst_50 : f32 to vector<2x128xf32>
    %99 = arith.addf %97, %98 : vector<2x128xf32>
    %100 = arith.mulf %93, %20 : vector<2x128xf32>
    %101 = arith.mulf %88, %94 : vector<2x128xf32>
    %102 = arith.addf %100, %101 : vector<2x128xf32>
    %103 = math.tanh %102 : vector<2x128xf32>
    %104 = arith.mulf %99, %103 : vector<2x128xf32>
    %105 = arith.truncf %104 : vector<2x128xf32> to vector<2x128xbf16>
    %c0_51 = arith.constant 0 : index
    %c0_52 = arith.constant 0 : index
    %106 = vector.load %arg12[%c0_51, %c0_52] : memref<16x128xbf16, #tpu.memory_space<vmem>>, vector<2x128xbf16>
    tpu.vector_store %arg12[%c0_51, %c0_52], %105 {strides = array<i32>} : memref<16x128xbf16, #tpu.memory_space<vmem>>, vector<2x128xbf16>,
    %c0_53 = arith.constant 0 : index
    %c0_54 = arith.constant 0 : index
    %107 = vector.load %arg3[%c0_53, %c0_54] : memref<128x512xbf16, #tpu.memory_space<vmem>>, vector<128x512xbf16>
    %cst_55 = arith.constant dense<0.000000e+00> : vector<2x512xf32>
    %108 = tpu.matmul %74, %107, %cst_55 {dimension_numbers = #tpu.dot_dimension_numbers<[1], [0], [0], [1], [0, 0, 1, 1], [], []>} : vector<2x128xbf16>, vector<128x512xbf16>, vector<2x512xf32> -> vector<2x512xf32>
    %c4 = arith.constant 4 : index
    %c0_56 = arith.constant 0 : index
    %109 = vector.load %arg11[%c4, %c0_56] : memref<16x512xf32, #tpu.memory_space<vmem>>, vector<2x512xf32>
    %110 = arith.addf %109, %108 : vector<2x512xf32>
    %111 = math.tanh %110 : vector<2x512xf32>
    %112 = vector.extract_strided_slice %111 {offsets = [0, 0], sizes = [2, 128], strides = [1, 1]} : vector<2x512xf32> to vector<2x128xf32>
    %cst_57 = arith.constant 5.000000e-01 : f32
    %113 = vector.broadcast %cst_57 : f32 to vector<2x128xf32>
    %114 = arith.mulf %112, %113 : vector<2x128xf32>
    %cst_58 = arith.constant 5.000000e-01 : f32
    %115 = vector.broadcast %cst_58 : f32 to vector<2x128xf32>
    %116 = arith.addf %114, %115 : vector<2x128xf32>
    %117 = vector.extract_strided_slice %111 {offsets = [0, 128], sizes = [2, 128], strides = [1, 1]} : vector<2x512xf32> to vector<2x128xf32>
    %cst_59 = arith.constant 5.000000e-01 : f32
    %118 = vector.broadcast %cst_59 : f32 to vector<2x128xf32>
    %119 = arith.mulf %117, %118 : vector<2x128xf32>
    %cst_60 = arith.constant 5.000000e-01 : f32
    %120 = vector.broadcast %cst_60 : f32 to vector<2x128xf32>
    %121 = arith.addf %119, %120 : vector<2x128xf32>
    %122 = vector.extract_strided_slice %111 {offsets = [0, 256], sizes = [2, 128], strides = [1, 1]} : vector<2x512xf32> to vector<2x128xf32>
    %123 = vector.extract_strided_slice %111 {offsets = [0, 384], sizes = [2, 128], strides = [1, 1]} : vector<2x512xf32> to vector<2x128xf32>
    %cst_61 = arith.constant 5.000000e-01 : f32
    %124 = vector.broadcast %cst_61 : f32 to vector<2x128xf32>
    %125 = arith.mulf %123, %124 : vector<2x128xf32>
    %cst_62 = arith.constant 5.000000e-01 : f32
    %126 = vector.broadcast %cst_62 : f32 to vector<2x128xf32>
    %127 = arith.addf %125, %126 : vector<2x128xf32>
    %128 = arith.mulf %121, %71 : vector<2x128xf32>
    %129 = arith.mulf %116, %122 : vector<2x128xf32>
    %130 = arith.addf %128, %129 : vector<2x128xf32>
    %131 = math.tanh %130 : vector<2x128xf32>
    %132 = arith.mulf %127, %131 : vector<2x128xf32>
    %133 = arith.truncf %132 : vector<2x128xf32> to vector<2x128xbf16>
    %c0_63 = arith.constant 0 : index
    %c0_64 = arith.constant 0 : index
    %134 = vector.load %arg6[%c0_63, %c0_64] : memref<128x512xbf16, #tpu.memory_space<vmem>>, vector<128x512xbf16>
    %cst_65 = arith.constant dense<0.000000e+00> : vector<2x512xf32>
    %135 = tpu.matmul %105, %134, %cst_65 {dimension_numbers = #tpu.dot_dimension_numbers<[1], [0], [0], [1], [0, 0, 1, 1], [], []>} : vector<2x128xbf16>, vector<128x512xbf16>, vector<2x512xf32> -> vector<2x512xf32>
    %c0_66 = arith.constant 0 : index
    %c0_67 = arith.constant 0 : index
    %136 = vector.load %arg7[%c0_66, %c0_67] : memref<1x512xf32, #tpu.memory_space<vmem>>, vector<1x512xf32>
    %137 = vector.broadcast %136 : vector<1x512xf32> to vector<2x512xf32>
    %138 = arith.addf %135, %137 : vector<2x512xf32>
    %c0_68 = arith.constant 0 : index
    %c0_69 = arith.constant 0 : index
    %139 = vector.load %arg5[%c0_68, %c0_69] : memref<128x512xbf16, #tpu.memory_space<vmem>>, vector<128x512xbf16>
    %cst_70 = arith.constant dense<0.000000e+00> : vector<2x512xf32>
    %140 = tpu.matmul %74, %139, %cst_70 {dimension_numbers = #tpu.dot_dimension_numbers<[1], [0], [0], [1], [0, 0, 1, 1], [], []>} : vector<2x128xbf16>, vector<128x512xbf16>, vector<2x512xf32> -> vector<2x512xf32>
    %141 = arith.addf %138, %140 : vector<2x512xf32>
    %142 = math.tanh %141 : vector<2x512xf32>
    %143 = vector.extract_strided_slice %142 {offsets = [0, 0], sizes = [2, 128], strides = [1, 1]} : vector<2x512xf32> to vector<2x128xf32>
    %cst_71 = arith.constant 5.000000e-01 : f32
    %144 = vector.broadcast %cst_71 : f32 to vector<2x128xf32>
    %145 = arith.mulf %143, %144 : vector<2x128xf32>
    %cst_72 = arith.constant 5.000000e-01 : f32
    %146 = vector.broadcast %cst_72 : f32 to vector<2x128xf32>
    %147 = arith.addf %145, %146 : vector<2x128xf32>
    %148 = vector.extract_strided_slice %142 {offsets = [0, 128], sizes = [2, 128], strides = [1, 1]} : vector<2x512xf32> to vector<2x128xf32>
    %cst_73 = arith.constant 5.000000e-01 : f32
    %149 = vector.broadcast %cst_73 : f32 to vector<2x128xf32>
    %150 = arith.mulf %148, %149 : vector<2x128xf32>
    %cst_74 = arith.constant 5.000000e-01 : f32
    %151 = vector.broadcast %cst_74 : f32 to vector<2x128xf32>
    %152 = arith.addf %150, %151 : vector<2x128xf32>
    %153 = vector.extract_strided_slice %142 {offsets = [0, 256], sizes = [2, 128], strides = [1, 1]} : vector<2x512xf32> to vector<2x128xf32>
    %154 = vector.extract_strided_slice %142 {offsets = [0, 384], sizes = [2, 128], strides = [1, 1]} : vector<2x512xf32> to vector<2x128xf32>
    %cst_75 = arith.constant 5.000000e-01 : f32
    %155 = vector.broadcast %cst_75 : f32 to vector<2x128xf32>
    %156 = arith.mulf %154, %155 : vector<2x128xf32>
    %cst_76 = arith.constant 5.000000e-01 : f32
    %157 = vector.broadcast %cst_76 : f32 to vector<2x128xf32>
    %158 = arith.addf %156, %157 : vector<2x128xf32>
    %159 = arith.mulf %152, %102 : vector<2x128xf32>
    %160 = arith.mulf %147, %153 : vector<2x128xf32>
    %161 = arith.addf %159, %160 : vector<2x128xf32>
    %162 = math.tanh %161 : vector<2x128xf32>
    %163 = arith.mulf %158, %162 : vector<2x128xf32>
    %164 = arith.truncf %163 : vector<2x128xf32> to vector<2x128xbf16>
    %c2_77 = arith.constant 2 : index
    %c0_78 = arith.constant 0 : index
    %165 = vector.load %arg12[%c2_77, %c0_78] : memref<16x128xbf16, #tpu.memory_space<vmem>>, vector<2x128xbf16>
    tpu.vector_store %arg12[%c2_77, %c0_78], %164 {strides = array<i32>} : memref<16x128xbf16, #tpu.memory_space<vmem>>, vector<2x128xbf16>,
    %c0_79 = arith.constant 0 : index
    %c0_80 = arith.constant 0 : index
    %166 = vector.load %arg3[%c0_79, %c0_80] : memref<128x512xbf16, #tpu.memory_space<vmem>>, vector<128x512xbf16>
    %cst_81 = arith.constant dense<0.000000e+00> : vector<2x512xf32>
    %167 = tpu.matmul %133, %166, %cst_81 {dimension_numbers = #tpu.dot_dimension_numbers<[1], [0], [0], [1], [0, 0, 1, 1], [], []>} : vector<2x128xbf16>, vector<128x512xbf16>, vector<2x512xf32> -> vector<2x512xf32>
    %c6 = arith.constant 6 : index
    %c0_82 = arith.constant 0 : index
    %168 = vector.load %arg11[%c6, %c0_82] : memref<16x512xf32, #tpu.memory_space<vmem>>, vector<2x512xf32>
    %169 = arith.addf %168, %167 : vector<2x512xf32>
    %170 = math.tanh %169 : vector<2x512xf32>
    %171 = vector.extract_strided_slice %170 {offsets = [0, 0], sizes = [2, 128], strides = [1, 1]} : vector<2x512xf32> to vector<2x128xf32>
    %cst_83 = arith.constant 5.000000e-01 : f32
    %172 = vector.broadcast %cst_83 : f32 to vector<2x128xf32>
    %173 = arith.mulf %171, %172 : vector<2x128xf32>
    %cst_84 = arith.constant 5.000000e-01 : f32
    %174 = vector.broadcast %cst_84 : f32 to vector<2x128xf32>
    %175 = arith.addf %173, %174 : vector<2x128xf32>
    %176 = vector.extract_strided_slice %170 {offsets = [0, 128], sizes = [2, 128], strides = [1, 1]} : vector<2x512xf32> to vector<2x128xf32>
    %cst_85 = arith.constant 5.000000e-01 : f32
    %177 = vector.broadcast %cst_85 : f32 to vector<2x128xf32>
    %178 = arith.mulf %176, %177 : vector<2x128xf32>
    %cst_86 = arith.constant 5.000000e-01 : f32
    %179 = vector.broadcast %cst_86 : f32 to vector<2x128xf32>
    %180 = arith.addf %178, %179 : vector<2x128xf32>
    %181 = vector.extract_strided_slice %170 {offsets = [0, 256], sizes = [2, 128], strides = [1, 1]} : vector<2x512xf32> to vector<2x128xf32>
    %182 = vector.extract_strided_slice %170 {offsets = [0, 384], sizes = [2, 128], strides = [1, 1]} : vector<2x512xf32> to vector<2x128xf32>
    %cst_87 = arith.constant 5.000000e-01 : f32
    %183 = vector.broadcast %cst_87 : f32 to vector<2x128xf32>
    %184 = arith.mulf %182, %183 : vector<2x128xf32>
    %cst_88 = arith.constant 5.000000e-01 : f32
    %185 = vector.broadcast %cst_88 : f32 to vector<2x128xf32>
    %186 = arith.addf %184, %185 : vector<2x128xf32>
    %187 = arith.mulf %180, %130 : vector<2x128xf32>
    %188 = arith.mulf %175, %181 : vector<2x128xf32>
    %189 = arith.addf %187, %188 : vector<2x128xf32>
    %190 = math.tanh %189 : vector<2x128xf32>
    %191 = arith.mulf %186, %190 : vector<2x128xf32>
    %192 = arith.truncf %191 : vector<2x128xf32> to vector<2x128xbf16>
    %c0_89 = arith.constant 0 : index
    %c0_90 = arith.constant 0 : index
    %193 = vector.load %arg6[%c0_89, %c0_90] : memref<128x512xbf16, #tpu.memory_space<vmem>>, vector<128x512xbf16>
    %cst_91 = arith.constant dense<0.000000e+00> : vector<2x512xf32>
    %194 = tpu.matmul %164, %193, %cst_91 {dimension_numbers = #tpu.dot_dimension_numbers<[1], [0], [0], [1], [0, 0, 1, 1], [], []>} : vector<2x128xbf16>, vector<128x512xbf16>, vector<2x512xf32> -> vector<2x512xf32>
    %c0_92 = arith.constant 0 : index
    %c0_93 = arith.constant 0 : index
    %195 = vector.load %arg7[%c0_92, %c0_93] : memref<1x512xf32, #tpu.memory_space<vmem>>, vector<1x512xf32>
    %196 = vector.broadcast %195 : vector<1x512xf32> to vector<2x512xf32>
    %197 = arith.addf %194, %196 : vector<2x512xf32>
    %c0_94 = arith.constant 0 : index
    %c0_95 = arith.constant 0 : index
    %198 = vector.load %arg5[%c0_94, %c0_95] : memref<128x512xbf16, #tpu.memory_space<vmem>>, vector<128x512xbf16>
    %cst_96 = arith.constant dense<0.000000e+00> : vector<2x512xf32>
    %199 = tpu.matmul %133, %198, %cst_96 {dimension_numbers = #tpu.dot_dimension_numbers<[1], [0], [0], [1], [0, 0, 1, 1], [], []>} : vector<2x128xbf16>, vector<128x512xbf16>, vector<2x512xf32> -> vector<2x512xf32>
    %200 = arith.addf %197, %199 : vector<2x512xf32>
    %201 = math.tanh %200 : vector<2x512xf32>
    %202 = vector.extract_strided_slice %201 {offsets = [0, 0], sizes = [2, 128], strides = [1, 1]} : vector<2x512xf32> to vector<2x128xf32>
    %cst_97 = arith.constant 5.000000e-01 : f32
    %203 = vector.broadcast %cst_97 : f32 to vector<2x128xf32>
    %204 = arith.mulf %202, %203 : vector<2x128xf32>
    %cst_98 = arith.constant 5.000000e-01 : f32
    %205 = vector.broadcast %cst_98 : f32 to vector<2x128xf32>
    %206 = arith.addf %204, %205 : vector<2x128xf32>
    %207 = vector.extract_strided_slice %201 {offsets = [0, 128], sizes = [2, 128], strides = [1, 1]} : vector<2x512xf32> to vector<2x128xf32>
    %cst_99 = arith.constant 5.000000e-01 : f32
    %208 = vector.broadcast %cst_99 : f32 to vector<2x128xf32>
    %209 = arith.mulf %207, %208 : vector<2x128xf32>
    %cst_100 = arith.constant 5.000000e-01 : f32
    %210 = vector.broadcast %cst_100 : f32 to vector<2x128xf32>
    %211 = arith.addf %209, %210 : vector<2x128xf32>
    %212 = vector.extract_strided_slice %201 {offsets = [0, 256], sizes = [2, 128], strides = [1, 1]} : vector<2x512xf32> to vector<2x128xf32>
    %213 = vector.extract_strided_slice %201 {offsets = [0, 384], sizes = [2, 128], strides = [1, 1]} : vector<2x512xf32> to vector<2x128xf32>
    %cst_101 = arith.constant 5.000000e-01 : f32
    %214 = vector.broadcast %cst_101 : f32 to vector<2x128xf32>
    %215 = arith.mulf %213, %214 : vector<2x128xf32>
    %cst_102 = arith.constant 5.000000e-01 : f32
    %216 = vector.broadcast %cst_102 : f32 to vector<2x128xf32>
    %217 = arith.addf %215, %216 : vector<2x128xf32>
    %218 = arith.mulf %211, %161 : vector<2x128xf32>
    %219 = arith.mulf %206, %212 : vector<2x128xf32>
    %220 = arith.addf %218, %219 : vector<2x128xf32>
    %221 = math.tanh %220 : vector<2x128xf32>
    %222 = arith.mulf %217, %221 : vector<2x128xf32>
    %223 = arith.truncf %222 : vector<2x128xf32> to vector<2x128xbf16>
    %c4_103 = arith.constant 4 : index
    %c0_104 = arith.constant 0 : index
    %224 = vector.load %arg12[%c4_103, %c0_104] : memref<16x128xbf16, #tpu.memory_space<vmem>>, vector<2x128xbf16>
    tpu.vector_store %arg12[%c4_103, %c0_104], %223 {strides = array<i32>} : memref<16x128xbf16, #tpu.memory_space<vmem>>, vector<2x128xbf16>,
    %c0_105 = arith.constant 0 : index
    %c0_106 = arith.constant 0 : index
    %225 = vector.load %arg3[%c0_105, %c0_106] : memref<128x512xbf16, #tpu.memory_space<vmem>>, vector<128x512xbf16>
    %cst_107 = arith.constant dense<0.000000e+00> : vector<2x512xf32>
    %226 = tpu.matmul %192, %225, %cst_107 {dimension_numbers = #tpu.dot_dimension_numbers<[1], [0], [0], [1], [0, 0, 1, 1], [], []>} : vector<2x128xbf16>, vector<128x512xbf16>, vector<2x512xf32> -> vector<2x512xf32>
    %c8 = arith.constant 8 : index
    %c0_108 = arith.constant 0 : index
    %227 = vector.load %arg11[%c8, %c0_108] : memref<16x512xf32, #tpu.memory_space<vmem>>, vector<2x512xf32>
    %228 = arith.addf %227, %226 : vector<2x512xf32>
    %229 = math.tanh %228 : vector<2x512xf32>
    %230 = vector.extract_strided_slice %229 {offsets = [0, 0], sizes = [2, 128], strides = [1, 1]} : vector<2x512xf32> to vector<2x128xf32>
    %cst_109 = arith.constant 5.000000e-01 : f32
    %231 = vector.broadcast %cst_109 : f32 to vector<2x128xf32>
    %232 = arith.mulf %230, %231 : vector<2x128xf32>
    %cst_110 = arith.constant 5.000000e-01 : f32
    %233 = vector.broadcast %cst_110 : f32 to vector<2x128xf32>
    %234 = arith.addf %232, %233 : vector<2x128xf32>
    %235 = vector.extract_strided_slice %229 {offsets = [0, 128], sizes = [2, 128], strides = [1, 1]} : vector<2x512xf32> to vector<2x128xf32>
    %cst_111 = arith.constant 5.000000e-01 : f32
    %236 = vector.broadcast %cst_111 : f32 to vector<2x128xf32>
    %237 = arith.mulf %235, %236 : vector<2x128xf32>
    %cst_112 = arith.constant 5.000000e-01 : f32
    %238 = vector.broadcast %cst_112 : f32 to vector<2x128xf32>
    %239 = arith.addf %237, %238 : vector<2x128xf32>
    %240 = vector.extract_strided_slice %229 {offsets = [0, 256], sizes = [2, 128], strides = [1, 1]} : vector<2x512xf32> to vector<2x128xf32>
    %241 = vector.extract_strided_slice %229 {offsets = [0, 384], sizes = [2, 128], strides = [1, 1]} : vector<2x512xf32> to vector<2x128xf32>
    %cst_113 = arith.constant 5.000000e-01 : f32
    %242 = vector.broadcast %cst_113 : f32 to vector<2x128xf32>
    %243 = arith.mulf %241, %242 : vector<2x128xf32>
    %cst_114 = arith.constant 5.000000e-01 : f32
    %244 = vector.broadcast %cst_114 : f32 to vector<2x128xf32>
    %245 = arith.addf %243, %244 : vector<2x128xf32>
    %246 = arith.mulf %239, %189 : vector<2x128xf32>
    %247 = arith.mulf %234, %240 : vector<2x128xf32>
    %248 = arith.addf %246, %247 : vector<2x128xf32>
    %249 = math.tanh %248 : vector<2x128xf32>
    %250 = arith.mulf %245, %249 : vector<2x128xf32>
    %251 = arith.truncf %250 : vector<2x128xf32> to vector<2x128xbf16>
    %c0_115 = arith.constant 0 : index
    %c0_116 = arith.constant 0 : index
    %252 = vector.load %arg6[%c0_115, %c0_116] : memref<128x512xbf16, #tpu.memory_space<vmem>>, vector<128x512xbf16>
    %cst_117 = arith.constant dense<0.000000e+00> : vector<2x512xf32>
    %253 = tpu.matmul %223, %252, %cst_117 {dimension_numbers = #tpu.dot_dimension_numbers<[1], [0], [0], [1], [0, 0, 1, 1], [], []>} : vector<2x128xbf16>, vector<128x512xbf16>, vector<2x512xf32> -> vector<2x512xf32>
    %c0_118 = arith.constant 0 : index
    %c0_119 = arith.constant 0 : index
    %254 = vector.load %arg7[%c0_118, %c0_119] : memref<1x512xf32, #tpu.memory_space<vmem>>, vector<1x512xf32>
    %255 = vector.broadcast %254 : vector<1x512xf32> to vector<2x512xf32>
    %256 = arith.addf %253, %255 : vector<2x512xf32>
    %c0_120 = arith.constant 0 : index
    %c0_121 = arith.constant 0 : index
    %257 = vector.load %arg5[%c0_120, %c0_121] : memref<128x512xbf16, #tpu.memory_space<vmem>>, vector<128x512xbf16>
    %cst_122 = arith.constant dense<0.000000e+00> : vector<2x512xf32>
    %258 = tpu.matmul %192, %257, %cst_122 {dimension_numbers = #tpu.dot_dimension_numbers<[1], [0], [0], [1], [0, 0, 1, 1], [], []>} : vector<2x128xbf16>, vector<128x512xbf16>, vector<2x512xf32> -> vector<2x512xf32>
    %259 = arith.addf %256, %258 : vector<2x512xf32>
    %260 = math.tanh %259 : vector<2x512xf32>
    %261 = vector.extract_strided_slice %260 {offsets = [0, 0], sizes = [2, 128], strides = [1, 1]} : vector<2x512xf32> to vector<2x128xf32>
    %cst_123 = arith.constant 5.000000e-01 : f32
    %262 = vector.broadcast %cst_123 : f32 to vector<2x128xf32>
    %263 = arith.mulf %261, %262 : vector<2x128xf32>
    %cst_124 = arith.constant 5.000000e-01 : f32
    %264 = vector.broadcast %cst_124 : f32 to vector<2x128xf32>
    %265 = arith.addf %263, %264 : vector<2x128xf32>
    %266 = vector.extract_strided_slice %260 {offsets = [0, 128], sizes = [2, 128], strides = [1, 1]} : vector<2x512xf32> to vector<2x128xf32>
    %cst_125 = arith.constant 5.000000e-01 : f32
    %267 = vector.broadcast %cst_125 : f32 to vector<2x128xf32>
    %268 = arith.mulf %266, %267 : vector<2x128xf32>
    %cst_126 = arith.constant 5.000000e-01 : f32
    %269 = vector.broadcast %cst_126 : f32 to vector<2x128xf32>
    %270 = arith.addf %268, %269 : vector<2x128xf32>
    %271 = vector.extract_strided_slice %260 {offsets = [0, 256], sizes = [2, 128], strides = [1, 1]} : vector<2x512xf32> to vector<2x128xf32>
    %272 = vector.extract_strided_slice %260 {offsets = [0, 384], sizes = [2, 128], strides = [1, 1]} : vector<2x512xf32> to vector<2x128xf32>
    %cst_127 = arith.constant 5.000000e-01 : f32
    %273 = vector.broadcast %cst_127 : f32 to vector<2x128xf32>
    %274 = arith.mulf %272, %273 : vector<2x128xf32>
    %cst_128 = arith.constant 5.000000e-01 : f32
    %275 = vector.broadcast %cst_128 : f32 to vector<2x128xf32>
    %276 = arith.addf %274, %275 : vector<2x128xf32>
    %277 = arith.mulf %270, %220 : vector<2x128xf32>
    %278 = arith.mulf %265, %271 : vector<2x128xf32>
    %279 = arith.addf %277, %278 : vector<2x128xf32>
    %280 = math.tanh %279 : vector<2x128xf32>
    %281 = arith.mulf %276, %280 : vector<2x128xf32>
    %282 = arith.truncf %281 : vector<2x128xf32> to vector<2x128xbf16>
    %c6_129 = arith.constant 6 : index
    %c0_130 = arith.constant 0 : index
    %283 = vector.load %arg12[%c6_129, %c0_130] : memref<16x128xbf16, #tpu.memory_space<vmem>>, vector<2x128xbf16>
    tpu.vector_store %arg12[%c6_129, %c0_130], %282 {strides = array<i32>} : memref<16x128xbf16, #tpu.memory_space<vmem>>, vector<2x128xbf16>,
    %c0_131 = arith.constant 0 : index
    %c0_132 = arith.constant 0 : index
    %284 = vector.load %arg3[%c0_131, %c0_132] : memref<128x512xbf16, #tpu.memory_space<vmem>>, vector<128x512xbf16>
    %cst_133 = arith.constant dense<0.000000e+00> : vector<2x512xf32>
    %285 = tpu.matmul %251, %284, %cst_133 {dimension_numbers = #tpu.dot_dimension_numbers<[1], [0], [0], [1], [0, 0, 1, 1], [], []>} : vector<2x128xbf16>, vector<128x512xbf16>, vector<2x512xf32> -> vector<2x512xf32>
    %c10 = arith.constant 10 : index
    %c0_134 = arith.constant 0 : index
    %286 = vector.load %arg11[%c10, %c0_134] : memref<16x512xf32, #tpu.memory_space<vmem>>, vector<2x512xf32>
    %287 = arith.addf %286, %285 : vector<2x512xf32>
    %288 = math.tanh %287 : vector<2x512xf32>
    %289 = vector.extract_strided_slice %288 {offsets = [0, 0], sizes = [2, 128], strides = [1, 1]} : vector<2x512xf32> to vector<2x128xf32>
    %cst_135 = arith.constant 5.000000e-01 : f32
    %290 = vector.broadcast %cst_135 : f32 to vector<2x128xf32>
    %291 = arith.mulf %289, %290 : vector<2x128xf32>
    %cst_136 = arith.constant 5.000000e-01 : f32
    %292 = vector.broadcast %cst_136 : f32 to vector<2x128xf32>
    %293 = arith.addf %291, %292 : vector<2x128xf32>
    %294 = vector.extract_strided_slice %288 {offsets = [0, 128], sizes = [2, 128], strides = [1, 1]} : vector<2x512xf32> to vector<2x128xf32>
    %cst_137 = arith.constant 5.000000e-01 : f32
    %295 = vector.broadcast %cst_137 : f32 to vector<2x128xf32>
    %296 = arith.mulf %294, %295 : vector<2x128xf32>
    %cst_138 = arith.constant 5.000000e-01 : f32
    %297 = vector.broadcast %cst_138 : f32 to vector<2x128xf32>
    %298 = arith.addf %296, %297 : vector<2x128xf32>
    %299 = vector.extract_strided_slice %288 {offsets = [0, 256], sizes = [2, 128], strides = [1, 1]} : vector<2x512xf32> to vector<2x128xf32>
    %300 = vector.extract_strided_slice %288 {offsets = [0, 384], sizes = [2, 128], strides = [1, 1]} : vector<2x512xf32> to vector<2x128xf32>
    %cst_139 = arith.constant 5.000000e-01 : f32
    %301 = vector.broadcast %cst_139 : f32 to vector<2x128xf32>
    %302 = arith.mulf %300, %301 : vector<2x128xf32>
    %cst_140 = arith.constant 5.000000e-01 : f32
    %303 = vector.broadcast %cst_140 : f32 to vector<2x128xf32>
    %304 = arith.addf %302, %303 : vector<2x128xf32>
    %305 = arith.mulf %298, %248 : vector<2x128xf32>
    %306 = arith.mulf %293, %299 : vector<2x128xf32>
    %307 = arith.addf %305, %306 : vector<2x128xf32>
    %308 = math.tanh %307 : vector<2x128xf32>
    %309 = arith.mulf %304, %308 : vector<2x128xf32>
    %310 = arith.truncf %309 : vector<2x128xf32> to vector<2x128xbf16>
    %c0_141 = arith.constant 0 : index
    %c0_142 = arith.constant 0 : index
    %311 = vector.load %arg6[%c0_141, %c0_142] : memref<128x512xbf16, #tpu.memory_space<vmem>>, vector<128x512xbf16>
    %cst_143 = arith.constant dense<0.000000e+00> : vector<2x512xf32>
    %312 = tpu.matmul %282, %311, %cst_143 {dimension_numbers = #tpu.dot_dimension_numbers<[1], [0], [0], [1], [0, 0, 1, 1], [], []>} : vector<2x128xbf16>, vector<128x512xbf16>, vector<2x512xf32> -> vector<2x512xf32>
    %c0_144 = arith.constant 0 : index
    %c0_145 = arith.constant 0 : index
    %313 = vector.load %arg7[%c0_144, %c0_145] : memref<1x512xf32, #tpu.memory_space<vmem>>, vector<1x512xf32>
    %314 = vector.broadcast %313 : vector<1x512xf32> to vector<2x512xf32>
    %315 = arith.addf %312, %314 : vector<2x512xf32>
    %c0_146 = arith.constant 0 : index
    %c0_147 = arith.constant 0 : index
    %316 = vector.load %arg5[%c0_146, %c0_147] : memref<128x512xbf16, #tpu.memory_space<vmem>>, vector<128x512xbf16>
    %cst_148 = arith.constant dense<0.000000e+00> : vector<2x512xf32>
    %317 = tpu.matmul %251, %316, %cst_148 {dimension_numbers = #tpu.dot_dimension_numbers<[1], [0], [0], [1], [0, 0, 1, 1], [], []>} : vector<2x128xbf16>, vector<128x512xbf16>, vector<2x512xf32> -> vector<2x512xf32>
    %318 = arith.addf %315, %317 : vector<2x512xf32>
    %319 = math.tanh %318 : vector<2x512xf32>
    %320 = vector.extract_strided_slice %319 {offsets = [0, 0], sizes = [2, 128], strides = [1, 1]} : vector<2x512xf32> to vector<2x128xf32>
    %cst_149 = arith.constant 5.000000e-01 : f32
    %321 = vector.broadcast %cst_149 : f32 to vector<2x128xf32>
    %322 = arith.mulf %320, %321 : vector<2x128xf32>
    %cst_150 = arith.constant 5.000000e-01 : f32
    %323 = vector.broadcast %cst_150 : f32 to vector<2x128xf32>
    %324 = arith.addf %322, %323 : vector<2x128xf32>
    %325 = vector.extract_strided_slice %319 {offsets = [0, 128], sizes = [2, 128], strides = [1, 1]} : vector<2x512xf32> to vector<2x128xf32>
    %cst_151 = arith.constant 5.000000e-01 : f32
    %326 = vector.broadcast %cst_151 : f32 to vector<2x128xf32>
    %327 = arith.mulf %325, %326 : vector<2x128xf32>
    %cst_152 = arith.constant 5.000000e-01 : f32
    %328 = vector.broadcast %cst_152 : f32 to vector<2x128xf32>
    %329 = arith.addf %327, %328 : vector<2x128xf32>
    %330 = vector.extract_strided_slice %319 {offsets = [0, 256], sizes = [2, 128], strides = [1, 1]} : vector<2x512xf32> to vector<2x128xf32>
    %331 = vector.extract_strided_slice %319 {offsets = [0, 384], sizes = [2, 128], strides = [1, 1]} : vector<2x512xf32> to vector<2x128xf32>
    %cst_153 = arith.constant 5.000000e-01 : f32
    %332 = vector.broadcast %cst_153 : f32 to vector<2x128xf32>
    %333 = arith.mulf %331, %332 : vector<2x128xf32>
    %cst_154 = arith.constant 5.000000e-01 : f32
    %334 = vector.broadcast %cst_154 : f32 to vector<2x128xf32>
    %335 = arith.addf %333, %334 : vector<2x128xf32>
    %336 = arith.mulf %329, %279 : vector<2x128xf32>
    %337 = arith.mulf %324, %330 : vector<2x128xf32>
    %338 = arith.addf %336, %337 : vector<2x128xf32>
    %339 = math.tanh %338 : vector<2x128xf32>
    %340 = arith.mulf %335, %339 : vector<2x128xf32>
    %341 = arith.truncf %340 : vector<2x128xf32> to vector<2x128xbf16>
    %c8_155 = arith.constant 8 : index
    %c0_156 = arith.constant 0 : index
    %342 = vector.load %arg12[%c8_155, %c0_156] : memref<16x128xbf16, #tpu.memory_space<vmem>>, vector<2x128xbf16>
    tpu.vector_store %arg12[%c8_155, %c0_156], %341 {strides = array<i32>} : memref<16x128xbf16, #tpu.memory_space<vmem>>, vector<2x128xbf16>,
    %c0_157 = arith.constant 0 : index
    %c0_158 = arith.constant 0 : index
    %343 = vector.load %arg3[%c0_157, %c0_158] : memref<128x512xbf16, #tpu.memory_space<vmem>>, vector<128x512xbf16>
    %cst_159 = arith.constant dense<0.000000e+00> : vector<2x512xf32>
    %344 = tpu.matmul %310, %343, %cst_159 {dimension_numbers = #tpu.dot_dimension_numbers<[1], [0], [0], [1], [0, 0, 1, 1], [], []>} : vector<2x128xbf16>, vector<128x512xbf16>, vector<2x512xf32> -> vector<2x512xf32>
    %c12 = arith.constant 12 : index
    %c0_160 = arith.constant 0 : index
    %345 = vector.load %arg11[%c12, %c0_160] : memref<16x512xf32, #tpu.memory_space<vmem>>, vector<2x512xf32>
    %346 = arith.addf %345, %344 : vector<2x512xf32>
    %347 = math.tanh %346 : vector<2x512xf32>
    %348 = vector.extract_strided_slice %347 {offsets = [0, 0], sizes = [2, 128], strides = [1, 1]} : vector<2x512xf32> to vector<2x128xf32>
    %cst_161 = arith.constant 5.000000e-01 : f32
    %349 = vector.broadcast %cst_161 : f32 to vector<2x128xf32>
    %350 = arith.mulf %348, %349 : vector<2x128xf32>
    %cst_162 = arith.constant 5.000000e-01 : f32
    %351 = vector.broadcast %cst_162 : f32 to vector<2x128xf32>
    %352 = arith.addf %350, %351 : vector<2x128xf32>
    %353 = vector.extract_strided_slice %347 {offsets = [0, 128], sizes = [2, 128], strides = [1, 1]} : vector<2x512xf32> to vector<2x128xf32>
    %cst_163 = arith.constant 5.000000e-01 : f32
    %354 = vector.broadcast %cst_163 : f32 to vector<2x128xf32>
    %355 = arith.mulf %353, %354 : vector<2x128xf32>
    %cst_164 = arith.constant 5.000000e-01 : f32
    %356 = vector.broadcast %cst_164 : f32 to vector<2x128xf32>
    %357 = arith.addf %355, %356 : vector<2x128xf32>
    %358 = vector.extract_strided_slice %347 {offsets = [0, 256], sizes = [2, 128], strides = [1, 1]} : vector<2x512xf32> to vector<2x128xf32>
    %359 = vector.extract_strided_slice %347 {offsets = [0, 384], sizes = [2, 128], strides = [1, 1]} : vector<2x512xf32> to vector<2x128xf32>
    %cst_165 = arith.constant 5.000000e-01 : f32
    %360 = vector.broadcast %cst_165 : f32 to vector<2x128xf32>
    %361 = arith.mulf %359, %360 : vector<2x128xf32>
    %cst_166 = arith.constant 5.000000e-01 : f32
    %362 = vector.broadcast %cst_166 : f32 to vector<2x128xf32>
    %363 = arith.addf %361, %362 : vector<2x128xf32>
    %364 = arith.mulf %357, %307 : vector<2x128xf32>
    %365 = arith.mulf %352, %358 : vector<2x128xf32>
    %366 = arith.addf %364, %365 : vector<2x128xf32>
    %367 = math.tanh %366 : vector<2x128xf32>
    %368 = arith.mulf %363, %367 : vector<2x128xf32>
    %369 = arith.truncf %368 : vector<2x128xf32> to vector<2x128xbf16>
    %c0_167 = arith.constant 0 : index
    %c0_168 = arith.constant 0 : index
    %370 = vector.load %arg6[%c0_167, %c0_168] : memref<128x512xbf16, #tpu.memory_space<vmem>>, vector<128x512xbf16>
    %cst_169 = arith.constant dense<0.000000e+00> : vector<2x512xf32>
    %371 = tpu.matmul %341, %370, %cst_169 {dimension_numbers = #tpu.dot_dimension_numbers<[1], [0], [0], [1], [0, 0, 1, 1], [], []>} : vector<2x128xbf16>, vector<128x512xbf16>, vector<2x512xf32> -> vector<2x512xf32>
    %c0_170 = arith.constant 0 : index
    %c0_171 = arith.constant 0 : index
    %372 = vector.load %arg7[%c0_170, %c0_171] : memref<1x512xf32, #tpu.memory_space<vmem>>, vector<1x512xf32>
    %373 = vector.broadcast %372 : vector<1x512xf32> to vector<2x512xf32>
    %374 = arith.addf %371, %373 : vector<2x512xf32>
    %c0_172 = arith.constant 0 : index
    %c0_173 = arith.constant 0 : index
    %375 = vector.load %arg5[%c0_172, %c0_173] : memref<128x512xbf16, #tpu.memory_space<vmem>>, vector<128x512xbf16>
    %cst_174 = arith.constant dense<0.000000e+00> : vector<2x512xf32>
    %376 = tpu.matmul %310, %375, %cst_174 {dimension_numbers = #tpu.dot_dimension_numbers<[1], [0], [0], [1], [0, 0, 1, 1], [], []>} : vector<2x128xbf16>, vector<128x512xbf16>, vector<2x512xf32> -> vector<2x512xf32>
    %377 = arith.addf %374, %376 : vector<2x512xf32>
    %378 = math.tanh %377 : vector<2x512xf32>
    %379 = vector.extract_strided_slice %378 {offsets = [0, 0], sizes = [2, 128], strides = [1, 1]} : vector<2x512xf32> to vector<2x128xf32>
    %cst_175 = arith.constant 5.000000e-01 : f32
    %380 = vector.broadcast %cst_175 : f32 to vector<2x128xf32>
    %381 = arith.mulf %379, %380 : vector<2x128xf32>
    %cst_176 = arith.constant 5.000000e-01 : f32
    %382 = vector.broadcast %cst_176 : f32 to vector<2x128xf32>
    %383 = arith.addf %381, %382 : vector<2x128xf32>
    %384 = vector.extract_strided_slice %378 {offsets = [0, 128], sizes = [2, 128], strides = [1, 1]} : vector<2x512xf32> to vector<2x128xf32>
    %cst_177 = arith.constant 5.000000e-01 : f32
    %385 = vector.broadcast %cst_177 : f32 to vector<2x128xf32>
    %386 = arith.mulf %384, %385 : vector<2x128xf32>
    %cst_178 = arith.constant 5.000000e-01 : f32
    %387 = vector.broadcast %cst_178 : f32 to vector<2x128xf32>
    %388 = arith.addf %386, %387 : vector<2x128xf32>
    %389 = vector.extract_strided_slice %378 {offsets = [0, 256], sizes = [2, 128], strides = [1, 1]} : vector<2x512xf32> to vector<2x128xf32>
    %390 = vector.extract_strided_slice %378 {offsets = [0, 384], sizes = [2, 128], strides = [1, 1]} : vector<2x512xf32> to vector<2x128xf32>
    %cst_179 = arith.constant 5.000000e-01 : f32
    %391 = vector.broadcast %cst_179 : f32 to vector<2x128xf32>
    %392 = arith.mulf %390, %391 : vector<2x128xf32>
    %cst_180 = arith.constant 5.000000e-01 : f32
    %393 = vector.broadcast %cst_180 : f32 to vector<2x128xf32>
    %394 = arith.addf %392, %393 : vector<2x128xf32>
    %395 = arith.mulf %388, %338 : vector<2x128xf32>
    %396 = arith.mulf %383, %389 : vector<2x128xf32>
    %397 = arith.addf %395, %396 : vector<2x128xf32>
    %398 = math.tanh %397 : vector<2x128xf32>
    %399 = arith.mulf %394, %398 : vector<2x128xf32>
    %400 = arith.truncf %399 : vector<2x128xf32> to vector<2x128xbf16>
    %c10_181 = arith.constant 10 : index
    %c0_182 = arith.constant 0 : index
    %401 = vector.load %arg12[%c10_181, %c0_182] : memref<16x128xbf16, #tpu.memory_space<vmem>>, vector<2x128xbf16>
    tpu.vector_store %arg12[%c10_181, %c0_182], %400 {strides = array<i32>} : memref<16x128xbf16, #tpu.memory_space<vmem>>, vector<2x128xbf16>,
    %c0_183 = arith.constant 0 : index
    %c0_184 = arith.constant 0 : index
    %402 = vector.load %arg3[%c0_183, %c0_184] : memref<128x512xbf16, #tpu.memory_space<vmem>>, vector<128x512xbf16>
    %cst_185 = arith.constant dense<0.000000e+00> : vector<2x512xf32>
    %403 = tpu.matmul %369, %402, %cst_185 {dimension_numbers = #tpu.dot_dimension_numbers<[1], [0], [0], [1], [0, 0, 1, 1], [], []>} : vector<2x128xbf16>, vector<128x512xbf16>, vector<2x512xf32> -> vector<2x512xf32>
    %c14 = arith.constant 14 : index
    %c0_186 = arith.constant 0 : index
    %404 = vector.load %arg11[%c14, %c0_186] : memref<16x512xf32, #tpu.memory_space<vmem>>, vector<2x512xf32>
    %405 = arith.addf %404, %403 : vector<2x512xf32>
    %406 = math.tanh %405 : vector<2x512xf32>
    %407 = vector.extract_strided_slice %406 {offsets = [0, 0], sizes = [2, 128], strides = [1, 1]} : vector<2x512xf32> to vector<2x128xf32>
    %cst_187 = arith.constant 5.000000e-01 : f32
    %408 = vector.broadcast %cst_187 : f32 to vector<2x128xf32>
    %409 = arith.mulf %407, %408 : vector<2x128xf32>
    %cst_188 = arith.constant 5.000000e-01 : f32
    %410 = vector.broadcast %cst_188 : f32 to vector<2x128xf32>
    %411 = arith.addf %409, %410 : vector<2x128xf32>
    %412 = vector.extract_strided_slice %406 {offsets = [0, 128], sizes = [2, 128], strides = [1, 1]} : vector<2x512xf32> to vector<2x128xf32>
    %cst_189 = arith.constant 5.000000e-01 : f32
    %413 = vector.broadcast %cst_189 : f32 to vector<2x128xf32>
    %414 = arith.mulf %412, %413 : vector<2x128xf32>
    %cst_190 = arith.constant 5.000000e-01 : f32
    %415 = vector.broadcast %cst_190 : f32 to vector<2x128xf32>
    %416 = arith.addf %414, %415 : vector<2x128xf32>
    %417 = vector.extract_strided_slice %406 {offsets = [0, 256], sizes = [2, 128], strides = [1, 1]} : vector<2x512xf32> to vector<2x128xf32>
    %418 = vector.extract_strided_slice %406 {offsets = [0, 384], sizes = [2, 128], strides = [1, 1]} : vector<2x512xf32> to vector<2x128xf32>
    %cst_191 = arith.constant 5.000000e-01 : f32
    %419 = vector.broadcast %cst_191 : f32 to vector<2x128xf32>
    %420 = arith.mulf %418, %419 : vector<2x128xf32>
    %cst_192 = arith.constant 5.000000e-01 : f32
    %421 = vector.broadcast %cst_192 : f32 to vector<2x128xf32>
    %422 = arith.addf %420, %421 : vector<2x128xf32>
    %423 = arith.mulf %416, %366 : vector<2x128xf32>
    %424 = arith.mulf %411, %417 : vector<2x128xf32>
    %425 = arith.addf %423, %424 : vector<2x128xf32>
    %426 = math.tanh %425 : vector<2x128xf32>
    %427 = arith.mulf %422, %426 : vector<2x128xf32>
    %428 = arith.truncf %427 : vector<2x128xf32> to vector<2x128xbf16>
    %c0_193 = arith.constant 0 : index
    %c0_194 = arith.constant 0 : index
    %429 = vector.load %arg6[%c0_193, %c0_194] : memref<128x512xbf16, #tpu.memory_space<vmem>>, vector<128x512xbf16>
    %cst_195 = arith.constant dense<0.000000e+00> : vector<2x512xf32>
    %430 = tpu.matmul %400, %429, %cst_195 {dimension_numbers = #tpu.dot_dimension_numbers<[1], [0], [0], [1], [0, 0, 1, 1], [], []>} : vector<2x128xbf16>, vector<128x512xbf16>, vector<2x512xf32> -> vector<2x512xf32>
    %c0_196 = arith.constant 0 : index
    %c0_197 = arith.constant 0 : index
    %431 = vector.load %arg7[%c0_196, %c0_197] : memref<1x512xf32, #tpu.memory_space<vmem>>, vector<1x512xf32>
    %432 = vector.broadcast %431 : vector<1x512xf32> to vector<2x512xf32>
    %433 = arith.addf %430, %432 : vector<2x512xf32>
    %c0_198 = arith.constant 0 : index
    %c0_199 = arith.constant 0 : index
    %434 = vector.load %arg5[%c0_198, %c0_199] : memref<128x512xbf16, #tpu.memory_space<vmem>>, vector<128x512xbf16>
    %cst_200 = arith.constant dense<0.000000e+00> : vector<2x512xf32>
    %435 = tpu.matmul %369, %434, %cst_200 {dimension_numbers = #tpu.dot_dimension_numbers<[1], [0], [0], [1], [0, 0, 1, 1], [], []>} : vector<2x128xbf16>, vector<128x512xbf16>, vector<2x512xf32> -> vector<2x512xf32>
    %436 = arith.addf %433, %435 : vector<2x512xf32>
    %437 = math.tanh %436 : vector<2x512xf32>
    %438 = vector.extract_strided_slice %437 {offsets = [0, 0], sizes = [2, 128], strides = [1, 1]} : vector<2x512xf32> to vector<2x128xf32>
    %cst_201 = arith.constant 5.000000e-01 : f32
    %439 = vector.broadcast %cst_201 : f32 to vector<2x128xf32>
    %440 = arith.mulf %438, %439 : vector<2x128xf32>
    %cst_202 = arith.constant 5.000000e-01 : f32
    %441 = vector.broadcast %cst_202 : f32 to vector<2x128xf32>
    %442 = arith.addf %440, %441 : vector<2x128xf32>
    %443 = vector.extract_strided_slice %437 {offsets = [0, 128], sizes = [2, 128], strides = [1, 1]} : vector<2x512xf32> to vector<2x128xf32>
    %cst_203 = arith.constant 5.000000e-01 : f32
    %444 = vector.broadcast %cst_203 : f32 to vector<2x128xf32>
    %445 = arith.mulf %443, %444 : vector<2x128xf32>
    %cst_204 = arith.constant 5.000000e-01 : f32
    %446 = vector.broadcast %cst_204 : f32 to vector<2x128xf32>
    %447 = arith.addf %445, %446 : vector<2x128xf32>
    %448 = vector.extract_strided_slice %437 {offsets = [0, 256], sizes = [2, 128], strides = [1, 1]} : vector<2x512xf32> to vector<2x128xf32>
    %449 = vector.extract_strided_slice %437 {offsets = [0, 384], sizes = [2, 128], strides = [1, 1]} : vector<2x512xf32> to vector<2x128xf32>
    %cst_205 = arith.constant 5.000000e-01 : f32
    %450 = vector.broadcast %cst_205 : f32 to vector<2x128xf32>
    %451 = arith.mulf %449, %450 : vector<2x128xf32>
    %cst_206 = arith.constant 5.000000e-01 : f32
    %452 = vector.broadcast %cst_206 : f32 to vector<2x128xf32>
    %453 = arith.addf %451, %452 : vector<2x128xf32>
    %454 = arith.mulf %447, %397 : vector<2x128xf32>
    %455 = arith.mulf %442, %448 : vector<2x128xf32>
    %456 = arith.addf %454, %455 : vector<2x128xf32>
    %457 = math.tanh %456 : vector<2x128xf32>
    %458 = arith.mulf %453, %457 : vector<2x128xf32>
    %459 = arith.truncf %458 : vector<2x128xf32> to vector<2x128xbf16>
    %c12_207 = arith.constant 12 : index
    %c0_208 = arith.constant 0 : index
    %460 = vector.load %arg12[%c12_207, %c0_208] : memref<16x128xbf16, #tpu.memory_space<vmem>>, vector<2x128xbf16>
    tpu.vector_store %arg12[%c12_207, %c0_208], %459 {strides = array<i32>} : memref<16x128xbf16, #tpu.memory_space<vmem>>, vector<2x128xbf16>,
    %c0_209 = arith.constant 0 : index
    %c0_210 = arith.constant 0 : index
    %461 = vector.load %arg6[%c0_209, %c0_210] : memref<128x512xbf16, #tpu.memory_space<vmem>>, vector<128x512xbf16>
    %cst_211 = arith.constant dense<0.000000e+00> : vector<2x512xf32>
    %462 = tpu.matmul %459, %461, %cst_211 {dimension_numbers = #tpu.dot_dimension_numbers<[1], [0], [0], [1], [0, 0, 1, 1], [], []>} : vector<2x128xbf16>, vector<128x512xbf16>, vector<2x512xf32> -> vector<2x512xf32>
    %c0_212 = arith.constant 0 : index
    %c0_213 = arith.constant 0 : index
    %463 = vector.load %arg7[%c0_212, %c0_213] : memref<1x512xf32, #tpu.memory_space<vmem>>, vector<1x512xf32>
    %464 = vector.broadcast %463 : vector<1x512xf32> to vector<2x512xf32>
    %465 = arith.addf %462, %464 : vector<2x512xf32>
    %c0_214 = arith.constant 0 : index
    %c0_215 = arith.constant 0 : index
    %466 = vector.load %arg5[%c0_214, %c0_215] : memref<128x512xbf16, #tpu.memory_space<vmem>>, vector<128x512xbf16>
    %cst_216 = arith.constant dense<0.000000e+00> : vector<2x512xf32>
    %467 = tpu.matmul %428, %466, %cst_216 {dimension_numbers = #tpu.dot_dimension_numbers<[1], [0], [0], [1], [0, 0, 1, 1], [], []>} : vector<2x128xbf16>, vector<128x512xbf16>, vector<2x512xf32> -> vector<2x512xf32>
    %468 = arith.addf %465, %467 : vector<2x512xf32>
    %469 = math.tanh %468 : vector<2x512xf32>
    %470 = vector.extract_strided_slice %469 {offsets = [0, 0], sizes = [2, 128], strides = [1, 1]} : vector<2x512xf32> to vector<2x128xf32>
    %cst_217 = arith.constant 5.000000e-01 : f32
    %471 = vector.broadcast %cst_217 : f32 to vector<2x128xf32>
    %472 = arith.mulf %470, %471 : vector<2x128xf32>
    %cst_218 = arith.constant 5.000000e-01 : f32
    %473 = vector.broadcast %cst_218 : f32 to vector<2x128xf32>
    %474 = arith.addf %472, %473 : vector<2x128xf32>
    %475 = vector.extract_strided_slice %469 {offsets = [0, 128], sizes = [2, 128], strides = [1, 1]} : vector<2x512xf32> to vector<2x128xf32>
    %cst_219 = arith.constant 5.000000e-01 : f32
    %476 = vector.broadcast %cst_219 : f32 to vector<2x128xf32>
    %477 = arith.mulf %475, %476 : vector<2x128xf32>
    %cst_220 = arith.constant 5.000000e-01 : f32
    %478 = vector.broadcast %cst_220 : f32 to vector<2x128xf32>
    %479 = arith.addf %477, %478 : vector<2x128xf32>
    %480 = vector.extract_strided_slice %469 {offsets = [0, 256], sizes = [2, 128], strides = [1, 1]} : vector<2x512xf32> to vector<2x128xf32>
    %481 = vector.extract_strided_slice %469 {offsets = [0, 384], sizes = [2, 128], strides = [1, 1]} : vector<2x512xf32> to vector<2x128xf32>
    %cst_221 = arith.constant 5.000000e-01 : f32
    %482 = vector.broadcast %cst_221 : f32 to vector<2x128xf32>
    %483 = arith.mulf %481, %482 : vector<2x128xf32>
    %cst_222 = arith.constant 5.000000e-01 : f32
    %484 = vector.broadcast %cst_222 : f32 to vector<2x128xf32>
    %485 = arith.addf %483, %484 : vector<2x128xf32>
    %486 = arith.mulf %479, %456 : vector<2x128xf32>
    %487 = arith.mulf %474, %480 : vector<2x128xf32>
    %488 = arith.addf %486, %487 : vector<2x128xf32>
    %489 = math.tanh %488 : vector<2x128xf32>
    %490 = arith.mulf %485, %489 : vector<2x128xf32>
    %491 = arith.truncf %490 : vector<2x128xf32> to vector<2x128xbf16>
    %c14_223 = arith.constant 14 : index
    %c0_224 = arith.constant 0 : index
    %492 = vector.load %arg12[%c14_223, %c0_224] : memref<16x128xbf16, #tpu.memory_space<vmem>>, vector<2x128xbf16>
    tpu.vector_store %arg12[%c14_223, %c0_224], %491 {strides = array<i32>} : memref<16x128xbf16, #tpu.memory_space<vmem>>, vector<2x128xbf16>,
    %c0_225 = arith.constant 0 : index
    %c0_226 = arith.constant 0 : index
    %493 = vector.load %arg12[%c0_225, %c0_226] : memref<16x128xbf16, #tpu.memory_space<vmem>>, vector<16x128xbf16>
    %c0_227 = arith.constant 0 : index
    %c0_228 = arith.constant 0 : index
    %494 = vector.load %arg8[%c0_227, %c0_228] : memref<128x256xbf16, #tpu.memory_space<vmem>>, vector<128x256xbf16>
    %cst_229 = arith.constant dense<0.000000e+00> : vector<16x256xf32>
    %495 = tpu.matmul %493, %494, %cst_229 {dimension_numbers = #tpu.dot_dimension_numbers<[1], [0], [0], [1], [0, 0, 1, 1], [], []>} : vector<16x128xbf16>, vector<128x256xbf16>, vector<16x256xf32> -> vector<16x256xf32>
    %c0_230 = arith.constant 0 : index
    %c0_231 = arith.constant 0 : index
    %496 = vector.load %arg9[%c0_230, %c0_231] : memref<1x256xf32, #tpu.memory_space<vmem>>, vector<1x256xf32>
    %497 = vector.broadcast %496 : vector<1x256xf32> to vector<16x256xf32>
    %498 = arith.addf %495, %497 : vector<16x256xf32>
    %cst_232 = arith.constant dense<0xFF800000> : vector<16xf32>
    %499 = vector.multi_reduction <maximumf>, %498, %cst_232 [1] : vector<16x256xf32> to vector<16xf32>
    %500 = vector.shape_cast %499 : vector<16xf32> to vector<16x1xf32>
    %501 = vector.broadcast %500 : vector<16x1xf32> to vector<16x256xf32>
    %502 = arith.subf %498, %501 : vector<16x256xf32>
    %503 = math.exp %502 : vector<16x256xf32>
    %cst_233 = arith.constant dense<0.000000e+00> : vector<16xf32>
    %504 = vector.multi_reduction <add>, %503, %cst_233 [1] : vector<16x256xf32> to vector<16xf32>
    %505 = vector.shape_cast %504 : vector<16xf32> to vector<16x1xf32>
    %506 = vector.broadcast %505 : vector<16x1xf32> to vector<16x256xf32>
    %507 = arith.divf %503, %506 : vector<16x256xf32>
    %c0_234 = arith.constant 0 : index
    %c0_235 = arith.constant 0 : index
    %508 = vector.load %arg10[%c0_234, %c0_235] : memref<16x256xf32, #tpu.memory_space<vmem>>, vector<16x256xf32>
    tpu.vector_store %arg10[%c0_234, %c0_235], %507 {strides = array<i32>} : memref<16x256xf32, #tpu.memory_space<vmem>>, vector<16x256xf32>,
    return
  }
}

</mosaic_0001>

<bundles_post_ra>
// kernel: lstm_with_embedding_forward.1
= control target key start
LH: loop header
LB: loop body
LE: loop exit
PB: predicated region body
PF: predicated region fallthrough
CT: control target
= control target key end

     0   :  { %15 = vsyncpa [#allocation5], 0  ;;  %s11967_s0 = inlined_call_operand.vmem [shape: s32[16,1], index: 0, kind: input, shape index: {}]   ;;  %s11968_s1 = inlined_call_operand.hbm [shape: bf16[256,128], index: 1, kind: input, shape index: {}]   ;;  %s11969_s2 = inlined_call_operand.hbm [shape: bf16[128,512], index: 2, kind: input, shape index: {}]   ;;  %s11970_s3 = inlined_call_operand.hbm [shape: bf16[128,512], index: 3, kind: input, shape index: {}]   ;;  %s11971_s4 = inlined_call_operand.vmem [shape: f32[1,512], index: 4, kind: input, shape index: {}]   ;;  %s11972_s5 = inlined_call_operand.hbm [shape: bf16[128,512], index: 5, kind: input, shape index: {}]   ;;  %s11973_s6 = inlined_call_operand.hbm [shape: bf16[128,512], index: 6, kind: input, shape index: {}]   ;;  %s11974_s7 = inlined_call_operand.vmem [shape: f32[1,512], index: 7, kind: input, shape index: {}]   ;;  %s11975_s8 = inlined_call_operand.hbm [shape: bf16[128,256], index: 8, kind: input, shape index: {}]   ;;  %s11976_s9 = inlined_call_operand.vmem [shape: f32[1,256], index: 9, kind: input, shape index: {}]   ;;  %s11977_s10 = inlined_call_operand.vmem [shape: f32[16,256], index: 10, kind: output, shape index: {}]  }
   0x1   :  { %16 = vsyncpa [#allocation7], 0 }
   0x2   :  { %17 = vsyncpa [#allocation10], 0  ;;  %s38_s15 = sshll.u32 %s11969_s2, 4  ;;  %s39_s15 = int_to_ptr.hbm [resolvable:$true] %s38_s15 }
   0x3   :  { %18 = vsyncpa [#allocation13], 0  ;;  %s11361_s16 = smov [#allocation6]   ;;  %s66_s20 = sshll.u32 %s11972_s5, 4  ;;  %s67_s20 = int_to_ptr.hbm [resolvable:$true] %s66_s20 }
   0x4   :  { %s40_s17 = sshll.u32 %s11361_s16, 4  ;;  %s11362_s21 = smov 256   ;;  %s41_s17 = int_to_ptr.vmem [resolvable:$true] %s40_s17 }
   0x5   :  { %s11363_s22 = smov 16   ;;  %s11364_s23 = smov [#allocation9]  }
   0x6   :  { %46 = dma.hbm_to_vmem [thread:$0]  %s39_s15, 4096, %s41_s17, [#allocation7], %s11362_s21, %s11362_s21, %s11363_s22  }
   0x7   :  { %s68_s24 = sshll.u32 %s11364_s23, 4  ;;  %s25_s26 = sshll.u32 %s11968_s1, 4  ;;  %s69_s24 = int_to_ptr.vmem [resolvable:$true] %s68_s24  ;;  %s26_s26 = int_to_ptr.hbm [resolvable:$true] %s25_s26 }
   0x8   :  { %74 = dma.hbm_to_vmem [thread:$0]  %s67_s20, 4096, %s69_s24, [#allocation10], %s11362_s21, %s11362_s21, %s11363_s22  }
   0x9   :  { %s11365_s5 = smov [#allocation4]   ;;  %s51_s30 = sshll.u32 %s11970_s3, 4  ;;  %s52_s30 = int_to_ptr.hbm [resolvable:$true] %s51_s30 }
   0xa   :  { %s27_s27 = sshll.u32 %s11365_s5, 4  ;;  %s11366_s11 = smov 64   ;;  %s28_s27 = int_to_ptr.vmem [resolvable:$true] %s27_s27 }
   0xb   :  { %s11367_s12 = smov 4   ;;  %s11368_s13 = smov [#allocation8]  }
   0xc   :  { %33 = dma.hbm_to_vmem [thread:$0]  %s26_s26, 2048, %s28_s27, [#allocation5], %s11366_s11, %s11366_s11, %s11367_s12  }
   0xd   :  { %s53_s14 = sshll.u32 %s11368_s13, 4  ;;  %s79_s16 = sshll.u32 %s11973_s6, 4  ;;  %s54_s14 = int_to_ptr.vmem [resolvable:$true] %s53_s14  ;;  %s80_s16 = int_to_ptr.hbm [resolvable:$true] %s79_s16 }
   0xe   :  { %59 = dma.hbm_to_vmem [thread:$0]  %s52_s30, 4096, %s54_s14, [#allocation7], %s11362_s21, %s11362_s21, %s11363_s22  }
   0xf   :  { %s94_s3 = sshll.u32 %s11975_s8, 4  ;;  %s11369_s19 = smov [#allocation11]   ;;  %s95_s3 = int_to_ptr.hbm [resolvable:$true] %s94_s3 }
  0x10   :  { %s81_s20 = sshll.u32 %s11369_s19, 4  ;;  %s11370_s23 = smov [#allocation12]   ;;  %s82_s20 = int_to_ptr.vmem [resolvable:$true] %s81_s20 }
  0x11   :  { %87 = dma.hbm_to_vmem [thread:$0]  %s80_s16, 4096, %s82_s20, [#allocation10], %s11362_s21, %s11362_s21, %s11363_s22  }
  0x12   :  { %s96_s6 = sshll.u32 %s11370_s23, 4  ;;  %s11371_s24 = smov 128   ;;  %s97_s6 = int_to_ptr.vmem [resolvable:$true] %s96_s6 }
  0x13   :  { %s11372_s25 = smov 8  }
  0x14   :  { %102 = dma.hbm_to_vmem [thread:$0]  %s95_s3, 2048, %s97_s6, [#allocation13], %s11371_s24, %s11371_s24, %s11372_s25  }
  0x15   :  { %11353 = dma.done.wait [#allocation5], 2048  }
  0x16   :  { %11354 = vsyncadd [#allocation5], 4294965248 }
  0x17   :  { %11355 = dma.done.wait [#allocation7], 8192  }
  0x18   :  { %11356 = vsyncadd [#allocation7], 4294959104 }
  0x19   :  { %11357 = dma.done.wait [#allocation10], 8192  }
  0x1a   :  { %11358 = vsyncadd [#allocation10], 4294959104 }
  0x1b   :  { %11359 = dma.done.wait [#allocation13], 2048  }
  0x1c   :  { %11360 = vsyncadd [#allocation13], 4294965248  ;;  %v11373_v0 = vmov 0   ;;  %v130_v1 = vld [vmem:[%s11967_s0] sm:$0xff]  ;;  %v10227_v4 = vld [vmem:[#allocation4 + $0x30] sm:$0xff] }
  0x1d   :  { %11036 = vset.pattern.permute.xlu0 %v11373_v0  ;;  %v10228_v2 = vld [vmem:[#allocation4 + $0x38] sm:$0xff]  ;;  %v10235_v5 = vld [vmem:[#allocation4 + $0x70] sm:$0xff]  ;;  %v131_v6 = vld [vmem:[%s11967_s0 + $0x8] sm:$0xff] }
  0x1e   :  { %136 = vperm.xlu0 %11036, %v130_v1   ;;  %v10236_v3 = vld [vmem:[#allocation4 + $0x78] sm:$0xff]  ;;  %279 = vmatpush.bf16.msra.mxu0 %v10228_v2  ;;  %v10226_v7 = vld [vmem:[#allocation4 + $0x28] sm:$0xff]  ;;  %v10225_v9 = vld [vmem:[#allocation4 + $0x20] sm:$0xff] }
  0x1f   :  { %293 = vmatpush.bf16.msra.mxu1 %v10236_v3  ;;  %v10234_v8 = vld [vmem:[#allocation4 + $0x68] sm:$0xff]  ;;  %v10233_v10 = vld [vmem:[#allocation4 + $0x60] sm:$0xff]  ;;  %v10224_v11 = vld [vmem:[#allocation4 + $0x18] sm:$0xff] }
  0x20   :  { %v10232_v12 = vld [vmem:[#allocation4 + $0x58] sm:$0xff]  ;;  %v10223_v13 = vld [vmem:[#allocation4 + $0x10] sm:$0xff]  ;;  %v10222_v15 = vld [vmem:[#allocation4 + $0x8] sm:$0xff] }
  0x21   :  { %v10231_v14 = vld [vmem:[#allocation4 + $0x50] sm:$0xff]  ;;  %v10230_v16 = vld [vmem:[#allocation4 + $0x48] sm:$0xff]  ;;  %v10221_v17 = vld [vmem:[#allocation4] sm:$0xff] }
  0x22   :  { %280 = vmatpush.bf16.msra.mxu0 %v10227_v4  ;;  %v10229_v18 = vld [vmem:[#allocation4 + $0x40] sm:$0xff]  ;;  %v10267_v20 = vld [vmem:[#allocation6 + $0xec] sm:$0xf0]  ;;  %v7197_v23 = vld [vmem:[#allocation6 + $0xf0] sm:$0xf0] }
  0x23   :  { %294 = vmatpush.bf16.msra.mxu1 %v10235_v5  ;;  %v7195_v19 = vld [vmem:[#allocation6 + $0xe0] sm:$0xf]  ;;  %v10265_v21 = vld [vmem:[#allocation6 + $0xe4] sm:$0xf]  ;;  %v7203_v24 = vld [vmem:[#allocation6 + $0xe8] sm:$0xf] }
  0x24   :  { %v7196_v22 = vor.u32 %v10267_v20, %v7195_v19  ;;  %v10268_v25 = vld [vmem:[#allocation6 + $0xf4] sm:$0xf0]  ;;  %v7200_v26 = vor.u32 %v10265_v21, %v7197_v23  ;;  %v10266_v28 = vld [vmem:[#allocation6 + $0xec] sm:$0xf]  ;;  %v7205_v29 = vld [vmem:[#allocation6 + $0xf8] sm:$0xf0] }
  0x25   :  { %v7204_v27 = vor.u32 %v10268_v25, %v7203_v24  ;;  %v7179_v30 = vld [vmem:[#allocation6 + $0xc0] sm:$0xf]  ;;  %v7208_v31 = vor.u32 %v10266_v28, %v7205_v29  ;;  %v10263_v32 = vld [vmem:[#allocation6 + $0xcc] sm:$0xf0]  ;;  %v10261_v33 = vld [vmem:[#allocation6 + $0xc4] sm:$0xf] }
  0x26   :  { %139 = vperm.xlu0 %11036, %v131_v6   ;;  %281 = vmatpush.bf16.msra.mxu0 %v10226_v7  ;;  %v7181_v34 = vld [vmem:[#allocation6 + $0xd0] sm:$0xf0]  ;;  %v7180_v35 = vor.u32 %v10263_v32, %v7179_v30  ;;  %v7187_v37 = vld [vmem:[#allocation6 + $0xc8] sm:$0xf]  ;;  %v10264_v38 = vld [vmem:[#allocation6 + $0xd4] sm:$0xf0] }
  0x27   :  { %295 = vmatpush.bf16.msra.mxu1 %v10234_v8  ;;  %510 = vmatpush.bf16.msra.mxu2 %v7196_v22  ;;  %v7184_v36 = vor.u32 %v10261_v33, %v7181_v34  ;;  %v10262_v39 = vld [vmem:[#allocation6 + $0xcc] sm:$0xf]  ;;  %v7188_v40 = vor.u32 %v10264_v38, %v7187_v37  ;;  %v7189_v41 = vld [vmem:[#allocation6 + $0xd8] sm:$0xf0]  ;;  %v7163_v42 = vld [vmem:[#allocation6 + $0xa0] sm:$0xf] }
  0x28   :  { %524 = vmatpush.bf16.msra.mxu3 %v7200_v26  ;;  %v10259_v43 = vld [vmem:[#allocation6 + $0xac] sm:$0xf0]  ;;  %v7192_v44 = vor.u32 %v10262_v39, %v7189_v41  ;;  %v10257_v45 = vld [vmem:[#allocation6 + $0xa4] sm:$0xf]  ;;  %v7165_v46 = vld [vmem:[#allocation6 + $0xb0] sm:$0xf0] }
  0x29   :  { %v7171_v47 = vld [vmem:[#allocation6 + $0xa8] sm:$0xf]  ;;  %v7164_v48 = vor.u32 %v10259_v43, %v7163_v42  ;;  %v10260_v49 = vld [vmem:[#allocation6 + $0xb4] sm:$0xf0]  ;;  %v10258_v50 = vld [vmem:[#allocation6 + $0xac] sm:$0xf]  ;;  %v7168_v52 = vor.u32 %v10257_v45, %v7165_v46 }
  0x2a   :  { %282 = vmatpush.bf16.msra.mxu0 %v10225_v9  ;;  %v7173_v51 = vld [vmem:[#allocation6 + $0xb8] sm:$0xf0]  ;;  %v7172_v53 = vor.u32 %v10260_v49, %v7171_v47  ;;  %v7147_v54 = vld [vmem:[#allocation6 + $0x80] sm:$0xf]  ;;  %v10255_v55 = vld [vmem:[#allocation6 + $0x8c] sm:$0xf0] }
  0x2b   :  { %296 = vmatpush.bf16.msra.mxu1 %v10233_v10  ;;  %511 = vmatpush.bf16.msra.mxu2 %v7180_v35  ;;  %v10253_v56 = vld [vmem:[#allocation6 + $0x84] sm:$0xf]  ;;  %v7176_v57 = vor.u32 %v10258_v50, %v7173_v51  ;;  %v7149_v58 = vld [vmem:[#allocation6 + $0x90] sm:$0xf0]  ;;  %v7155_v59 = vld [vmem:[#allocation6 + $0x88] sm:$0xf]  ;;  %v7148_v63 = vor.u32 %v10255_v55, %v7147_v54 }
  0x2c   :  { %525 = vmatpush.bf16.msra.mxu3 %v7184_v36  ;;  %v10256_v60 = vld [vmem:[#allocation6 + $0x94] sm:$0xf0]  ;;  %v10254_v61 = vld [vmem:[#allocation6 + $0x8c] sm:$0xf]  ;;  %v7157_v62 = vld [vmem:[#allocation6 + $0x98] sm:$0xf0]  ;;  %v7152_v1 = vor.u32 %v10253_v56, %v7149_v58 }
  0x2d   :  { %v7156_v2 = vor.u32 %v10256_v60, %v7155_v59  ;;  %v7131_v3 = vld [vmem:[#allocation6 + $0x60] sm:$0xf]  ;;  %v10251_v4 = vld [vmem:[#allocation6 + $0x6c] sm:$0xf0]  ;;  %v10249_v5 = vld [vmem:[#allocation6 + $0x64] sm:$0xf]  ;;  %v7160_v6 = vor.u32 %v10254_v61, %v7157_v62 }
  0x2e   :  { %283 = vmatpush.bf16.msra.mxu0 %v10224_v11  ;;  %v7133_v7 = vld [vmem:[#allocation6 + $0x70] sm:$0xf0]  ;;  %v7139_v8 = vld [vmem:[#allocation6 + $0x68] sm:$0xf]  ;;  %v10252_v9 = vld [vmem:[#allocation6 + $0x74] sm:$0xf0] }
  0x2f   :  { %297 = vmatpush.bf16.msra.mxu1 %v10232_v12  ;;  %512 = vmatpush.bf16.msra.mxu2 %v7164_v48  ;;  %v10250_v10 = vld [vmem:[#allocation6 + $0x6c] sm:$0xf]  ;;  %v7141_v11 = vld [vmem:[#allocation6 + $0x78] sm:$0xf0]  ;;  %v132_v12 = vlaneseq  ;;  %v7117_v20 = vld [vmem:[#allocation6 + $0x50] sm:$0xf0] }
  0x30   :  { %526 = vmatpush.bf16.msra.mxu3 %v7168_v52  ;;  %v7144_v19 = vor.u32 %v10250_v10, %v7141_v11  ;;  %v7123_v21 = vld [vmem:[#allocation6 + $0x48] sm:$0xf]  ;;  %v10248_v22 = vld [vmem:[#allocation6 + $0x54] sm:$0xf0]  ;;  %v10246_v23 = vld [vmem:[#allocation6 + $0x4c] sm:$0xf] }
  0x31   :  { %v7125_v24 = vld [vmem:[#allocation6 + $0x58] sm:$0xf0]  ;;  %v133_v25 = vand.u32 127, %v132_v12  ;;  %v7124_v29 = vor.u32 %v10248_v22, %v7123_v21  ;;  %v7099_v30 = vld [vmem:[#allocation6 + $0x20] sm:$0xf] }
  0x32   :  { %284 = vmatpush.bf16.msra.mxu0 %v10223_v13  ;;  %v7132_v13 = vor.u32 %v10251_v4, %v7131_v3  ;;  %v10241_v32 = vld [vmem:[#allocation6 + $0x24] sm:$0xf]  ;;  %v7128_v33 = vor.u32 %v10246_v23, %v7125_v24  ;;  %v7101_v34 = vld [vmem:[#allocation6 + $0x30] sm:$0xf0]  ;;  %v7107_v35 = vld [vmem:[#allocation6 + $0x28] sm:$0xf] }
  0x33   :  { %298 = vmatpush.bf16.msra.mxu1 %v10231_v14  ;;  %513 = vmatpush.bf16.msra.mxu2 %v7148_v63  ;;  %v7136_v14 = vor.u32 %v10249_v5, %v7133_v7  ;;  %v10244_v36 = vld [vmem:[#allocation6 + $0x34] sm:$0xf0]  ;;  %v10242_v37 = vld [vmem:[#allocation6 + $0x2c] sm:$0xf]  ;;  %v7109_v38 = vld [vmem:[#allocation6 + $0x38] sm:$0xf0]  ;;  %v7104_v42 = vor.u32 %v10241_v32, %v7101_v34 }
  0x34   :  { %527 = vmatpush.bf16.msra.mxu3 %v7152_v1  ;;  %v134_v39 = vadd.s32 128, %v133_v25  ;;  %v7083_v41 = vld [vmem:[#allocation6] sm:$0xf]  ;;  %v7108_v43 = vor.u32 %v10244_v36, %v7107_v35  ;;  %v10237_v45 = vld [vmem:[#allocation6 + $0x4] sm:$0xf]  ;;  %v7112_v47 = vor.u32 %v10242_v37, %v7109_v38 }
  0x35   :  { %v7085_v46 = vld [vmem:[#allocation6 + $0x10] sm:$0xf0]  ;;  %v7091_v48 = vld [vmem:[#allocation6 + $0x8] sm:$0xf]  ;;  %v10240_v49 = vld [vmem:[#allocation6 + $0x14] sm:$0xf0] }
  0x36   :  { %285 = vmatpush.bf16.msra.mxu0 %v10222_v15  ;;  %v7140_v15 = vor.u32 %v10252_v9, %v7139_v8  ;;  %v10238_v50 = vld [vmem:[#allocation6 + $0xc] sm:$0xf]  ;;  %v7093_v51 = vld [vmem:[#allocation6 + $0x18] sm:$0xf0]  ;;  %v7323_v52 = vld [vmem:[#allocation8 + $0xe0] sm:$0xf]  ;;  %v7088_v59 = vor.u32 %v10237_v45, %v7085_v46  ;;  %v7092_v63 = vor.u32 %v10240_v49, %v7091_v48 }
  0x37   :  { %299 = vmatpush.bf16.msra.mxu1 %v10230_v16  ;;  %v7115_v16 = vld [vmem:[#allocation6 + $0x40] sm:$0xf]  ;;  %514 = vmatpush.bf16.msra.mxu2 %v7132_v13  ;;  %v10297_v55 = vld [vmem:[#allocation8 + $0xe4] sm:$0xf]  ;;  %v7325_v56 = vld [vmem:[#allocation8 + $0xf0] sm:$0xf0]  ;;  %v7096_v1 = vor.u32 %v10238_v50, %v7093_v51 }
  0x38   :  { %528 = vmatpush.bf16.msra.mxu3 %v7136_v14  ;;  %v10300_v60 = vld [vmem:[#allocation8 + $0xf4] sm:$0xf0]  ;;  %v10298_v61 = vld [vmem:[#allocation8 + $0xec] sm:$0xf]  ;;  %v7333_v62 = vld [vmem:[#allocation8 + $0xf8] sm:$0xf0]  ;;  %v11469_v3 = vor.u32 %v10297_v55, %v7325_v56 }
  0x39   :  { %v11374_v4 = vmov 1.0|1.0   ;;  %v7307_v7 = vld [vmem:[#allocation8 + $0xc0] sm:$0xf]  ;;  %v10295_v8 = vld [vmem:[#allocation8 + $0xcc] sm:$0xf0] }
  0x3a   :  { %286 = vmatpush.bf16.msra.mxu0 %v10221_v17  ;;  %v10247_v17 = vld [vmem:[#allocation6 + $0x4c] sm:$0xf0]  ;;  %v10293_v9 = vld [vmem:[#allocation8 + $0xc4] sm:$0xf]  ;;  %v11479_v10 = vor.u32 %v10295_v8, %v7307_v7  ;;  %v7309_v11 = vld [vmem:[#allocation8 + $0xd0] sm:$0xf0] }
  0x3b   :  { %300 = vmatpush.bf16.msra.mxu1 %v10229_v18  ;;  %v10245_v18 = vld [vmem:[#allocation6 + $0x44] sm:$0xf]  ;;  %v7116_v26 = vor.u32 %v10247_v17, %v7115_v16  ;;  %v7315_v12 = vld [vmem:[#allocation8 + $0xc8] sm:$0xf]  ;;  %v10296_v13 = vld [vmem:[#allocation8 + $0xd4] sm:$0xf0]  ;;  %v11481_v14 = vor.u32 %v10293_v9, %v7309_v11 }
  0x3c   :  { %v7120_v28 = vor.u32 %v10245_v18, %v7117_v20  ;;  %v10294_v16 = vld [vmem:[#allocation8 + $0xcc] sm:$0xf]  ;;  %v7317_v17 = vld [vmem:[#allocation8 + $0xd8] sm:$0xf0]  ;;  %v7291_v18 = vld [vmem:[#allocation8 + $0xa0] sm:$0xf] }
  0x3d   :  { %515 = vmatpush.bf16.msra.mxu2 %v7116_v26  ;;  %v10291_v20 = vld [vmem:[#allocation8 + $0xac] sm:$0xf0]  ;;  %v10289_v21 = vld [vmem:[#allocation8 + $0xa4] sm:$0xf]  ;;  %v7293_v22 = vld [vmem:[#allocation8 + $0xb0] sm:$0xf0] }
  0x3e   :  { %538 = vmatpush.bf16.msrb.mxu0 %v7204_v27  ;;  %529 = vmatpush.bf16.msra.mxu3 %v7120_v28  ;;  %v11490_v23 = vor.u32 %v10291_v20, %v7291_v18  ;;  %v11492_v24 = vor.u32 %v10289_v21, %v7293_v22  ;;  %v10292_v26 = vld [vmem:[#allocation8 + $0xb4] sm:$0xf0]  ;;  %v10287_v32 = vld [vmem:[#allocation8 + $0x8c] sm:$0xf0]  ;;  %v7277_v35 = vld [vmem:[#allocation8 + $0x90] sm:$0xf0] }
  0x3f   :  { %552 = vmatpush.bf16.msrb.mxu1 %v7208_v31  ;;  %v10243_v31 = vld [vmem:[#allocation6 + $0x2c] sm:$0xf0]  ;;  %v7283_v36 = vld [vmem:[#allocation8 + $0x88] sm:$0xf]  ;;  %v10288_v37 = vld [vmem:[#allocation8 + $0x94] sm:$0xf0] }
  0x40   :  { %v10281_v45 = vld [vmem:[#allocation8 + $0x64] sm:$0xf]  ;;  %v7267_v48 = vld [vmem:[#allocation8 + $0x68] sm:$0xf]  ;;  %v10284_v49 = vld [vmem:[#allocation8 + $0x74] sm:$0xf0] }
  0x41   :  { %v11519_v51 = vor.u32 %v10284_v49, %v7267_v48  ;;  %v10279_v56 = vld [vmem:[#allocation8 + $0x4c] sm:$0xf0]  ;;  %v7227_v7 = vld [vmem:[#allocation8 + $0x20] sm:$0xf]  ;;  %v10273_v11 = vld [vmem:[#allocation8 + $0x24] sm:$0xf] }
  0x42   :  { %539 = vmatpush.bf16.msrb.mxu0 %v7188_v40  ;;  %v7100_v40 = vor.u32 %v10243_v31, %v7099_v30  ;;  %530 = vmatpush.bf16.msra.mxu3 %v7104_v42  ;;  %v7275_v31 = vld [vmem:[#allocation8 + $0x80] sm:$0xf]  ;;  %v10275_v8 = vld [vmem:[#allocation8 + $0x2c] sm:$0xf0]  ;;  %v10274_v18 = vld [vmem:[#allocation8 + $0x2c] sm:$0xf] }
  0x43   :  { %553 = vmatpush.bf16.msrb.mxu1 %v7192_v44  ;;  %v10239_v44 = vld [vmem:[#allocation6 + $0xc] sm:$0xf0]  ;;  %v11503_v34 = vor.u32 %v10287_v32, %v7275_v31  ;;  %v7237_v20 = vld [vmem:[#allocation8 + $0x38] sm:$0xf0]  ;;  %v7213_v31 = vld [vmem:[#allocation8 + $0x10] sm:$0xf0] }
  0x44   :  { %516 = vmatpush.bf16.msra.mxu2 %v7100_v40  ;;  %v7084_v54 = vor.u32 %v10239_v44, %v7083_v41  ;;  %v10286_v40 = vld [vmem:[#allocation8 + $0x8c] sm:$0xf]  ;;  %v7285_v41 = vld [vmem:[#allocation8 + $0x98] sm:$0xf0]  ;;  %v10283_v44 = vld [vmem:[#allocation8 + $0x6c] sm:$0xf0] }
  0x45   :  { %v11510_v42 = vor.u32 %v10286_v40, %v7285_v41  ;;  %v7219_v32 = vld [vmem:[#allocation8 + $0x8] sm:$0xf] }
  0x46   :  { %540 = vmatpush.bf16.msrb.mxu0 %v7172_v53  ;;  %v10299_v53 = vld [vmem:[#allocation8 + $0xec] sm:$0xf0]  ;;  %531 = vmatpush.bf16.msra.mxu3 %v7088_v59 }
  0x47   :  { %554 = vmatpush.bf16.msrb.mxu1 %v7176_v57  ;;  %v7331_v57 = vld [vmem:[#allocation8 + $0xe8] sm:$0xf] }
  0x48   :  { %517 = vmatpush.bf16.msra.mxu2 %v7084_v54  ;;  %v11471_v5 = vor.u32 %v10300_v60, %v7331_v57  ;;  %v7243_v54 = vld [vmem:[#allocation8 + $0x40] sm:$0xf]  ;;  %v10277_v57 = vld [vmem:[#allocation8 + $0x44] sm:$0xf] }
  0x49   :  { %v11526_v59 = vor.u32 %v10279_v56, %v7243_v54  ;;  %v10328_v54 = vld [vmem:[#allocation11 + $0xd4] sm:$0xf0] }
  0x4a   :  { %541 = vmatpush.bf16.msrb.mxu0 %v7156_v2  ;;  %v11467_v2 = vor.u32 %v10299_v53, %v7323_v52  ;;  %779 = vmatpush.bf16.msrb.mxu3 %v11469_v3  ;;  %v10282_v52 = vld [vmem:[#allocation8 + $0x6c] sm:$0xf]  ;;  %v7269_v53 = vld [vmem:[#allocation8 + $0x78] sm:$0xf0] }
  0x4b   :  { %555 = vmatpush.bf16.msrb.mxu1 %v7160_v6  ;;  %v11473_v6 = vor.u32 %v10298_v61, %v7333_v62  ;;  %v11522_v55 = vor.u32 %v10282_v52, %v7269_v53  ;;  %v7251_v61 = vld [vmem:[#allocation8 + $0x48] sm:$0xf]  ;;  %v10280_v62 = vld [vmem:[#allocation8 + $0x54] sm:$0xf0] }
  0x4c   :  { %766 = vmatpush.bf16.msrb.mxu2 %v11467_v2 }
  0x4e   :  { %542 = vmatpush.bf16.msrb.mxu0 %v7140_v15  ;;  %v11483_v15 = vor.u32 %v10296_v13, %v7315_v12  ;;  %780 = vmatpush.bf16.msrb.mxu3 %v11481_v14  ;;  %v7229_v12 = vld [vmem:[#allocation8 + $0x30] sm:$0xf0]  ;;  %v7235_v13 = vld [vmem:[#allocation8 + $0x28] sm:$0xf] }
  0x4f   :  { %556 = vmatpush.bf16.msrb.mxu1 %v7144_v19  ;;  %v11486_v19 = vor.u32 %v10294_v16, %v7317_v17  ;;  %v11536_v16 = vor.u32 %v10275_v8, %v7227_v7  ;;  %v10276_v17 = vld [vmem:[#allocation8 + $0x34] sm:$0xf0]  ;;  %v11540_v21 = vor.u32 %v10273_v11, %v7229_v12  ;;  %v7421_v7 = vld [vmem:[#allocation11 + $0xb0] sm:$0xf0]  ;;  %v7427_v8 = vld [vmem:[#allocation11 + $0xa8] sm:$0xf] }
  0x50   :  { %767 = vmatpush.bf16.msrb.mxu2 %v11479_v10  ;;  %v11542_v22 = vor.u32 %v10276_v17, %v7235_v13  ;;  %v10322_v13 = vld [vmem:[#allocation11 + $0xac] sm:$0xf] }
  0x52   :  { %543 = vmatpush.bf16.msrb.mxu0 %v7124_v29  ;;  %v7301_v29 = vld [vmem:[#allocation8 + $0xb8] sm:$0xf0]  ;;  %781 = vmatpush.bf16.msrb.mxu3 %v11492_v24 }
  0x53   :  { %557 = vmatpush.bf16.msrb.mxu1 %v7128_v33  ;;  %v10285_v33 = vld [vmem:[#allocation8 + $0x84] sm:$0xf] }
  0x54   :  { %768 = vmatpush.bf16.msrb.mxu2 %v11490_v23  ;;  %v11505_v38 = vor.u32 %v10285_v33, %v7277_v35  ;;  %v10272_v33 = vld [vmem:[#allocation8 + $0x14] sm:$0xf0]  ;;  %v10270_v35 = vld [vmem:[#allocation8 + $0xc] sm:$0xf] }
  0x55   :  { %v7220_v41 = vor.u32 %v10272_v33, %v7219_v32  ;;  %v7405_v33 = vld [vmem:[#allocation11 + $0x90] sm:$0xf0] }
  0x56   :  { %544 = vmatpush.bf16.msrb.mxu0 %v7108_v43  ;;  %782 = vmatpush.bf16.msrb.mxu3 %v11505_v38  ;;  %v7259_v43 = vld [vmem:[#allocation8 + $0x60] sm:$0xf] }
  0x57   :  { %558 = vmatpush.bf16.msrb.mxu1 %v7112_v47  ;;  %v11515_v46 = vor.u32 %v10283_v44, %v7259_v43  ;;  %v7261_v47 = vld [vmem:[#allocation8 + $0x70] sm:$0xf0] }
  0x58   :  { %769 = vmatpush.bf16.msrb.mxu2 %v11503_v34  ;;  %v11517_v50 = vor.u32 %v10281_v45, %v7261_v47 }
  0x5a   :  { %545 = vmatpush.bf16.msrb.mxu0 %v7092_v63  ;;  %783 = vmatpush.bf16.msrb.mxu3 %v11517_v50  ;;  %v10278_v63 = vld [vmem:[#allocation8 + $0x4c] sm:$0xf] }
  0x5b   :  { %559 = vmatpush.bf16.msrb.mxu1 %v7096_v1  ;;  %v11531_v1 = vor.u32 %v10280_v62, %v7251_v61  ;;  %v7419_v62 = vld [vmem:[#allocation11 + $0xa0] sm:$0xf] }
  0x5c   :  { %770 = vmatpush.bf16.msrb.mxu2 %v11515_v46 }
  0x60   :  { %771 = vmatpush.bf16.msrb.mxu2 %v11526_v59 }
  0x64   :  { %772 = vmatpush.bf16.msrb.mxu2 %v11536_v16 }
  0x90   :  { %v137_v27 = vpop.permute.xlu0 %136 }
  0x91   :  { %vm141_vm0 = vcmp.eq.s32.totalorder %v133_v25, %v137_v27  ;;  %vm142_vm3 = vcmp.eq.s32.totalorder %v134_v39, %v137_v27  ;;  %v10290_v27 = vld [vmem:[#allocation8 + $0xac] sm:$0xf] }
  0x92   :  { %v11497_v30 = vor.u32 %v10290_v27, %v7301_v29  ;;  %v10269_v27 = vld [vmem:[#allocation8 + $0x4] sm:$0xf]  ;;  %v7240_v29 = vor.u32 %v10274_v18, %v7237_v20 }
  0x93   :  { %v7216_v40 = vor.u32 %v10269_v27, %v7213_v31  ;;  %v7403_v27 = vld [vmem:[#allocation11 + $0x80] sm:$0xf]  ;;  %v10317_v31 = vld [vmem:[#allocation11 + $0x84] sm:$0xf] }
  0x98   :  { %v140_v58 = vpop.permute.xlu0 %139 }
  0x99   :  { %vm143_vm1 = vcmp.eq.s32.totalorder %v133_v25, %v140_v58  ;;  %vm144_vm2 = vcmp.eq.s32.totalorder %v134_v39, %v140_v58  ;;  %v7299_v25 = vld [vmem:[#allocation8 + $0xa8] sm:$0xf]  ;;  %v11507_v39 = vor.u32 %v10288_v37, %v7283_v36  ;;  %v7245_v58 = vld [vmem:[#allocation8 + $0x50] sm:$0xf0]  ;;  %v7221_v36 = vld [vmem:[#allocation8 + $0x18] sm:$0xf0] }
  0x9a   :  { %vm7077_vm4 = vmpackc.low %vm143_vm1, %vm141_vm0  ;;  %v11495_v28 = vor.u32 %v10292_v26, %v7299_v25  ;;  %v11528_v60 = vor.u32 %v10277_v57, %v7245_v58  ;;  %v7211_v25 = vld [vmem:[#allocation8] sm:$0xf]  ;;  %v10271_v26 = vld [vmem:[#allocation8 + $0xc] sm:$0xf0]  ;;  %v7224_v43 = vor.u32 %v10270_v35, %v7221_v36 }
  0x9b   :  { %vm7079_vm5 = vmpackc.low %vm144_vm2, %vm142_vm3  ;;  %7078 = vmatmul.msk.bf16.vlgmr.msra.gmra.mxu0 %vm7077_vm4, %v11374_v4  ;;  %v7212_v37 = vor.u32 %v10271_v26, %v7211_v25  ;;  %v10326_v57 = vld [vmem:[#allocation11 + $0xcc] sm:$0xf]  ;;  %v7445_v58 = vld [vmem:[#allocation11 + $0xd8] sm:$0xf0] }
  0x9c   :  { %7080 = vmatmul.msk.bf16.vlgmr.msra.gmra.mxu1 %vm7079_vm5, %v11374_v4  ;;  %792 = vmatpush.bf16.msra.mxu0 %v11471_v5  ;;  %v7253_v4 = vld [vmem:[#allocation8 + $0x58] sm:$0xf0]  ;;  %v7448_v61 = vor.u32 %v10326_v57, %v7445_v58  ;;  %v7411_v35 = vld [vmem:[#allocation11 + $0x88] sm:$0xf]  ;;  %v10320_v36 = vld [vmem:[#allocation11 + $0x94] sm:$0xf0] }
  0x9d   :  { %805 = vmatpush.bf16.msra.mxu1 %v11473_v6  ;;  %v11533_v9 = vor.u32 %v10278_v63, %v7253_v4  ;;  %784 = vmatpush.bf16.msrb.mxu3 %v11528_v60  ;;  %v10323_v63 = vld [vmem:[#allocation11 + $0xac] sm:$0xf0]  ;;  %v10312_v57 = vld [vmem:[#allocation11 + $0x54] sm:$0xf0]  ;;  %v10310_v58 = vld [vmem:[#allocation11 + $0x4c] sm:$0xf] }
  0x9e   :  { %773 = vmatpush.bf16.msrb.mxu2 %v7212_v37  ;;  %v7420_v4 = vor.u32 %v10323_v63, %v7419_v62  ;;  %v7355_v63 = vld [vmem:[#allocation11 + $0x20] sm:$0xf] }
  0xa0   :  { %793 = vmatpush.bf16.msra.mxu0 %v11483_v15 }
  0xa1   :  { %806 = vmatpush.bf16.msra.mxu1 %v11486_v19  ;;  %785 = vmatpush.bf16.msrb.mxu3 %v11540_v21 }
  0xa4   :  { %794 = vmatpush.bf16.msra.mxu0 %v11495_v28 }
  0xa5   :  { %807 = vmatpush.bf16.msra.mxu1 %v11497_v30  ;;  %786 = vmatpush.bf16.msrb.mxu3 %v7216_v40 }
  0xa8   :  { %795 = vmatpush.bf16.msra.mxu0 %v11507_v39 }
  0xa9   :  { %808 = vmatpush.bf16.msra.mxu1 %v11510_v42 }
  0xac   :  { %796 = vmatpush.bf16.msra.mxu0 %v11519_v51 }
  0xad   :  { %809 = vmatpush.bf16.msra.mxu1 %v11522_v55 }
  0xb0   :  { %797 = vmatpush.bf16.msra.mxu0 %v11531_v1 }
  0xb1   :  { %810 = vmatpush.bf16.msra.mxu1 %v11533_v9 }
  0xb4   :  { %798 = vmatpush.bf16.msra.mxu0 %v11542_v22 }
  0xb5   :  { %811 = vmatpush.bf16.msra.mxu1 %v7240_v29 }
  0xb8   :  { %799 = vmatpush.bf16.msra.mxu0 %v7220_v41 }
  0xb9   :  { %812 = vmatpush.bf16.msra.mxu1 %v7224_v43 }
 0x118   :  { %v288_v44 = vpop.f32.mrf.mxu0 }
 0x119   :  { %v302_v45 = vpop.f32.mrf.mxu1 }
 0x11a   :  { %v303_v49 = vadd.f32 %v302_v45, %v288_v44 }
 0x120   :  { %v290_v47 = vpop.f32.mrf.mxu0 }
 0x121   :  { %v304_v48 = vpop.f32.mrf.mxu1 }
 0x122   :  { %v305_v52 = vadd.f32 %v304_v48, %v290_v47  ;;  %v7387_v48 = vld [vmem:[#allocation11 + $0x60] sm:$0xf] }
 0x124   :  { %v307_v53 = vpack.c.bf16 %v305_v52, %v303_v49  ;;  %v10315_v49 = vld [vmem:[#allocation11 + $0x6c] sm:$0xf0]  ;;  %v10313_v52 = vld [vmem:[#allocation11 + $0x64] sm:$0xf] }
 0x126   :  { %518 = vmatmul.bf16.vlgmr.msra.gmra.mxu2 %v307_v53  ;;  %532 = vmatmul.bf16.vlgmr.msra.gmra.mxu3 %v307_v53 }
 0x127   :  { %546 = vmatmul.bf16.vlgmr.msrb.gmra.mxu0 %v307_v53  ;;  %560 = vmatmul.bf16.vlgmr.msrb.gmra.mxu1 %v307_v53 }
 0x128   :  { %842 = vmatpush.bf16.msra.mxu2 %v11467_v2  ;;  %855 = vmatpush.bf16.msra.mxu3 %v11469_v3  ;;  %v7451_v2 = vld [vmem:[#allocation11 + $0xe0] sm:$0xf]  ;;  %v10331_v3 = vld [vmem:[#allocation11 + $0xec] sm:$0xf0] }
 0x129   :  { %868 = vmatpush.bf16.msrb.mxu0 %v11471_v5  ;;  %881 = vmatpush.bf16.msrb.mxu1 %v11473_v6  ;;  %v10329_v5 = vld [vmem:[#allocation11 + $0xe4] sm:$0xf]  ;;  %v7452_v6 = vor.u32 %v10331_v3, %v7451_v2  ;;  %v7388_v3 = vor.u32 %v10315_v49, %v7387_v48 }
 0x12c   :  { %843 = vmatpush.bf16.msra.mxu2 %v11479_v10  ;;  %856 = vmatpush.bf16.msra.mxu3 %v11481_v14  ;;  %v7453_v10 = vld [vmem:[#allocation11 + $0xf0] sm:$0xf0]  ;;  %v7459_v14 = vld [vmem:[#allocation11 + $0xe8] sm:$0xf] }
 0x12d   :  { %869 = vmatpush.bf16.msrb.mxu0 %v11483_v15  ;;  %882 = vmatpush.bf16.msrb.mxu1 %v11486_v19  ;;  %v10332_v15 = vld [vmem:[#allocation11 + $0xf4] sm:$0xf0]  ;;  %v7456_v19 = vor.u32 %v10329_v5, %v7453_v10  ;;  %v7389_v5 = vld [vmem:[#allocation11 + $0x70] sm:$0xf0] }
 0x12e   :  { %v10316_v10 = vld [vmem:[#allocation11 + $0x74] sm:$0xf0] }
 0x130   :  { %844 = vmatpush.bf16.msra.mxu2 %v11490_v23  ;;  %857 = vmatpush.bf16.msra.mxu3 %v11492_v24  ;;  %v7460_v23 = vor.u32 %v10332_v15, %v7459_v14  ;;  %v10330_v24 = vld [vmem:[#allocation11 + $0xec] sm:$0xf]  ;;  %v7392_v14 = vor.u32 %v10313_v52, %v7389_v5 }
 0x131   :  { %870 = vmatpush.bf16.msrb.mxu0 %v11495_v28  ;;  %883 = vmatpush.bf16.msrb.mxu1 %v11497_v30  ;;  %v7461_v28 = vld [vmem:[#allocation11 + $0xf8] sm:$0xf0]  ;;  %v11582_v30 = vld [vmem:[%s11971_s4] sm:$0xf] }
 0x132   :  { %v342_v20 = vperm.slane %v11582_v30, 0 }
 0x134   :  { %845 = vmatpush.bf16.msra.mxu2 %v11503_v34  ;;  %858 = vmatpush.bf16.msra.mxu3 %v11505_v38  ;;  %v7464_v34 = vor.u32 %v10330_v24, %v7461_v28  ;;  %v7435_v38 = vld [vmem:[#allocation11 + $0xc0] sm:$0xf] }
 0x135   :  { %871 = vmatpush.bf16.msrb.mxu0 %v11507_v39  ;;  %884 = vmatpush.bf16.msrb.mxu1 %v11510_v42  ;;  %v10327_v39 = vld [vmem:[#allocation11 + $0xcc] sm:$0xf0]  ;;  %v10325_v42 = vld [vmem:[#allocation11 + $0xc4] sm:$0xf] }
 0x136   :  { %774 = vmatmul.bf16.vlgmr.msrb.gmra.mxu2 %v11373_v0  ;;  %787 = vmatmul.bf16.vlgmr.msrb.gmra.mxu3 %v11373_v0 }
 0x137   :  { %800 = vmatmul.bf16.vlgmr.msra.gmra.mxu0 %v11373_v0  ;;  %813 = vmatmul.bf16.vlgmr.msra.gmra.mxu1 %v11373_v0 }
 0x138   :  { %846 = vmatpush.bf16.msra.mxu2 %v11515_v46  ;;  %859 = vmatpush.bf16.msra.mxu3 %v11517_v50  ;;  %v7436_v46 = vor.u32 %v10327_v39, %v7435_v38  ;;  %v7437_v50 = vld [vmem:[#allocation11 + $0xd0] sm:$0xf0] }
 0x139   :  { %872 = vmatpush.bf16.msrb.mxu0 %v11519_v51  ;;  %885 = vmatpush.bf16.msrb.mxu1 %v11522_v55  ;;  %v7443_v51 = vld [vmem:[#allocation11 + $0xc8] sm:$0xf]  ;;  %v7440_v55 = vor.u32 %v10325_v42, %v7437_v50  ;;  %v7371_v42 = vld [vmem:[#allocation11 + $0x40] sm:$0xf] }
 0x13a   :  { %v7444_v56 = vor.u32 %v10328_v54, %v7443_v51  ;;  %v10309_v51 = vld [vmem:[#allocation11 + $0x44] sm:$0xf]  ;;  %v7373_v54 = vld [vmem:[#allocation11 + $0x50] sm:$0xf0] }
 0x13c   :  { %847 = vmatpush.bf16.msra.mxu2 %v11526_v59  ;;  %860 = vmatpush.bf16.msra.mxu3 %v11528_v60  ;;  %v344_v59 = vperm.slane %v11582_v30, 2  ;;  %v345_v60 = vperm.slane %v11582_v30, 3 }
 0x13d   :  { %873 = vmatpush.bf16.msrb.mxu0 %v11531_v1  ;;  %886 = vmatpush.bf16.msrb.mxu1 %v11533_v9  ;;  %v10321_v1 = vld [vmem:[#allocation11 + $0xa4] sm:$0xf]  ;;  %v10324_v9 = vld [vmem:[#allocation11 + $0xb4] sm:$0xf0] }
 0x13e   :  { %v7424_v11 = vor.u32 %v10321_v1, %v7421_v7  ;;  %v7428_v12 = vor.u32 %v10324_v9, %v7427_v8  ;;  %v10307_v1 = vld [vmem:[#allocation11 + $0x2c] sm:$0xf0] }
 0x13f   :  { %v7356_v9 = vor.u32 %v10307_v1, %v7355_v63  ;;  %v10364_v63 = vld [vmem:[#allocation9 + $0xf4] sm:$0xf0]  ;;  %v10362_v1 = vld [vmem:[#allocation9 + $0xec] sm:$0xf] }
 0x140   :  { %848 = vmatpush.bf16.msra.mxu2 %v11536_v16  ;;  %861 = vmatpush.bf16.msra.mxu3 %v11540_v21  ;;  %v7429_v16 = vld [vmem:[#allocation11 + $0xb8] sm:$0xf0]  ;;  %v343_v21 = vperm.slane %v11582_v30, 1 }
 0x141   :  { %874 = vmatpush.bf16.msrb.mxu0 %v11542_v22  ;;  %887 = vmatpush.bf16.msrb.mxu1 %v7240_v29  ;;  %v7432_v22 = vor.u32 %v10322_v13, %v7429_v16  ;;  %v10319_v29 = vld [vmem:[#allocation11 + $0x8c] sm:$0xf0]  ;;  %v7363_v13 = vld [vmem:[#allocation11 + $0x28] sm:$0xf] }
 0x142   :  { %v7404_v32 = vor.u32 %v10319_v29, %v7403_v27  ;;  %v7365_v27 = vld [vmem:[#allocation11 + $0x38] sm:$0xf0] }
 0x144   :  { %849 = vmatpush.bf16.msra.mxu2 %v7212_v37  ;;  %862 = vmatpush.bf16.msra.mxu3 %v7216_v40  ;;  %v7408_v37 = vor.u32 %v10317_v31, %v7405_v33  ;;  %v7412_v40 = vor.u32 %v10320_v36, %v7411_v35  ;;  %v10301_v31 = vld [vmem:[#allocation11 + $0x4] sm:$0xf]  ;;  %v7347_v33 = vld [vmem:[#allocation11 + $0x8] sm:$0xf]  ;;  %v10304_v36 = vld [vmem:[#allocation11 + $0x14] sm:$0xf0] }
 0x145   :  { %875 = vmatpush.bf16.msrb.mxu0 %v7220_v41  ;;  %888 = vmatpush.bf16.msrb.mxu1 %v7224_v43  ;;  %v10318_v41 = vld [vmem:[#allocation11 + $0x8c] sm:$0xf]  ;;  %v7413_v43 = vld [vmem:[#allocation11 + $0x98] sm:$0xf0] }
 0x146   :  { %v7416_v44 = vor.u32 %v10318_v41, %v7413_v43  ;;  %v7348_v41 = vor.u32 %v10304_v36, %v7347_v33  ;;  %v10353_v33 = vld [vmem:[#allocation9 + $0xa4] sm:$0xf]  ;;  %v7555_v36 = vld [vmem:[#allocation9 + $0xa8] sm:$0xf] }
 0x148   :  { %1135 = vmatpush.bf16.msrb.mxu2 %v7452_v6  ;;  %1148 = vmatpush.bf16.msrb.mxu3 %v7456_v19  ;;  %v7395_v6 = vld [vmem:[#allocation11 + $0x68] sm:$0xf]  ;;  %v10314_v19 = vld [vmem:[#allocation11 + $0x6c] sm:$0xf] }
 0x149   :  { %1161 = vmatpush.bf16.msra.mxu0 %v7460_v23  ;;  %1174 = vmatpush.bf16.msra.mxu1 %v7464_v34  ;;  %v7396_v15 = vor.u32 %v10316_v10, %v7395_v6  ;;  %v7397_v23 = vld [vmem:[#allocation11 + $0x78] sm:$0xf0] }
 0x14a   :  { %v7400_v34 = vor.u32 %v10314_v19, %v7397_v23 }
 0x14c   :  { %1136 = vmatpush.bf16.msrb.mxu2 %v7436_v46  ;;  %1149 = vmatpush.bf16.msrb.mxu3 %v7440_v55  ;;  %v10311_v46 = vld [vmem:[#allocation11 + $0x4c] sm:$0xf0]  ;;  %v7376_v55 = vor.u32 %v10309_v51, %v7373_v54 }
 0x14d   :  { %1162 = vmatpush.bf16.msra.mxu0 %v7444_v56  ;;  %1175 = vmatpush.bf16.msra.mxu1 %v7448_v61  ;;  %v7372_v50 = vor.u32 %v10311_v46, %v7371_v42  ;;  %v7379_v56 = vld [vmem:[#allocation11 + $0x48] sm:$0xf] }
 0x14e   :  { %v7380_v62 = vor.u32 %v10312_v57, %v7379_v56  ;;  %v7579_v56 = vld [vmem:[#allocation9 + $0xe0] sm:$0xf]  ;;  %v10363_v57 = vld [vmem:[#allocation9 + $0xec] sm:$0xf0] }
 0x150   :  { %1137 = vmatpush.bf16.msrb.mxu2 %v7420_v4  ;;  %1150 = vmatpush.bf16.msrb.mxu3 %v7424_v11  ;;  %v10305_v11 = vld [vmem:[#allocation11 + $0x24] sm:$0xf] }
 0x151   :  { %1163 = vmatpush.bf16.msra.mxu0 %v7428_v12  ;;  %1176 = vmatpush.bf16.msra.mxu1 %v7432_v22  ;;  %v7357_v12 = vld [vmem:[#allocation11 + $0x30] sm:$0xf0] }
 0x152   :  { %v7360_v16 = vor.u32 %v10305_v11, %v7357_v12  ;;  %v7563_v11 = vld [vmem:[#allocation9 + $0xc0] sm:$0xf]  ;;  %v10359_v12 = vld [vmem:[#allocation9 + $0xcc] sm:$0xf0] }
 0x154   :  { %1138 = vmatpush.bf16.msrb.mxu2 %v7404_v32  ;;  %1151 = vmatpush.bf16.msrb.mxu3 %v7408_v37  ;;  %v7341_v32 = vld [vmem:[#allocation11 + $0x10] sm:$0xf0]  ;;  %v10302_v37 = vld [vmem:[#allocation11 + $0xc] sm:$0xf] }
 0x155   :  { %1164 = vmatpush.bf16.msra.mxu0 %v7412_v40  ;;  %1177 = vmatpush.bf16.msra.mxu1 %v7416_v44  ;;  %v7344_v35 = vor.u32 %v10301_v31, %v7341_v32  ;;  %v7349_v40 = vld [vmem:[#allocation11 + $0x18] sm:$0xf0] }
 0x156   :  { %v7352_v43 = vor.u32 %v10302_v37, %v7349_v40  ;;  %v10356_v37 = vld [vmem:[#allocation9 + $0xb4] sm:$0xf0]  ;;  %v10354_v40 = vld [vmem:[#allocation9 + $0xac] sm:$0xf] }
 0x158   :  { %1139 = vmatpush.bf16.msrb.mxu2 %v7388_v3  ;;  %1152 = vmatpush.bf16.msrb.mxu3 %v7392_v14 }
 0x159   :  { %1165 = vmatpush.bf16.msra.mxu0 %v7396_v15  ;;  %1178 = vmatpush.bf16.msra.mxu1 %v7400_v34 }
 0x15c   :  { %1140 = vmatpush.bf16.msrb.mxu2 %v7372_v50  ;;  %1153 = vmatpush.bf16.msrb.mxu3 %v7376_v55 }
 0x15d   :  { %1166 = vmatpush.bf16.msra.mxu0 %v7380_v62  ;;  %v7587_v62 = vld [vmem:[#allocation9 + $0xe8] sm:$0xf] }
 0x160   :  { %1141 = vmatpush.bf16.msrb.mxu2 %v7356_v9  ;;  %1154 = vmatpush.bf16.msrb.mxu3 %v7360_v16 }
 0x164   :  { %1155 = vmatpush.bf16.msrb.mxu3 %v7344_v35  ;;  %v7549_v35 = vld [vmem:[#allocation9 + $0xb0] sm:$0xf0] }
 0x1a4   :  { %v547_v17 = vpop.f32.mrf.mxu0  ;;  %v561_v18 = vpop.f32.mrf.mxu1 }
 0x1a5   :  { %v548_v25 = vadd.f32 %v547_v17, %v344_v59  ;;  %v562_v26 = vadd.f32 %v561_v18, %v345_v60  ;;  %v10308_v17 = vld [vmem:[#allocation11 + $0x34] sm:$0xf0]  ;;  %v10306_v18 = vld [vmem:[#allocation11 + $0x2c] sm:$0xf] }
 0x1a6   :  { %v7368_v30 = vor.u32 %v10306_v18, %v7365_v27  ;;  %v7565_v18 = vld [vmem:[#allocation9 + $0xd0] sm:$0xf0]  ;;  %v7573_v27 = vld [vmem:[#allocation9 + $0xd8] sm:$0xf0] }
 0x1a7   :  { %568 = vst [vmem:[#allocation2 + $0x18] sm:$0xff] %v548_v25 }
 0x1a8   :  { %569 = vst [vmem:[#allocation2 + $0x10] sm:$0xff] %v562_v26  ;;  %v7364_v26 = vor.u32 %v10308_v17, %v7363_v13  ;;  %v7588_v13 = vor.u32 %v10364_v63, %v7587_v62  ;;  %v10357_v17 = vld [vmem:[#allocation9 + $0xc4] sm:$0xf]  ;;  %v7507_v62 = vld [vmem:[#allocation9 + $0x48] sm:$0xf] }
 0x1a9   :  { %v519_v45 = vpop.f32.mrf.mxu2  ;;  %v533_v47 = vpop.f32.mrf.mxu3  ;;  %v10342_v63 = vld [vmem:[#allocation9 + $0x4c] sm:$0xf] }
 0x1aa   :  { %v520_v53 = vadd.f32 %v519_v45, %v342_v20  ;;  %v534_v2 = vadd.f32 %v533_v47, %v343_v21  ;;  %1167 = vmatpush.bf16.msra.mxu0 %v7364_v26  ;;  %v10358_v26 = vld [vmem:[#allocation9 + $0xcc] sm:$0xf] }
 0x1ab   :  { %v7576_v32 = vor.u32 %v10358_v26, %v7573_v27  ;;  %v7493_v26 = vld [vmem:[#allocation9 + $0x38] sm:$0xf0] }
 0x1ac   :  { %566 = vst [vmem:[#allocation2 + $0x30] sm:$0xff] %v520_v53  ;;  %v549_v24 = vpop.f32.mrf.mxu0  ;;  %v563_v28 = vpop.f32.mrf.mxu1 }
 0x1ad   :  { %567 = vst [vmem:[#allocation2] sm:$0xff] %v534_v2  ;;  %v550_v38 = vadd.f32 %v549_v24, %v344_v59  ;;  %v564_v39 = vadd.f32 %v563_v28, %v345_v60  ;;  %v7381_v60 = vld [vmem:[#allocation11 + $0x58] sm:$0xf0] }
 0x1ae   :  { %v7384_v8 = vor.u32 %v10310_v58, %v7381_v60  ;;  %v820_v53 = vld [vmem:[#allocation2 + $0x18] sm:$0x3]  ;;  %1168 = vmatpush.bf16.msra.mxu0 %v7348_v41  ;;  %v7557_v41 = vld [vmem:[#allocation9 + $0xb8] sm:$0xf0] }
 0x1af   :  { %572 = vst [vmem:[#allocation2 + $0x28] sm:$0xff] %v550_v38  ;;  %v821_v6 = vld [vmem:[#allocation2 + $0x10] sm:$0x3] }
 0x1b0   :  { %573 = vst [vmem:[#allocation2 + $0x38] sm:$0xff] %v564_v39  ;;  %1179 = vmatpush.bf16.msra.mxu1 %v7384_v8  ;;  %v7580_v8 = vor.u32 %v10363_v57, %v7579_v56  ;;  %v10343_v56 = vld [vmem:[#allocation9 + $0x4c] sm:$0xf0] }
 0x1b1   :  { %v521_v61 = vpop.f32.mrf.mxu2  ;;  %v535_v59 = vpop.f32.mrf.mxu3 }
 0x1b2   :  { %v522_v4 = vadd.f32 %v521_v61, %v342_v20  ;;  %v536_v7 = vadd.f32 %v535_v59, %v343_v21  ;;  %v7339_v20 = vld [vmem:[#allocation11] sm:$0xf]  ;;  %v10303_v21 = vld [vmem:[#allocation11 + $0xc] sm:$0xf0]  ;;  %v10361_v61 = vld [vmem:[#allocation9 + $0xe4] sm:$0xf] }
 0x1b3   :  { %v7340_v29 = vor.u32 %v10303_v21, %v7339_v20  ;;  %v818_v45 = vld [vmem:[#allocation2 + $0x30] sm:$0x3]  ;;  %v7581_v59 = vld [vmem:[#allocation9 + $0xf0] sm:$0xf0]  ;;  %v7568_v20 = vor.u32 %v10357_v17, %v7565_v18  ;;  %v7547_v21 = vld [vmem:[#allocation9 + $0xa0] sm:$0xf] }
 0x1b4   :  { %570 = vst [vmem:[#allocation2 + $0x8] sm:$0xff] %v522_v4  ;;  %v801_v22 = vpop.f32.mrf.mxu0  ;;  %v814_v25 = vpop.f32.mrf.mxu1  ;;  %1180 = vmatpush.bf16.msra.mxu1 %v7368_v30  ;;  %v819_v48 = vld [vmem:[#allocation2] sm:$0x3]  ;;  %v7589_v4 = vld [vmem:[#allocation9 + $0xf8] sm:$0xf0]  ;;  %v7584_v9 = vor.u32 %v10361_v61, %v7581_v59  ;;  %v7564_v30 = vor.u32 %v10359_v12, %v7563_v11 }
 0x1b5   :  { %571 = vst [vmem:[#allocation2 + $0x20] sm:$0xff] %v536_v7  ;;  %1142 = vmatpush.bf16.msrb.mxu2 %v7340_v29  ;;  %v824_v2 = vadd.f32 %v820_v53, %v801_v22  ;;  %v825_v10 = vadd.f32 %v821_v6, %v814_v25  ;;  %v7592_v16 = vor.u32 %v10362_v1, %v7589_v4  ;;  %v7571_v22 = vld [vmem:[#allocation9 + $0xc8] sm:$0xf]  ;;  %v10360_v25 = vld [vmem:[#allocation9 + $0xd4] sm:$0xf0] }
 0x1b6   :  { %v10355_v29 = vld [vmem:[#allocation9 + $0xac] sm:$0xf0]  ;;  %v7572_v31 = vor.u32 %v10360_v25, %v7571_v22  ;;  %v7533_v53 = vld [vmem:[#allocation9 + $0x90] sm:$0xf0]  ;;  %v7541_v6 = vld [vmem:[#allocation9 + $0x98] sm:$0xf0] }
 0x1b7   :  { %v10341_v61 = vld [vmem:[#allocation9 + $0x44] sm:$0xf]  ;;  %v7501_v59 = vld [vmem:[#allocation9 + $0x50] sm:$0xf0]  ;;  %v7509_v1 = vld [vmem:[#allocation9 + $0x58] sm:$0xf0] }
 0x1b8   :  { %1181 = vmatpush.bf16.msra.mxu1 %v7352_v43  ;;  %v7548_v43 = vor.u32 %v10355_v29, %v7547_v21  ;;  %v10339_v11 = vld [vmem:[#allocation9 + $0x2c] sm:$0xf0]  ;;  %v7485_v17 = vld [vmem:[#allocation9 + $0x30] sm:$0xf0]  ;;  %v7491_v18 = vld [vmem:[#allocation9 + $0x28] sm:$0xf] }
 0x1b9   :  { %v775_v44 = vpop.f32.mrf.mxu2  ;;  %v788_v47 = vpop.f32.mrf.mxu3  ;;  %v10340_v22 = vld [vmem:[#allocation9 + $0x34] sm:$0xf0]  ;;  %v10338_v25 = vld [vmem:[#allocation9 + $0x2c] sm:$0xf]  ;;  %v10333_v21 = vld [vmem:[#allocation9 + $0x4] sm:$0xf] }
 0x1ba   :  { %v822_v49 = vadd.f32 %v818_v45, %v775_v44  ;;  %v823_v52 = vadd.f32 %v819_v48, %v788_v47  ;;  %v7552_v44 = vor.u32 %v10353_v33, %v7549_v35  ;;  %v7531_v45 = vld [vmem:[#allocation9 + $0x80] sm:$0xf]  ;;  %v10351_v47 = vld [vmem:[#allocation9 + $0x8c] sm:$0xf0]  ;;  %v7556_v48 = vor.u32 %v10356_v37, %v7555_v36  ;;  %v7475_v33 = vld [vmem:[#allocation9 + $0x8] sm:$0xf] }
 0x1bb   :  { %v7492_v29 = vor.u32 %v10340_v22, %v7491_v18  ;;  %v10336_v35 = vld [vmem:[#allocation9 + $0x14] sm:$0xf0]  ;;  %v10334_v36 = vld [vmem:[#allocation9 + $0xc] sm:$0xf]  ;;  %v7477_v37 = vld [vmem:[#allocation9 + $0x18] sm:$0xf0] }
 0x1bc   :  { %11037 = vtanh.f32 %v822_v49  ;;  %v803_v3 = vpop.f32.mrf.mxu0  ;;  %v816_v5 = vpop.f32.mrf.mxu1  ;;  %v7560_v49 = vor.u32 %v10354_v40, %v7557_v41  ;;  %v7707_v40 = vld [vmem:[#allocation8 + $0xe0] sm:$0xf]  ;;  %v10395_v41 = vld [vmem:[#allocation8 + $0xec] sm:$0xf0] }
 0x1bd   :  { %11039 = vtanh.f32 %v823_v52  ;;  %v10349_v52 = vld [vmem:[#allocation9 + $0x84] sm:$0xf]  ;;  %v10352_v3 = vld [vmem:[#allocation9 + $0x94] sm:$0xf0]  ;;  %v10350_v5 = vld [vmem:[#allocation9 + $0x8c] sm:$0xf] }
 0x1be   :  { %11041 = vtanh.f32 %v824_v2  ;;  %v7539_v2 = vld [vmem:[#allocation9 + $0x88] sm:$0xf] }
 0x1bf   :  { %11043 = vtanh.f32 %v825_v10  ;;  %v7532_v10 = vor.u32 %v10351_v47, %v7531_v45 }
 0x1c1   :  { %v777_v14 = vpop.f32.mrf.mxu2  ;;  %v790_v15 = vpop.f32.mrf.mxu3 }
 0x1c2   :  { %v11038_v19 = vpop.eup %11037  ;;  %v7536_v14 = vor.u32 %v10349_v52, %v7533_v53  ;;  %v7515_v15 = vld [vmem:[#allocation9 + $0x60] sm:$0xf]  ;;  %v7715_v52 = vld [vmem:[#allocation8 + $0xe8] sm:$0xf]  ;;  %v10396_v53 = vld [vmem:[#allocation8 + $0xf4] sm:$0xf0] }
 0x1c3   :  { %v11040_v23 = vpop.eup %11039  ;;  %v830_v24 = vmul.f32 0.5, %v11038_v19  ;;  %v10347_v19 = vld [vmem:[#allocation9 + $0x6c] sm:$0xf0] }
 0x1c4   :  { %v832_v28 = vmul.f32 0.5, %v11040_v23  ;;  %v11042_v38 = vpop.eup %11041  ;;  %v7540_v23 = vor.u32 %v10352_v3, %v7539_v2  ;;  %v7708_v2 = vor.u32 %v10395_v41, %v7707_v40  ;;  %v7627_v41 = vld [vmem:[#allocation8 + $0x40] sm:$0xf] }
 0x1c5   :  { %v831_v34 = vadd.f32 0.5, %v830_v24  ;;  %v11044_v50 = vpop.eup %11043  ;;  %v7544_v24 = vor.u32 %v10350_v5, %v7541_v6  ;;  %v10394_v5 = vld [vmem:[#allocation8 + $0xec] sm:$0xf]  ;;  %v7717_v6 = vld [vmem:[#allocation8 + $0xf8] sm:$0xf0] }
 0x1c6   :  { %v833_v39 = vadd.f32 0.5, %v832_v28  ;;  %v834_v54 = vmul.f32 0.5, %v11044_v50  ;;  %v10345_v28 = vld [vmem:[#allocation9 + $0x64] sm:$0xf]  ;;  %v7516_v50 = vor.u32 %v10347_v19, %v7515_v15  ;;  %v7693_v19 = vld [vmem:[#allocation8 + $0xd0] sm:$0xf0] }
 0x1c7   :  { %v837_v42 = vmul.f32 %v11042_v38, %v831_v34  ;;  %v7517_v34 = vld [vmem:[#allocation9 + $0x70] sm:$0xf0]  ;;  %v7523_v38 = vld [vmem:[#allocation9 + $0x68] sm:$0xf]  ;;  %v10389_v15 = vld [vmem:[#allocation8 + $0xc4] sm:$0xf] }
 0x1c8   :  { %v836_v46 = vmul.f32 0.0, %v833_v39  ;;  %v835_v55 = vadd.f32 0.5, %v834_v54  ;;  %v10348_v39 = vld [vmem:[#allocation9 + $0x74] sm:$0xf0]  ;;  %v7520_v54 = vor.u32 %v10345_v28, %v7517_v34  ;;  %v7699_v28 = vld [vmem:[#allocation8 + $0xc8] sm:$0xf] }
 0x1c9   :  { %v7524_v57 = vor.u32 %v10348_v39, %v7523_v38  ;;  %v7696_v38 = vor.u32 %v10389_v15, %v7693_v19  ;;  %v10392_v39 = vld [vmem:[#allocation8 + $0xd4] sm:$0xf0]  ;;  %v7613_v19 = vld [vmem:[#allocation8 + $0x30] sm:$0xf0] }
 0x1ca   :  { %v11604_v51 = vadd.f32 %v837_v42, %v836_v46  ;;  %v10346_v42 = vld [vmem:[#allocation9 + $0x6c] sm:$0xf]  ;;  %v7525_v46 = vld [vmem:[#allocation9 + $0x78] sm:$0xf0] }
 0x1cc   :  { %11045 = vtanh.f32 %v11604_v51 }
 0x1d2   :  { %v11046_v58 = vpop.eup %11045 }
 0x1d3   :  { %v840_v60 = vmul.f32 %v11046_v58, %v835_v55  ;;  %v7499_v55 = vld [vmem:[#allocation9 + $0x40] sm:$0xf]  ;;  %v7528_v58 = vor.u32 %v10346_v42, %v7525_v46  ;;  %v10390_v42 = vld [vmem:[#allocation8 + $0xcc] sm:$0xf]  ;;  %v7701_v46 = vld [vmem:[#allocation8 + $0xd8] sm:$0xf0] }
 0x1d4   :  { %v7500_v4 = vor.u32 %v10343_v56, %v7499_v55  ;;  %v7675_v55 = vld [vmem:[#allocation8 + $0xa0] sm:$0xf]  ;;  %v10387_v56 = vld [vmem:[#allocation8 + $0xac] sm:$0xf0] }
 0x1d5   :  { %v11607_v7 = vpack.c.bf16 %v840_v60, %v840_v60  ;;  %v10344_v60 = vld [vmem:[#allocation9 + $0x54] sm:$0xf0] }
 0x1d6   :  { %v7508_v12 = vor.u32 %v10344_v60, %v7507_v62  ;;  %v10388_v62 = vld [vmem:[#allocation8 + $0xb4] sm:$0xf0] }
 0x1d7   :  { %850 = vmatmul.bf16.vlgmr.msra.gmra.mxu2 %v11607_v7  ;;  %863 = vmatmul.bf16.vlgmr.msra.gmra.mxu3 %v11607_v7 }
 0x1d8   :  { %876 = vmatmul.bf16.vlgmr.msrb.gmra.mxu0 %v11607_v7  ;;  %889 = vmatmul.bf16.vlgmr.msrb.gmra.mxu1 %v11607_v7 }
 0x1d9   :  { %1379 = vmatpush.bf16.msra.mxu2 %v7580_v8  ;;  %1392 = vmatpush.bf16.msra.mxu3 %v7584_v9  ;;  %v7504_v8 = vor.u32 %v10341_v61, %v7501_v59  ;;  %v7483_v9 = vld [vmem:[#allocation9 + $0x20] sm:$0xf]  ;;  %v7677_v61 = vld [vmem:[#allocation8 + $0xb0] sm:$0xf0]  ;;  %v7683_v59 = vld [vmem:[#allocation8 + $0xa8] sm:$0xf] }
 0x1da   :  { %1405 = vmatpush.bf16.msrb.mxu0 %v7588_v13  ;;  %1418 = vmatpush.bf16.msrb.mxu1 %v7592_v16  ;;  %v7512_v13 = vor.u32 %v10342_v63, %v7509_v1  ;;  %v10337_v16 = vld [vmem:[#allocation9 + $0x24] sm:$0xf]  ;;  %v7484_v27 = vor.u32 %v10339_v11, %v7483_v9  ;;  %v7684_v63 = vor.u32 %v10388_v62, %v7683_v59  ;;  %v10386_v1 = vld [vmem:[#allocation8 + $0xac] sm:$0xf]  ;;  %v10383_v9 = vld [vmem:[#allocation8 + $0x8c] sm:$0xf0] }
 0x1db   :  { %v10381_v11 = vld [vmem:[#allocation8 + $0x84] sm:$0xf]  ;;  %v10368_v59 = vld [vmem:[#allocation8 + $0x14] sm:$0xf0] }
 0x1dd   :  { %1380 = vmatpush.bf16.msra.mxu2 %v7564_v30  ;;  %1393 = vmatpush.bf16.msra.mxu3 %v7568_v20  ;;  %v7467_v30 = vld [vmem:[#allocation9] sm:$0xf]  ;;  %v10335_v20 = vld [vmem:[#allocation9 + $0xc] sm:$0xf0] }
 0x1de   :  { %1406 = vmatpush.bf16.msrb.mxu0 %v7572_v31  ;;  %1419 = vmatpush.bf16.msrb.mxu1 %v7576_v32  ;;  %v7496_v31 = vor.u32 %v10338_v25, %v7493_v26  ;;  %v7469_v32 = vld [vmem:[#allocation9 + $0x10] sm:$0xf0]  ;;  %v7468_v45 = vor.u32 %v10335_v20, %v7467_v30  ;;  %v10382_v25 = vld [vmem:[#allocation8 + $0x8c] sm:$0xf]  ;;  %v7669_v26 = vld [vmem:[#allocation8 + $0x98] sm:$0xf0] }
 0x1df   :  { %v7472_v47 = vor.u32 %v10333_v21, %v7469_v32  ;;  %v10379_v30 = vld [vmem:[#allocation8 + $0x6c] sm:$0xf0]  ;;  %v10377_v20 = vld [vmem:[#allocation8 + $0x64] sm:$0xf]  ;;  %v10380_v32 = vld [vmem:[#allocation8 + $0x74] sm:$0xf0] }
 0x1e1   :  { %1381 = vmatpush.bf16.msra.mxu2 %v7548_v43  ;;  %1394 = vmatpush.bf16.msra.mxu3 %v7552_v44  ;;  %v10393_v43 = vld [vmem:[#allocation8 + $0xe4] sm:$0xf]  ;;  %v7709_v44 = vld [vmem:[#allocation8 + $0xf0] sm:$0xf0] }
 0x1e2   :  { %1407 = vmatpush.bf16.msrb.mxu0 %v7556_v48  ;;  %1420 = vmatpush.bf16.msrb.mxu1 %v7560_v49  ;;  %v7476_v48 = vor.u32 %v10336_v35, %v7475_v33  ;;  %v7480_v49 = vor.u32 %v10334_v36, %v7477_v37  ;;  %v7712_v3 = vor.u32 %v10393_v43, %v7709_v44  ;;  %v10378_v36 = vld [vmem:[#allocation8 + $0x6c] sm:$0xf]  ;;  %v7653_v37 = vld [vmem:[#allocation8 + $0x78] sm:$0xf0]  ;;  %v10375_v43 = vld [vmem:[#allocation8 + $0x4c] sm:$0xf0] }
 0x1e3   :  { %v7656_v40 = vor.u32 %v10378_v36, %v7653_v37  ;;  %v10373_v44 = vld [vmem:[#allocation8 + $0x44] sm:$0xf] }
 0x1e5   :  { %1382 = vmatpush.bf16.msra.mxu2 %v7532_v10  ;;  %1395 = vmatpush.bf16.msra.mxu3 %v7536_v14  ;;  %v7691_v10 = vld [vmem:[#allocation8 + $0xc0] sm:$0xf]  ;;  %v10391_v14 = vld [vmem:[#allocation8 + $0xcc] sm:$0xf0] }
 0x1e6   :  { %1408 = vmatpush.bf16.msrb.mxu0 %v7540_v23  ;;  %1421 = vmatpush.bf16.msrb.mxu1 %v7544_v24  ;;  %v7716_v23 = vor.u32 %v10396_v53, %v7715_v52  ;;  %v7720_v24 = vor.u32 %v10394_v5, %v7717_v6  ;;  %v7692_v34 = vor.u32 %v10391_v14, %v7691_v10  ;;  %v7611_v6 = vld [vmem:[#allocation8 + $0x20] sm:$0xf]  ;;  %v10371_v10 = vld [vmem:[#allocation8 + $0x2c] sm:$0xf0]  ;;  %v10369_v14 = vld [vmem:[#allocation8 + $0x24] sm:$0xf] }
 0x1e7   :  { %1143 = vmatmul.bf16.vlgmr.msrb.gmra.mxu2 %v11373_v0  ;;  %1156 = vmatmul.bf16.vlgmr.msrb.gmra.mxu3 %v11373_v0  ;;  %v7612_v15 = vor.u32 %v10371_v10, %v7611_v6  ;;  %v7829_v6 = vld [vmem:[#allocation11 + $0xd8] sm:$0xf0]  ;;  %v7803_v10 = vld [vmem:[#allocation11 + $0xa0] sm:$0xf] }
 0x1e8   :  { %1169 = vmatmul.bf16.vlgmr.msra.gmra.mxu0 %v11373_v0  ;;  %1182 = vmatmul.bf16.vlgmr.msra.gmra.mxu1 %v11373_v0  ;;  %v7488_v0 = vor.u32 %v10337_v16, %v7485_v17  ;;  %v7667_v16 = vld [vmem:[#allocation8 + $0x88] sm:$0xf]  ;;  %v10384_v17 = vld [vmem:[#allocation8 + $0x94] sm:$0xf0] }
 0x1e9   :  { %1383 = vmatpush.bf16.msra.mxu2 %v7516_v50  ;;  %1396 = vmatpush.bf16.msra.mxu3 %v7520_v54  ;;  %v7700_v50 = vor.u32 %v10392_v39, %v7699_v28  ;;  %v7704_v54 = vor.u32 %v10390_v42, %v7701_v46  ;;  %v7668_v22 = vor.u32 %v10384_v17, %v7667_v16  ;;  %v7621_v39 = vld [vmem:[#allocation8 + $0x38] sm:$0xf0]  ;;  %v10427_v17 = vld [vmem:[#allocation11 + $0xec] sm:$0xf0] }
 0x1ea   :  { %1409 = vmatpush.bf16.msrb.mxu0 %v7524_v57  ;;  %1422 = vmatpush.bf16.msrb.mxu1 %v7528_v58  ;;  %v10385_v57 = vld [vmem:[#allocation8 + $0xa4] sm:$0xf]  ;;  %v7676_v58 = vor.u32 %v10387_v56, %v7675_v55  ;;  %v7616_v28 = vor.u32 %v10369_v14, %v7613_v19  ;;  %v10367_v55 = vld [vmem:[#allocation8 + $0xc] sm:$0xf0] }
 0x1eb   :  { %v7680_v60 = vor.u32 %v10385_v57, %v7677_v61  ;;  %v10365_v57 = vld [vmem:[#allocation8 + $0x4] sm:$0xf]  ;;  %v7603_v61 = vld [vmem:[#allocation8 + $0x8] sm:$0xf] }
 0x1ec   :  { %v10417_v19 = vld [vmem:[#allocation11 + $0xa4] sm:$0xf] }
 0x1ed   :  { %1384 = vmatpush.bf16.msra.mxu2 %v7500_v4  ;;  %1397 = vmatpush.bf16.msra.mxu3 %v7504_v8  ;;  %v7685_v4 = vld [vmem:[#allocation8 + $0xb8] sm:$0xf0]  ;;  %v7659_v8 = vld [vmem:[#allocation8 + $0x80] sm:$0xf] }
 0x1ee   :  { %1410 = vmatpush.bf16.msrb.mxu0 %v7508_v12  ;;  %1423 = vmatpush.bf16.msrb.mxu1 %v7512_v13  ;;  %v7660_v12 = vor.u32 %v10383_v9, %v7659_v8  ;;  %v7661_v13 = vld [vmem:[#allocation8 + $0x90] sm:$0xf0] }
 0x1ef   :  { %v7664_v18 = vor.u32 %v10381_v11, %v7661_v13  ;;  %v894_v11 = vld [vmem:[#allocation2 + $0x30] sm:$0xc]  ;;  %v895_v13 = vld [vmem:[#allocation2] sm:$0xc] }
 0x1f1   :  { %1385 = vmatpush.bf16.msra.mxu2 %v7484_v27  ;;  %1398 = vmatpush.bf16.msra.mxu3 %v7488_v0  ;;  %v7672_v27 = vor.u32 %v10382_v25, %v7669_v26  ;;  %v7643_v0 = vld [vmem:[#allocation8 + $0x60] sm:$0xf] }
 0x1f2   :  { %1411 = vmatpush.bf16.msrb.mxu0 %v7492_v29  ;;  %1424 = vmatpush.bf16.msrb.mxu1 %v7496_v31  ;;  %v7644_v21 = vor.u32 %v10379_v30, %v7643_v0  ;;  %v7645_v29 = vld [vmem:[#allocation8 + $0x70] sm:$0xf0]  ;;  %v7651_v31 = vld [vmem:[#allocation8 + $0x68] sm:$0xf]  ;;  %v896_v30 = vld [vmem:[#allocation2 + $0x18] sm:$0xc] }
 0x1f3   :  { %v7648_v33 = vor.u32 %v10377_v20, %v7645_v29  ;;  %v7652_v35 = vor.u32 %v10380_v32, %v7651_v31  ;;  %v7843_v0 = vld [vmem:[#allocation11 + $0xe8] sm:$0xf]  ;;  %v10426_v29 = vld [vmem:[#allocation11 + $0xec] sm:$0xf]  ;;  %v7845_v31 = vld [vmem:[#allocation11 + $0xf8] sm:$0xf0] }
 0x1f5   :  { %1386 = vmatpush.bf16.msra.mxu2 %v7468_v45  ;;  %1399 = vmatpush.bf16.msra.mxu3 %v7472_v47  ;;  %v7628_v45 = vor.u32 %v10375_v43, %v7627_v41  ;;  %v7629_v47 = vld [vmem:[#allocation8 + $0x50] sm:$0xf0]  ;;  %v7819_v41 = vld [vmem:[#allocation11 + $0xc0] sm:$0xf]  ;;  %v10423_v43 = vld [vmem:[#allocation11 + $0xcc] sm:$0xf0] }
 0x1f6   :  { %1412 = vmatpush.bf16.msrb.mxu0 %v7476_v48  ;;  %1425 = vmatpush.bf16.msrb.mxu1 %v7480_v49  ;;  %v7635_v48 = vld [vmem:[#allocation8 + $0x48] sm:$0xf]  ;;  %v10376_v49 = vld [vmem:[#allocation8 + $0x54] sm:$0xf0]  ;;  %v7632_v52 = vor.u32 %v10373_v44, %v7629_v47  ;;  %v10421_v44 = vld [vmem:[#allocation11 + $0xc4] sm:$0xf]  ;;  %v7820_v47 = vor.u32 %v10423_v43, %v7819_v41 }
 0x1f7   :  { %v7636_v53 = vor.u32 %v10376_v49, %v7635_v48  ;;  %v7821_v48 = vld [vmem:[#allocation11 + $0xd0] sm:$0xf0]  ;;  %v7827_v49 = vld [vmem:[#allocation11 + $0xc8] sm:$0xf]  ;;  %v7781_v41 = vld [vmem:[#allocation11 + $0x78] sm:$0xf0] }
 0x1f8   :  { %1387 = vmatmul.bf16.vlgmr.msra.gmra.mxu2 %v11607_v7  ;;  %1400 = vmatmul.bf16.vlgmr.msra.gmra.mxu3 %v11607_v7 }
 0x1f9   :  { %1647 = vmatpush.bf16.msrb.mxu2 %v7708_v2  ;;  %1660 = vmatpush.bf16.msrb.mxu3 %v7712_v3  ;;  %v10374_v2 = vld [vmem:[#allocation8 + $0x4c] sm:$0xf]  ;;  %v7637_v3 = vld [vmem:[#allocation8 + $0x58] sm:$0xf0] }
 0x1fa   :  { %1413 = vmatmul.bf16.vlgmr.msrb.gmra.mxu0 %v11607_v7  ;;  %1426 = vmatmul.bf16.vlgmr.msrb.gmra.mxu1 %v11607_v7  ;;  %v7688_v7 = vor.u32 %v10386_v1, %v7685_v4  ;;  %v7640_v5 = vor.u32 %v10374_v2, %v7637_v3  ;;  %v7605_v1 = vld [vmem:[#allocation8 + $0x18] sm:$0xf0]  ;;  %v7835_v4 = vld [vmem:[#allocation11 + $0xe0] sm:$0xf]  ;;  %v7824_v2 = vor.u32 %v10421_v44, %v7821_v48  ;;  %v10405_v48 = vld [vmem:[#allocation11 + $0x44] sm:$0xf] }
 0x1fb   :  { %1673 = vmatpush.bf16.msra.mxu0 %v7716_v23  ;;  %1686 = vmatpush.bf16.msra.mxu1 %v7720_v24  ;;  %v7619_v23 = vld [vmem:[#allocation8 + $0x28] sm:$0xf]  ;;  %v10372_v24 = vld [vmem:[#allocation8 + $0x34] sm:$0xf0]  ;;  %v7836_v26 = vor.u32 %v10427_v17, %v7835_v4 }
 0x1fd   :  { %1648 = vmatpush.bf16.msrb.mxu2 %v7692_v34  ;;  %1661 = vmatpush.bf16.msrb.mxu3 %v7696_v38  ;;  %v7620_v34 = vor.u32 %v10372_v24, %v7619_v23  ;;  %v10370_v38 = vld [vmem:[#allocation8 + $0x2c] sm:$0xf]  ;;  %v7805_v23 = vld [vmem:[#allocation11 + $0xb0] sm:$0xf0] }
 0x1ff   :  { %1674 = vmatpush.bf16.msra.mxu0 %v7700_v50  ;;  %1687 = vmatpush.bf16.msra.mxu1 %v7704_v54  ;;  %v7624_v50 = vor.u32 %v10370_v38, %v7621_v39  ;;  %v7595_v54 = vld [vmem:[#allocation8] sm:$0xf]  ;;  %v10420_v38 = vld [vmem:[#allocation11 + $0xb4] sm:$0xf0]  ;;  %v10418_v39 = vld [vmem:[#allocation11 + $0xac] sm:$0xf] }
 0x200   :  { %v7596_v56 = vor.u32 %v10367_v55, %v7595_v54  ;;  %v7813_v54 = vld [vmem:[#allocation11 + $0xb8] sm:$0xf0] }
 0x201   :  { %1649 = vmatpush.bf16.msrb.mxu2 %v7676_v58  ;;  %1662 = vmatpush.bf16.msrb.mxu3 %v7680_v60  ;;  %v7597_v58 = vld [vmem:[#allocation8 + $0x10] sm:$0xf0]  ;;  %v7604_v60 = vor.u32 %v10368_v59, %v7603_v61  ;;  %v10413_v61 = vld [vmem:[#allocation11 + $0x84] sm:$0xf] }
 0x202   :  { %v7600_v62 = vor.u32 %v10365_v57, %v7597_v58  ;;  %v7787_v57 = vld [vmem:[#allocation11 + $0x80] sm:$0xf]  ;;  %v10415_v58 = vld [vmem:[#allocation11 + $0x8c] sm:$0xf0]  ;;  %v7789_v59 = vld [vmem:[#allocation11 + $0x90] sm:$0xf0] }
 0x203   :  { %1675 = vmatpush.bf16.msra.mxu0 %v7684_v63  ;;  %1688 = vmatpush.bf16.msra.mxu1 %v7688_v7  ;;  %v10366_v63 = vld [vmem:[#allocation8 + $0xc] sm:$0xf]  ;;  %v7788_v4 = vor.u32 %v10415_v58, %v7787_v57 }
 0x204   :  { %v7608_v16 = vor.u32 %v10366_v63, %v7605_v1 }
 0x205   :  { %1650 = vmatpush.bf16.msrb.mxu2 %v7660_v12  ;;  %1663 = vmatpush.bf16.msrb.mxu3 %v7664_v18  ;;  %v10425_v18 = vld [vmem:[#allocation11 + $0xe4] sm:$0xf] }
 0x207   :  { %1676 = vmatpush.bf16.msra.mxu0 %v7668_v22  ;;  %1689 = vmatpush.bf16.msra.mxu1 %v7672_v27  ;;  %v7837_v27 = vld [vmem:[#allocation11 + $0xf0] sm:$0xf0] }
 0x208   :  { %v7840_v20 = vor.u32 %v10425_v18, %v7837_v27  ;;  %v10409_v27 = vld [vmem:[#allocation11 + $0x64] sm:$0xf] }
 0x209   :  { %1651 = vmatpush.bf16.msrb.mxu2 %v7644_v21  ;;  %1664 = vmatpush.bf16.msrb.mxu3 %v7648_v33  ;;  %v10428_v21 = vld [vmem:[#allocation11 + $0xf4] sm:$0xf0] }
 0x20a   :  { %v7844_v37 = vor.u32 %v10428_v21, %v7843_v0  ;;  %v7773_v0 = vld [vmem:[#allocation11 + $0x70] sm:$0xf0] }
 0x20b   :  { %1677 = vmatpush.bf16.msra.mxu0 %v7652_v35  ;;  %1690 = vmatpush.bf16.msra.mxu1 %v7656_v40  ;;  %v7848_v40 = vor.u32 %v10426_v29, %v7845_v31  ;;  %v7779_v31 = vld [vmem:[#allocation11 + $0x68] sm:$0xf] }
 0x20d   :  { %1652 = vmatpush.bf16.msrb.mxu2 %v7628_v45  ;;  %1665 = vmatpush.bf16.msrb.mxu3 %v7632_v52  ;;  %v897_v45 = vld [vmem:[#allocation2 + $0x10] sm:$0xc]  ;;  %v10424_v52 = vld [vmem:[#allocation11 + $0xd4] sm:$0xf0] }
 0x20e   :  { %v7828_v3 = vor.u32 %v10424_v52, %v7827_v49  ;;  %v7757_v52 = vld [vmem:[#allocation11 + $0x50] sm:$0xf0] }
 0x20f   :  { %1678 = vmatpush.bf16.msra.mxu0 %v7636_v53  ;;  %1691 = vmatpush.bf16.msra.mxu1 %v7640_v5  ;;  %v10422_v5 = vld [vmem:[#allocation11 + $0xcc] sm:$0xf] }
 0x210   :  { %v7832_v14 = vor.u32 %v10422_v5, %v7829_v6 }
 0x211   :  { %1653 = vmatpush.bf16.msrb.mxu2 %v7612_v15  ;;  %1666 = vmatpush.bf16.msrb.mxu3 %v7616_v28  ;;  %v10419_v15 = vld [vmem:[#allocation11 + $0xac] sm:$0xf0] }
 0x212   :  { %v7804_v28 = vor.u32 %v10419_v15, %v7803_v10  ;;  %v7765_v15 = vld [vmem:[#allocation11 + $0x58] sm:$0xf0] }
 0x213   :  { %1679 = vmatpush.bf16.msra.mxu0 %v7620_v34  ;;  %1692 = vmatpush.bf16.msra.mxu1 %v7624_v50  ;;  %v7811_v34 = vld [vmem:[#allocation11 + $0xa8] sm:$0xf]  ;;  %v7808_v50 = vor.u32 %v10417_v19, %v7805_v23  ;;  %v7760_v23 = vor.u32 %v10405_v48, %v7757_v52 }
 0x214   :  { %v7812_v55 = vor.u32 %v10420_v38, %v7811_v34 }
 0x215   :  { %1654 = vmatpush.bf16.msrb.mxu2 %v7596_v56  ;;  %1667 = vmatpush.bf16.msrb.mxu3 %v7600_v62  ;;  %v7816_v56 = vor.u32 %v10418_v39, %v7813_v54  ;;  %v7795_v62 = vld [vmem:[#allocation11 + $0x88] sm:$0xf]  ;;  %v10401_v39 = vld [vmem:[#allocation11 + $0x24] sm:$0xf]  ;;  %v10402_v54 = vld [vmem:[#allocation11 + $0x2c] sm:$0xf] }
 0x217   :  { %1680 = vmatpush.bf16.msra.mxu0 %v7604_v60  ;;  %1693 = vmatpush.bf16.msra.mxu1 %v7608_v16 }
 0x219   :  { %1940 = vmatpush.bf16.msra.mxu2 %v7836_v26  ;;  %1953 = vmatpush.bf16.msra.mxu3 %v7840_v20  ;;  %v925_v20 = vrot.slane %v11604_v51, 6  ;;  %v7755_v51 = vld [vmem:[#allocation11 + $0x40] sm:$0xf] }
 0x21b   :  { %1966 = vmatpush.bf16.msrb.mxu0 %v7844_v37  ;;  %1979 = vmatpush.bf16.msrb.mxu1 %v7848_v40  ;;  %v7776_v37 = vor.u32 %v10409_v27, %v7773_v0  ;;  %v10410_v40 = vld [vmem:[#allocation11 + $0x6c] sm:$0xf] }
 0x21c   :  { %v7784_v49 = vor.u32 %v10410_v40, %v7781_v41  ;;  %v7965_v40 = vld [vmem:[#allocation9 + $0xf0] sm:$0xf0]  ;;  %v7971_v41 = vld [vmem:[#allocation9 + $0xe8] sm:$0xf] }
 0x21d   :  { %1941 = vmatpush.bf16.msra.mxu2 %v7820_v47  ;;  %1954 = vmatpush.bf16.msra.mxu3 %v7824_v2  ;;  %v10407_v47 = vld [vmem:[#allocation11 + $0x4c] sm:$0xf0]  ;;  %v10408_v2 = vld [vmem:[#allocation11 + $0x54] sm:$0xf0] }
 0x21e   :  { %v7756_v10 = vor.u32 %v10407_v47, %v7755_v51  ;;  %v7973_v51 = vld [vmem:[#allocation9 + $0xf8] sm:$0xf0] }
 0x21f   :  { %1967 = vmatpush.bf16.msrb.mxu0 %v7828_v3  ;;  %1980 = vmatpush.bf16.msrb.mxu1 %v7832_v14  ;;  %v10406_v14 = vld [vmem:[#allocation11 + $0x4c] sm:$0xf] }
 0x220   :  { %v7768_v38 = vor.u32 %v10406_v14, %v7765_v15 }
 0x221   :  { %1942 = vmatpush.bf16.msra.mxu2 %v7804_v28  ;;  %1955 = vmatpush.bf16.msra.mxu3 %v7808_v50  ;;  %v10403_v28 = vld [vmem:[#allocation11 + $0x2c] sm:$0xf0]  ;;  %v10404_v50 = vld [vmem:[#allocation11 + $0x34] sm:$0xf0] }
 0x223   :  { %1968 = vmatpush.bf16.msrb.mxu0 %v7812_v55  ;;  %1981 = vmatpush.bf16.msrb.mxu1 %v7816_v56  ;;  %v7749_v55 = vld [vmem:[#allocation11 + $0x38] sm:$0xf0]  ;;  %v11639_v56 = vld [vmem:[%s11974_s7] sm:$0xf] }
 0x224   :  { %v969_v27 = vperm.slane %v11639_v56, 2  ;;  %v968_v0 = vperm.slane %v11639_v56, 1  ;;  %v970_v47 = vperm.slane %v11639_v56, 3 }
 0x225   :  { %1943 = vmatpush.bf16.msra.mxu2 %v7788_v4  ;;  %v10399_v4 = vld [vmem:[#allocation11 + $0xc] sm:$0xf0] }
 0x255   :  { %v877_v42 = vpop.f32.mrf.mxu0  ;;  %v11621_v46 = vpop.f32.mrf.mxu1 }
 0x256   :  { %v904_v7 = vrot.slane %v877_v42, 6  ;;  %v905_v8 = vrot.slane %v11621_v46, 6 }
 0x258   :  { %v912_v53 = vadd.f32 %v904_v7, %v896_v30  ;;  %v913_v24 = vadd.f32 %v905_v8, %v897_v45  ;;  %v10416_v7 = vld [vmem:[#allocation11 + $0x94] sm:$0xf0]  ;;  %v10414_v8 = vld [vmem:[#allocation11 + $0x8c] sm:$0xf] }
 0x259   :  { %v7796_v17 = vor.u32 %v10416_v7, %v7795_v62 }
 0x25a   :  { %v851_v9 = vpop.f32.mrf.mxu2  ;;  %v864_v12 = vpop.f32.mrf.mxu3 }
 0x25b   :  { %v902_v22 = vrot.slane %v851_v9, 6  ;;  %v903_v25 = vrot.slane %v864_v12, 6  ;;  %v7797_v9 = vld [vmem:[#allocation11 + $0x98] sm:$0xf0]  ;;  %1969 = vmatpush.bf16.msrb.mxu0 %v7796_v17 }
 0x25c   :  { %v7800_v18 = vor.u32 %v10414_v8, %v7797_v9  ;;  %v7752_v8 = vor.u32 %v10402_v54, %v7749_v55  ;;  %v10397_v9 = vld [vmem:[#allocation11 + $0x4] sm:$0xf]  ;;  %v7733_v17 = vld [vmem:[#allocation11 + $0x18] sm:$0xf0] }
 0x25d   :  { %v910_v32 = vadd.f32 %v902_v22, %v894_v11  ;;  %v911_v33 = vadd.f32 %v903_v25, %v895_v13  ;;  %v879_v35 = vpop.f32.mrf.mxu0  ;;  %v892_v36 = vpop.f32.mrf.mxu1  ;;  %v7792_v13 = vor.u32 %v10413_v61, %v7789_v59  ;;  %v7771_v22 = vld [vmem:[#allocation11 + $0x60] sm:$0xf]  ;;  %v10411_v25 = vld [vmem:[#allocation11 + $0x6c] sm:$0xf0] }
 0x25e   :  { %v7772_v29 = vor.u32 %v10411_v25, %v7771_v22  ;;  %1982 = vmatpush.bf16.msrb.mxu1 %v7800_v18  ;;  %v967_v22 = vperm.slane %v11639_v56, 0 }
 0x25f   :  { %11047 = vtanh.f32 %v910_v32  ;;  %v10412_v32 = vld [vmem:[#allocation11 + $0x74] sm:$0xf0]  ;;  %1956 = vmatpush.bf16.msra.mxu3 %v7792_v13 }
 0x260   :  { %11049 = vtanh.f32 %v911_v33  ;;  %v7780_v45 = vor.u32 %v10412_v32, %v7779_v31  ;;  %1944 = vmatpush.bf16.msra.mxu2 %v7772_v29  ;;  %v10400_v13 = vld [vmem:[#allocation11 + $0x14] sm:$0xf0]  ;;  %v7963_v29 = vld [vmem:[#allocation9 + $0xe0] sm:$0xf]  ;;  %v10459_v31 = vld [vmem:[#allocation9 + $0xec] sm:$0xf0] }
 0x261   :  { %11051 = vtanh.f32 %v912_v53  ;;  %v7763_v53 = vld [vmem:[#allocation11 + $0x48] sm:$0xf] }
 0x262   :  { %v853_v42 = vpop.f32.mrf.mxu2  ;;  %v866_v46 = vpop.f32.mrf.mxu3  ;;  %11053 = vtanh.f32 %v913_v24  ;;  %v7739_v24 = vld [vmem:[#allocation11 + $0x20] sm:$0xf]  ;;  %1970 = vmatpush.bf16.msrb.mxu0 %v7780_v45  ;;  %1983 = vmatpush.bf16.msrb.mxu1 %v7784_v49  ;;  %v7764_v34 = vor.u32 %v10408_v2, %v7763_v53  ;;  %v10458_v45 = vld [vmem:[#allocation9 + $0xec] sm:$0xf]  ;;  %v7964_v53 = vor.u32 %v10459_v31, %v7963_v29 }
 0x263   :  { %1957 = vmatpush.bf16.msra.mxu3 %v7776_v37  ;;  %v7741_v42 = vld [vmem:[#allocation11 + $0x30] sm:$0xf0]  ;;  %v7747_v46 = vld [vmem:[#allocation11 + $0x28] sm:$0xf]  ;;  %v7740_v57 = vor.u32 %v10403_v28, %v7739_v24  ;;  %v10457_v37 = vld [vmem:[#allocation9 + $0xe4] sm:$0xf] }
 0x264   :  { %1945 = vmatpush.bf16.msra.mxu2 %v7756_v10  ;;  %v7744_v62 = vor.u32 %v10401_v39, %v7741_v42  ;;  %v7748_v7 = vor.u32 %v10404_v50, %v7747_v46  ;;  %v7968_v2 = vor.u32 %v10457_v37, %v7965_v40  ;;  %v7949_v24 = vld [vmem:[#allocation9 + $0xd0] sm:$0xf0]  ;;  %v7955_v28 = vld [vmem:[#allocation9 + $0xc8] sm:$0xf]  ;;  %v10454_v39 = vld [vmem:[#allocation9 + $0xcc] sm:$0xf] }
 0x265   :  { %v11048_v60 = vpop.eup %11047  ;;  %v11624_v63 = vpop.f32.mrf.mxu0  ;;  %v7957_v42 = vld [vmem:[#allocation9 + $0xd8] sm:$0xf0]  ;;  %v10446_v29 = vld [vmem:[#allocation9 + $0x8c] sm:$0xf]  ;;  %v10443_v37 = vld [vmem:[#allocation9 + $0x6c] sm:$0xf0] }
 0x266   :  { %v11626_v1 = vpop.f32.mrf.mxu1  ;;  %v11050_v11 = vpop.eup %11049  ;;  %v918_v12 = vmul.f32 0.5, %v11048_v60  ;;  %v7723_v60 = vld [vmem:[#allocation11] sm:$0xf]  ;;  %1971 = vmatpush.bf16.msrb.mxu0 %v7764_v34  ;;  %1984 = vmatpush.bf16.msrb.mxu1 %v7768_v38 }
 0x267   :  { %v920_v16 = vmul.f32 0.5, %v11050_v11  ;;  %v11052_v30 = vpop.eup %11051  ;;  %1958 = vmatpush.bf16.msra.mxu3 %v7760_v23  ;;  %v7725_v11 = vld [vmem:[#allocation11 + $0x10] sm:$0xf0]  ;;  %v7724_v25 = vor.u32 %v10399_v4, %v7723_v60  ;;  %v10453_v23 = vld [vmem:[#allocation9 + $0xc4] sm:$0xf]  ;;  %v1184_v46 = vadd.f32 %v11626_v1, %v970_v47 }
 0x268   :  { %v919_v26 = vadd.f32 0.5, %v918_v12  ;;  %v11054_v43 = vpop.eup %11053  ;;  %v7731_v12 = vld [vmem:[#allocation11 + $0x8] sm:$0xf]  ;;  %1946 = vmatpush.bf16.msra.mxu2 %v7740_v57  ;;  %v7952_v56 = vor.u32 %v10453_v23, %v7949_v24  ;;  %v7931_v57 = vld [vmem:[#allocation9 + $0xa0] sm:$0xf] }
 0x269   :  { %v921_v21 = vadd.f32 0.5, %v920_v16  ;;  %v922_v19 = vmul.f32 0.5, %v11054_v43  ;;  %v10398_v16 = vld [vmem:[#allocation11 + $0xc] sm:$0xf]  ;;  %v7732_v32 = vor.u32 %v10400_v13, %v7731_v12  ;;  %v10449_v1 = vld [vmem:[#allocation9 + $0xa4] sm:$0xf] }
 0x26a   :  { %v928_v33 = vmul.f32 %v11052_v30, %v919_v26  ;;  %v11629_v35 = vpop.f32.mrf.mxu2  ;;  %v11631_v36 = vpop.f32.mrf.mxu3  ;;  %1972 = vmatpush.bf16.msrb.mxu0 %v7748_v7  ;;  %1985 = vmatpush.bf16.msrb.mxu1 %v7752_v8  ;;  %v7939_v60 = vld [vmem:[#allocation9 + $0xa8] sm:$0xf]  ;;  %v10452_v4 = vld [vmem:[#allocation9 + $0xb4] sm:$0xf0]  ;;  %v10450_v7 = vld [vmem:[#allocation9 + $0xac] sm:$0xf] }
 0x26b   :  { %v927_v44 = vmul.f32 %v925_v20, %v921_v21  ;;  %v923_v58 = vadd.f32 0.5, %v922_v19  ;;  %1959 = vmatpush.bf16.msra.mxu3 %v7744_v62  ;;  %v7728_v21 = vor.u32 %v10397_v9, %v7725_v11  ;;  %v1145_v48 = vadd.f32 %v11629_v35, %v967_v22  ;;  %v7933_v62 = vld [vmem:[#allocation9 + $0xb0] sm:$0xf0]  ;;  %v7941_v8 = vld [vmem:[#allocation9 + $0xb8] sm:$0xf0] }
 0x26c   :  { %1947 = vmatpush.bf16.msra.mxu2 %v7724_v25  ;;  %v1158_v52 = vadd.f32 %v11631_v36, %v968_v0  ;;  %v7976_v19 = vor.u32 %v10458_v45, %v7973_v51  ;;  %v1171_v35 = vadd.f32 %v11624_v63, %v969_v27  ;;  %v10456_v36 = vld [vmem:[#allocation9 + $0xd4] sm:$0xf0]  ;;  %v7936_v12 = vor.u32 %v10449_v1, %v7933_v62  ;;  %v7915_v13 = vld [vmem:[#allocation9 + $0x80] sm:$0xf]  ;;  %v7917_v27 = vld [vmem:[#allocation9 + $0x90] sm:$0xf0] }
 0x26d   :  { %v11633_v3 = vadd.f32 %v928_v33, %v927_v44  ;;  %v1172_v5 = vpop.f32.mrf.mxu0  ;;  %v7736_v33 = vor.u32 %v10398_v16, %v7733_v17  ;;  %v10460_v44 = vld [vmem:[#allocation9 + $0xf4] sm:$0xf0]  ;;  %v10447_v16 = vld [vmem:[#allocation9 + $0x8c] sm:$0xf0]  ;;  %v7940_v22 = vor.u32 %v10452_v4, %v7939_v60  ;;  %v7944_v25 = vor.u32 %v10450_v7, %v7941_v8  ;;  %v7923_v0 = vld [vmem:[#allocation9 + $0x88] sm:$0xf] }
 0x26e   :  { %v1185_v6 = vpop.f32.mrf.mxu1  ;;  %v7947_v5 = vld [vmem:[#allocation9 + $0xc0] sm:$0xf]  ;;  %1973 = vmatpush.bf16.msrb.mxu0 %v7732_v32  ;;  %v7972_v15 = vor.u32 %v10460_v44, %v7971_v41  ;;  %v7916_v41 = vor.u32 %v10447_v16, %v7915_v13  ;;  %v10441_v44 = vld [vmem:[#allocation9 + $0x64] sm:$0xf]  ;;  %v7901_v45 = vld [vmem:[#allocation9 + $0x70] sm:$0xf0] }
 0x26f   :  { %11055 = vtanh.f32 %v11633_v3  ;;  %1960 = vmatpush.bf16.msra.mxu3 %v7728_v21  ;;  %v10455_v6 = vld [vmem:[#allocation9 + $0xcc] sm:$0xf0]  ;;  %1986 = vmatpush.bf16.msrb.mxu1 %v7736_v33  ;;  %v10448_v21 = vld [vmem:[#allocation9 + $0x94] sm:$0xf0]  ;;  %v7899_v33 = vld [vmem:[#allocation9 + $0x60] sm:$0xf]  ;;  %v7904_v23 = vor.u32 %v10441_v44, %v7901_v45 }
 0x270   :  { %v7948_v63 = vor.u32 %v10455_v6, %v7947_v5  ;;  %v7924_v47 = vor.u32 %v10448_v21, %v7923_v0  ;;  %v10442_v6 = vld [vmem:[#allocation9 + $0x6c] sm:$0xf]  ;;  %v7883_v24 = vld [vmem:[#allocation9 + $0x40] sm:$0xf]  ;;  %v10433_v62 = vld [vmem:[#allocation9 + $0x24] sm:$0xf] }
 0x271   :  { %v7869_v60 = vld [vmem:[#allocation9 + $0x30] sm:$0xf0]  ;;  %v7875_v4 = vld [vmem:[#allocation9 + $0x28] sm:$0xf]  ;;  %v10436_v7 = vld [vmem:[#allocation9 + $0x34] sm:$0xf0] }
 0x272   :  { %v1146_v61 = vpop.f32.mrf.mxu2  ;;  %v1159_v59 = vpop.f32.mrf.mxu3  ;;  %v10434_v8 = vld [vmem:[#allocation9 + $0x2c] sm:$0xf]  ;;  %v7876_v16 = vor.u32 %v10436_v7, %v7875_v4  ;;  %v7859_v0 = vld [vmem:[#allocation9 + $0x8] sm:$0xf]  ;;  %v10432_v21 = vld [vmem:[#allocation9 + $0x14] sm:$0xf0] }
 0x273   :  { %v7956_v61 = vor.u32 %v10456_v36, %v7955_v28  ;;  %v7960_v59 = vor.u32 %v10454_v39, %v7957_v42  ;;  %v10439_v28 = vld [vmem:[#allocation9 + $0x4c] sm:$0xf0]  ;;  %v10437_v36 = vld [vmem:[#allocation9 + $0x44] sm:$0xf]  ;;  %v7885_v39 = vld [vmem:[#allocation9 + $0x50] sm:$0xf0] }
 0x274   :  { %v7891_v42 = vld [vmem:[#allocation9 + $0x48] sm:$0xf]  ;;  %v10489_v44 = vld [vmem:[#allocation8 + $0xe4] sm:$0xf] }
 0x275   :  { %v11056_v18 = vpop.eup %11055 }
 0x276   :  { %v931_v26 = vmul.f32 %v11056_v18, %v923_v58  ;;  %v10451_v58 = vld [vmem:[#allocation9 + $0xac] sm:$0xf0] }
 0x277   :  { %v1414_v30 = vpop.f32.mrf.mxu0  ;;  %v11644_v20 = vpop.f32.mrf.mxu1  ;;  %v7932_v11 = vor.u32 %v10451_v58, %v7931_v57  ;;  %v7888_v57 = vor.u32 %v10437_v36, %v7885_v39  ;;  %v7867_v58 = vld [vmem:[#allocation9 + $0x20] sm:$0xf] }
 0x278   :  { %v932_v43 = vpack.c.bf16 %v931_v26, %v931_v26  ;;  %v1433_v50 = vadd.f32 %v1414_v30, %v1171_v35  ;;  %v1434_v9 = vadd.f32 %v11644_v20, %v1184_v46  ;;  %v10445_v26 = vld [vmem:[#allocation9 + $0x84] sm:$0xf]  ;;  %v7925_v20 = vld [vmem:[#allocation9 + $0x98] sm:$0xf0] }
 0x27a   :  { %v11648_v49 = vrot.slane %v932_v43, 1  ;;  %v7920_v43 = vor.u32 %v10445_v26, %v7917_v27  ;;  %v10429_v26 = vld [vmem:[#allocation9 + $0x4] sm:$0xf]  ;;  %v7853_v27 = vld [vmem:[#allocation9 + $0x10] sm:$0xf0] }
 0x27b   :  { %v1388_v10 = vpop.f32.mrf.mxu2  ;;  %v1401_v14 = vpop.f32.mrf.mxu3 }
 0x27c   :  { %v1431_v34 = vadd.f32 %v1388_v10, %v1145_v48  ;;  %v1432_v38 = vadd.f32 %v1401_v14, %v1158_v52  ;;  %1655 = vmatmul.bf16.vlgmr.msrb.gmra.mxu2 %v11648_v49  ;;  %1668 = vmatmul.bf16.vlgmr.msrb.gmra.mxu3 %v11648_v49  ;;  %v7928_v48 = vor.u32 %v10446_v29, %v7925_v20  ;;  %v7907_v52 = vld [vmem:[#allocation9 + $0x68] sm:$0xf]  ;;  %v7909_v10 = vld [vmem:[#allocation9 + $0x78] sm:$0xf0]  ;;  %v10430_v29 = vld [vmem:[#allocation9 + $0xc] sm:$0xf] }
 0x27d   :  { %1681 = vmatmul.bf16.vlgmr.msra.gmra.mxu0 %v11648_v49  ;;  %1694 = vmatmul.bf16.vlgmr.msra.gmra.mxu1 %v11648_v49  ;;  %v7861_v20 = vld [vmem:[#allocation9 + $0x18] sm:$0xf0] }
 0x27e   :  { %11057 = vtanh.f32 %v1431_v34  ;;  %2184 = vmatpush.bf16.msrb.mxu2 %v7964_v53  ;;  %2197 = vmatpush.bf16.msrb.mxu3 %v7968_v2  ;;  %v10444_v53 = vld [vmem:[#allocation9 + $0x74] sm:$0xf0] }
 0x27f   :  { %v1416_v54 = vpop.f32.mrf.mxu0  ;;  %v1429_v55 = vpop.f32.mrf.mxu1  ;;  %11059 = vtanh.f32 %v1432_v38  ;;  %2210 = vmatpush.bf16.msra.mxu0 %v7972_v15  ;;  %2223 = vmatpush.bf16.msra.mxu1 %v7976_v19  ;;  %v7900_v19 = vor.u32 %v10443_v37, %v7899_v33  ;;  %v7908_v34 = vor.u32 %v10444_v53, %v7907_v52  ;;  %v7912_v38 = vor.u32 %v10442_v6, %v7909_v10  ;;  %v8075_v10 = vld [vmem:[#allocation8 + $0xc0] sm:$0xf] }
 0x280   :  { %11061 = vtanh.f32 %v1433_v50  ;;  %v10440_v50 = vld [vmem:[#allocation9 + $0x54] sm:$0xf0]  ;;  %v10438_v54 = vld [vmem:[#allocation9 + $0x4c] sm:$0xf]  ;;  %v7893_v55 = vld [vmem:[#allocation9 + $0x58] sm:$0xf0]  ;;  %v7856_v33 = vor.u32 %v10429_v26, %v7853_v27  ;;  %v7860_v37 = vor.u32 %v10432_v21, %v7859_v0 }
 0x281   :  { %11063 = vtanh.f32 %v1434_v9  ;;  %v7896_v1 = vor.u32 %v10438_v54, %v7893_v55  ;;  %v7877_v9 = vld [vmem:[#allocation9 + $0x38] sm:$0xf0]  ;;  %v10483_v54 = vld [vmem:[#allocation8 + $0xac] sm:$0xf0]  ;;  %v8045_v26 = vld [vmem:[#allocation8 + $0x90] sm:$0xf0] }
 0x282   :  { %2185 = vmatpush.bf16.msrb.mxu2 %v7948_v63  ;;  %2198 = vmatpush.bf16.msrb.mxu3 %v7952_v56  ;;  %v7884_v56 = vor.u32 %v10439_v28, %v7883_v24  ;;  %v10488_v24 = vld [vmem:[#allocation8 + $0xd4] sm:$0xf0]  ;;  %v8051_v27 = vld [vmem:[#allocation8 + $0x88] sm:$0xf]  ;;  %v1701_v0 = vld [vmem:[#allocation2 + $0x18] sm:$0x30] }
 0x283   :  { %v1390_v17 = vpop.f32.mrf.mxu2  ;;  %v1403_v18 = vpop.f32.mrf.mxu3  ;;  %2211 = vmatpush.bf16.msra.mxu0 %v7956_v61  ;;  %2224 = vmatpush.bf16.msra.mxu1 %v7960_v59  ;;  %v10435_v61 = vld [vmem:[#allocation9 + $0x2c] sm:$0xf0]  ;;  %v7892_v59 = vor.u32 %v10440_v50, %v7891_v42  ;;  %v8059_v50 = vld [vmem:[#allocation8 + $0xa0] sm:$0xf]  ;;  %v10480_v21 = vld [vmem:[#allocation8 + $0x94] sm:$0xf0] }
 0x284   :  { %v11058_v30 = vpop.eup %11057  ;;  %v7880_v17 = vor.u32 %v10434_v8, %v7877_v9  ;;  %v7851_v18 = vld [vmem:[#allocation9] sm:$0xf]  ;;  %v8060_v55 = vor.u32 %v10483_v54, %v8059_v50  ;;  %v1699_v9 = vld [vmem:[#allocation2 + $0x30] sm:$0x30]  ;;  %v8021_v54 = vld [vmem:[#allocation8 + $0x58] sm:$0xf0] }
 0x285   :  { %v11060_v31 = vpop.eup %11059  ;;  %v1439_v32 = vmul.f32 0.5, %v11058_v30 }
 0x286   :  { %v1441_v40 = vmul.f32 0.5, %v11060_v31  ;;  %2186 = vmatpush.bf16.msrb.mxu2 %v7932_v11  ;;  %2199 = vmatpush.bf16.msrb.mxu3 %v7936_v12  ;;  %v11062_v2 = vpop.eup %11061  ;;  %v7868_v11 = vor.u32 %v10435_v61, %v7867_v58  ;;  %v7872_v12 = vor.u32 %v10433_v62, %v7869_v60  ;;  %v10484_v61 = vld [vmem:[#allocation8 + $0xb4] sm:$0xf0] }
 0x287   :  { %v1440_v51 = vadd.f32 0.5, %v1439_v32  ;;  %2212 = vmatpush.bf16.msra.mxu0 %v7940_v22  ;;  %2225 = vmatpush.bf16.msra.mxu1 %v7944_v25  ;;  %v11064_v35 = vpop.eup %11063  ;;  %v10431_v22 = vld [vmem:[#allocation9 + $0xc] sm:$0xf0] }
 0x288   :  { %v1442_v5 = vadd.f32 0.5, %v1441_v40  ;;  %v1443_v63 = vmul.f32 0.5, %v11064_v35  ;;  %v7852_v32 = vor.u32 %v10431_v22, %v7851_v18  ;;  %v7864_v40 = vor.u32 %v10430_v29, %v7861_v20  ;;  %v10478_v29 = vld [vmem:[#allocation8 + $0x8c] sm:$0xf]  ;;  %v8053_v20 = vld [vmem:[#allocation8 + $0x98] sm:$0xf0] }
 0x289   :  { %v1446_v14 = vmul.f32 %v11062_v2, %v1440_v51  ;;  %v8093_v51 = vld [vmem:[#allocation8 + $0xf0] sm:$0xf0]  ;;  %v10490_v2 = vld [vmem:[#allocation8 + $0xec] sm:$0xf] }
 0x28a   :  { %v1445_v15 = vmul.f32 0.0, %v1442_v5  ;;  %2187 = vmatpush.bf16.msrb.mxu2 %v7916_v41  ;;  %2200 = vmatpush.bf16.msrb.mxu3 %v7920_v43  ;;  %v1444_v13 = vadd.f32 0.5, %v1443_v63  ;;  %v8091_v41 = vld [vmem:[#allocation8 + $0xe0] sm:$0xf]  ;;  %v10491_v43 = vld [vmem:[#allocation8 + $0xec] sm:$0xf0]  ;;  %v8096_v52 = vor.u32 %v10489_v44, %v8093_v51 }
 0x28b   :  { %2213 = vmatpush.bf16.msra.mxu0 %v7924_v47  ;;  %2226 = vmatpush.bf16.msra.mxu1 %v7928_v48  ;;  %v8092_v45 = vor.u32 %v10491_v43, %v8091_v41  ;;  %v8099_v47 = vld [vmem:[#allocation8 + $0xe8] sm:$0xf]  ;;  %v10492_v48 = vld [vmem:[#allocation8 + $0xf4] sm:$0xf0]  ;;  %v8101_v5 = vld [vmem:[#allocation8 + $0xf8] sm:$0xf0]  ;;  %v8056_v41 = vor.u32 %v10478_v29, %v8053_v20 }
 0x28c   :  { %v11658_v46 = vadd.f32 %v1446_v14, %v1445_v15  ;;  %v8100_v53 = vor.u32 %v10492_v48, %v8099_v47  ;;  %v8104_v6 = vor.u32 %v10490_v2, %v8101_v5  ;;  %v10487_v14 = vld [vmem:[#allocation8 + $0xcc] sm:$0xf0]  ;;  %v10485_v15 = vld [vmem:[#allocation8 + $0xc4] sm:$0xf]  ;;  %v8027_v43 = vld [vmem:[#allocation8 + $0x60] sm:$0xf] }
 0x28d   :  { %v10481_v63 = vld [vmem:[#allocation8 + $0xa4] sm:$0xf]  ;;  %v10475_v44 = vld [vmem:[#allocation8 + $0x6c] sm:$0xf0]  ;;  %v8029_v47 = vld [vmem:[#allocation8 + $0x70] sm:$0xf0] }
 0x28e   :  { %11065 = vtanh.f32 %v11658_v46  ;;  %2188 = vmatpush.bf16.msrb.mxu2 %v7900_v19  ;;  %2201 = vmatpush.bf16.msrb.mxu3 %v7904_v23  ;;  %v8077_v19 = vld [vmem:[#allocation8 + $0xd0] sm:$0xf0]  ;;  %v8083_v23 = vld [vmem:[#allocation8 + $0xc8] sm:$0xf]  ;;  %v8028_v51 = vor.u32 %v10475_v44, %v8027_v43  ;;  %v10464_v20 = vld [vmem:[#allocation8 + $0x14] sm:$0xf0] }
 0x28f   :  { %2214 = vmatpush.bf16.msra.mxu0 %v7908_v34  ;;  %2227 = vmatpush.bf16.msra.mxu1 %v7912_v38  ;;  %v8080_v28 = vor.u32 %v10485_v15, %v8077_v19  ;;  %v8084_v35 = vor.u32 %v10488_v24, %v8083_v23  ;;  %v10486_v34 = vld [vmem:[#allocation8 + $0xcc] sm:$0xf]  ;;  %v8085_v38 = vld [vmem:[#allocation8 + $0xd8] sm:$0xf0]  ;;  %v8035_v48 = vld [vmem:[#allocation8 + $0x68] sm:$0xf] }
 0x290   :  { %v8088_v42 = vor.u32 %v10486_v34, %v8085_v38  ;;  %v10469_v19 = vld [vmem:[#allocation8 + $0x44] sm:$0xf]  ;;  %v8013_v23 = vld [vmem:[#allocation8 + $0x50] sm:$0xf0]  ;;  %v10470_v34 = vld [vmem:[#allocation8 + $0x4c] sm:$0xf] }
 0x291   :  { %v1702_v38 = vld [vmem:[#allocation2 + $0x10] sm:$0x30]  ;;  %v8016_v50 = vor.u32 %v10469_v19, %v8013_v23  ;;  %v10523_v43 = vld [vmem:[#allocation11 + $0xec] sm:$0xf0]  ;;  %v10517_v23 = vld [vmem:[#allocation11 + $0xc4] sm:$0xf] }
 0x292   :  { %2189 = vmatpush.bf16.msrb.mxu2 %v7884_v56  ;;  %2202 = vmatpush.bf16.msrb.mxu3 %v7888_v57  ;;  %v8061_v56 = vld [vmem:[#allocation8 + $0xb0] sm:$0xf0]  ;;  %v8067_v57 = vld [vmem:[#allocation8 + $0xa8] sm:$0xf]  ;;  %v10519_v19 = vld [vmem:[#allocation11 + $0xcc] sm:$0xf0] }
 0x293   :  { %2215 = vmatpush.bf16.msra.mxu0 %v7892_v59  ;;  %2228 = vmatpush.bf16.msra.mxu1 %v7896_v1  ;;  %v8064_v58 = vor.u32 %v10481_v63, %v8061_v56  ;;  %v10482_v59 = vld [vmem:[#allocation8 + $0xac] sm:$0xf]  ;;  %v8069_v1 = vld [vmem:[#allocation8 + $0xb8] sm:$0xf0]  ;;  %v8068_v4 = vor.u32 %v10484_v61, %v8067_v57  ;;  %v8024_v56 = vor.u32 %v10470_v34, %v8021_v54  ;;  %v7995_v57 = vld [vmem:[#allocation8 + $0x20] sm:$0xf] }
 0x294   :  { %v11066_v25 = vpop.eup %11065  ;;  %v8072_v7 = vor.u32 %v10482_v59, %v8069_v1  ;;  %v10465_v61 = vld [vmem:[#allocation8 + $0x24] sm:$0xf]  ;;  %v7997_v59 = vld [vmem:[#allocation8 + $0x30] sm:$0xf0]  ;;  %v10520_v34 = vld [vmem:[#allocation11 + $0xd4] sm:$0xf0] }
 0x295   :  { %v1449_v30 = vmul.f32 %v11066_v25, %v1444_v13  ;;  %v8043_v13 = vld [vmem:[#allocation8 + $0x80] sm:$0xf] }
 0x296   :  { %2190 = vmatpush.bf16.msrb.mxu2 %v7868_v11  ;;  %2203 = vmatpush.bf16.msrb.mxu3 %v7872_v12  ;;  %v1700_v12 = vld [vmem:[#allocation2] sm:$0x30] }
 0x297   :  { %v1450_v31 = vpack.c.bf16 %v1449_v30, %v1449_v30  ;;  %2216 = vmatpush.bf16.msra.mxu0 %v7876_v16  ;;  %2229 = vmatpush.bf16.msra.mxu1 %v7880_v17  ;;  %v10479_v16 = vld [vmem:[#allocation8 + $0x8c] sm:$0xf0]  ;;  %v10477_v17 = vld [vmem:[#allocation8 + $0x84] sm:$0xf] }
 0x298   :  { %v8044_v25 = vor.u32 %v10479_v16, %v8043_v13  ;;  %v8048_v30 = vor.u32 %v10477_v17, %v8045_v26  ;;  %v7981_v26 = vld [vmem:[#allocation8 + $0x10] sm:$0xf0] }
 0x299   :  { %1451 = vst [vmem:[#allocation3] sm:$0x1] %v1450_v31  ;;  %1948 = vmatmul.bf16.vlgmr.msra.gmra.mxu2 %v1450_v31  ;;  %1961 = vmatmul.bf16.vlgmr.msra.gmra.mxu3 %v1450_v31 }
 0x29a   :  { %1974 = vmatmul.bf16.vlgmr.msrb.gmra.mxu0 %v1450_v31  ;;  %1987 = vmatmul.bf16.vlgmr.msrb.gmra.mxu1 %v1450_v31 }
 0x29b   :  { %2191 = vmatpush.bf16.msrb.mxu2 %v7852_v32  ;;  %2204 = vmatpush.bf16.msrb.mxu3 %v7856_v33 }
 0x29c   :  { %2217 = vmatpush.bf16.msra.mxu0 %v7860_v37  ;;  %2230 = vmatpush.bf16.msra.mxu1 %v7864_v40  ;;  %v8052_v40 = vor.u32 %v10480_v21, %v8051_v27  ;;  %v7987_v27 = vld [vmem:[#allocation8 + $0x8] sm:$0xf]  ;;  %v1730_v21 = vrot.slane %v11633_v3, 6 }
 0x29f   :  { %2455 = vmatpush.bf16.msra.mxu2 %v8092_v45  ;;  %2468 = vmatpush.bf16.msra.mxu3 %v8096_v52  ;;  %v10473_v45 = vld [vmem:[#allocation8 + $0x64] sm:$0xf]  ;;  %v10476_v52 = vld [vmem:[#allocation8 + $0x74] sm:$0xf0] }
 0x2a0   :  { %2481 = vmatpush.bf16.msrb.mxu0 %v8100_v53  ;;  %2494 = vmatpush.bf16.msrb.mxu1 %v8104_v6  ;;  %v8032_v2 = vor.u32 %v10473_v45, %v8029_v47  ;;  %v8036_v5 = vor.u32 %v10476_v52, %v8035_v48  ;;  %v10474_v6 = vld [vmem:[#allocation8 + $0x6c] sm:$0xf]  ;;  %v10521_v47 = vld [vmem:[#allocation11 + $0xe4] sm:$0xf]  ;;  %v8221_v48 = vld [vmem:[#allocation11 + $0xf0] sm:$0xf0] }
 0x2a1   :  { %v8227_v52 = vld [vmem:[#allocation11 + $0xe8] sm:$0xf]  ;;  %v8224_v3 = vor.u32 %v10521_v47, %v8221_v48  ;;  %v8157_v47 = vld [vmem:[#allocation11 + $0x70] sm:$0xf0] }
 0x2a2   :  { %v8163_v48 = vld [vmem:[#allocation11 + $0x68] sm:$0xf] }
 0x2a3   :  { %2469 = vmatpush.bf16.msra.mxu3 %v8080_v28  ;;  %v8019_v28 = vld [vmem:[#allocation8 + $0x48] sm:$0xf] }
 0x2a4   :  { %2482 = vmatpush.bf16.msrb.mxu0 %v8084_v35  ;;  %2495 = vmatpush.bf16.msrb.mxu1 %v8088_v42  ;;  %v10472_v35 = vld [vmem:[#allocation8 + $0x54] sm:$0xf0] }
 0x2a5   :  { %v8020_v63 = vor.u32 %v10472_v35, %v8019_v28  ;;  %v8205_v28 = vld [vmem:[#allocation11 + $0xd0] sm:$0xf0]  ;;  %v8211_v35 = vld [vmem:[#allocation11 + $0xc8] sm:$0xf] }
 0x2a6   :  { %v8208_v54 = vor.u32 %v10517_v23, %v8205_v28 }
 0x2a7   :  { %2470 = vmatpush.bf16.msra.mxu3 %v8064_v58  ;;  %v10467_v58 = vld [vmem:[#allocation8 + $0x2c] sm:$0xf0] }
 0x2a8   :  { %2483 = vmatpush.bf16.msrb.mxu0 %v8068_v4  ;;  %2496 = vmatpush.bf16.msrb.mxu1 %v8072_v7  ;;  %v8003_v4 = vld [vmem:[#allocation8 + $0x28] sm:$0xf]  ;;  %v10468_v7 = vld [vmem:[#allocation8 + $0x34] sm:$0xf0] }
 0x2a9   :  { %2192 = vmatmul.bf16.vlgmr.msrb.gmra.mxu2 %v11648_v49  ;;  %2205 = vmatmul.bf16.vlgmr.msrb.gmra.mxu3 %v11648_v49  ;;  %v8004_v16 = vor.u32 %v10468_v7, %v8003_v4  ;;  %v10514_v7 = vld [vmem:[#allocation11 + $0xac] sm:$0xf] }
 0x2aa   :  { %2218 = vmatmul.bf16.vlgmr.msra.gmra.mxu0 %v11648_v49  ;;  %2231 = vmatmul.bf16.vlgmr.msra.gmra.mxu1 %v11648_v49  ;;  %v8076_v49 = vor.u32 %v10487_v14, %v8075_v10  ;;  %v8037_v10 = vld [vmem:[#allocation8 + $0x78] sm:$0xf0]  ;;  %v8011_v14 = vld [vmem:[#allocation8 + $0x40] sm:$0xf] }
 0x2ab   :  { %2471 = vmatpush.bf16.msra.mxu3 %v8048_v30  ;;  %v8040_v15 = vor.u32 %v10474_v6, %v8037_v10 }
 0x2ac   :  { %2456 = vmatpush.bf16.msra.mxu2 %v8076_v49  ;;  %2484 = vmatpush.bf16.msrb.mxu0 %v8052_v40  ;;  %v10471_v49 = vld [vmem:[#allocation8 + $0x4c] sm:$0xf0]  ;;  %v7989_v40 = vld [vmem:[#allocation8 + $0x18] sm:$0xf0] }
 0x2ad   :  { %2497 = vmatpush.bf16.msrb.mxu1 %v8056_v41  ;;  %v8012_v24 = vor.u32 %v10471_v49, %v8011_v14  ;;  %v8219_v41 = vld [vmem:[#allocation11 + $0xe0] sm:$0xf] }
 0x2ae   :  { %v8203_v49 = vld [vmem:[#allocation11 + $0xc0] sm:$0xf] }
 0x2af   :  { %2472 = vmatpush.bf16.msra.mxu3 %v8032_v2  ;;  %v10522_v2 = vld [vmem:[#allocation11 + $0xec] sm:$0xf] }
 0x2b0   :  { %2457 = vmatpush.bf16.msra.mxu2 %v8060_v55  ;;  %2485 = vmatpush.bf16.msrb.mxu0 %v8036_v5  ;;  %v8229_v5 = vld [vmem:[#allocation11 + $0xf8] sm:$0xf0] }
 0x2b1   :  { %2498 = vmatpush.bf16.msrb.mxu1 %v8040_v15  ;;  %v8232_v15 = vor.u32 %v10522_v2, %v8229_v5  ;;  %v8139_v2 = vld [vmem:[#allocation11 + $0x40] sm:$0xf]  ;;  %v10503_v5 = vld [vmem:[#allocation11 + $0x4c] sm:$0xf0] }
 0x2b3   :  { %2473 = vmatpush.bf16.msra.mxu3 %v8016_v50 }
 0x2b4   :  { %2458 = vmatpush.bf16.msra.mxu2 %v8044_v25  ;;  %2486 = vmatpush.bf16.msrb.mxu0 %v8020_v63  ;;  %v10515_v63 = vld [vmem:[#allocation11 + $0xac] sm:$0xf0] }
 0x2b5   :  { %2499 = vmatpush.bf16.msrb.mxu1 %v8024_v56  ;;  %v10513_v56 = vld [vmem:[#allocation11 + $0xa4] sm:$0xf] }
 0x2b8   :  { %2459 = vmatpush.bf16.msra.mxu2 %v8028_v51  ;;  %2487 = vmatpush.bf16.msrb.mxu0 %v8004_v16  ;;  %v8220_v51 = vor.u32 %v10523_v43, %v8219_v41  ;;  %v8155_v41 = vld [vmem:[#allocation11 + $0x60] sm:$0xf]  ;;  %v10507_v43 = vld [vmem:[#allocation11 + $0x6c] sm:$0xf0] }
 0x2bc   :  { %2460 = vmatpush.bf16.msra.mxu2 %v8012_v24  ;;  %v8204_v24 = vor.u32 %v10519_v19, %v8203_v49  ;;  %v10501_v49 = vld [vmem:[#allocation11 + $0x44] sm:$0xf]  ;;  %v8141_v19 = vld [vmem:[#allocation11 + $0x50] sm:$0xf0] }
 0x2fa   :  { %v1682_v36 = vpop.f32.mrf.mxu0  ;;  %v11665_v39 = vpop.f32.mrf.mxu1 }
 0x2fb   :  { %v1709_v62 = vrot.slane %v1682_v36, 4  ;;  %v1710_v60 = vrot.slane %v11665_v39, 4  ;;  %v8005_v39 = vld [vmem:[#allocation8 + $0x38] sm:$0xf0] }
 0x2fd   :  { %v1717_v53 = vadd.f32 %v1709_v62, %v1701_v0  ;;  %v1718_v55 = vadd.f32 %v1710_v60, %v1702_v38  ;;  %v7996_v62 = vor.u32 %v10467_v58, %v7995_v57  ;;  %v7979_v60 = vld [vmem:[#allocation8] sm:$0xf]  ;;  %v10518_v38 = vld [vmem:[#allocation11 + $0xcc] sm:$0xf]  ;;  %v8189_v58 = vld [vmem:[#allocation11 + $0xb0] sm:$0xf0] }
 0x2ff   :  { %v1656_v8 = vpop.f32.mrf.mxu2  ;;  %v1669_v11 = vpop.f32.mrf.mxu3  ;;  %2461 = vmatpush.bf16.msra.mxu2 %v7996_v62 }
 0x300   :  { %v1707_v18 = vrot.slane %v1656_v8, 4  ;;  %v1708_v22 = vrot.slane %v1669_v11, 4  ;;  %v10466_v8 = vld [vmem:[#allocation8 + $0x2c] sm:$0xf] }
 0x301   :  { %v8008_v17 = vor.u32 %v10466_v8, %v8005_v39  ;;  %v8197_v8 = vld [vmem:[#allocation11 + $0xb8] sm:$0xf0]  ;;  %v8192_v39 = vor.u32 %v10513_v56, %v8189_v58 }
 0x302   :  { %v1715_v31 = vadd.f32 %v1707_v18, %v1699_v9  ;;  %v1716_v32 = vadd.f32 %v1708_v22, %v1700_v12  ;;  %v1684_v33 = vpop.f32.mrf.mxu0  ;;  %v1697_v37 = vpop.f32.mrf.mxu1  ;;  %v8000_v12 = vor.u32 %v10465_v61, %v7997_v59  ;;  %v10463_v18 = vld [vmem:[#allocation8 + $0xc] sm:$0xf0]  ;;  %v10461_v22 = vld [vmem:[#allocation8 + $0x4] sm:$0xf]  ;;  %v8195_v61 = vld [vmem:[#allocation11 + $0xa8] sm:$0xf]  ;;  %v8200_v16 = vor.u32 %v10514_v7, %v8197_v8 }
 0x303   :  { %v7980_v29 = vor.u32 %v10463_v18, %v7979_v60  ;;  %v7984_v33 = vor.u32 %v10461_v22, %v7981_v26  ;;  %v7988_v37 = vor.u32 %v10464_v20, %v7987_v27  ;;  %2500 = vmatpush.bf16.msrb.mxu1 %v8008_v17  ;;  %v10516_v59 = vld [vmem:[#allocation11 + $0xb4] sm:$0xf0]  ;;  %v10509_v22 = vld [vmem:[#allocation11 + $0x84] sm:$0xf]  ;;  %v8173_v27 = vld [vmem:[#allocation11 + $0x90] sm:$0xf0] }
 0x304   :  { %11067 = vtanh.f32 %v1715_v31  ;;  %v10462_v31 = vld [vmem:[#allocation8 + $0xc] sm:$0xf]  ;;  %2474 = vmatpush.bf16.msra.mxu3 %v8000_v12  ;;  %v8196_v60 = vor.u32 %v10516_v59, %v8195_v61  ;;  %v8181_v20 = vld [vmem:[#allocation11 + $0x98] sm:$0xf0]  ;;  %v8144_v61 = vor.u32 %v10501_v49, %v8141_v19  ;;  %v8125_v7 = vld [vmem:[#allocation11 + $0x30] sm:$0xf0] }
 0x305   :  { %11069 = vtanh.f32 %v1716_v32  ;;  %v7992_v45 = vor.u32 %v10462_v31, %v7989_v40  ;;  %2462 = vmatpush.bf16.msra.mxu2 %v7980_v29  ;;  %2488 = vmatpush.bf16.msrb.mxu0 %v7988_v37  ;;  %v10510_v29 = vld [vmem:[#allocation11 + $0x8c] sm:$0xf]  ;;  %v8176_v37 = vor.u32 %v10509_v22, %v8173_v27  ;;  %v8347_v22 = vld [vmem:[#allocation9 + $0xe0] sm:$0xf]  ;;  %v10555_v27 = vld [vmem:[#allocation9 + $0xec] sm:$0xf0] }
 0x306   :  { %11071 = vtanh.f32 %v1717_v53  ;;  %v10524_v53 = vld [vmem:[#allocation11 + $0xf4] sm:$0xf0] }
 0x307   :  { %v1658_v36 = vpop.f32.mrf.mxu2  ;;  %v1671_v42 = vpop.f32.mrf.mxu3  ;;  %11073 = vtanh.f32 %v1718_v55  ;;  %v8228_v14 = vor.u32 %v10524_v53, %v8227_v52  ;;  %2501 = vmatpush.bf16.msrb.mxu1 %v7992_v45  ;;  %v8212_v55 = vor.u32 %v10520_v34, %v8211_v35  ;;  %v8156_v45 = vor.u32 %v10507_v43, %v8155_v41  ;;  %v10508_v52 = vld [vmem:[#allocation11 + $0x74] sm:$0xf0]  ;;  %v8165_v53 = vld [vmem:[#allocation11 + $0x78] sm:$0xf0]  ;;  %v8147_v34 = vld [vmem:[#allocation11 + $0x48] sm:$0xf] }
 0x308   :  { %2475 = vmatpush.bf16.msra.mxu3 %v7984_v33  ;;  %v8213_v36 = vld [vmem:[#allocation11 + $0xd8] sm:$0xf0]  ;;  %v8187_v42 = vld [vmem:[#allocation11 + $0xa0] sm:$0xf]  ;;  %v8140_v35 = vor.u32 %v10503_v5, %v8139_v2  ;;  %v10496_v43 = vld [vmem:[#allocation11 + $0x14] sm:$0xf0] }
 0x309   :  { %2748 = vmatpush.bf16.msrb.mxu2 %v8220_v51  ;;  %2774 = vmatpush.bf16.msra.mxu0 %v8228_v14  ;;  %v8216_v57 = vor.u32 %v10518_v38, %v8213_v36  ;;  %v8188_v4 = vor.u32 %v10515_v63, %v8187_v42  ;;  %v10505_v51 = vld [vmem:[#allocation11 + $0x64] sm:$0xf]  ;;  %v10504_v38 = vld [vmem:[#allocation11 + $0x54] sm:$0xf0]  ;;  %v10502_v36 = vld [vmem:[#allocation11 + $0x4c] sm:$0xf] }
 0x30a   :  { %v11068_v1 = vpop.eup %11067  ;;  %v8160_v14 = vor.u32 %v10505_v51, %v8157_v47  ;;  %v8149_v42 = vld [vmem:[#allocation11 + $0x58] sm:$0xf0]  ;;  %v8148_v59 = vor.u32 %v10504_v38, %v8147_v34  ;;  %v8348_v47 = vor.u32 %v10555_v27, %v8347_v22  ;;  %v10554_v2 = vld [vmem:[#allocation9 + $0xec] sm:$0xf] }
 0x30b   :  { %v11070_v9 = vpop.eup %11069  ;;  %v1723_v11 = vmul.f32 0.5, %v11068_v1  ;;  %2787 = vmatpush.bf16.msra.mxu1 %v8232_v15  ;;  %v8164_v15 = vor.u32 %v10508_v52, %v8163_v48  ;;  %v8152_v8 = vor.u32 %v10502_v36, %v8149_v42  ;;  %v10553_v48 = vld [vmem:[#allocation9 + $0xe4] sm:$0xf]  ;;  %v8349_v52 = vld [vmem:[#allocation9 + $0xf0] sm:$0xf0] }
 0x30c   :  { %v1725_v13 = vmul.f32 0.5, %v11070_v9  ;;  %v11072_v0 = vpop.eup %11071  ;;  %2761 = vmatpush.bf16.msrb.mxu3 %v8224_v3  ;;  %v8171_v9 = vld [vmem:[#allocation11 + $0x80] sm:$0xf]  ;;  %v10506_v3 = vld [vmem:[#allocation11 + $0x6c] sm:$0xf] }
 0x30d   :  { %v1724_v25 = vadd.f32 0.5, %v1723_v11  ;;  %v11074_v6 = vpop.eup %11073  ;;  %2749 = vmatpush.bf16.msrb.mxu2 %v8204_v24  ;;  %v10511_v11 = vld [vmem:[#allocation11 + $0x8c] sm:$0xf0]  ;;  %2775 = vmatpush.bf16.msra.mxu0 %v8212_v55  ;;  %v8168_v28 = vor.u32 %v10506_v3, %v8165_v53  ;;  %v8355_v3 = vld [vmem:[#allocation9 + $0xe8] sm:$0xf] }
 0x30e   :  { %v1726_v30 = vadd.f32 0.5, %v1725_v13  ;;  %v1727_v50 = vmul.f32 0.5, %v11074_v6  ;;  %v8172_v18 = vor.u32 %v10511_v11, %v8171_v9  ;;  %v11691_v6 = vld [vmem:[%s11974_s7] sm:$0xf]  ;;  %v8131_v11 = vld [vmem:[#allocation11 + $0x28] sm:$0xf] }
 0x30f   :  { %v1733_v32 = vmul.f32 %v11072_v0, %v1724_v25  ;;  %2788 = vmatpush.bf16.msra.mxu1 %v8216_v57  ;;  %v8179_v0 = vld [vmem:[#allocation11 + $0x88] sm:$0xf]  ;;  %v1772_v55 = vperm.slane %v11691_v6, 0  ;;  %v1774_v63 = vperm.slane %v11691_v6, 2  ;;  %v1773_v56 = vperm.slane %v11691_v6, 1 }
 0x310   :  { %v1732_v44 = vmul.f32 %v1730_v21, %v1726_v30  ;;  %v1728_v12 = vadd.f32 0.5, %v1727_v50  ;;  %2762 = vmatpush.bf16.msrb.mxu3 %v8208_v54  ;;  %v10512_v30 = vld [vmem:[#allocation11 + $0x94] sm:$0xf0]  ;;  %v8123_v50 = vld [vmem:[#allocation11 + $0x20] sm:$0xf] }
 0x311   :  { %2750 = vmatpush.bf16.msrb.mxu2 %v8188_v4  ;;  %2776 = vmatpush.bf16.msra.mxu0 %v8196_v60  ;;  %v8180_v40 = vor.u32 %v10512_v30, %v8179_v0  ;;  %v10499_v54 = vld [vmem:[#allocation11 + $0x2c] sm:$0xf0]  ;;  %v10497_v4 = vld [vmem:[#allocation11 + $0x24] sm:$0xf]  ;;  %v8133_v60 = vld [vmem:[#allocation11 + $0x38] sm:$0xf0] }
 0x312   :  { %v11671_v10 = vadd.f32 %v1733_v32, %v1732_v44  ;;  %v8184_v44 = vor.u32 %v10510_v29, %v8181_v20  ;;  %v8124_v9 = vor.u32 %v10499_v54, %v8123_v50  ;;  %v8128_v30 = vor.u32 %v10497_v4, %v8125_v7  ;;  %v10493_v29 = vld [vmem:[#allocation11 + $0x4] sm:$0xf]  ;;  %v8109_v20 = vld [vmem:[#allocation11 + $0x10] sm:$0xf0]  ;;  %v10556_v53 = vld [vmem:[#allocation9 + $0xf4] sm:$0xf0] }
 0x313   :  { %2789 = vmatpush.bf16.msra.mxu1 %v8200_v16  ;;  %v10495_v16 = vld [vmem:[#allocation11 + $0xc] sm:$0xf0]  ;;  %v8357_v5 = vld [vmem:[#allocation9 + $0xf8] sm:$0xf0]  ;;  %v8112_v49 = vor.u32 %v10493_v29, %v8109_v20  ;;  %v8356_v34 = vor.u32 %v10556_v53, %v8355_v3  ;;  %v10549_v36 = vld [vmem:[#allocation9 + $0xc4] sm:$0xf] }
 0x314   :  { %11075 = vtanh.f32 %v11671_v10  ;;  %2763 = vmatpush.bf16.msrb.mxu3 %v8192_v39  ;;  %v10498_v39 = vld [vmem:[#allocation11 + $0x2c] sm:$0xf]  ;;  %v8360_v38 = vor.u32 %v10554_v2, %v8357_v5  ;;  %v8333_v42 = vld [vmem:[#allocation9 + $0xd0] sm:$0xf0]  ;;  %v8339_v50 = vld [vmem:[#allocation9 + $0xc8] sm:$0xf] }
 0x315   :  { %2751 = vmatpush.bf16.msrb.mxu2 %v8172_v18  ;;  %2777 = vmatpush.bf16.msra.mxu0 %v8180_v40  ;;  %v8136_v40 = vor.u32 %v10498_v39, %v8133_v60  ;;  %v8317_v39 = vld [vmem:[#allocation9 + $0xb0] sm:$0xf0]  ;;  %v8323_v60 = vld [vmem:[#allocation9 + $0xa8] sm:$0xf]  ;;  %v8325_v22 = vld [vmem:[#allocation9 + $0xb8] sm:$0xf0] }
 0x316   :  { %v10541_v20 = vld [vmem:[#allocation9 + $0x84] sm:$0xf] }
 0x317   :  { %v11674_v1 = vpop.f32.mrf.mxu0  ;;  %v11676_v62 = vpop.f32.mrf.mxu1  ;;  %2790 = vmatpush.bf16.msra.mxu1 %v8184_v44  ;;  %v10494_v44 = vld [vmem:[#allocation11 + $0xc] sm:$0xf] }
 0x318   :  { %2764 = vmatpush.bf16.msrb.mxu3 %v8176_v37 }
 0x319   :  { %2752 = vmatpush.bf16.msrb.mxu2 %v8156_v45  ;;  %2778 = vmatpush.bf16.msra.mxu0 %v8164_v15  ;;  %v1976_v45 = vadd.f32 %v11674_v1, %v1774_v63  ;;  %v10550_v63 = vld [vmem:[#allocation9 + $0xcc] sm:$0xf] }
 0x31a   :  { %v11076_v13 = vpop.eup %11075 }
 0x31b   :  { %v1736_v17 = vmul.f32 %v11076_v13, %v1728_v12  ;;  %2791 = vmatpush.bf16.msra.mxu1 %v8168_v28  ;;  %v10500_v12 = vld [vmem:[#allocation11 + $0x34] sm:$0xf0]  ;;  %v8107_v13 = vld [vmem:[#allocation11] sm:$0xf]  ;;  %v8352_v28 = vor.u32 %v10553_v48, %v8349_v52  ;;  %v10539_v52 = vld [vmem:[#allocation9 + $0x6c] sm:$0xf0] }
 0x31c   :  { %v11678_v25 = vpop.f32.mrf.mxu2  ;;  %v11680_v26 = vpop.f32.mrf.mxu3  ;;  %2765 = vmatpush.bf16.msrb.mxu3 %v8160_v14  ;;  %v8108_v41 = vor.u32 %v10495_v16, %v8107_v13  ;;  %v10548_v13 = vld [vmem:[#allocation9 + $0xb4] sm:$0xf0]  ;;  %v8283_v48 = vld [vmem:[#allocation9 + $0x60] sm:$0xf] }
 0x31d   :  { %v1737_v21 = vpack.c.bf16 %v1736_v17, %v1736_v17  ;;  %2753 = vmatpush.bf16.msrb.mxu2 %v8140_v35  ;;  %v1775_v17 = vperm.slane %v11691_v6, 3  ;;  %v1950_v18 = vadd.f32 %v11678_v25, %v1772_v55  ;;  %v1963_v0 = vadd.f32 %v11680_v26, %v1773_v56  ;;  %2779 = vmatpush.bf16.msra.mxu0 %v8148_v59  ;;  %v8117_v25 = vld [vmem:[#allocation11 + $0x18] sm:$0xf0]  ;;  %v10552_v55 = vld [vmem:[#allocation9 + $0xd4] sm:$0xf0] }
 0x31e   :  { %v8120_v1 = vor.u32 %v10494_v44, %v8117_v25  ;;  %v8341_v56 = vld [vmem:[#allocation9 + $0xd8] sm:$0xf0]  ;;  %v10547_v59 = vld [vmem:[#allocation9 + $0xac] sm:$0xf0] }
 0x31f   :  { %v11682_v31 = vrot.slane %v1737_v21, 2  ;;  %v1977_v32 = vpop.f32.mrf.mxu0  ;;  %v1990_v33 = vpop.f32.mrf.mxu1  ;;  %v8132_v21 = vor.u32 %v10500_v12, %v8131_v11  ;;  %2792 = vmatpush.bf16.msra.mxu1 %v8152_v8  ;;  %v1989_v35 = vadd.f32 %v11676_v62, %v1775_v17  ;;  %v8336_v62 = vor.u32 %v10549_v36, %v8333_v42  ;;  %v10545_v8 = vld [vmem:[#allocation9 + $0xa4] sm:$0xf] }
 0x320   :  { %2766 = vmatpush.bf16.msrb.mxu3 %v8144_v61  ;;  %v8115_v32 = vld [vmem:[#allocation11 + $0x8] sm:$0xf]  ;;  %v8315_v61 = vld [vmem:[#allocation9 + $0xa0] sm:$0xf]  ;;  %v8340_v11 = vor.u32 %v10552_v55, %v8339_v50  ;;  %v8344_v12 = vor.u32 %v10550_v63, %v8341_v56  ;;  %v8320_v29 = vor.u32 %v10545_v8, %v8317_v39  ;;  %v10533_v42 = vld [vmem:[#allocation9 + $0x44] sm:$0xf] }
 0x321   :  { %2463 = vmatmul.bf16.vlgmr.msra.gmra.mxu2 %v11682_v31  ;;  %2476 = vmatmul.bf16.vlgmr.msra.gmra.mxu3 %v11682_v31  ;;  %v8116_v19 = vor.u32 %v10496_v43, %v8115_v32  ;;  %v8316_v17 = vor.u32 %v10547_v59, %v8315_v61  ;;  %v8307_v43 = vld [vmem:[#allocation9 + $0x88] sm:$0xf]  ;;  %v8269_v50 = vld [vmem:[#allocation9 + $0x50] sm:$0xf0]  ;;  %v10536_v63 = vld [vmem:[#allocation9 + $0x54] sm:$0xf0] }
 0x322   :  { %2489 = vmatmul.bf16.vlgmr.msrb.gmra.mxu0 %v11682_v31  ;;  %2502 = vmatmul.bf16.vlgmr.msrb.gmra.mxu1 %v11682_v31  ;;  %v10534_v56 = vld [vmem:[#allocation9 + $0x4c] sm:$0xf]  ;;  %v8272_v59 = vor.u32 %v10533_v42, %v8269_v50  ;;  %v8259_v39 = vld [vmem:[#allocation9 + $0x28] sm:$0xf] }
 0x323   :  { %2754 = vmatpush.bf16.msrb.mxu2 %v8124_v9  ;;  %2780 = vmatpush.bf16.msra.mxu0 %v8132_v21 }
 0x324   :  { %v1951_v23 = vpop.f32.mrf.mxu2  ;;  %v1964_v24 = vpop.f32.mrf.mxu3  ;;  %2767 = vmatpush.bf16.msrb.mxu3 %v8128_v30  ;;  %2793 = vmatpush.bf16.msra.mxu1 %v8136_v40  ;;  %v10543_v30 = vld [vmem:[#allocation9 + $0x8c] sm:$0xf0] }
 0x325   :  { %v8331_v23 = vld [vmem:[#allocation9 + $0xc0] sm:$0xf]  ;;  %v10551_v24 = vld [vmem:[#allocation9 + $0xcc] sm:$0xf0] }
 0x326   :  { %v8332_v54 = vor.u32 %v10551_v24, %v8331_v23  ;;  %v10540_v23 = vld [vmem:[#allocation9 + $0x74] sm:$0xf0]  ;;  %v10538_v24 = vld [vmem:[#allocation9 + $0x6c] sm:$0xf] }
 0x327   :  { %v2219_v57 = vpop.f32.mrf.mxu0  ;;  %v11696_v58 = vpop.f32.mrf.mxu1  ;;  %2755 = vmatpush.bf16.msrb.mxu2 %v8108_v41  ;;  %2781 = vmatpush.bf16.msra.mxu0 %v8116_v19  ;;  %v8301_v41 = vld [vmem:[#allocation9 + $0x90] sm:$0xf0]  ;;  %v8284_v19 = vor.u32 %v10539_v52, %v8283_v48  ;;  %v10587_v48 = vld [vmem:[#allocation8 + $0xec] sm:$0xf0] }
 0x328   :  { %v2238_v6 = vadd.f32 %v2219_v57, %v1976_v45  ;;  %v2239_v57 = vadd.f32 %v11696_v58, %v1989_v35  ;;  %2768 = vmatpush.bf16.msrb.mxu3 %v8112_v49  ;;  %2794 = vmatpush.bf16.msra.mxu1 %v8120_v1  ;;  %v10544_v45 = vld [vmem:[#allocation9 + $0x94] sm:$0xf0]  ;;  %v8304_v3 = vor.u32 %v10541_v20, %v8301_v41  ;;  %v8291_v49 = vld [vmem:[#allocation9 + $0x68] sm:$0xf]  ;;  %v8293_v1 = vld [vmem:[#allocation9 + $0x78] sm:$0xf0] }
 0x329   :  { %v8308_v5 = vor.u32 %v10544_v45, %v8307_v43  ;;  %v8296_v36 = vor.u32 %v10538_v24, %v8293_v1  ;;  %v8237_v20 = vld [vmem:[#allocation9 + $0x10] sm:$0xf0]  ;;  %v8245_v41 = vld [vmem:[#allocation9 + $0x18] sm:$0xf0] }
 0x32b   :  { %2992 = vmatpush.bf16.msra.mxu2 %v8348_v47  ;;  %3018 = vmatpush.bf16.msrb.mxu0 %v8356_v34 }
 0x32c   :  { %v2193_v33 = vpop.f32.mrf.mxu2  ;;  %v2206_v37 = vpop.f32.mrf.mxu3  ;;  %3005 = vmatpush.bf16.msra.mxu3 %v8352_v28  ;;  %3031 = vmatpush.bf16.msrb.mxu1 %v8360_v38  ;;  %v10535_v28 = vld [vmem:[#allocation9 + $0x4c] sm:$0xf0]  ;;  %v8292_v38 = vor.u32 %v10540_v23, %v8291_v49  ;;  %v8485_v49 = vld [vmem:[#allocation8 + $0xf8] sm:$0xf0] }
 0x32d   :  { %v2236_v51 = vadd.f32 %v2193_v33, %v1950_v18  ;;  %v2237_v26 = vadd.f32 %v2206_v37, %v1963_v0  ;;  %v10546_v18 = vld [vmem:[#allocation9 + $0xac] sm:$0xf]  ;;  %v8299_v0 = vld [vmem:[#allocation9 + $0x80] sm:$0xf]  ;;  %v8324_v37 = vor.u32 %v10548_v13, %v8323_v60  ;;  %v10532_v13 = vld [vmem:[#allocation9 + $0x34] sm:$0xf0] }
 0x32e   :  { %v8328_v40 = vor.u32 %v10546_v18, %v8325_v22  ;;  %v8300_v25 = vor.u32 %v10543_v30, %v8299_v0  ;;  %v10527_v0 = vld [vmem:[#allocation9 + $0xc] sm:$0xf0]  ;;  %v10525_v30 = vld [vmem:[#allocation9 + $0x4] sm:$0xf] }
 0x32f   :  { %11077 = vtanh.f32 %v2236_v51  ;;  %v2221_v14 = vpop.f32.mrf.mxu0  ;;  %v2234_v15 = vpop.f32.mrf.mxu1  ;;  %2993 = vmatpush.bf16.msra.mxu2 %v8332_v54  ;;  %3019 = vmatpush.bf16.msrb.mxu0 %v8340_v11  ;;  %v10542_v51 = vld [vmem:[#allocation9 + $0x8c] sm:$0xf]  ;;  %v8275_v54 = vld [vmem:[#allocation9 + $0x48] sm:$0xf]  ;;  %v10529_v11 = vld [vmem:[#allocation9 + $0x24] sm:$0xf] }
 0x330   :  { %11079 = vtanh.f32 %v2237_v26  ;;  %3006 = vmatpush.bf16.msra.mxu3 %v8336_v62  ;;  %3032 = vmatpush.bf16.msrb.mxu1 %v8344_v12  ;;  %v8309_v26 = vld [vmem:[#allocation9 + $0x98] sm:$0xf0]  ;;  %v10537_v14 = vld [vmem:[#allocation9 + $0x64] sm:$0xf]  ;;  %v8285_v15 = vld [vmem:[#allocation9 + $0x70] sm:$0xf0]  ;;  %v8276_v8 = vor.u32 %v10536_v63, %v8275_v54 }
 0x331   :  { %11081 = vtanh.f32 %v2238_v6  ;;  %v8312_v6 = vor.u32 %v10542_v51, %v8309_v26  ;;  %v8288_v34 = vor.u32 %v10537_v14, %v8285_v15  ;;  %v8253_v12 = vld [vmem:[#allocation9 + $0x30] sm:$0xf0]  ;;  %v10588_v14 = vld [vmem:[#allocation8 + $0xf4] sm:$0xf0]  ;;  %v10586_v15 = vld [vmem:[#allocation8 + $0xec] sm:$0xf] }
 0x332   :  { %11083 = vtanh.f32 %v2239_v57  ;;  %v8277_v57 = vld [vmem:[#allocation9 + $0x58] sm:$0xf0]  ;;  %v8256_v22 = vor.u32 %v10529_v11, %v8253_v12  ;;  %v8488_v1 = vor.u32 %v10586_v15, %v8485_v49  ;;  %v8467_v63 = vld [vmem:[#allocation8 + $0xc8] sm:$0xf]  ;;  %v10572_v49 = vld [vmem:[#allocation8 + $0x74] sm:$0xf0] }
 0x333   :  { %2994 = vmatpush.bf16.msra.mxu2 %v8316_v17  ;;  %3020 = vmatpush.bf16.msrb.mxu0 %v8324_v37  ;;  %v8419_v15 = vld [vmem:[#allocation8 + $0x68] sm:$0xf] }
 0x334   :  { %v2195_v4 = vpop.f32.mrf.mxu2  ;;  %v2208_v7 = vpop.f32.mrf.mxu3  ;;  %3007 = vmatpush.bf16.msra.mxu3 %v8320_v29  ;;  %3033 = vmatpush.bf16.msrb.mxu1 %v8328_v40  ;;  %v10526_v40 = vld [vmem:[#allocation9 + $0xc] sm:$0xf] }
 0x335   :  { %v11078_v9 = vpop.eup %11077  ;;  %v8251_v4 = vld [vmem:[#allocation9 + $0x20] sm:$0xf]  ;;  %v10531_v7 = vld [vmem:[#allocation9 + $0x2c] sm:$0xf0]  ;;  %v8248_v45 = vor.u32 %v10526_v40, %v8245_v41  ;;  %v10573_v40 = vld [vmem:[#allocation8 + $0x84] sm:$0xf] }
 0x336   :  { %v11080_v16 = vpop.eup %11079  ;;  %v2244_v58 = vmul.f32 0.5, %v11078_v9  ;;  %v8280_v9 = vor.u32 %v10534_v56, %v8277_v57  ;;  %v8252_v18 = vor.u32 %v10531_v7, %v8251_v4  ;;  %v2509_v56 = vld [vmem:[#allocation2 + $0x18] sm:$0xc0]  ;;  %v8469_v4 = vld [vmem:[#allocation8 + $0xd8] sm:$0xf0] }
 0x337   :  { %v2246_v27 = vmul.f32 0.5, %v11080_v16  ;;  %v11082_v32 = vpop.eup %11081  ;;  %2995 = vmatpush.bf16.msra.mxu2 %v8300_v25  ;;  %3021 = vmatpush.bf16.msrb.mxu0 %v8308_v5  ;;  %v10530_v16 = vld [vmem:[#allocation9 + $0x2c] sm:$0xf]  ;;  %v8483_v5 = vld [vmem:[#allocation8 + $0xe8] sm:$0xf] }
 0x338   :  { %v2245_v21 = vadd.f32 0.5, %v2244_v58  ;;  %v11084_v53 = vpop.eup %11083  ;;  %3008 = vmatpush.bf16.msra.mxu3 %v8304_v3  ;;  %3034 = vmatpush.bf16.msrb.mxu1 %v8312_v6  ;;  %v8261_v58 = vld [vmem:[#allocation9 + $0x38] sm:$0xf0]  ;;  %v10585_v3 = vld [vmem:[#allocation8 + $0xe4] sm:$0xf]  ;;  %v8484_v24 = vor.u32 %v10588_v14, %v8483_v5 }
 0x339   :  { %v2247_v33 = vadd.f32 0.5, %v2246_v27  ;;  %v2248_v35 = vmul.f32 0.5, %v11084_v53  ;;  %v8235_v27 = vld [vmem:[#allocation9] sm:$0xf]  ;;  %v8264_v29 = vor.u32 %v10530_v16, %v8261_v58  ;;  %v8477_v53 = vld [vmem:[#allocation8 + $0xf0] sm:$0xf0] }
 0x33a   :  { %v2251_v44 = vmul.f32 %v11082_v32, %v2245_v21  ;;  %v8260_v21 = vor.u32 %v10532_v13, %v8259_v39  ;;  %v8243_v32 = vld [vmem:[#allocation9 + $0x8] sm:$0xf]  ;;  %v8236_v43 = vor.u32 %v10527_v0, %v8235_v27  ;;  %v8480_v6 = vor.u32 %v10585_v3, %v8477_v53  ;;  %v2510_v7 = vld [vmem:[#allocation2 + $0x10] sm:$0xc0]  ;;  %v10579_v13 = vld [vmem:[#allocation8 + $0xac] sm:$0xf0] }
 0x33b   :  { %v2250_v47 = vmul.f32 %v2247_v33, %v11658_v46  ;;  %v8267_v46 = vld [vmem:[#allocation9 + $0x40] sm:$0xf]  ;;  %2996 = vmatpush.bf16.msra.mxu2 %v8284_v19  ;;  %v2249_v61 = vadd.f32 0.5, %v2248_v35  ;;  %3022 = vmatpush.bf16.msrb.mxu0 %v8292_v38  ;;  %v10528_v33 = vld [vmem:[#allocation9 + $0x14] sm:$0xf0] }
 0x33c   :  { %v8268_v55 = vor.u32 %v10535_v28, %v8267_v46  ;;  %3009 = vmatpush.bf16.msra.mxu3 %v8288_v34  ;;  %3035 = vmatpush.bf16.msrb.mxu1 %v8296_v36  ;;  %v8244_v25 = vor.u32 %v10528_v33, %v8243_v32  ;;  %v2507_v28 = vld [vmem:[#allocation2 + $0x30] sm:$0xc0]  ;;  %v2508_v35 = vld [vmem:[#allocation2] sm:$0xc0]  ;;  %v8459_v34 = vld [vmem:[#allocation8 + $0xc0] sm:$0xf] }
 0x33d   :  { %v11705_v2 = vadd.f32 %v2251_v44, %v2250_v47  ;;  %v8240_v44 = vor.u32 %v10525_v30, %v8237_v20  ;;  %v8475_v47 = vld [vmem:[#allocation8 + $0xe0] sm:$0xf]  ;;  %v10583_v38 = vld [vmem:[#allocation8 + $0xcc] sm:$0xf0]  ;;  %v10581_v36 = vld [vmem:[#allocation8 + $0xc4] sm:$0xf] }
 0x33e   :  { %v8476_v52 = vor.u32 %v10587_v48, %v8475_v47  ;;  %v8460_v54 = vor.u32 %v10583_v38, %v8459_v34  ;;  %v10577_v16 = vld [vmem:[#allocation8 + $0xa4] sm:$0xf]  ;;  %v8427_v20 = vld [vmem:[#allocation8 + $0x80] sm:$0xf]  ;;  %v8429_v41 = vld [vmem:[#allocation8 + $0x90] sm:$0xf0] }
 0x33f   :  { %11085 = vtanh.f32 %v11705_v2  ;;  %2997 = vmatpush.bf16.msra.mxu2 %v8268_v55  ;;  %3023 = vmatpush.bf16.msrb.mxu0 %v8276_v8  ;;  %v8461_v55 = vld [vmem:[#allocation8 + $0xd0] sm:$0xf0]  ;;  %v8432_v47 = vor.u32 %v10573_v40, %v8429_v41  ;;  %v8437_v48 = vld [vmem:[#allocation8 + $0x98] sm:$0xf0]  ;;  %v10571_v5 = vld [vmem:[#allocation8 + $0x6c] sm:$0xf0] }
 0x340   :  { %3010 = vmatpush.bf16.msra.mxu3 %v8272_v59  ;;  %3036 = vmatpush.bf16.msrb.mxu1 %v8280_v9  ;;  %v8464_v57 = vor.u32 %v10581_v36, %v8461_v55  ;;  %v10582_v59 = vld [vmem:[#allocation8 + $0xcc] sm:$0xf]  ;;  %v8413_v14 = vld [vmem:[#allocation8 + $0x70] sm:$0xf0]  ;;  %v10567_v34 = vld [vmem:[#allocation8 + $0x4c] sm:$0xf0] }
 0x341   :  { %v8472_v39 = vor.u32 %v10582_v59, %v8469_v4  ;;  %v10565_v38 = vld [vmem:[#allocation8 + $0x44] sm:$0xf]  ;;  %v8403_v55 = vld [vmem:[#allocation8 + $0x48] sm:$0xf]  ;;  %v2538_v4 = vrot.slane %v11671_v10, 6 }
 0x342   :  { %v8389_v10 = vld [vmem:[#allocation8 + $0x38] sm:$0xf0]  ;;  %v8371_v40 = vld [vmem:[#allocation8 + $0x8] sm:$0xf] }
 0x343   :  { %2998 = vmatpush.bf16.msra.mxu2 %v8252_v18  ;;  %3024 = vmatpush.bf16.msrb.mxu0 %v8260_v21  ;;  %v8451_v18 = vld [vmem:[#allocation8 + $0xa8] sm:$0xf]  ;;  %v10578_v21 = vld [vmem:[#allocation8 + $0xac] sm:$0xf] }
 0x344   :  { %3011 = vmatpush.bf16.msra.mxu3 %v8256_v22  ;;  %3037 = vmatpush.bf16.msrb.mxu1 %v8264_v29  ;;  %v10580_v22 = vld [vmem:[#allocation8 + $0xb4] sm:$0xf0]  ;;  %v8453_v29 = vld [vmem:[#allocation8 + $0xb8] sm:$0xf0] }
 0x345   :  { %v11086_v62 = vpop.eup %11085  ;;  %v8452_v30 = vor.u32 %v10580_v22, %v8451_v18  ;;  %v8456_v33 = vor.u32 %v10578_v21, %v8453_v29  ;;  %v8387_v18 = vld [vmem:[#allocation8 + $0x28] sm:$0xf]  ;;  %v10564_v22 = vld [vmem:[#allocation8 + $0x34] sm:$0xf0]  ;;  %v8363_v29 = vld [vmem:[#allocation8] sm:$0xf] }
 0x346   :  { %v2254_v60 = vmul.f32 %v11086_v62, %v2249_v61  ;;  %v10584_v61 = vld [vmem:[#allocation8 + $0xd4] sm:$0xf0]  ;;  %v8388_v41 = vor.u32 %v10564_v22, %v8387_v18 }
 0x347   :  { %2999 = vmatpush.bf16.msra.mxu2 %v8236_v43  ;;  %3025 = vmatpush.bf16.msrb.mxu0 %v8244_v25  ;;  %v8468_v12 = vor.u32 %v10584_v61, %v8467_v63  ;;  %v10576_v25 = vld [vmem:[#allocation8 + $0x94] sm:$0xf0] }
 0x348   :  { %v2255_v17 = vpack.c.bf16 %v2254_v60, %v2254_v60  ;;  %3012 = vmatpush.bf16.msra.mxu3 %v8240_v44  ;;  %3038 = vmatpush.bf16.msrb.mxu1 %v8248_v45  ;;  %v8443_v60 = vld [vmem:[#allocation8 + $0xa0] sm:$0xf]  ;;  %v8435_v44 = vld [vmem:[#allocation8 + $0x88] sm:$0xf]  ;;  %v10574_v45 = vld [vmem:[#allocation8 + $0x8c] sm:$0xf] }
 0x349   :  { %v8444_v58 = vor.u32 %v10579_v13, %v8443_v60  ;;  %v8436_v3 = vor.u32 %v10576_v25, %v8435_v44  ;;  %v8440_v53 = vor.u32 %v10574_v45, %v8437_v48  ;;  %v10560_v44 = vld [vmem:[#allocation8 + $0x14] sm:$0xf0]  ;;  %v8603_v25 = vld [vmem:[#allocation11 + $0xe0] sm:$0xf]  ;;  %v10619_v45 = vld [vmem:[#allocation11 + $0xec] sm:$0xf0] }
 0x34a   :  { %v2257_v37 = vrot.slane %v2255_v17, 7  ;;  %2756 = vmatmul.bf16.vlgmr.msrb.gmra.mxu2 %v2255_v17  ;;  %2769 = vmatmul.bf16.vlgmr.msrb.gmra.mxu3 %v2255_v17 }
 0x34b   :  { %2782 = vmatmul.bf16.vlgmr.msra.gmra.mxu0 %v2255_v17  ;;  %2795 = vmatmul.bf16.vlgmr.msra.gmra.mxu1 %v2255_v17  ;;  %v8445_v17 = vld [vmem:[#allocation8 + $0xb0] sm:$0xf0] }
 0x34c   :  { %2259 = vst [vmem:[#allocation3] sm:$0x2] %v2257_v37  ;;  %3263 = vmatpush.bf16.msrb.mxu2 %v8476_v52  ;;  %3276 = vmatpush.bf16.msrb.mxu3 %v8480_v6  ;;  %v8448_v0 = vor.u32 %v10577_v16, %v8445_v17  ;;  %v10575_v37 = vld [vmem:[#allocation8 + $0x8c] sm:$0xf0]  ;;  %v8411_v52 = vld [vmem:[#allocation8 + $0x60] sm:$0xf] }
 0x34d   :  { %3289 = vmatpush.bf16.msra.mxu0 %v8484_v24  ;;  %3302 = vmatpush.bf16.msra.mxu1 %v8488_v1  ;;  %v8428_v43 = vor.u32 %v10575_v37, %v8427_v20  ;;  %v10569_v6 = vld [vmem:[#allocation8 + $0x64] sm:$0xf]  ;;  %v10570_v24 = vld [vmem:[#allocation8 + $0x6c] sm:$0xf]  ;;  %v8421_v1 = vld [vmem:[#allocation8 + $0x78] sm:$0xf0] }
 0x34e   :  { %v8381_v17 = vld [vmem:[#allocation8 + $0x30] sm:$0xf0]  ;;  %v10559_v20 = vld [vmem:[#allocation8 + $0xc] sm:$0xf0] }
 0x34f   :  { %v8365_v37 = vld [vmem:[#allocation8 + $0x10] sm:$0xf0]  ;;  %v8364_v48 = vor.u32 %v10559_v20, %v8363_v29  ;;  %v8563_v20 = vld [vmem:[#allocation11 + $0x88] sm:$0xf] }
 0x350   :  { %3264 = vmatpush.bf16.msrb.mxu2 %v8460_v54  ;;  %3277 = vmatpush.bf16.msrb.mxu3 %v8464_v57  ;;  %v8397_v54 = vld [vmem:[#allocation8 + $0x50] sm:$0xf0]  ;;  %v10566_v57 = vld [vmem:[#allocation8 + $0x4c] sm:$0xf] }
 0x351   :  { %3290 = vmatpush.bf16.msra.mxu0 %v8468_v12  ;;  %3303 = vmatpush.bf16.msra.mxu1 %v8472_v39  ;;  %v8379_v12 = vld [vmem:[#allocation8 + $0x20] sm:$0xf]  ;;  %v10563_v39 = vld [vmem:[#allocation8 + $0x2c] sm:$0xf0]  ;;  %v8557_v29 = vld [vmem:[#allocation11 + $0x90] sm:$0xf0] }
 0x352   :  { %v8380_v21 = vor.u32 %v10563_v39, %v8379_v12  ;;  %v8579_v12 = vld [vmem:[#allocation11 + $0xa8] sm:$0xf]  ;;  %v10612_v39 = vld [vmem:[#allocation11 + $0xb4] sm:$0xf0] }
 0x354   :  { %3265 = vmatpush.bf16.msrb.mxu2 %v8444_v58  ;;  %3278 = vmatpush.bf16.msrb.mxu3 %v8448_v0  ;;  %v10561_v58 = vld [vmem:[#allocation8 + $0x24] sm:$0xf] }
 0x355   :  { %3291 = vmatpush.bf16.msra.mxu0 %v8452_v30  ;;  %3304 = vmatpush.bf16.msra.mxu1 %v8456_v33  ;;  %v10557_v33 = vld [vmem:[#allocation8 + $0x4] sm:$0xf] }
 0x358   :  { %3266 = vmatpush.bf16.msrb.mxu2 %v8428_v43  ;;  %3279 = vmatpush.bf16.msrb.mxu3 %v8432_v47  ;;  %v10617_v47 = vld [vmem:[#allocation11 + $0xe4] sm:$0xf] }
 0x359   :  { %3292 = vmatpush.bf16.msra.mxu0 %v8436_v3  ;;  %3305 = vmatpush.bf16.msra.mxu1 %v8440_v53  ;;  %v8611_v3 = vld [vmem:[#allocation11 + $0xe8] sm:$0xf]  ;;  %v10620_v53 = vld [vmem:[#allocation11 + $0xf4] sm:$0xf0] }
 0x35a   :  { %3000 = vmatmul.bf16.vlgmr.msra.gmra.mxu2 %v11682_v31  ;;  %3013 = vmatmul.bf16.vlgmr.msra.gmra.mxu3 %v11682_v31 }
 0x35b   :  { %3026 = vmatmul.bf16.vlgmr.msrb.gmra.mxu0 %v11682_v31  ;;  %3039 = vmatmul.bf16.vlgmr.msrb.gmra.mxu1 %v11682_v31 }
 0x39f   :  { %v2490_v51 = vpop.f32.mrf.mxu0  ;;  %v2503_v26 = vpop.f32.mrf.mxu1 }
 0x3a0   :  { %v2517_v19 = vrot.slane %v2490_v51, 2  ;;  %v2518_v23 = vrot.slane %v2503_v26, 2 }
 0x3a2   :  { %v2525_v27 = vadd.f32 %v2517_v19, %v2509_v56  ;;  %v2526_v32 = vadd.f32 %v2518_v23, %v2510_v7  ;;  %v8412_v23 = vor.u32 %v10571_v5, %v8411_v52  ;;  %v10568_v56 = vld [vmem:[#allocation8 + $0x54] sm:$0xf0]  ;;  %v8605_v52 = vld [vmem:[#allocation11 + $0xf0] sm:$0xf0]  ;;  %v8368_v5 = vor.u32 %v10557_v33, %v8365_v37  ;;  %v10606_v33 = vld [vmem:[#allocation11 + $0x8c] sm:$0xf] }
 0x3a3   :  { %v8404_v13 = vor.u32 %v10568_v56, %v8403_v55  ;;  %v10614_v55 = vld [vmem:[#allocation11 + $0xcc] sm:$0xf]  ;;  %v8597_v56 = vld [vmem:[#allocation11 + $0xd8] sm:$0xf0] }
 0x3a4   :  { %v2464_v46 = vpop.f32.mrf.mxu2  ;;  %v2477_v31 = vpop.f32.mrf.mxu3  ;;  %3267 = vmatpush.bf16.msrb.mxu2 %v8412_v23  ;;  %v8587_v23 = vld [vmem:[#allocation11 + $0xc0] sm:$0xf]  ;;  %v8565_v37 = vld [vmem:[#allocation11 + $0x98] sm:$0xf0] }
 0x3a5   :  { %v2515_v42 = vrot.slane %v2464_v46, 2  ;;  %v2516_v50 = vrot.slane %v2477_v31, 2  ;;  %v8395_v46 = vld [vmem:[#allocation8 + $0x40] sm:$0xf] }
 0x3a6   :  { %v8396_v7 = vor.u32 %v10567_v34, %v8395_v46  ;;  %v8608_v46 = vor.u32 %v10617_v47, %v8605_v52 }
 0x3a7   :  { %v2523_v62 = vadd.f32 %v2515_v42, %v2507_v28  ;;  %v2524_v8 = vadd.f32 %v2516_v50, %v2508_v35  ;;  %v2492_v9 = vpop.f32.mrf.mxu0  ;;  %v2505_v11 = vpop.f32.mrf.mxu1  ;;  %v8416_v35 = vor.u32 %v10569_v6, %v8413_v14  ;;  %v8420_v42 = vor.u32 %v10572_v49, %v8419_v15  ;;  %v10618_v14 = vld [vmem:[#allocation11 + $0xec] sm:$0xf]  ;;  %v8613_v15 = vld [vmem:[#allocation11 + $0xf8] sm:$0xf0] }
 0x3a8   :  { %v8424_v50 = vor.u32 %v10570_v24, %v8421_v1  ;;  %v8400_v11 = vor.u32 %v10565_v38, %v8397_v54  ;;  %3268 = vmatpush.bf16.msrb.mxu2 %v8396_v7  ;;  %v8604_v6 = vor.u32 %v10619_v45, %v8603_v25  ;;  %v8372_v49 = vor.u32 %v10560_v44, %v8371_v40  ;;  %v10615_v24 = vld [vmem:[#allocation11 + $0xcc] sm:$0xf0]  ;;  %v10616_v54 = vld [vmem:[#allocation11 + $0xd4] sm:$0xf0] }
 0x3a9   :  { %11087 = vtanh.f32 %v2523_v62  ;;  %v8405_v62 = vld [vmem:[#allocation8 + $0x58] sm:$0xf0]  ;;  %3280 = vmatpush.bf16.msrb.mxu3 %v8416_v35  ;;  %3293 = vmatpush.bf16.msra.mxu0 %v8420_v42  ;;  %v8616_v35 = vor.u32 %v10618_v14, %v8613_v15  ;;  %v8588_v38 = vor.u32 %v10615_v24, %v8587_v23  ;;  %v8589_v42 = vld [vmem:[#allocation11 + $0xd0] sm:$0xf0]  ;;  %v11729_v40 = vld [vmem:[%s11974_s7] sm:$0xf]  ;;  %v8568_v45 = vor.u32 %v10606_v33, %v8565_v37 }
 0x3aa   :  { %11089 = vtanh.f32 %v2524_v8  ;;  %3306 = vmatpush.bf16.msra.mxu1 %v8424_v50  ;;  %v8408_v16 = vor.u32 %v10566_v57, %v8405_v62  ;;  %v8595_v50 = vld [vmem:[#allocation11 + $0xc8] sm:$0xf]  ;;  %v8571_v57 = vld [vmem:[#allocation11 + $0xa0] sm:$0xf]  ;;  %v10609_v62 = vld [vmem:[#allocation11 + $0xa4] sm:$0xf] }
 0x3ab   :  { %11091 = vtanh.f32 %v2525_v27  ;;  %v10562_v27 = vld [vmem:[#allocation8 + $0x2c] sm:$0xf]  ;;  %v8596_v7 = vor.u32 %v10616_v54, %v8595_v50  ;;  %v2581_v47 = vperm.slane %v11729_v40, 1  ;;  %v8541_v14 = vld [vmem:[#allocation11 + $0x70] sm:$0xf0] }
 0x3ac   :  { %v2466_v51 = vpop.f32.mrf.mxu2  ;;  %v2479_v26 = vpop.f32.mrf.mxu3  ;;  %11093 = vtanh.f32 %v2526_v32  ;;  %v8384_v32 = vor.u32 %v10561_v58, %v8381_v17  ;;  %v8392_v43 = vor.u32 %v10562_v27, %v8389_v10  ;;  %3269 = vmatpush.bf16.msrb.mxu2 %v8380_v21  ;;  %v10607_v58 = vld [vmem:[#allocation11 + $0x8c] sm:$0xf0]  ;;  %v8580_v27 = vor.u32 %v10612_v39, %v8579_v12  ;;  %v10605_v10 = vld [vmem:[#allocation11 + $0x84] sm:$0xf]  ;;  %v8547_v15 = vld [vmem:[#allocation11 + $0x68] sm:$0xf] }
 0x3ad   :  { %3281 = vmatpush.bf16.msrb.mxu3 %v8400_v11  ;;  %3294 = vmatpush.bf16.msra.mxu0 %v8404_v13  ;;  %v10558_v51 = vld [vmem:[#allocation8 + $0xc] sm:$0xf]  ;;  %v8373_v26 = vld [vmem:[#allocation8 + $0x18] sm:$0xf0]  ;;  %v10600_v50 = vld [vmem:[#allocation11 + $0x54] sm:$0xf0] }
 0x3ae   :  { %3307 = vmatpush.bf16.msra.mxu1 %v8408_v16  ;;  %v8581_v13 = vld [vmem:[#allocation11 + $0xb8] sm:$0xf0]  ;;  %v8555_v16 = vld [vmem:[#allocation11 + $0x80] sm:$0xf]  ;;  %v10602_v24 = vld [vmem:[#allocation11 + $0x6c] sm:$0xf] }
 0x3af   :  { %v11088_v19 = vpop.eup %11087  ;;  %v8556_v21 = vor.u32 %v10607_v58, %v8555_v16  ;;  %v10598_v54 = vld [vmem:[#allocation11 + $0x4c] sm:$0xf]  ;;  %v10596_v12 = vld [vmem:[#allocation11 + $0x34] sm:$0xf0]  ;;  %v8501_v37 = vld [vmem:[#allocation11 + $0x18] sm:$0xf0] }
 0x3b0   :  { %v11090_v28 = vpop.eup %11089  ;;  %v2531_v31 = vmul.f32 0.5, %v11088_v19  ;;  %v8376_v19 = vor.u32 %v10558_v51, %v8373_v26  ;;  %3270 = vmatpush.bf16.msrb.mxu2 %v8364_v48  ;;  %v2582_v51 = vperm.slane %v11729_v40, 2  ;;  %v2580_v26 = vperm.slane %v11729_v40, 0  ;;  %v10594_v39 = vld [vmem:[#allocation11 + $0x2c] sm:$0xf] }
 0x3b1   :  { %v2533_v36 = vmul.f32 0.5, %v11090_v28  ;;  %v11092_v61 = vpop.eup %11091  ;;  %3282 = vmatpush.bf16.msrb.mxu3 %v8384_v32  ;;  %3295 = vmatpush.bf16.msra.mxu0 %v8388_v41  ;;  %v8612_v28 = vor.u32 %v10620_v53, %v8611_v3  ;;  %v10608_v32 = vld [vmem:[#allocation11 + $0x94] sm:$0xf0]  ;;  %v8560_v41 = vor.u32 %v10605_v10, %v8557_v29  ;;  %v8539_v3 = vld [vmem:[#allocation11 + $0x60] sm:$0xf] }
 0x3b2   :  { %v2532_v63 = vadd.f32 0.5, %v2531_v31  ;;  %v11094_v8 = vpop.eup %11093  ;;  %3308 = vmatpush.bf16.msra.mxu1 %v8392_v43  ;;  %v8564_v43 = vor.u32 %v10608_v32, %v8563_v20  ;;  %v10603_v53 = vld [vmem:[#allocation11 + $0x6c] sm:$0xf0]  ;;  %v8493_v29 = vld [vmem:[#allocation11 + $0x10] sm:$0xf0] }
 0x3b3   :  { %v2534_v59 = vadd.f32 0.5, %v2533_v36  ;;  %v2535_v0 = vmul.f32 0.5, %v11094_v8  ;;  %v10613_v36 = vld [vmem:[#allocation11 + $0xc4] sm:$0xf]  ;;  %v8573_v8 = vld [vmem:[#allocation11 + $0xb0] sm:$0xf0] }
 0x3b4   :  { %v2541_v9 = vmul.f32 %v11092_v61, %v2532_v63  ;;  %3544 = vmatpush.bf16.msra.mxu2 %v8604_v6  ;;  %v10611_v61 = vld [vmem:[#allocation11 + $0xac] sm:$0xf0]  ;;  %v8576_v22 = vor.u32 %v10609_v62, %v8573_v8  ;;  %v8540_v6 = vor.u32 %v10603_v53, %v8539_v3  ;;  %v10593_v62 = vld [vmem:[#allocation11 + $0x24] sm:$0xf]  ;;  %v8509_v8 = vld [vmem:[#allocation11 + $0x30] sm:$0xf0] }
 0x3b5   :  { %v2540_v60 = vmul.f32 %v2538_v4, %v2534_v59  ;;  %v2536_v1 = vadd.f32 0.5, %v2535_v0  ;;  %3283 = vmatpush.bf16.msrb.mxu3 %v8368_v5  ;;  %3296 = vmatpush.bf16.msra.mxu0 %v8372_v49  ;;  %v8592_v4 = vor.u32 %v10613_v36, %v8589_v42  ;;  %v8572_v11 = vor.u32 %v10611_v61, %v8571_v57  ;;  %v10601_v5 = vld [vmem:[#allocation11 + $0x64] sm:$0xf]  ;;  %v10604_v49 = vld [vmem:[#allocation11 + $0x74] sm:$0xf0] }
 0x3b6   :  { %3309 = vmatpush.bf16.msra.mxu1 %v8376_v19  ;;  %v8544_v19 = vor.u32 %v10601_v5, %v8541_v14  ;;  %v8548_v23 = vor.u32 %v10604_v49, %v8547_v15  ;;  %v8531_v42 = vld [vmem:[#allocation11 + $0x48] sm:$0xf]  ;;  %v8533_v57 = vld [vmem:[#allocation11 + $0x58] sm:$0xf0]  ;;  %v8507_v61 = vld [vmem:[#allocation11 + $0x20] sm:$0xf]  ;;  %v8512_v58 = vor.u32 %v10593_v62, %v8509_v8 }
 0x3b7   :  { %v11713_v30 = vadd.f32 %v2541_v9, %v2540_v60  ;;  %v8600_v9 = vor.u32 %v10614_v55, %v8597_v56  ;;  %v10610_v60 = vld [vmem:[#allocation11 + $0xac] sm:$0xf]  ;;  %v8532_v56 = vor.u32 %v10600_v50, %v8531_v42  ;;  %v10591_v10 = vld [vmem:[#allocation11 + $0xc] sm:$0xf0]  ;;  %v8499_v20 = vld [vmem:[#allocation11 + $0x8] sm:$0xf] }
 0x3b8   :  { %3545 = vmatpush.bf16.msra.mxu2 %v8588_v38  ;;  %v8584_v0 = vor.u32 %v10610_v60, %v8581_v13  ;;  %v8517_v60 = vld [vmem:[#allocation11 + $0x38] sm:$0xf0]  ;;  %v10592_v32 = vld [vmem:[#allocation11 + $0x14] sm:$0xf0]  ;;  %v10590_v33 = vld [vmem:[#allocation11 + $0xc] sm:$0xf] }
 0x3b9   :  { %11095 = vtanh.f32 %v11713_v30  ;;  %3557 = vmatpush.bf16.msra.mxu3 %v8608_v46  ;;  %3570 = vmatpush.bf16.msrb.mxu0 %v8612_v28  ;;  %v8523_v46 = vld [vmem:[#allocation11 + $0x40] sm:$0xf]  ;;  %v8733_v3 = vld [vmem:[#allocation9 + $0xf0] sm:$0xf0]  ;;  %v8739_v14 = vld [vmem:[#allocation9 + $0xe8] sm:$0xf] }
 0x3ba   :  { %3583 = vmatpush.bf16.msrb.mxu1 %v8616_v35  ;;  %v10597_v35 = vld [vmem:[#allocation11 + $0x44] sm:$0xf]  ;;  %v10652_v15 = vld [vmem:[#allocation9 + $0xf4] sm:$0xf0]  ;;  %v10650_v49 = vld [vmem:[#allocation9 + $0xec] sm:$0xf] }
 0x3bb   :  { %v8717_v42 = vld [vmem:[#allocation9 + $0xd0] sm:$0xf0]  ;;  %v8723_v50 = vld [vmem:[#allocation9 + $0xc8] sm:$0xf]  ;;  %v10643_v62 = vld [vmem:[#allocation9 + $0xac] sm:$0xf0] }
 0x3bc   :  { %3546 = vmatpush.bf16.msra.mxu2 %v8572_v11  ;;  %v10641_v8 = vld [vmem:[#allocation9 + $0xa4] sm:$0xf] }
 0x3bd   :  { %3558 = vmatpush.bf16.msra.mxu3 %v8592_v4  ;;  %3571 = vmatpush.bf16.msrb.mxu0 %v8596_v7  ;;  %v10595_v4 = vld [vmem:[#allocation11 + $0x2c] sm:$0xf0]  ;;  %v8536_v7 = vor.u32 %v10598_v54, %v8533_v57 }
 0x3be   :  { %3584 = vmatpush.bf16.msrb.mxu1 %v8600_v9  ;;  %v8515_v9 = vld [vmem:[#allocation11 + $0x28] sm:$0xf]  ;;  %v8508_v11 = vor.u32 %v10595_v4, %v8507_v61 }
 0x3bf   :  { %v11096_v31 = vpop.eup %11095 }
 0x3c0   :  { %v2544_v34 = vmul.f32 %v11096_v31, %v2536_v1  ;;  %3547 = vmatpush.bf16.msra.mxu2 %v8556_v21  ;;  %v8549_v1 = vld [vmem:[#allocation11 + $0x78] sm:$0xf0]  ;;  %v10599_v31 = vld [vmem:[#allocation11 + $0x4c] sm:$0xf0]  ;;  %v8520_v21 = vor.u32 %v10594_v39, %v8517_v60  ;;  %v10644_v39 = vld [vmem:[#allocation9 + $0xb4] sm:$0xf0] }
 0x3c1   :  { %3559 = vmatpush.bf16.msra.mxu3 %v8576_v22  ;;  %3572 = vmatpush.bf16.msrb.mxu0 %v8580_v27  ;;  %v8552_v28 = vor.u32 %v10602_v24, %v8549_v1  ;;  %v8524_v38 = vor.u32 %v10599_v31, %v8523_v46  ;;  %v8516_v22 = vor.u32 %v10596_v12, %v8515_v9  ;;  %v8491_v27 = vld [vmem:[#allocation11] sm:$0xf]  ;;  %v8741_v46 = vld [vmem:[#allocation9 + $0xf8] sm:$0xf0]  ;;  %v8707_v12 = vld [vmem:[#allocation9 + $0xa8] sm:$0xf] }
 0x3c2   :  { %v2545_v63 = vpack.c.bf16 %v2544_v34, %v2544_v34  ;;  %3585 = vmatpush.bf16.msrb.mxu1 %v8584_v0  ;;  %v8525_v34 = vld [vmem:[#allocation11 + $0x50] sm:$0xf0]  ;;  %v10589_v0 = vld [vmem:[#allocation11 + $0x4] sm:$0xf]  ;;  %v8504_v24 = vor.u32 %v10590_v33, %v8501_v37  ;;  %v8740_v31 = vor.u32 %v10652_v15, %v8739_v14 }
 0x3c3   :  { %v8528_v36 = vor.u32 %v10597_v35, %v8525_v34  ;;  %v8496_v5 = vor.u32 %v10589_v0, %v8493_v29  ;;  %v8715_v35 = vld [vmem:[#allocation9 + $0xc0] sm:$0xf]  ;;  %v10647_v34 = vld [vmem:[#allocation9 + $0xcc] sm:$0xf0]  ;;  %v8708_v29 = vor.u32 %v10644_v39, %v8707_v12  ;;  %v8685_v33 = vld [vmem:[#allocation9 + $0x90] sm:$0xf0] }
 0x3c4   :  { %v11716_v59 = vrot.slane %v2545_v63, 3  ;;  %3548 = vmatpush.bf16.msra.mxu2 %v8540_v6  ;;  %v8500_v6 = vor.u32 %v10592_v32, %v8499_v20  ;;  %v10639_v20 = vld [vmem:[#allocation9 + $0x8c] sm:$0xf0]  ;;  %v10637_v32 = vld [vmem:[#allocation9 + $0x84] sm:$0xf] }
 0x3c5   :  { %3560 = vmatpush.bf16.msra.mxu3 %v8560_v41  ;;  %3573 = vmatpush.bf16.msrb.mxu0 %v8564_v43  ;;  %v8731_v41 = vld [vmem:[#allocation9 + $0xe0] sm:$0xf]  ;;  %v8637_v12 = vld [vmem:[#allocation9 + $0x30] sm:$0xf0]  ;;  %v8643_v39 = vld [vmem:[#allocation9 + $0x28] sm:$0xf] }
 0x3c6   :  { %3271 = vmatmul.bf16.vlgmr.msrb.gmra.mxu2 %v11716_v59  ;;  %3284 = vmatmul.bf16.vlgmr.msrb.gmra.mxu3 %v11716_v59 }
 0x3c7   :  { %3297 = vmatmul.bf16.vlgmr.msra.gmra.mxu0 %v11716_v59  ;;  %3310 = vmatmul.bf16.vlgmr.msra.gmra.mxu1 %v11716_v59 }
 0x3c8   :  { %v11722_v17 = vpop.f32.mrf.mxu0  ;;  %v11724_v18 = vpop.f32.mrf.mxu1  ;;  %3586 = vmatpush.bf16.msrb.mxu1 %v8568_v45  ;;  %3549 = vmatpush.bf16.msra.mxu2 %v8524_v38  ;;  %v8492_v45 = vor.u32 %v10591_v10, %v8491_v27  ;;  %v10645_v38 = vld [vmem:[#allocation9 + $0xc4] sm:$0xf]  ;;  %v8683_v10 = vld [vmem:[#allocation9 + $0x80] sm:$0xf] }
 0x3c9   :  { %3561 = vmatpush.bf16.msra.mxu3 %v8544_v19  ;;  %3574 = vmatpush.bf16.msrb.mxu0 %v8548_v23  ;;  %v8720_v61 = vor.u32 %v10645_v38, %v8717_v42 }
 0x3cc   :  { %3587 = vmatpush.bf16.msrb.mxu1 %v8552_v28  ;;  %3550 = vmatpush.bf16.msra.mxu2 %v8508_v11  ;;  %v8701_v11 = vld [vmem:[#allocation9 + $0xb0] sm:$0xf0] }
 0x3cd   :  { %v11731_v44 = vpop.f32.mrf.mxu2  ;;  %v11733_v25 = vpop.f32.mrf.mxu3  ;;  %3562 = vmatpush.bf16.msra.mxu3 %v8528_v36  ;;  %3575 = vmatpush.bf16.msrb.mxu0 %v8532_v56  ;;  %v8744_v36 = vor.u32 %v10650_v49, %v8741_v46  ;;  %v8716_v56 = vor.u32 %v10647_v34, %v8715_v35  ;;  %v8688_v49 = vor.u32 %v10637_v32, %v8685_v33  ;;  %v8675_v46 = vld [vmem:[#allocation9 + $0x68] sm:$0xf]  ;;  %v8621_v33 = vld [vmem:[#allocation9 + $0x10] sm:$0xf0] }
 0x3ce   :  { %v2758_v43 = vadd.f32 %v11731_v44, %v2580_v26  ;;  %v2771_v53 = vadd.f32 %v11733_v25, %v2581_v47  ;;  %v2784_v44 = vadd.f32 %v11722_v17, %v2582_v51  ;;  %v2583_v26 = vperm.slane %v11729_v40, 3  ;;  %v10648_v17 = vld [vmem:[#allocation9 + $0xd4] sm:$0xf0] }
 0x3cf   :  { %v8724_v4 = vor.u32 %v10648_v17, %v8723_v50  ;;  %v8651_v50 = vld [vmem:[#allocation9 + $0x40] sm:$0xf]  ;;  %v10631_v17 = vld [vmem:[#allocation9 + $0x4c] sm:$0xf0] }
 0x3d0   :  { %v2785_v48 = vpop.f32.mrf.mxu0  ;;  %v2798_v52 = vpop.f32.mrf.mxu1  ;;  %3588 = vmatpush.bf16.msrb.mxu1 %v8536_v7  ;;  %3551 = vmatpush.bf16.msra.mxu2 %v8492_v45  ;;  %v2797_v57 = vadd.f32 %v11724_v18, %v2583_v26  ;;  %v8699_v7 = vld [vmem:[#allocation9 + $0xa0] sm:$0xf]  ;;  %v10640_v45 = vld [vmem:[#allocation9 + $0x94] sm:$0xf0]  ;;  %v10635_v26 = vld [vmem:[#allocation9 + $0x6c] sm:$0xf0] }
 0x3d1   :  { %v10651_v48 = vld [vmem:[#allocation9 + $0xec] sm:$0xf0]  ;;  %v10649_v52 = vld [vmem:[#allocation9 + $0xe4] sm:$0xf]  ;;  %3563 = vmatpush.bf16.msra.mxu3 %v8512_v58  ;;  %3576 = vmatpush.bf16.msrb.mxu0 %v8516_v22  ;;  %v8709_v58 = vld [vmem:[#allocation9 + $0xb8] sm:$0xf0]  ;;  %v8700_v18 = vor.u32 %v10643_v62, %v8699_v7 }
 0x3d2   :  { %v8732_v1 = vor.u32 %v10651_v48, %v8731_v41  ;;  %v8736_v28 = vor.u32 %v10649_v52, %v8733_v3  ;;  %v10638_v52 = vld [vmem:[#allocation9 + $0x8c] sm:$0xf]  ;;  %v8693_v3 = vld [vmem:[#allocation9 + $0x98] sm:$0xf0]  ;;  %v8635_v62 = vld [vmem:[#allocation9 + $0x20] sm:$0xf] }
 0x3d4   :  { %3589 = vmatpush.bf16.msrb.mxu1 %v8520_v21  ;;  %3788 = vmatpush.bf16.msrb.mxu2 %v8732_v1  ;;  %v8704_v21 = vor.u32 %v10641_v8, %v8701_v11  ;;  %v8669_v1 = vld [vmem:[#allocation9 + $0x70] sm:$0xf0]  ;;  %v10627_v8 = vld [vmem:[#allocation9 + $0x2c] sm:$0xf0] }
 0x3d5   :  { %v2759_v55 = vpop.f32.mrf.mxu2  ;;  %v2772_v63 = vpop.f32.mrf.mxu3  ;;  %3564 = vmatpush.bf16.msra.mxu3 %v8496_v5  ;;  %3577 = vmatpush.bf16.msrb.mxu0 %v8500_v6  ;;  %v8684_v5 = vor.u32 %v10639_v20, %v8683_v10  ;;  %v8667_v6 = vld [vmem:[#allocation9 + $0x60] sm:$0xf]  ;;  %v10621_v20 = vld [vmem:[#allocation9 + $0x4] sm:$0xf] }
 0x3d6   :  { %v10646_v55 = vld [vmem:[#allocation9 + $0xcc] sm:$0xf]  ;;  %v8725_v63 = vld [vmem:[#allocation9 + $0xd8] sm:$0xf0]  ;;  %v8668_v35 = vor.u32 %v10635_v26, %v8667_v6  ;;  %v8861_v26 = vld [vmem:[#allocation8 + $0xf0] sm:$0xf0] }
 0x3d7   :  { %v8728_v9 = vor.u32 %v10646_v55, %v8725_v63  ;;  %v8659_v55 = vld [vmem:[#allocation9 + $0x48] sm:$0xf]  ;;  %v10632_v63 = vld [vmem:[#allocation9 + $0x54] sm:$0xf0] }
 0x3d8   :  { %v3027_v13 = vpop.f32.mrf.mxu0  ;;  %v11738_v16 = vpop.f32.mrf.mxu1  ;;  %3590 = vmatpush.bf16.msrb.mxu1 %v8504_v24  ;;  %3789 = vmatpush.bf16.msrb.mxu2 %v8716_v56  ;;  %v8696_v24 = vor.u32 %v10638_v52, %v8693_v3  ;;  %v8661_v56 = vld [vmem:[#allocation9 + $0x58] sm:$0xf0]  ;;  %v8660_v7 = vor.u32 %v10632_v63, %v8659_v55  ;;  %v10622_v3 = vld [vmem:[#allocation9 + $0xc] sm:$0xf]  ;;  %v8827_v63 = vld [vmem:[#allocation8 + $0xa0] sm:$0xf] }
 0x3d9   :  { %v3046_v51 = vadd.f32 %v3027_v13, %v2784_v44  ;;  %3801 = vmatpush.bf16.msrb.mxu3 %v8736_v28  ;;  %3814 = vmatpush.bf16.msra.mxu0 %v8740_v31  ;;  %v3047_v60 = vadd.f32 %v11738_v16, %v2797_v57  ;;  %v10642_v13 = vld [vmem:[#allocation9 + $0xac] sm:$0xf]  ;;  %v8691_v16 = vld [vmem:[#allocation9 + $0x88] sm:$0xf]  ;;  %v8677_v31 = vld [vmem:[#allocation9 + $0x78] sm:$0xf0] }
 0x3da   :  { %v8692_v44 = vor.u32 %v10640_v45, %v8691_v16  ;;  %v10634_v28 = vld [vmem:[#allocation9 + $0x6c] sm:$0xf]  ;;  %v8853_v55 = vld [vmem:[#allocation8 + $0xd8] sm:$0xf0] }
 0x3dc   :  { %3827 = vmatpush.bf16.msra.mxu1 %v8744_v36  ;;  %3790 = vmatpush.bf16.msrb.mxu2 %v8700_v18 }
 0x3dd   :  { %v3001_v19 = vpop.f32.mrf.mxu2  ;;  %v3014_v23 = vpop.f32.mrf.mxu3  ;;  %3802 = vmatpush.bf16.msrb.mxu3 %v8720_v61  ;;  %3815 = vmatpush.bf16.msra.mxu0 %v8724_v4  ;;  %v8652_v61 = vor.u32 %v10631_v17, %v8651_v50  ;;  %v8851_v50 = vld [vmem:[#allocation8 + $0xc8] sm:$0xf]  ;;  %v10680_v17 = vld [vmem:[#allocation8 + $0xd4] sm:$0xf0] }
 0x3de   :  { %v3044_v25 = vadd.f32 %v3001_v19, %v2758_v43  ;;  %v3045_v47 = vadd.f32 %v3014_v23, %v2771_v53  ;;  %v8712_v43 = vor.u32 %v10642_v13, %v8709_v58  ;;  %v10633_v19 = vld [vmem:[#allocation9 + $0x64] sm:$0xf]  ;;  %v8636_v58 = vor.u32 %v10627_v8, %v8635_v62 }
 0x3df   :  { %v8672_v36 = vor.u32 %v10633_v19, %v8669_v1  ;;  %v8867_v19 = vld [vmem:[#allocation8 + $0xe8] sm:$0xf] }
 0x3e0   :  { %11097 = vtanh.f32 %v3044_v25  ;;  %v3029_v40 = vpop.f32.mrf.mxu0  ;;  %v3042_v54 = vpop.f32.mrf.mxu1  ;;  %3828 = vmatpush.bf16.msra.mxu1 %v8728_v9  ;;  %v10636_v25 = vld [vmem:[#allocation9 + $0x74] sm:$0xf0]  ;;  %3791 = vmatpush.bf16.msrb.mxu2 %v8684_v5  ;;  %v10625_v9 = vld [vmem:[#allocation9 + $0x24] sm:$0xf] }
 0x3e1   :  { %11099 = vtanh.f32 %v3045_v47  ;;  %3803 = vmatpush.bf16.msrb.mxu3 %v8704_v21  ;;  %3816 = vmatpush.bf16.msra.mxu0 %v8708_v29  ;;  %v8676_v42 = vor.u32 %v10636_v25, %v8675_v46  ;;  %v8680_v40 = vor.u32 %v10634_v28, %v8677_v31  ;;  %v8653_v54 = vld [vmem:[#allocation9 + $0x50] sm:$0xf0]  ;;  %v8640_v10 = vor.u32 %v10625_v9, %v8637_v12  ;;  %v8619_v21 = vld [vmem:[#allocation9] sm:$0xf]  ;;  %v10623_v29 = vld [vmem:[#allocation9 + $0xc] sm:$0xf0] }
 0x3e2   :  { %11101 = vtanh.f32 %v3046_v51  ;;  %v10629_v51 = vld [vmem:[#allocation9 + $0x44] sm:$0xf]  ;;  %v8620_v45 = vor.u32 %v10623_v29, %v8619_v21  ;;  %v10682_v46 = vld [vmem:[#allocation8 + $0xec] sm:$0xf]  ;;  %v8869_v25 = vld [vmem:[#allocation8 + $0xf8] sm:$0xf0] }
 0x3e3   :  { %11103 = vtanh.f32 %v3047_v60  ;;  %v8656_v4 = vor.u32 %v10629_v51, %v8653_v54  ;;  %v10628_v60 = vld [vmem:[#allocation9 + $0x34] sm:$0xf0]  ;;  %v10678_v54 = vld [vmem:[#allocation8 + $0xcc] sm:$0xf]  ;;  %v8835_v9 = vld [vmem:[#allocation8 + $0xa8] sm:$0xf] }
 0x3e4   :  { %3829 = vmatpush.bf16.msra.mxu1 %v8712_v43  ;;  %3792 = vmatpush.bf16.msrb.mxu2 %v8668_v35  ;;  %v10679_v35 = vld [vmem:[#allocation8 + $0xcc] sm:$0xf0]  ;;  %v10674_v12 = vld [vmem:[#allocation8 + $0xac] sm:$0xf]  ;;  %v10669_v29 = vld [vmem:[#allocation8 + $0x84] sm:$0xf] }
 0x3e5   :  { %v3003_v22 = vpop.f32.mrf.mxu2  ;;  %v3016_v27 = vpop.f32.mrf.mxu3  ;;  %3804 = vmatpush.bf16.msrb.mxu3 %v8688_v49  ;;  %3817 = vmatpush.bf16.msra.mxu0 %v8692_v44  ;;  %v10681_v49 = vld [vmem:[#allocation8 + $0xe4] sm:$0xf] }
 0x3e6   :  { %v11098_v0 = vpop.eup %11097  ;;  %v10626_v22 = vld [vmem:[#allocation9 + $0x2c] sm:$0xf]  ;;  %v8645_v27 = vld [vmem:[#allocation9 + $0x38] sm:$0xf0] }
 0x3e7   :  { %v11100_v37 = vpop.eup %11099  ;;  %v3052_v41 = vmul.f32 0.5, %v11098_v0  ;;  %v8644_v0 = vor.u32 %v10628_v60, %v8643_v39  ;;  %v8648_v16 = vor.u32 %v10626_v22, %v8645_v27  ;;  %v3317_v39 = vld [vmem:[#allocation2 + $0x28] sm:$0x3]  ;;  %v8837_v22 = vld [vmem:[#allocation8 + $0xb8] sm:$0xf0] }
 0x3e8   :  { %v3054_v48 = vmul.f32 0.5, %v11100_v37  ;;  %v11102_v14 = vpop.eup %11101  ;;  %3830 = vmatpush.bf16.msra.mxu1 %v8696_v24  ;;  %3793 = vmatpush.bf16.msrb.mxu2 %v8652_v61  ;;  %v8627_v37 = vld [vmem:[#allocation9 + $0x8] sm:$0xf]  ;;  %v8864_v24 = vor.u32 %v10681_v49, %v8861_v26  ;;  %v10675_v61 = vld [vmem:[#allocation8 + $0xac] sm:$0xf0]  ;;  %v8840_v21 = vor.u32 %v10674_v12, %v8837_v22 }
 0x3e9   :  { %v3053_v53 = vadd.f32 0.5, %v3052_v41  ;;  %v11104_v34 = vpop.eup %11103  ;;  %3805 = vmatpush.bf16.msrb.mxu3 %v8672_v36  ;;  %3818 = vmatpush.bf16.msra.mxu0 %v8676_v42  ;;  %v10624_v41 = vld [vmem:[#allocation9 + $0x14] sm:$0xf0]  ;;  %v8845_v42 = vld [vmem:[#allocation8 + $0xd0] sm:$0xf0]  ;;  %v8828_v62 = vor.u32 %v10675_v61, %v8827_v63 }
 0x3ea   :  { %v3055_v15 = vadd.f32 0.5, %v3054_v48  ;;  %v3056_v57 = vmul.f32 0.5, %v11104_v34  ;;  %v8624_v48 = vor.u32 %v10621_v20, %v8621_v33  ;;  %v8628_v52 = vor.u32 %v10624_v41, %v8627_v37  ;;  %v10677_v34 = vld [vmem:[#allocation8 + $0xc4] sm:$0xf]  ;;  %v8811_v27 = vld [vmem:[#allocation8 + $0x80] sm:$0xf] }
 0x3eb   :  { %v3059_v23 = vmul.f32 %v11102_v14, %v3053_v53  ;;  %v8629_v53 = vld [vmem:[#allocation9 + $0x18] sm:$0xf0]  ;;  %v8859_v14 = vld [vmem:[#allocation8 + $0xe0] sm:$0xf]  ;;  %v8848_v51 = vor.u32 %v10677_v34, %v8845_v42  ;;  %v8813_v20 = vld [vmem:[#allocation8 + $0x90] sm:$0xf0] }
 0x3ec   :  { %v3058_v47 = vmul.f32 %v3055_v15, %v11705_v2  ;;  %v10630_v2 = vld [vmem:[#allocation9 + $0x4c] sm:$0xf]  ;;  %3831 = vmatpush.bf16.msra.mxu1 %v8680_v40  ;;  %v3057_v13 = vadd.f32 0.5, %v3056_v57  ;;  %3794 = vmatpush.bf16.msrb.mxu2 %v8636_v58  ;;  %v8632_v6 = vor.u32 %v10622_v3, %v8629_v53  ;;  %v10683_v15 = vld [vmem:[#allocation8 + $0xec] sm:$0xf0]  ;;  %v8852_v40 = vor.u32 %v10680_v17, %v8851_v50 }
 0x3ed   :  { %v8664_v11 = vor.u32 %v10630_v2, %v8661_v56  ;;  %3806 = vmatpush.bf16.msrb.mxu3 %v8656_v4  ;;  %3819 = vmatpush.bf16.msra.mxu0 %v8660_v7  ;;  %v8860_v44 = vor.u32 %v10683_v15, %v8859_v14  ;;  %v3315_v2 = vld [vmem:[#allocation2 + $0x8] sm:$0x3]  ;;  %v3316_v56 = vld [vmem:[#allocation2 + $0x20] sm:$0x3]  ;;  %v8856_v57 = vor.u32 %v10678_v54, %v8853_v55  ;;  %v10673_v4 = vld [vmem:[#allocation8 + $0xa4] sm:$0xf] }
 0x3ee   :  { %v11753_v38 = vadd.f32 %v3059_v23, %v3058_v47  ;;  %v10684_v23 = vld [vmem:[#allocation8 + $0xf4] sm:$0xf0]  ;;  %v8872_v47 = vor.u32 %v10682_v46, %v8869_v25  ;;  %v8829_v7 = vld [vmem:[#allocation8 + $0xb0] sm:$0xf0]  ;;  %v3318_v33 = vld [vmem:[#allocation2 + $0x38] sm:$0x3]  ;;  %v8816_v3 = vor.u32 %v10669_v29, %v8813_v20 }
 0x3ef   :  { %v8868_v1 = vor.u32 %v10684_v23, %v8867_v19  ;;  %v8832_v8 = vor.u32 %v10673_v4, %v8829_v7  ;;  %v10672_v41 = vld [vmem:[#allocation8 + $0x94] sm:$0xf0]  ;;  %v10665_v14 = vld [vmem:[#allocation8 + $0x64] sm:$0xf]  ;;  %v8797_v49 = vld [vmem:[#allocation8 + $0x70] sm:$0xf0] }
 0x3f0   :  { %11105 = vtanh.f32 %v11753_v38  ;;  %3832 = vmatpush.bf16.msra.mxu1 %v8664_v11  ;;  %3795 = vmatpush.bf16.msrb.mxu2 %v8620_v45  ;;  %v10676_v11 = vld [vmem:[#allocation8 + $0xb4] sm:$0xf0]  ;;  %v10666_v23 = vld [vmem:[#allocation8 + $0x6c] sm:$0xf]  ;;  %v8800_v46 = vor.u32 %v10665_v14, %v8797_v49  ;;  %v8781_v42 = vld [vmem:[#allocation8 + $0x50] sm:$0xf0] }
 0x3f1   :  { %3807 = vmatpush.bf16.msrb.mxu3 %v8640_v10  ;;  %3820 = vmatpush.bf16.msra.mxu0 %v8644_v0  ;;  %v8836_v58 = vor.u32 %v10676_v11, %v8835_v9  ;;  %v10668_v26 = vld [vmem:[#allocation8 + $0x74] sm:$0xf0]  ;;  %v8787_v50 = vld [vmem:[#allocation8 + $0x48] sm:$0xf]  ;;  %v10657_v7 = vld [vmem:[#allocation8 + $0x24] sm:$0xf] }
 0x3f2   :  { %v10664_v17 = vld [vmem:[#allocation8 + $0x54] sm:$0xf0]  ;;  %v8771_v11 = vld [vmem:[#allocation8 + $0x28] sm:$0xf]  ;;  %v8773_v22 = vld [vmem:[#allocation8 + $0x38] sm:$0xf0] }
 0x3f3   :  { %v8788_v4 = vor.u32 %v10664_v17, %v8787_v50  ;;  %v10660_v12 = vld [vmem:[#allocation8 + $0x34] sm:$0xf0]  ;;  %v8747_v20 = vld [vmem:[#allocation8] sm:$0xf]  ;;  %v10715_v49 = vld [vmem:[#allocation11 + $0xec] sm:$0xf0] }
 0x3f4   :  { %3833 = vmatpush.bf16.msra.mxu1 %v8648_v16  ;;  %v8821_v16 = vld [vmem:[#allocation8 + $0x98] sm:$0xf0]  ;;  %v8772_v29 = vor.u32 %v10660_v12, %v8771_v11  ;;  %v8973_v17 = vld [vmem:[#allocation11 + $0xd0] sm:$0xf0]  ;;  %v10706_v11 = vld [vmem:[#allocation11 + $0xac] sm:$0xf] }
 0x3f5   :  { %3808 = vmatpush.bf16.msrb.mxu3 %v8624_v48  ;;  %3821 = vmatpush.bf16.msra.mxu0 %v8628_v52  ;;  %v8965_v12 = vld [vmem:[#allocation11 + $0xb8] sm:$0xf0] }
 0x3f6   :  { %v11106_v18 = vpop.eup %11105 }
 0x3f7   :  { %v3062_v32 = vmul.f32 %v11106_v18, %v3057_v13  ;;  %v10671_v18 = vld [vmem:[#allocation8 + $0x8c] sm:$0xf0] }
 0x3f8   :  { %3834 = vmatpush.bf16.msra.mxu1 %v8632_v6  ;;  %v8812_v37 = vor.u32 %v10671_v18, %v8811_v27  ;;  %v10667_v6 = vld [vmem:[#allocation8 + $0x6c] sm:$0xf0] }
 0x3f9   :  { %v3063_v43 = vpack.c.bf16 %v3062_v32, %v3062_v32  ;;  %v8819_v32 = vld [vmem:[#allocation8 + $0x88] sm:$0xf] }
 0x3fa   :  { %v8820_v53 = vor.u32 %v10672_v41, %v8819_v32  ;;  %v10655_v32 = vld [vmem:[#allocation8 + $0xc] sm:$0xf0]  ;;  %v8749_v41 = vld [vmem:[#allocation8 + $0x10] sm:$0xf0] }
 0x3fb   :  { %v3065_v5 = vrot.slane %v3063_v43, 6  ;;  %3552 = vmatmul.bf16.vlgmr.msra.gmra.mxu2 %v3063_v43  ;;  %3565 = vmatmul.bf16.vlgmr.msra.gmra.mxu3 %v3063_v43 }
 0x3fc   :  { %3578 = vmatmul.bf16.vlgmr.msrb.gmra.mxu0 %v3063_v43  ;;  %3591 = vmatmul.bf16.vlgmr.msrb.gmra.mxu1 %v3063_v43  ;;  %v10670_v43 = vld [vmem:[#allocation8 + $0x8c] sm:$0xf] }
 0x3fd   :  { %3067 = vst [vmem:[#allocation3] sm:$0x4] %v3065_v5  ;;  %4056 = vmatpush.bf16.msra.mxu2 %v8860_v44  ;;  %4069 = vmatpush.bf16.msra.mxu3 %v8864_v24  ;;  %v8795_v5 = vld [vmem:[#allocation8 + $0x60] sm:$0xf]  ;;  %v8824_v15 = vor.u32 %v10670_v43, %v8821_v16  ;;  %v8803_v44 = vld [vmem:[#allocation8 + $0x68] sm:$0xf] }
 0x3fe   :  { %4082 = vmatpush.bf16.msrb.mxu0 %v8868_v1  ;;  %4095 = vmatpush.bf16.msrb.mxu1 %v8872_v47  ;;  %v8805_v24 = vld [vmem:[#allocation8 + $0x78] sm:$0xf0]  ;;  %v8796_v1 = vor.u32 %v10667_v6, %v8795_v5  ;;  %v8804_v25 = vor.u32 %v10668_v26, %v8803_v44  ;;  %v8779_v47 = vld [vmem:[#allocation8 + $0x40] sm:$0xf]  ;;  %v8755_v43 = vld [vmem:[#allocation8 + $0x8] sm:$0xf] }
 0x3ff   :  { %v10656_v16 = vld [vmem:[#allocation8 + $0x14] sm:$0xf0]  ;;  %v10713_v26 = vld [vmem:[#allocation11 + $0xe4] sm:$0xf] }
 0x400   :  { %v8756_v5 = vor.u32 %v10656_v16, %v8755_v43  ;;  %v11780_v16 = vld [vmem:[%s11974_s7] sm:$0xf] }
 0x401   :  { %4070 = vmatpush.bf16.msra.mxu3 %v8848_v51  ;;  %v10662_v51 = vld [vmem:[#allocation8 + $0x4c] sm:$0xf] }
 0x402   :  { %4083 = vmatpush.bf16.msrb.mxu0 %v8852_v40  ;;  %4096 = vmatpush.bf16.msrb.mxu1 %v8856_v57  ;;  %v8789_v40 = vld [vmem:[#allocation8 + $0x58] sm:$0xf0] }
 0x403   :  { %v8792_v9 = vor.u32 %v10662_v51, %v8789_v40  ;;  %v10712_v51 = vld [vmem:[#allocation11 + $0xd4] sm:$0xf0]  ;;  %v10710_v40 = vld [vmem:[#allocation11 + $0xcc] sm:$0xf] }
 0x405   :  { %4071 = vmatpush.bf16.msra.mxu3 %v8832_v8 }
 0x406   :  { %4084 = vmatpush.bf16.msrb.mxu0 %v8836_v58  ;;  %4097 = vmatpush.bf16.msrb.mxu1 %v8840_v21  ;;  %v10658_v58 = vld [vmem:[#allocation8 + $0x2c] sm:$0xf] }
 0x409   :  { %4072 = vmatpush.bf16.msra.mxu3 %v8816_v3  ;;  %v8748_v3 = vor.u32 %v10655_v32, %v8747_v20  ;;  %v10702_v32 = vld [vmem:[#allocation11 + $0x8c] sm:$0xf] }
 0x40a   :  { %4085 = vmatpush.bf16.msrb.mxu0 %v8820_v53  ;;  %4098 = vmatpush.bf16.msrb.mxu1 %v8824_v15  ;;  %v8987_v15 = vld [vmem:[#allocation11 + $0xe0] sm:$0xf] }
 0x40b   :  { %3796 = vmatmul.bf16.vlgmr.msrb.gmra.mxu2 %v11716_v59  ;;  %3809 = vmatmul.bf16.vlgmr.msrb.gmra.mxu3 %v11716_v59  ;;  %v8988_v44 = vor.u32 %v10715_v49, %v8987_v15  ;;  %v10699_v15 = vld [vmem:[#allocation11 + $0x6c] sm:$0xf0]  ;;  %v10697_v49 = vld [vmem:[#allocation11 + $0x64] sm:$0xf] }
 0x40c   :  { %3822 = vmatmul.bf16.vlgmr.msra.gmra.mxu0 %v11716_v59  ;;  %3835 = vmatmul.bf16.vlgmr.msra.gmra.mxu1 %v11716_v59  ;;  %v8843_v59 = vld [vmem:[#allocation8 + $0xc0] sm:$0xf] }
 0x40d   :  { %v8844_v36 = vor.u32 %v10679_v35, %v8843_v59  ;;  %v10661_v59 = vld [vmem:[#allocation8 + $0x44] sm:$0xf]  ;;  %4073 = vmatpush.bf16.msra.mxu3 %v8800_v46  ;;  %v10714_v46 = vld [vmem:[#allocation11 + $0xec] sm:$0xf] }
 0x40e   :  { %4086 = vmatpush.bf16.msrb.mxu0 %v8804_v25  ;;  %v8784_v61 = vor.u32 %v10661_v59, %v8781_v42  ;;  %v8997_v25 = vld [vmem:[#allocation11 + $0xf8] sm:$0xf0] }
 0x40f   :  { %4057 = vmatpush.bf16.msra.mxu2 %v8844_v36  ;;  %v8808_v36 = vor.u32 %v10666_v23, %v8805_v24  ;;  %v8995_v23 = vld [vmem:[#allocation11 + $0xe8] sm:$0xf]  ;;  %v9000_v59 = vor.u32 %v10714_v46, %v8997_v25  ;;  %v10698_v46 = vld [vmem:[#allocation11 + $0x6c] sm:$0xf]  ;;  %v8933_v25 = vld [vmem:[#allocation11 + $0x78] sm:$0xf0] }
 0x411   :  { %4099 = vmatpush.bf16.msrb.mxu1 %v8808_v36  ;;  %4074 = vmatpush.bf16.msra.mxu3 %v8784_v61  ;;  %v10709_v36 = vld [vmem:[#allocation11 + $0xc4] sm:$0xf]  ;;  %v10707_v61 = vld [vmem:[#allocation11 + $0xac] sm:$0xf0] }
 0x412   :  { %4087 = vmatpush.bf16.msrb.mxu0 %v8788_v4  ;;  %v10705_v4 = vld [vmem:[#allocation11 + $0xa4] sm:$0xf] }
 0x413   :  { %4058 = vmatpush.bf16.msra.mxu2 %v8828_v62  ;;  %v8765_v62 = vld [vmem:[#allocation8 + $0x30] sm:$0xf0] }
 0x414   :  { %v8768_v21 = vor.u32 %v10657_v7, %v8765_v62  ;;  %v8957_v62 = vld [vmem:[#allocation11 + $0xb0] sm:$0xf0] }
 0x415   :  { %4100 = vmatpush.bf16.msrb.mxu1 %v8792_v9  ;;  %v10708_v9 = vld [vmem:[#allocation11 + $0xb4] sm:$0xf0] }
 0x416   :  { %4075 = vmatpush.bf16.msra.mxu3 %v8768_v21  ;;  %4088 = vmatpush.bf16.msrb.mxu0 %v8772_v29  ;;  %v10704_v21 = vld [vmem:[#allocation11 + $0x94] sm:$0xf0] }
 0x417   :  { %4059 = vmatpush.bf16.msra.mxu2 %v8812_v37  ;;  %v8776_v37 = vor.u32 %v10658_v58, %v8773_v22  ;;  %v8939_v58 = vld [vmem:[#allocation11 + $0x80] sm:$0xf]  ;;  %v10703_v22 = vld [vmem:[#allocation11 + $0x8c] sm:$0xf0] }
 0x419   :  { %4101 = vmatpush.bf16.msrb.mxu1 %v8776_v37 }
 0x41a   :  { %4089 = vmatpush.bf16.msrb.mxu0 %v8756_v5 }
 0x41b   :  { %4060 = vmatpush.bf16.msra.mxu2 %v8796_v1  ;;  %v10716_v1 = vld [vmem:[#allocation11 + $0xf4] sm:$0xf0] }
 0x444   :  { %v3298_v28 = vpop.f32.mrf.mxu0  ;;  %v11760_v31 = vpop.f32.mrf.mxu1 }
 0x445   :  { %v3321_v45 = vadd.f32 %v3317_v39, %v3298_v28  ;;  %v3322_v19 = vadd.f32 %v3318_v33, %v11760_v31  ;;  %v10663_v28 = vld [vmem:[#allocation8 + $0x4c] sm:$0xf0]  ;;  %v10653_v33 = vld [vmem:[#allocation8 + $0x4] sm:$0xf] }
 0x446   :  { %v8780_v63 = vor.u32 %v10663_v28, %v8779_v47  ;;  %v8752_v53 = vor.u32 %v10653_v33, %v8749_v41  ;;  %v8996_v28 = vor.u32 %v10716_v1, %v8995_v23  ;;  %v8949_v33 = vld [vmem:[#allocation11 + $0x98] sm:$0xf0]  ;;  %v10700_v23 = vld [vmem:[#allocation11 + $0x74] sm:$0xf0] }
 0x447   :  { %v8952_v43 = vor.u32 %v10702_v32, %v8949_v33  ;;  %v9115_v32 = vld [vmem:[#allocation9 + $0xe0] sm:$0xf] }
 0x448   :  { %4061 = vmatpush.bf16.msra.mxu2 %v8780_v63  ;;  %4076 = vmatpush.bf16.msra.mxu3 %v8752_v53  ;;  %v8976_v63 = vor.u32 %v10709_v36, %v8973_v17  ;;  %v3377_v53 = vperm.slane %v11780_v16, 1  ;;  %v10696_v17 = vld [vmem:[#allocation11 + $0x54] sm:$0xf0] }
 0x449   :  { %v3272_v60 = vpop.f32.mrf.mxu2  ;;  %v3285_v13 = vpop.f32.mrf.mxu3  ;;  %4375 = vmatpush.bf16.msra.mxu0 %v8996_v28  ;;  %v8936_v28 = vor.u32 %v10698_v46, %v8933_v25 }
 0x44a   :  { %v3319_v10 = vadd.f32 %v3315_v2, %v3272_v60  ;;  %v3320_v0 = vadd.f32 %v3316_v56, %v3285_v13  ;;  %v8763_v2 = vld [vmem:[#allocation8 + $0x20] sm:$0xf]  ;;  %v10659_v56 = vld [vmem:[#allocation8 + $0x2c] sm:$0xf0]  ;;  %v3334_v13 = vrot.slane %v11713_v30, 6 }
 0x44b   :  { %v8764_v18 = vor.u32 %v10659_v56, %v8763_v2 }
 0x44c   :  { %11107 = vtanh.f32 %v3319_v10  ;;  %v3300_v48 = vpop.f32.mrf.mxu0  ;;  %v3313_v52 = vpop.f32.mrf.mxu1 }
 0x44d   :  { %11109 = vtanh.f32 %v3320_v0  ;;  %v8757_v48 = vld [vmem:[#allocation8 + $0x18] sm:$0xf0]  ;;  %4062 = vmatpush.bf16.msra.mxu2 %v8764_v18  ;;  %v8940_v18 = vor.u32 %v10703_v22, %v8939_v58  ;;  %v8875_v58 = vld [vmem:[#allocation11] sm:$0xf]  ;;  %v10687_v22 = vld [vmem:[#allocation11 + $0xc] sm:$0xf0] }
 0x44e   :  { %11111 = vtanh.f32 %v3321_v45  ;;  %v10654_v45 = vld [vmem:[#allocation8 + $0xc] sm:$0xf] }
 0x44f   :  { %11113 = vtanh.f32 %v3322_v19  ;;  %v8760_v6 = vor.u32 %v10654_v45, %v8757_v48  ;;  %v8989_v19 = vld [vmem:[#allocation11 + $0xf0] sm:$0xf0] }
 0x450   :  { %v8992_v24 = vor.u32 %v10713_v26, %v8989_v19  ;;  %v8925_v26 = vld [vmem:[#allocation11 + $0x70] sm:$0xf0]  ;;  %v8931_v19 = vld [vmem:[#allocation11 + $0x68] sm:$0xf] }
 0x451   :  { %v3274_v35 = vpop.f32.mrf.mxu2  ;;  %v3287_v34 = vpop.f32.mrf.mxu3  ;;  %4063 = vmatpush.bf16.msra.mxu2 %v8748_v3  ;;  %4102 = vmatpush.bf16.msrb.mxu1 %v8760_v6  ;;  %v3376_v3 = vperm.slane %v11780_v16, 0  ;;  %v8932_v1 = vor.u32 %v10700_v23, %v8931_v19  ;;  %v10748_v19 = vld [vmem:[#allocation9 + $0xf4] sm:$0xf0]  ;;  %v10746_v23 = vld [vmem:[#allocation9 + $0xec] sm:$0xf] }
 0x452   :  { %v11108_v31 = vpop.eup %11107  ;;  %v8971_v35 = vld [vmem:[#allocation11 + $0xc0] sm:$0xf]  ;;  %v10711_v34 = vld [vmem:[#allocation11 + $0xcc] sm:$0xf0]  ;;  %4362 = vmatpush.bf16.msrb.mxu3 %v8992_v24  ;;  %v8928_v24 = vor.u32 %v10697_v49, %v8925_v26  ;;  %v9123_v26 = vld [vmem:[#allocation9 + $0xe8] sm:$0xf] }
 0x453   :  { %v11110_v54 = vpop.eup %11109  ;;  %v3327_v55 = vmul.f32 0.5, %v11108_v31  ;;  %v8972_v50 = vor.u32 %v10711_v34, %v8971_v35  ;;  %v8979_v31 = vld [vmem:[#allocation11 + $0xc8] sm:$0xf]  ;;  %v10693_v35 = vld [vmem:[#allocation11 + $0x44] sm:$0xf] }
 0x454   :  { %v3329_v57 = vmul.f32 0.5, %v11110_v54  ;;  %v11112_v39 = vpop.eup %11111  ;;  %v8981_v54 = vld [vmem:[#allocation11 + $0xd8] sm:$0xf0]  ;;  %v8980_v2 = vor.u32 %v10712_v51, %v8979_v31  ;;  %v8909_v34 = vld [vmem:[#allocation11 + $0x50] sm:$0xf0] }
 0x455   :  { %v3328_v8 = vadd.f32 0.5, %v3327_v55  ;;  %v11114_v10 = vpop.eup %11113  ;;  %4349 = vmatpush.bf16.msrb.mxu2 %v8988_v44  ;;  %4388 = vmatpush.bf16.msra.mxu1 %v9000_v59  ;;  %v8984_v56 = vor.u32 %v10710_v40, %v8981_v54  ;;  %v10695_v59 = vld [vmem:[#allocation11 + $0x4c] sm:$0xf0]  ;;  %v10694_v31 = vld [vmem:[#allocation11 + $0x4c] sm:$0xf] }
 0x456   :  { %v3330_v60 = vadd.f32 0.5, %v3329_v57  ;;  %v3331_v52 = vmul.f32 0.5, %v11114_v10  ;;  %v8955_v57 = vld [vmem:[#allocation11 + $0xa0] sm:$0xf]  ;;  %4363 = vmatpush.bf16.msrb.mxu3 %v8976_v63  ;;  %4376 = vmatpush.bf16.msra.mxu0 %v8980_v2  ;;  %v8941_v10 = vld [vmem:[#allocation11 + $0x90] sm:$0xf0] }
 0x457   :  { %v3337_v27 = vmul.f32 %v11112_v39, %v3328_v8  ;;  %v8956_v7 = vor.u32 %v10707_v61, %v8955_v57  ;;  %v8963_v8 = vld [vmem:[#allocation11 + $0xa8] sm:$0xf]  ;;  %v8960_v39 = vor.u32 %v10705_v4, %v8957_v62  ;;  %v8917_v63 = vld [vmem:[#allocation11 + $0x58] sm:$0xf0]  ;;  %v8891_v2 = vld [vmem:[#allocation11 + $0x20] sm:$0xf] }
 0x458   :  { %v3336_v0 = vmul.f32 %v3334_v13, %v3330_v60  ;;  %v3332_v14 = vadd.f32 0.5, %v3331_v52  ;;  %v8964_v60 = vor.u32 %v10708_v9, %v8963_v8  ;;  %v8968_v13 = vor.u32 %v10706_v11, %v8965_v12  ;;  %v10689_v61 = vld [vmem:[#allocation11 + $0x24] sm:$0xf]  ;;  %v8893_v4 = vld [vmem:[#allocation11 + $0x30] sm:$0xf0] }
 0x459   :  { %4350 = vmatpush.bf16.msrb.mxu2 %v8972_v50  ;;  %4389 = vmatpush.bf16.msra.mxu1 %v8984_v56  ;;  %v3378_v52 = vperm.slane %v11780_v16, 2  ;;  %v8915_v50 = vld [vmem:[#allocation11 + $0x48] sm:$0xf]  ;;  %v10691_v56 = vld [vmem:[#allocation11 + $0x2c] sm:$0xf0]  ;;  %v8920_v57 = vor.u32 %v10694_v31, %v8917_v63 }
 0x45a   :  { %v11764_v30 = vadd.f32 %v3337_v27, %v3336_v0  ;;  %4364 = vmatpush.bf16.msrb.mxu3 %v8960_v39  ;;  %4377 = vmatpush.bf16.msra.mxu0 %v8964_v60  ;;  %v10701_v27 = vld [vmem:[#allocation11 + $0x84] sm:$0xf]  ;;  %v8947_v0 = vld [vmem:[#allocation11 + $0x88] sm:$0xf]  ;;  %v8916_v54 = vor.u32 %v10696_v17, %v8915_v50  ;;  %v8892_v62 = vor.u32 %v10691_v56, %v8891_v2  ;;  %v10692_v8 = vld [vmem:[#allocation11 + $0x34] sm:$0xf0] }
 0x45b   :  { %v8944_v29 = vor.u32 %v10701_v27, %v8941_v10  ;;  %v8948_v20 = vor.u32 %v10704_v21, %v8947_v0  ;;  %v10690_v9 = vld [vmem:[#allocation11 + $0x2c] sm:$0xf]  ;;  %v8901_v11 = vld [vmem:[#allocation11 + $0x38] sm:$0xf0]  ;;  %v8896_v60 = vor.u32 %v10689_v61, %v8893_v4  ;;  %v10685_v27 = vld [vmem:[#allocation11 + $0x4] sm:$0xf] }
 0x45c   :  { %11115 = vtanh.f32 %v11764_v30  ;;  %v8877_v10 = vld [vmem:[#allocation11 + $0x10] sm:$0xf0]  ;;  %v8883_v0 = vld [vmem:[#allocation11 + $0x8] sm:$0xf]  ;;  %v10688_v21 = vld [vmem:[#allocation11 + $0x14] sm:$0xf0] }
 0x45d   :  { %4351 = vmatpush.bf16.msrb.mxu2 %v8956_v7  ;;  %4390 = vmatpush.bf16.msra.mxu1 %v8968_v13  ;;  %v8899_v7 = vld [vmem:[#allocation11 + $0x28] sm:$0xf]  ;;  %v8880_v49 = vor.u32 %v10685_v27, %v8877_v10  ;;  %v9101_v50 = vld [vmem:[#allocation9 + $0xd0] sm:$0xf0]  ;;  %v10739_v61 = vld [vmem:[#allocation9 + $0xac] sm:$0xf0] }
 0x45e   :  { %4365 = vmatpush.bf16.msrb.mxu3 %v8944_v29  ;;  %4378 = vmatpush.bf16.msra.mxu0 %v8948_v20  ;;  %v8900_v13 = vor.u32 %v10692_v8, %v8899_v7  ;;  %v10686_v29 = vld [vmem:[#allocation11 + $0xc] sm:$0xf]  ;;  %v8885_v20 = vld [vmem:[#allocation11 + $0x18] sm:$0xf0]  ;;  %v9107_v17 = vld [vmem:[#allocation9 + $0xc8] sm:$0xf] }
 0x45f   :  { %v8888_v46 = vor.u32 %v10686_v29, %v8885_v20  ;;  %v10737_v4 = vld [vmem:[#allocation9 + $0xa4] sm:$0xf]  ;;  %v9091_v8 = vld [vmem:[#allocation9 + $0xa8] sm:$0xf]  ;;  %v9069_v29 = vld [vmem:[#allocation9 + $0x90] sm:$0xf0] }
 0x461   :  { %4352 = vmatpush.bf16.msrb.mxu2 %v8940_v18  ;;  %4391 = vmatpush.bf16.msra.mxu1 %v8952_v43  ;;  %v8904_v18 = vor.u32 %v10690_v9, %v8901_v11  ;;  %v8876_v43 = vor.u32 %v10687_v22, %v8875_v58  ;;  %v10740_v9 = vld [vmem:[#allocation9 + $0xb4] sm:$0xf0]  ;;  %v9067_v22 = vld [vmem:[#allocation9 + $0x80] sm:$0xf] }
 0x462   :  { %v11116_v47 = vpop.eup %11115  ;;  %4366 = vmatpush.bf16.msrb.mxu3 %v8928_v24  ;;  %4379 = vmatpush.bf16.msra.mxu0 %v8932_v1  ;;  %v9092_v10 = vor.u32 %v10740_v9, %v9091_v8  ;;  %v9021_v8 = vld [vmem:[#allocation9 + $0x30] sm:$0xf0]  ;;  %v9027_v9 = vld [vmem:[#allocation9 + $0x28] sm:$0xf] }
 0x463   :  { %v3340_v42 = vmul.f32 %v11116_v47, %v3332_v14  ;;  %v8923_v14 = vld [vmem:[#allocation11 + $0x60] sm:$0xf] }
 0x464   :  { %v8924_v44 = vor.u32 %v10699_v15, %v8923_v14  ;;  %v8907_v47 = vld [vmem:[#allocation11 + $0x40] sm:$0xf]  ;;  %v9117_v14 = vld [vmem:[#allocation9 + $0xf0] sm:$0xf0] }
 0x465   :  { %v11767_v55 = vpack.c.bf16 %v3340_v42, %v3340_v42  ;;  %v8908_v36 = vor.u32 %v10695_v59, %v8907_v47  ;;  %v8912_v42 = vor.u32 %v10693_v35, %v8909_v34  ;;  %4392 = vmatpush.bf16.msra.mxu1 %v8936_v28  ;;  %v9125_v47 = vld [vmem:[#allocation9 + $0xf8] sm:$0xf0]  ;;  %v9124_v59 = vor.u32 %v10748_v19, %v9123_v26  ;;  %v9099_v35 = vld [vmem:[#allocation9 + $0xc0] sm:$0xf]  ;;  %v10743_v34 = vld [vmem:[#allocation9 + $0xcc] sm:$0xf0] }
 0x466   :  { %4353 = vmatpush.bf16.msrb.mxu2 %v8924_v44  ;;  %4380 = vmatpush.bf16.msra.mxu0 %v8916_v54  ;;  %v8884_v44 = vor.u32 %v10688_v21, %v8883_v0  ;;  %v9100_v54 = vor.u32 %v10743_v34, %v9099_v35  ;;  %v10735_v0 = vld [vmem:[#allocation9 + $0x8c] sm:$0xf0]  ;;  %v10733_v21 = vld [vmem:[#allocation9 + $0x84] sm:$0xf] }
 0x467   :  { %4064 = vmatmul.bf16.vlgmr.msra.gmra.mxu2 %v11767_v55  ;;  %4077 = vmatmul.bf16.vlgmr.msra.gmra.mxu3 %v11767_v55 }
 0x468   :  { %4090 = vmatmul.bf16.vlgmr.msrb.gmra.mxu0 %v11767_v55  ;;  %4103 = vmatmul.bf16.vlgmr.msrb.gmra.mxu1 %v11767_v55 }
 0x469   :  { %4367 = vmatpush.bf16.msrb.mxu3 %v8912_v42  ;;  %4393 = vmatpush.bf16.msra.mxu1 %v8920_v57  ;;  %v9128_v42 = vor.u32 %v10746_v23, %v9125_v47  ;;  %v9083_v57 = vld [vmem:[#allocation9 + $0xa0] sm:$0xf]  ;;  %v9072_v23 = vor.u32 %v10733_v21, %v9069_v29  ;;  %v9059_v47 = vld [vmem:[#allocation9 + $0x68] sm:$0xf]  ;;  %v9005_v29 = vld [vmem:[#allocation9 + $0x10] sm:$0xf0] }
 0x46a   :  { %4354 = vmatpush.bf16.msrb.mxu2 %v8908_v36  ;;  %4381 = vmatpush.bf16.msra.mxu0 %v8900_v13  ;;  %v10741_v36 = vld [vmem:[#allocation9 + $0xc4] sm:$0xf] }
 0x46b   :  { %v9104_v2 = vor.u32 %v10741_v36, %v9101_v50 }
 0x46d   :  { %4368 = vmatpush.bf16.msrb.mxu3 %v8896_v60  ;;  %4394 = vmatpush.bf16.msra.mxu1 %v8904_v18  ;;  %v9093_v60 = vld [vmem:[#allocation9 + $0xb8] sm:$0xf0] }
 0x46e   :  { %4355 = vmatpush.bf16.msrb.mxu2 %v8892_v62  ;;  %4382 = vmatpush.bf16.msra.mxu0 %v8884_v44  ;;  %v9085_v62 = vld [vmem:[#allocation9 + $0xb0] sm:$0xf0]  ;;  %v9051_v44 = vld [vmem:[#allocation9 + $0x60] sm:$0xf] }
 0x46f   :  { %v9088_v18 = vor.u32 %v10737_v4, %v9085_v62  ;;  %v10723_v4 = vld [vmem:[#allocation9 + $0x2c] sm:$0xf0] }
 0x471   :  { %4369 = vmatpush.bf16.msrb.mxu3 %v8880_v49  ;;  %4395 = vmatpush.bf16.msra.mxu1 %v8888_v46  ;;  %v9068_v49 = vor.u32 %v10735_v0, %v9067_v22  ;;  %v10717_v0 = vld [vmem:[#allocation9 + $0x4] sm:$0xf] }
 0x472   :  { %4356 = vmatpush.bf16.msrb.mxu2 %v8876_v43  ;;  %4619 = vmatpush.bf16.msrb.mxu0 %v9124_v59  ;;  %v10736_v43 = vld [vmem:[#allocation9 + $0x94] sm:$0xf0]  ;;  %v9061_v59 = vld [vmem:[#allocation9 + $0x78] sm:$0xf0] }
 0x475   :  { %4632 = vmatpush.bf16.msrb.mxu1 %v9128_v42 }
 0x479   :  { %v11773_v37 = vpop.f32.mrf.mxu0  ;;  %v11775_v41 = vpop.f32.mrf.mxu1 }
 0x47e   :  { %v11782_v45 = vpop.f32.mrf.mxu2  ;;  %v11784_v48 = vpop.f32.mrf.mxu3 }
 0x47f   :  { %v3554_v33 = vadd.f32 %v11782_v45, %v3376_v3  ;;  %v3567_v15 = vadd.f32 %v11784_v48, %v3377_v53  ;;  %v3580_v45 = vadd.f32 %v11773_v37, %v3378_v52  ;;  %v3379_v3 = vperm.slane %v11780_v16, 3  ;;  %v10744_v37 = vld [vmem:[#allocation9 + $0xd4] sm:$0xf0] }
 0x480   :  { %v9108_v56 = vor.u32 %v10744_v37, %v9107_v17  ;;  %v9035_v17 = vld [vmem:[#allocation9 + $0x40] sm:$0xf]  ;;  %v10727_v37 = vld [vmem:[#allocation9 + $0x4c] sm:$0xf0] }
 0x481   :  { %v3581_v5 = vpop.f32.mrf.mxu0  ;;  %v3594_v6 = vpop.f32.mrf.mxu1  ;;  %v3593_v63 = vadd.f32 %v11775_v41, %v3379_v3  ;;  %v9084_v41 = vor.u32 %v10739_v61, %v9083_v57  ;;  %v10731_v3 = vld [vmem:[#allocation9 + $0x6c] sm:$0xf0]  ;;  %v9019_v61 = vld [vmem:[#allocation9 + $0x20] sm:$0xf] }
 0x482   :  { %v10747_v5 = vld [vmem:[#allocation9 + $0xec] sm:$0xf0]  ;;  %v10745_v6 = vld [vmem:[#allocation9 + $0xe4] sm:$0xf]  ;;  %4620 = vmatpush.bf16.msrb.mxu0 %v9108_v56  ;;  %v9052_v35 = vor.u32 %v10731_v3, %v9051_v44 }
 0x483   :  { %v9116_v25 = vor.u32 %v10747_v5, %v9115_v32  ;;  %v9120_v28 = vor.u32 %v10745_v6, %v9117_v14  ;;  %v10734_v6 = vld [vmem:[#allocation9 + $0x8c] sm:$0xf]  ;;  %v9077_v14 = vld [vmem:[#allocation9 + $0x98] sm:$0xf0] }
 0x484   :  { %v9080_v46 = vor.u32 %v10734_v6, %v9077_v14  ;;  %v10718_v14 = vld [vmem:[#allocation9 + $0xc] sm:$0xf] }
 0x485   :  { %4593 = vmatpush.bf16.msra.mxu2 %v9116_v25  ;;  %4606 = vmatpush.bf16.msra.mxu3 %v9120_v28  ;;  %v9053_v25 = vld [vmem:[#allocation9 + $0x70] sm:$0xf0]  ;;  %v10730_v28 = vld [vmem:[#allocation9 + $0x6c] sm:$0xf] }
 0x486   :  { %v3555_v51 = vpop.f32.mrf.mxu2  ;;  %v3568_v40 = vpop.f32.mrf.mxu3  ;;  %4621 = vmatpush.bf16.msrb.mxu0 %v9092_v10  ;;  %v10719_v10 = vld [vmem:[#allocation9 + $0xc] sm:$0xf0] }
 0x487   :  { %v10742_v51 = vld [vmem:[#allocation9 + $0xcc] sm:$0xf]  ;;  %v9109_v40 = vld [vmem:[#allocation9 + $0xd8] sm:$0xf0] }
 0x488   :  { %v9112_v7 = vor.u32 %v10742_v51, %v9109_v40  ;;  %v9043_v51 = vld [vmem:[#allocation9 + $0x48] sm:$0xf]  ;;  %v10728_v40 = vld [vmem:[#allocation9 + $0x54] sm:$0xf0] }
 0x489   :  { %v3823_v12 = vpop.f32.mrf.mxu0  ;;  %v11789_v39 = vpop.f32.mrf.mxu1  ;;  %4594 = vmatpush.bf16.msra.mxu2 %v9100_v54  ;;  %4607 = vmatpush.bf16.msra.mxu3 %v9104_v2  ;;  %v9045_v54 = vld [vmem:[#allocation9 + $0x58] sm:$0xf0]  ;;  %v9036_v2 = vor.u32 %v10727_v37, %v9035_v17  ;;  %v9044_v57 = vor.u32 %v10728_v40, %v9043_v51  ;;  %v9229_v37 = vld [vmem:[#allocation8 + $0xd0] sm:$0xf0]  ;;  %v4108_v51 = vld [vmem:[#allocation2 + $0x8] sm:$0xc] }
 0x48a   :  { %v3842_v52 = vadd.f32 %v3823_v12, %v3580_v45  ;;  %v3843_v11 = vadd.f32 %v11789_v39, %v3593_v63  ;;  %v10738_v12 = vld [vmem:[#allocation9 + $0xac] sm:$0xf]  ;;  %4633 = vmatpush.bf16.msrb.mxu1 %v9112_v7  ;;  %v9075_v39 = vld [vmem:[#allocation9 + $0x88] sm:$0xf]  ;;  %v10721_v7 = vld [vmem:[#allocation9 + $0x24] sm:$0xf] }
 0x48b   :  { %v9076_v45 = vor.u32 %v10736_v43, %v9075_v39  ;;  %v9024_v22 = vor.u32 %v10721_v7, %v9021_v8  ;;  %v10769_v8 = vld [vmem:[#allocation8 + $0xa4] sm:$0xf] }
 0x48d   :  { %4595 = vmatpush.bf16.msra.mxu2 %v9084_v41  ;;  %4608 = vmatpush.bf16.msra.mxu3 %v9088_v18  ;;  %v9003_v18 = vld [vmem:[#allocation9] sm:$0xf] }
 0x48e   :  { %v3797_v24 = vpop.f32.mrf.mxu2  ;;  %v3810_v1 = vpop.f32.mrf.mxu3  ;;  %4622 = vmatpush.bf16.msrb.mxu0 %v9076_v45  ;;  %v9004_v43 = vor.u32 %v10719_v10, %v9003_v18 }
 0x48f   :  { %v3840_v48 = vadd.f32 %v3797_v24, %v3554_v33  ;;  %v3841_v53 = vadd.f32 %v3810_v1, %v3567_v15  ;;  %v9096_v33 = vor.u32 %v10738_v12, %v9093_v60  ;;  %v10729_v24 = vld [vmem:[#allocation9 + $0x64] sm:$0xf]  ;;  %v9020_v60 = vor.u32 %v10723_v4, %v9019_v61 }
 0x490   :  { %v9056_v42 = vor.u32 %v10729_v24, %v9053_v25  ;;  %v10780_v25 = vld [vmem:[#allocation8 + $0xf4] sm:$0xf0] }
 0x491   :  { %11117 = vtanh.f32 %v3840_v48  ;;  %v3825_v16 = vpop.f32.mrf.mxu0  ;;  %v3838_v31 = vpop.f32.mrf.mxu1  ;;  %4634 = vmatpush.bf16.msrb.mxu1 %v9096_v33  ;;  %v10732_v48 = vld [vmem:[#allocation9 + $0x74] sm:$0xf0]  ;;  %4596 = vmatpush.bf16.msra.mxu2 %v9068_v49 }
 0x492   :  { %11119 = vtanh.f32 %v3841_v53  ;;  %4609 = vmatpush.bf16.msra.mxu3 %v9072_v23  ;;  %v9060_v50 = vor.u32 %v10732_v48, %v9059_v47  ;;  %v9064_v16 = vor.u32 %v10730_v28, %v9061_v59  ;;  %v9037_v31 = vld [vmem:[#allocation9 + $0x50] sm:$0xf0]  ;;  %v10777_v23 = vld [vmem:[#allocation8 + $0xe4] sm:$0xf]  ;;  %v9253_v28 = vld [vmem:[#allocation8 + $0xf8] sm:$0xf0] }
 0x493   :  { %11121 = vtanh.f32 %v3842_v52  ;;  %v10725_v52 = vld [vmem:[#allocation9 + $0x44] sm:$0xf] }
 0x494   :  { %11123 = vtanh.f32 %v3843_v11  ;;  %4623 = vmatpush.bf16.msrb.mxu0 %v9060_v50  ;;  %v9040_v56 = vor.u32 %v10725_v52, %v9037_v31  ;;  %v10724_v11 = vld [vmem:[#allocation9 + $0x34] sm:$0xf0]  ;;  %v10773_v50 = vld [vmem:[#allocation8 + $0xc4] sm:$0xf]  ;;  %v9235_v52 = vld [vmem:[#allocation8 + $0xc8] sm:$0xf] }
 0x495   :  { %4635 = vmatpush.bf16.msrb.mxu1 %v9080_v46  ;;  %4597 = vmatpush.bf16.msra.mxu2 %v9052_v35  ;;  %v9251_v46 = vld [vmem:[#allocation8 + $0xe8] sm:$0xf] }
 0x496   :  { %v3799_v13 = vpop.f32.mrf.mxu2  ;;  %v3812_v58 = vpop.f32.mrf.mxu3  ;;  %4610 = vmatpush.bf16.msra.mxu3 %v9056_v42  ;;  %v9252_v48 = vor.u32 %v10780_v25, %v9251_v46  ;;  %v10775_v42 = vld [vmem:[#allocation8 + $0xcc] sm:$0xf0]  ;;  %v9187_v46 = vld [vmem:[#allocation8 + $0x68] sm:$0xf] }
 0x497   :  { %v11118_v27 = vpop.eup %11117  ;;  %v10722_v13 = vld [vmem:[#allocation9 + $0x2c] sm:$0xf]  ;;  %v9029_v58 = vld [vmem:[#allocation9 + $0x38] sm:$0xf0]  ;;  %v4111_v25 = vld [vmem:[#allocation2 + $0x38] sm:$0xc] }
 0x498   :  { %v11120_v20 = vpop.eup %11119  ;;  %v3848_v32 = vmul.f32 0.5, %v11118_v27  ;;  %4624 = vmatpush.bf16.msrb.mxu0 %v9044_v57  ;;  %v9028_v27 = vor.u32 %v10724_v11, %v9027_v9  ;;  %v9032_v39 = vor.u32 %v10722_v13, %v9029_v58  ;;  %v9211_v57 = vld [vmem:[#allocation8 + $0xa0] sm:$0xf]  ;;  %v10772_v13 = vld [vmem:[#allocation8 + $0xb4] sm:$0xf0] }
 0x499   :  { %v3850_v5 = vmul.f32 0.5, %v11120_v20  ;;  %v11122_v26 = vpop.eup %11121  ;;  %4636 = vmatpush.bf16.msrb.mxu1 %v9064_v16  ;;  %4598 = vmatpush.bf16.msra.mxu2 %v9036_v2  ;;  %v9011_v20 = vld [vmem:[#allocation9 + $0x8] sm:$0xf]  ;;  %v10776_v16 = vld [vmem:[#allocation8 + $0xd4] sm:$0xf0] }
 0x49a   :  { %v3849_v15 = vadd.f32 0.5, %v3848_v32  ;;  %v11124_v34 = vpop.eup %11123  ;;  %4611 = vmatpush.bf16.msra.mxu3 %v9040_v56  ;;  %v10720_v32 = vld [vmem:[#allocation9 + $0x14] sm:$0xf0]  ;;  %v10774_v2 = vld [vmem:[#allocation8 + $0xcc] sm:$0xf] }
 0x49b   :  { %v3851_v19 = vadd.f32 0.5, %v3850_v5  ;;  %v3852_v63 = vmul.f32 0.5, %v11124_v34  ;;  %v9008_v5 = vor.u32 %v10717_v0, %v9005_v29  ;;  %v9012_v6 = vor.u32 %v10720_v32, %v9011_v20  ;;  %v9237_v56 = vld [vmem:[#allocation8 + $0xd8] sm:$0xf0]  ;;  %v4110_v9 = vld [vmem:[#allocation2 + $0x28] sm:$0xc] }
 0x49c   :  { %v3855_v1 = vmul.f32 %v11122_v26, %v3849_v15  ;;  %4625 = vmatpush.bf16.msrb.mxu0 %v9028_v27  ;;  %v9013_v15 = vld [vmem:[#allocation9 + $0x18] sm:$0xf0]  ;;  %v9243_v26 = vld [vmem:[#allocation8 + $0xe0] sm:$0xf]  ;;  %v9240_v7 = vor.u32 %v10774_v2, %v9237_v56  ;;  %v10770_v0 = vld [vmem:[#allocation8 + $0xac] sm:$0xf] }
 0x49d   :  { %v3854_v53 = vmul.f32 %v3851_v19, %v11753_v38  ;;  %v10726_v38 = vld [vmem:[#allocation9 + $0x4c] sm:$0xf]  ;;  %v3853_v12 = vadd.f32 0.5, %v3852_v63  ;;  %4599 = vmatpush.bf16.msra.mxu2 %v9020_v60  ;;  %v9016_v44 = vor.u32 %v10718_v14, %v9013_v15  ;;  %v10779_v19 = vld [vmem:[#allocation8 + $0xec] sm:$0xf0]  ;;  %v9236_v63 = vor.u32 %v10776_v16, %v9235_v52 }
 0x49e   :  { %v9048_v62 = vor.u32 %v10726_v38, %v9045_v54  ;;  %4612 = vmatpush.bf16.msra.mxu3 %v9024_v22  ;;  %v9244_v24 = vor.u32 %v10779_v19, %v9243_v26  ;;  %v4109_v38 = vld [vmem:[#allocation2 + $0x20] sm:$0xc]  ;;  %v9232_v54 = vor.u32 %v10773_v50, %v9229_v37  ;;  %v9219_v60 = vld [vmem:[#allocation8 + $0xa8] sm:$0xf]  ;;  %v9195_v29 = vld [vmem:[#allocation8 + $0x80] sm:$0xf] }
 0x49f   :  { %v11802_v36 = vadd.f32 %v3855_v1, %v3854_v53  ;;  %v9245_v1 = vld [vmem:[#allocation8 + $0xf0] sm:$0xf0]  ;;  %v10778_v53 = vld [vmem:[#allocation8 + $0xec] sm:$0xf]  ;;  %v9220_v10 = vor.u32 %v10772_v13, %v9219_v60  ;;  %v10767_v32 = vld [vmem:[#allocation8 + $0x8c] sm:$0xf0] }
 0x4a0   :  { %4637 = vmatpush.bf16.msrb.mxu1 %v9048_v62  ;;  %4626 = vmatpush.bf16.msrb.mxu0 %v9012_v6  ;;  %v9248_v47 = vor.u32 %v10777_v23, %v9245_v1  ;;  %v9256_v34 = vor.u32 %v10778_v53, %v9253_v28  ;;  %v10771_v62 = vld [vmem:[#allocation8 + $0xac] sm:$0xf0]  ;;  %v9203_v6 = vld [vmem:[#allocation8 + $0x88] sm:$0xf]  ;;  %v10768_v14 = vld [vmem:[#allocation8 + $0x94] sm:$0xf0] }
 0x4a1   :  { %11125 = vtanh.f32 %v11802_v36  ;;  %4600 = vmatpush.bf16.msra.mxu2 %v9004_v43  ;;  %v9212_v11 = vor.u32 %v10771_v62, %v9211_v57  ;;  %v10766_v15 = vld [vmem:[#allocation8 + $0x8c] sm:$0xf]  ;;  %v9205_v26 = vld [vmem:[#allocation8 + $0x98] sm:$0xf0]  ;;  %v9179_v19 = vld [vmem:[#allocation8 + $0x60] sm:$0xf] }
 0x4a2   :  { %4613 = vmatpush.bf16.msra.mxu3 %v9008_v5  ;;  %v9196_v5 = vor.u32 %v10767_v32, %v9195_v29  ;;  %v10763_v23 = vld [vmem:[#allocation8 + $0x6c] sm:$0xf0]  ;;  %v9181_v1 = vld [vmem:[#allocation8 + $0x70] sm:$0xf0]  ;;  %v10764_v53 = vld [vmem:[#allocation8 + $0x74] sm:$0xf0] }
 0x4a3   :  { %v10762_v28 = vld [vmem:[#allocation8 + $0x6c] sm:$0xf]  ;;  %v9188_v50 = vor.u32 %v10764_v53, %v9187_v46  ;;  %v10759_v37 = vld [vmem:[#allocation8 + $0x4c] sm:$0xf0]  ;;  %v10757_v52 = vld [vmem:[#allocation8 + $0x44] sm:$0xf] }
 0x4a4   :  { %4638 = vmatpush.bf16.msrb.mxu1 %v9032_v39  ;;  %v9197_v39 = vld [vmem:[#allocation8 + $0x90] sm:$0xf0]  ;;  %v9147_v57 = vld [vmem:[#allocation8 + $0x20] sm:$0xf]  ;;  %v4139_v60 = vrot.slane %v11764_v30, 6 }
 0x4a5   :  { %v10751_v32 = vld [vmem:[#allocation8 + $0xc] sm:$0xf0] }
 0x4a6   :  { %v10811_v53 = vld [vmem:[#allocation11 + $0xec] sm:$0xf0] }
 0x4a7   :  { %v11126_v41 = vpop.eup %11125 }
 0x4a8   :  { %v3858_v21 = vmul.f32 %v11126_v41, %v3853_v12  ;;  %4639 = vmatpush.bf16.msrb.mxu1 %v9016_v44  ;;  %v9213_v12 = vld [vmem:[#allocation8 + $0xb0] sm:$0xf0]  ;;  %v9204_v44 = vor.u32 %v10768_v14, %v9203_v6  ;;  %v9139_v6 = vld [vmem:[#allocation8 + $0x8] sm:$0xf]  ;;  %v10752_v14 = vld [vmem:[#allocation8 + $0x14] sm:$0xf0] }
 0x4a9   :  { %v9216_v18 = vor.u32 %v10769_v8, %v9213_v12  ;;  %v10753_v8 = vld [vmem:[#allocation8 + $0x24] sm:$0xf] }
 0x4aa   :  { %v3859_v33 = vpack.c.bf16 %v3858_v21, %v3858_v21  ;;  %v9221_v21 = vld [vmem:[#allocation8 + $0xb8] sm:$0xf0] }
 0x4ab   :  { %v9224_v20 = vor.u32 %v10770_v0, %v9221_v21 }
 0x4ac   :  { %v3861_v49 = vrot.slane %v3859_v33, 5  ;;  %4357 = vmatmul.bf16.vlgmr.msrb.gmra.mxu2 %v3859_v33  ;;  %4370 = vmatmul.bf16.vlgmr.msrb.gmra.mxu3 %v3859_v33 }
 0x4ad   :  { %4383 = vmatmul.bf16.vlgmr.msra.gmra.mxu0 %v3859_v33  ;;  %4396 = vmatmul.bf16.vlgmr.msra.gmra.mxu1 %v3859_v33  ;;  %v10765_v33 = vld [vmem:[#allocation8 + $0x84] sm:$0xf] }
 0x4ae   :  { %3863 = vst [vmem:[#allocation3] sm:$0x8] %v3861_v49  ;;  %4861 = vmatpush.bf16.msrb.mxu2 %v9244_v24  ;;  %4874 = vmatpush.bf16.msrb.mxu3 %v9248_v47  ;;  %v9200_v49 = vor.u32 %v10765_v33, %v9197_v39  ;;  %v10761_v24 = vld [vmem:[#allocation8 + $0x64] sm:$0xf] }
 0x4af   :  { %4887 = vmatpush.bf16.msra.mxu0 %v9252_v48  ;;  %4900 = vmatpush.bf16.msra.mxu1 %v9256_v34  ;;  %v9180_v34 = vor.u32 %v10763_v23, %v9179_v19  ;;  %v10749_v33 = vld [vmem:[#allocation8 + $0x4] sm:$0xf]  ;;  %v9140_v23 = vor.u32 %v10752_v14, %v9139_v6 }
 0x4b2   :  { %4875 = vmatpush.bf16.msrb.mxu3 %v9232_v54 }
 0x4b3   :  { %4888 = vmatpush.bf16.msra.mxu0 %v9236_v63  ;;  %4901 = vmatpush.bf16.msra.mxu1 %v9240_v7 }
 0x4b6   :  { %4876 = vmatpush.bf16.msrb.mxu3 %v9216_v18  ;;  %v9157_v18 = vld [vmem:[#allocation8 + $0x38] sm:$0xf0] }
 0x4b7   :  { %4889 = vmatpush.bf16.msra.mxu0 %v9220_v10  ;;  %4902 = vmatpush.bf16.msra.mxu1 %v9224_v20  ;;  %v9131_v20 = vld [vmem:[#allocation8] sm:$0xf] }
 0x4ba   :  { %4877 = vmatpush.bf16.msrb.mxu3 %v9200_v49  ;;  %v9141_v49 = vld [vmem:[#allocation8 + $0x18] sm:$0xf0] }
 0x4bb   :  { %4890 = vmatpush.bf16.msra.mxu0 %v9204_v44  ;;  %v9132_v44 = vor.u32 %v10751_v32, %v9131_v20  ;;  %v10800_v20 = vld [vmem:[#allocation11 + $0x94] sm:$0xf0] }
 0x4bc   :  { %4601 = vmatmul.bf16.vlgmr.msra.gmra.mxu2 %v11767_v55  ;;  %4614 = vmatmul.bf16.vlgmr.msra.gmra.mxu3 %v11767_v55 }
 0x4bd   :  { %4627 = vmatmul.bf16.vlgmr.msrb.gmra.mxu0 %v11767_v55  ;;  %4640 = vmatmul.bf16.vlgmr.msrb.gmra.mxu1 %v11767_v55  ;;  %v9227_v55 = vld [vmem:[#allocation8 + $0xc0] sm:$0xf] }
 0x4be   :  { %v9228_v17 = vor.u32 %v10775_v42, %v9227_v55  ;;  %v9189_v55 = vld [vmem:[#allocation8 + $0x78] sm:$0xf0]  ;;  %v9184_v42 = vor.u32 %v10761_v24, %v9181_v1 }
 0x4bf   :  { %4891 = vmatpush.bf16.msra.mxu0 %v9188_v50  ;;  %v10812_v50 = vld [vmem:[#allocation11 + $0xf4] sm:$0xf0] }
 0x4c0   :  { %4862 = vmatpush.bf16.msrb.mxu2 %v9228_v17  ;;  %v9163_v17 = vld [vmem:[#allocation8 + $0x40] sm:$0xf]  ;;  %4878 = vmatpush.bf16.msrb.mxu3 %v9184_v42 }
 0x4c1   :  { %v9164_v56 = vor.u32 %v10759_v37, %v9163_v17  ;;  %v10810_v17 = vld [vmem:[#allocation11 + $0xec] sm:$0xf]  ;;  %v9381_v37 = vld [vmem:[#allocation11 + $0xf8] sm:$0xf0] }
 0x4c4   :  { %4863 = vmatpush.bf16.msrb.mxu2 %v9212_v11 }
 0x4c8   :  { %4864 = vmatpush.bf16.msrb.mxu2 %v9196_v5  ;;  %v9133_v5 = vld [vmem:[#allocation8 + $0x10] sm:$0xf0] }
 0x4c9   :  { %v9136_v19 = vor.u32 %v10749_v33, %v9133_v5 }
 0x4cc   :  { %4865 = vmatpush.bf16.msrb.mxu2 %v9180_v34  ;;  %v9373_v34 = vld [vmem:[#allocation11 + $0xf0] sm:$0xf0] }
 0x4d0   :  { %4866 = vmatpush.bf16.msrb.mxu2 %v9164_v56  ;;  %v10806_v56 = vld [vmem:[#allocation11 + $0xcc] sm:$0xf] }
 0x4e5   :  { %v4091_v45 = vpop.f32.mrf.mxu0  ;;  %v11809_v3 = vpop.f32.mrf.mxu1 }
 0x4e6   :  { %v4118_v59 = vrot.slane %v4091_v45, 6  ;;  %v4119_v35 = vrot.slane %v11809_v3, 6  ;;  %v9208_v45 = vor.u32 %v10766_v15, %v9205_v26  ;;  %v10758_v3 = vld [vmem:[#allocation8 + $0x4c] sm:$0xf] }
 0x4e7   :  { %v10750_v15 = vld [vmem:[#allocation8 + $0xc] sm:$0xf] }
 0x4e8   :  { %v4126_v43 = vadd.f32 %v4118_v59, %v4110_v9  ;;  %v4127_v59 = vadd.f32 %v4119_v35, %v4111_v25  ;;  %4903 = vmatpush.bf16.msra.mxu1 %v9208_v45  ;;  %v9173_v35 = vld [vmem:[#allocation8 + $0x58] sm:$0xf0]  ;;  %v9149_v9 = vld [vmem:[#allocation8 + $0x30] sm:$0xf0]  ;;  %v9144_v45 = vor.u32 %v10750_v15, %v9141_v49  ;;  %v11831_v15 = vld [vmem:[%s11974_s7] sm:$0xf] }
 0x4e9   :  { %v9176_v13 = vor.u32 %v10758_v3, %v9173_v35  ;;  %v9152_v21 = vor.u32 %v10753_v8, %v9149_v9  ;;  %v10808_v3 = vld [vmem:[#allocation11 + $0xd4] sm:$0xf0]  ;;  %v9341_v9 = vld [vmem:[#allocation11 + $0xb0] sm:$0xf0] }
 0x4ea   :  { %v4065_v31 = vpop.f32.mrf.mxu2  ;;  %v4078_v40 = vpop.f32.mrf.mxu3 }
 0x4eb   :  { %v4116_v61 = vrot.slane %v4065_v31, 6  ;;  %v4117_v4 = vrot.slane %v4078_v40, 6  ;;  %v9192_v31 = vor.u32 %v10762_v28, %v9189_v55  ;;  %v9171_v40 = vld [vmem:[#allocation8 + $0x48] sm:$0xf] }
 0x4ec   :  { %v9379_v55 = vld [vmem:[#allocation11 + $0xe8] sm:$0xf] }
 0x4ed   :  { %v4124_v58 = vadd.f32 %v4116_v61, %v4108_v51  ;;  %v4125_v41 = vadd.f32 %v4117_v4, %v4109_v38  ;;  %v4093_v22 = vpop.f32.mrf.mxu0  ;;  %v4106_v27 = vpop.f32.mrf.mxu1  ;;  %v9165_v51 = vld [vmem:[#allocation8 + $0x50] sm:$0xf0]  ;;  %v10760_v38 = vld [vmem:[#allocation8 + $0x54] sm:$0xf0]  ;;  %v10755_v61 = vld [vmem:[#allocation8 + $0x2c] sm:$0xf0]  ;;  %4904 = vmatpush.bf16.msra.mxu1 %v9192_v31 }
 0x4ee   :  { %v9168_v7 = vor.u32 %v10757_v52, %v9165_v51  ;;  %v9172_v62 = vor.u32 %v10760_v38, %v9171_v40  ;;  %v10754_v27 = vld [vmem:[#allocation8 + $0x2c] sm:$0xf]  ;;  %v9148_v0 = vor.u32 %v10755_v61, %v9147_v57  ;;  %v9380_v52 = vor.u32 %v10812_v50, %v9379_v55  ;;  %v9355_v31 = vld [vmem:[#allocation11 + $0xc0] sm:$0xf]  ;;  %v10807_v51 = vld [vmem:[#allocation11 + $0xcc] sm:$0xf0] }
 0x4ef   :  { %11127 = vtanh.f32 %v4124_v58  ;;  %v9155_v58 = vld [vmem:[#allocation8 + $0x28] sm:$0xf]  ;;  %v9160_v30 = vor.u32 %v10754_v27, %v9157_v18  ;;  %v10805_v40 = vld [vmem:[#allocation11 + $0xc4] sm:$0xf]  ;;  %v9356_v38 = vor.u32 %v10807_v51, %v9355_v31  ;;  %v9365_v57 = vld [vmem:[#allocation11 + $0xd8] sm:$0xf0] }
 0x4f0   :  { %11129 = vtanh.f32 %v4125_v41  ;;  %v10756_v41 = vld [vmem:[#allocation8 + $0x34] sm:$0xf0]  ;;  %4879 = vmatpush.bf16.msrb.mxu3 %v9168_v7  ;;  %4892 = vmatpush.bf16.msra.mxu0 %v9172_v62  ;;  %v9368_v61 = vor.u32 %v10806_v56, %v9365_v57  ;;  %v10803_v7 = vld [vmem:[#allocation11 + $0xac] sm:$0xf0]  ;;  %v10801_v62 = vld [vmem:[#allocation11 + $0xa4] sm:$0xf] }
 0x4f1   :  { %11131 = vtanh.f32 %v4126_v43  ;;  %v9156_v29 = vor.u32 %v10756_v41, %v9155_v58  ;;  %4905 = vmatpush.bf16.msra.mxu1 %v9176_v13  ;;  %4867 = vmatpush.bf16.msrb.mxu2 %v9148_v0  ;;  %v10802_v58 = vld [vmem:[#allocation11 + $0xac] sm:$0xf]  ;;  %v9349_v41 = vld [vmem:[#allocation11 + $0xb8] sm:$0xf0]  ;;  %v9323_v27 = vld [vmem:[#allocation11 + $0x80] sm:$0xf] }
 0x4f2   :  { %v4067_v47 = vpop.f32.mrf.mxu2  ;;  %v4080_v48 = vpop.f32.mrf.mxu3  ;;  %11133 = vtanh.f32 %v4127_v59  ;;  %v10809_v59 = vld [vmem:[#allocation11 + $0xe4] sm:$0xf]  ;;  %v10799_v18 = vld [vmem:[#allocation11 + $0x8c] sm:$0xf0]  ;;  %v9317_v50 = vld [vmem:[#allocation11 + $0x78] sm:$0xf0] }
 0x4f3   :  { %v9371_v48 = vld [vmem:[#allocation11 + $0xe0] sm:$0xf]  ;;  %v9376_v42 = vor.u32 %v10809_v59, %v9373_v34  ;;  %v9324_v0 = vor.u32 %v10799_v18, %v9323_v27  ;;  %v10796_v59 = vld [vmem:[#allocation11 + $0x74] sm:$0xf0]  ;;  %v9293_v31 = vld [vmem:[#allocation11 + $0x50] sm:$0xf0] }
 0x4f4   :  { %4880 = vmatpush.bf16.msrb.mxu3 %v9152_v21  ;;  %4893 = vmatpush.bf16.msra.mxu0 %v9156_v29  ;;  %v9372_v28 = vor.u32 %v10811_v53, %v9371_v48  ;;  %v9325_v21 = vld [vmem:[#allocation11 + $0x90] sm:$0xf0]  ;;  %v9331_v29 = vld [vmem:[#allocation11 + $0x88] sm:$0xf]  ;;  %v9301_v56 = vld [vmem:[#allocation11 + $0x58] sm:$0xf0] }
 0x4f5   :  { %v11128_v16 = vpop.eup %11127  ;;  %4906 = vmatpush.bf16.msra.mxu1 %v9160_v30  ;;  %4868 = vmatpush.bf16.msrb.mxu2 %v9132_v44  ;;  %v9332_v33 = vor.u32 %v10800_v20, %v9331_v29  ;;  %v9333_v30 = vld [vmem:[#allocation11 + $0x98] sm:$0xf0]  ;;  %v9309_v53 = vld [vmem:[#allocation11 + $0x70] sm:$0xf0]  ;;  %v9275_v57 = vld [vmem:[#allocation11 + $0x20] sm:$0xf] }
 0x4f6   :  { %v11130_v54 = vpop.eup %11129  ;;  %v4132_v63 = vmul.f32 0.5, %v11128_v16  ;;  %v9384_v16 = vor.u32 %v10810_v17, %v9381_v37  ;;  %v9291_v17 = vld [vmem:[#allocation11 + $0x40] sm:$0xf]  ;;  %v10783_v18 = vld [vmem:[#allocation11 + $0xc] sm:$0xf0] }
 0x4f7   :  { %v4134_v2 = vmul.f32 0.5, %v11130_v54  ;;  %v11132_v11 = vpop.eup %11131  ;;  %v9357_v54 = vld [vmem:[#allocation11 + $0xd0] sm:$0xf0]  ;;  %v9259_v27 = vld [vmem:[#allocation11] sm:$0xf] }
 0x4f8   :  { %v4133_v4 = vadd.f32 0.5, %v4132_v63  ;;  %v11134_v39 = vpop.eup %11133  ;;  %4881 = vmatpush.bf16.msrb.mxu3 %v9136_v19  ;;  %4894 = vmatpush.bf16.msra.mxu0 %v9140_v23  ;;  %v9363_v63 = vld [vmem:[#allocation11 + $0xc8] sm:$0xf]  ;;  %v9360_v35 = vor.u32 %v10805_v40, %v9357_v54  ;;  %v4181_v19 = vperm.slane %v11831_v15, 0  ;;  %v4182_v23 = vperm.slane %v11831_v15, 1 }
 0x4f9   :  { %v4135_v12 = vadd.f32 0.5, %v4134_v2  ;;  %v4136_v26 = vmul.f32 0.5, %v11134_v39  ;;  %4907 = vmatpush.bf16.msra.mxu1 %v9144_v45  ;;  %5154 = vmatpush.bf16.msra.mxu2 %v9372_v28  ;;  %v9364_v2 = vor.u32 %v10808_v3, %v9363_v63  ;;  %v10798_v39 = vld [vmem:[#allocation11 + $0x8c] sm:$0xf]  ;;  %v9315_v28 = vld [vmem:[#allocation11 + $0x68] sm:$0xf] }
 0x4fa   :  { %v4142_v22 = vmul.f32 %v11132_v11, %v4133_v4  ;;  %v9339_v4 = vld [vmem:[#allocation11 + $0xa0] sm:$0xf]  ;;  %v9347_v11 = vld [vmem:[#allocation11 + $0xa8] sm:$0xf]  ;;  %v9336_v14 = vor.u32 %v10798_v39, %v9333_v30  ;;  %v9316_v55 = vor.u32 %v10796_v59, %v9315_v28  ;;  %v10792_v54 = vld [vmem:[#allocation11 + $0x54] sm:$0xf0] }
 0x4fb   :  { %v4141_v10 = vmul.f32 %v4139_v60, %v4135_v12  ;;  %v4137_v24 = vadd.f32 0.5, %v4136_v26  ;;  %v9340_v8 = vor.u32 %v10803_v7, %v9339_v4  ;;  %v10804_v12 = vld [vmem:[#allocation11 + $0xb4] sm:$0xf0]  ;;  %v9344_v60 = vor.u32 %v10801_v62, %v9341_v9  ;;  %v10790_v63 = vld [vmem:[#allocation11 + $0x4c] sm:$0xf] }
 0x4fc   :  { %5167 = vmatpush.bf16.msra.mxu3 %v9376_v42  ;;  %5180 = vmatpush.bf16.msrb.mxu0 %v9380_v52  ;;  %v9348_v13 = vor.u32 %v10804_v12, %v9347_v11  ;;  %v4183_v26 = vperm.slane %v11831_v15, 2  ;;  %v10794_v42 = vld [vmem:[#allocation11 + $0x6c] sm:$0xf]  ;;  %v10791_v52 = vld [vmem:[#allocation11 + $0x4c] sm:$0xf0]  ;;  %v9304_v4 = vor.u32 %v10790_v63, %v9301_v56 }
 0x4fd   :  { %v11815_v43 = vadd.f32 %v4142_v22, %v4141_v10  ;;  %5193 = vmatpush.bf16.msrb.mxu1 %v9384_v16  ;;  %5155 = vmatpush.bf16.msra.mxu2 %v9356_v38  ;;  %v9352_v22 = vor.u32 %v10802_v58, %v9349_v41  ;;  %v10797_v10 = vld [vmem:[#allocation11 + $0x84] sm:$0xf]  ;;  %v9320_v37 = vor.u32 %v10794_v42, %v9317_v50  ;;  %v9299_v38 = vld [vmem:[#allocation11 + $0x48] sm:$0xf]  ;;  %v9277_v62 = vld [vmem:[#allocation11 + $0x30] sm:$0xf0] }
 0x4fe   :  { %v9328_v32 = vor.u32 %v10797_v10, %v9325_v21  ;;  %v10789_v16 = vld [vmem:[#allocation11 + $0x44] sm:$0xf]  ;;  %v9292_v51 = vor.u32 %v10791_v52, %v9291_v17  ;;  %v10788_v11 = vld [vmem:[#allocation11 + $0x34] sm:$0xf0]  ;;  %v10786_v12 = vld [vmem:[#allocation11 + $0x2c] sm:$0xf] }
 0x4ff   :  { %11135 = vtanh.f32 %v11815_v43  ;;  %v9296_v40 = vor.u32 %v10789_v16, %v9293_v31  ;;  %v10785_v7 = vld [vmem:[#allocation11 + $0x24] sm:$0xf]  ;;  %v9261_v21 = vld [vmem:[#allocation11 + $0x10] sm:$0xf0]  ;;  %v9267_v29 = vld [vmem:[#allocation11 + $0x8] sm:$0xf] }
 0x500   :  { %5168 = vmatpush.bf16.msra.mxu3 %v9360_v35  ;;  %5181 = vmatpush.bf16.msrb.mxu0 %v9364_v2  ;;  %v9300_v2 = vor.u32 %v10792_v54, %v9299_v38  ;;  %v9280_v41 = vor.u32 %v10785_v7, %v9277_v62  ;;  %v10781_v10 = vld [vmem:[#allocation11 + $0x4] sm:$0xf]  ;;  %v10784_v20 = vld [vmem:[#allocation11 + $0x14] sm:$0xf0]  ;;  %v9499_v39 = vld [vmem:[#allocation9 + $0xe0] sm:$0xf] }
 0x501   :  { %5194 = vmatpush.bf16.msrb.mxu1 %v9368_v61  ;;  %5156 = vmatpush.bf16.msra.mxu2 %v9340_v8  ;;  %v10787_v61 = vld [vmem:[#allocation11 + $0x2c] sm:$0xf0]  ;;  %v9283_v8 = vld [vmem:[#allocation11 + $0x28] sm:$0xf]  ;;  %v10844_v28 = vld [vmem:[#allocation9 + $0xf4] sm:$0xf0] }
 0x502   :  { %v9276_v9 = vor.u32 %v10787_v61, %v9275_v57  ;;  %v10842_v59 = vld [vmem:[#allocation9 + $0xec] sm:$0xf]  ;;  %v9509_v17 = vld [vmem:[#allocation9 + $0xf8] sm:$0xf0]  ;;  %v9483_v16 = vld [vmem:[#allocation9 + $0xc0] sm:$0xf] }
 0x503   :  { %v10839_v31 = vld [vmem:[#allocation9 + $0xcc] sm:$0xf0]  ;;  %v9485_v38 = vld [vmem:[#allocation9 + $0xd0] sm:$0xf0]  ;;  %v9491_v54 = vld [vmem:[#allocation9 + $0xc8] sm:$0xf] }
 0x504   :  { %5169 = vmatpush.bf16.msra.mxu3 %v9344_v60  ;;  %5182 = vmatpush.bf16.msrb.mxu0 %v9348_v13  ;;  %v9285_v60 = vld [vmem:[#allocation11 + $0x38] sm:$0xf0]  ;;  %v10835_v7 = vld [vmem:[#allocation9 + $0xac] sm:$0xf0]  ;;  %v10833_v62 = vld [vmem:[#allocation9 + $0xa4] sm:$0xf] }
 0x505   :  { %v11136_v1 = vpop.eup %11135  ;;  %5195 = vmatpush.bf16.msrb.mxu1 %v9352_v22  ;;  %5157 = vmatpush.bf16.msra.mxu2 %v9324_v0  ;;  %v9284_v22 = vor.u32 %v10788_v11, %v9283_v8  ;;  %v9288_v0 = vor.u32 %v10786_v12, %v9285_v60  ;;  %v9475_v11 = vld [vmem:[#allocation9 + $0xa8] sm:$0xf]  ;;  %v10836_v12 = vld [vmem:[#allocation9 + $0xb4] sm:$0xf0] }
 0x506   :  { %v4145_v46 = vmul.f32 %v11136_v1, %v4137_v24  ;;  %v9307_v1 = vld [vmem:[#allocation11 + $0x60] sm:$0xf] }
 0x508   :  { %v4146_v25 = vpack.c.bf16 %v4145_v46, %v4145_v46  ;;  %5170 = vmatpush.bf16.msra.mxu3 %v9328_v32  ;;  %5183 = vmatpush.bf16.msrb.mxu0 %v9332_v33  ;;  %v10795_v46 = vld [vmem:[#allocation11 + $0x6c] sm:$0xf0]  ;;  %v10782_v32 = vld [vmem:[#allocation11 + $0xc] sm:$0xf]  ;;  %v9269_v33 = vld [vmem:[#allocation11 + $0x18] sm:$0xf0] }
 0x509   :  { %5196 = vmatpush.bf16.msrb.mxu1 %v9336_v14  ;;  %v9308_v48 = vor.u32 %v10795_v46, %v9307_v1  ;;  %v9260_v14 = vor.u32 %v10783_v18, %v9259_v27  ;;  %v9501_v1 = vld [vmem:[#allocation9 + $0xf0] sm:$0xf0]  ;;  %v9272_v42 = vor.u32 %v10782_v32, %v9269_v33  ;;  %v9451_v18 = vld [vmem:[#allocation9 + $0x80] sm:$0xf] }
 0x50a   :  { %v11818_v47 = vrot.slane %v4146_v25, 1  ;;  %v10793_v25 = vld [vmem:[#allocation11 + $0x64] sm:$0xf]  ;;  %v9453_v32 = vld [vmem:[#allocation9 + $0x90] sm:$0xf0] }
 0x50b   :  { %v9312_v34 = vor.u32 %v10793_v25, %v9309_v53  ;;  %5158 = vmatpush.bf16.msra.mxu2 %v9308_v48  ;;  %v9264_v25 = vor.u32 %v10781_v10, %v9261_v21  ;;  %v9268_v48 = vor.u32 %v10784_v20, %v9267_v29  ;;  %v9507_v53 = vld [vmem:[#allocation9 + $0xe8] sm:$0xf]  ;;  %v9476_v21 = vor.u32 %v10836_v12, %v9475_v11  ;;  %v10831_v29 = vld [vmem:[#allocation9 + $0x8c] sm:$0xf0]  ;;  %v10829_v20 = vld [vmem:[#allocation9 + $0x84] sm:$0xf] }
 0x50c   :  { %4869 = vmatmul.bf16.vlgmr.msrb.gmra.mxu2 %v11818_v47  ;;  %4882 = vmatmul.bf16.vlgmr.msrb.gmra.mxu3 %v11818_v47  ;;  %v9508_v52 = vor.u32 %v10844_v28, %v9507_v53  ;;  %v9405_v11 = vld [vmem:[#allocation9 + $0x30] sm:$0xf0]  ;;  %v9411_v12 = vld [vmem:[#allocation9 + $0x28] sm:$0xf] }
 0x50d   :  { %4895 = vmatmul.bf16.vlgmr.msra.gmra.mxu0 %v11818_v47  ;;  %4908 = vmatmul.bf16.vlgmr.msra.gmra.mxu1 %v11818_v47 }
 0x50e   :  { %5171 = vmatpush.bf16.msra.mxu3 %v9312_v34  ;;  %5184 = vmatpush.bf16.msrb.mxu0 %v9316_v55 }
 0x50f   :  { %5197 = vmatpush.bf16.msrb.mxu1 %v9320_v37  ;;  %5159 = vmatpush.bf16.msra.mxu2 %v9292_v51  ;;  %v10837_v51 = vld [vmem:[#allocation9 + $0xc4] sm:$0xf] }
 0x510   :  { %v9488_v57 = vor.u32 %v10837_v51, %v9485_v38 }
 0x512   :  { %5172 = vmatpush.bf16.msra.mxu3 %v9296_v40  ;;  %5185 = vmatpush.bf16.msrb.mxu0 %v9300_v2  ;;  %v9512_v40 = vor.u32 %v10842_v59, %v9509_v17  ;;  %v9484_v2 = vor.u32 %v10839_v31, %v9483_v16  ;;  %v9456_v59 = vor.u32 %v10829_v20, %v9453_v32  ;;  %v9443_v17 = vld [vmem:[#allocation9 + $0x68] sm:$0xf]  ;;  %v9389_v32 = vld [vmem:[#allocation9 + $0x10] sm:$0xf0] }
 0x513   :  { %5198 = vmatpush.bf16.msrb.mxu1 %v9304_v4  ;;  %5160 = vmatpush.bf16.msra.mxu2 %v9276_v9  ;;  %v9467_v4 = vld [vmem:[#allocation9 + $0xa0] sm:$0xf]  ;;  %v9469_v9 = vld [vmem:[#allocation9 + $0xb0] sm:$0xf0] }
 0x516   :  { %5173 = vmatpush.bf16.msra.mxu3 %v9280_v41  ;;  %5186 = vmatpush.bf16.msrb.mxu0 %v9284_v22  ;;  %v9477_v41 = vld [vmem:[#allocation9 + $0xb8] sm:$0xf0] }
 0x517   :  { %5199 = vmatpush.bf16.msrb.mxu1 %v9288_v0  ;;  %5161 = vmatpush.bf16.msra.mxu2 %v9260_v14  ;;  %v9472_v0 = vor.u32 %v10833_v62, %v9469_v9  ;;  %v10832_v14 = vld [vmem:[#allocation9 + $0x94] sm:$0xf0]  ;;  %v10819_v62 = vld [vmem:[#allocation9 + $0x2c] sm:$0xf0] }
 0x51a   :  { %5174 = vmatpush.bf16.msra.mxu3 %v9264_v25  ;;  %5187 = vmatpush.bf16.msrb.mxu0 %v9268_v48  ;;  %v9452_v25 = vor.u32 %v10831_v29, %v9451_v18  ;;  %v9435_v48 = vld [vmem:[#allocation9 + $0x60] sm:$0xf]  ;;  %v10813_v29 = vld [vmem:[#allocation9 + $0x4] sm:$0xf] }
 0x51b   :  { %5200 = vmatpush.bf16.msrb.mxu1 %v9272_v42 }
 0x51e   :  { %5424 = vmatpush.bf16.msra.mxu0 %v9508_v52  ;;  %v9445_v52 = vld [vmem:[#allocation9 + $0x78] sm:$0xf0] }
 0x51f   :  { %5437 = vmatpush.bf16.msra.mxu1 %v9512_v40 }
 0x52a   :  { %v11824_v5 = vpop.f32.mrf.mxu0  ;;  %v11826_v6 = vpop.f32.mrf.mxu1 }
 0x52f   :  { %v11833_v49 = vpop.f32.mrf.mxu2  ;;  %v11835_v44 = vpop.f32.mrf.mxu3 }
 0x530   :  { %v4359_v30 = vadd.f32 %v11833_v49, %v4181_v19  ;;  %v4372_v46 = vadd.f32 %v11835_v44, %v4182_v23  ;;  %v4385_v49 = vadd.f32 %v11824_v5, %v4183_v26  ;;  %v4184_v19 = vperm.slane %v11831_v15, 3  ;;  %v10840_v5 = vld [vmem:[#allocation9 + $0xd4] sm:$0xf0] }
 0x531   :  { %v9492_v61 = vor.u32 %v10840_v5, %v9491_v54  ;;  %v9419_v54 = vld [vmem:[#allocation9 + $0x40] sm:$0xf]  ;;  %v10823_v5 = vld [vmem:[#allocation9 + $0x4c] sm:$0xf0] }
 0x532   :  { %v4386_v45 = vpop.f32.mrf.mxu0  ;;  %v4399_v24 = vpop.f32.mrf.mxu1  ;;  %v4398_v56 = vadd.f32 %v11826_v6, %v4184_v19  ;;  %v9468_v6 = vor.u32 %v10835_v7, %v9467_v4  ;;  %v10827_v19 = vld [vmem:[#allocation9 + $0x6c] sm:$0xf0]  ;;  %v9403_v7 = vld [vmem:[#allocation9 + $0x20] sm:$0xf] }
 0x533   :  { %v10843_v45 = vld [vmem:[#allocation9 + $0xec] sm:$0xf0]  ;;  %v10841_v24 = vld [vmem:[#allocation9 + $0xe4] sm:$0xf]  ;;  %5425 = vmatpush.bf16.msra.mxu0 %v9492_v61  ;;  %v9436_v16 = vor.u32 %v10827_v19, %v9435_v48 }
 0x534   :  { %v9500_v50 = vor.u32 %v10843_v45, %v9499_v39  ;;  %v9504_v37 = vor.u32 %v10841_v24, %v9501_v1  ;;  %v10830_v24 = vld [vmem:[#allocation9 + $0x8c] sm:$0xf]  ;;  %v9461_v1 = vld [vmem:[#allocation9 + $0x98] sm:$0xf0] }
 0x535   :  { %v9464_v42 = vor.u32 %v10830_v24, %v9461_v1  ;;  %v10814_v1 = vld [vmem:[#allocation9 + $0xc] sm:$0xf] }
 0x536   :  { %5398 = vmatpush.bf16.msrb.mxu2 %v9500_v50  ;;  %5411 = vmatpush.bf16.msrb.mxu3 %v9504_v37  ;;  %v9437_v50 = vld [vmem:[#allocation9 + $0x70] sm:$0xf0]  ;;  %v10826_v37 = vld [vmem:[#allocation9 + $0x6c] sm:$0xf] }
 0x537   :  { %v4360_v3 = vpop.f32.mrf.mxu2  ;;  %v4373_v35 = vpop.f32.mrf.mxu3  ;;  %5426 = vmatpush.bf16.msra.mxu0 %v9476_v21  ;;  %v10815_v21 = vld [vmem:[#allocation9 + $0xc] sm:$0xf0] }
 0x538   :  { %v10838_v3 = vld [vmem:[#allocation9 + $0xcc] sm:$0xf]  ;;  %v9493_v35 = vld [vmem:[#allocation9 + $0xd8] sm:$0xf0] }
 0x539   :  { %v9496_v8 = vor.u32 %v10838_v3, %v9493_v35  ;;  %v9427_v3 = vld [vmem:[#allocation9 + $0x48] sm:$0xf]  ;;  %v10824_v35 = vld [vmem:[#allocation9 + $0x54] sm:$0xf0] }
 0x53a   :  { %v4628_v13 = vpop.f32.mrf.mxu0  ;;  %v11840_v58 = vpop.f32.mrf.mxu1  ;;  %5399 = vmatpush.bf16.msrb.mxu2 %v9484_v2  ;;  %5412 = vmatpush.bf16.msrb.mxu3 %v9488_v57  ;;  %v9429_v2 = vld [vmem:[#allocation9 + $0x58] sm:$0xf0]  ;;  %v9420_v57 = vor.u32 %v10823_v5, %v9419_v54  ;;  %v9428_v4 = vor.u32 %v10824_v35, %v9427_v3  ;;  %v4913_v54 = vld [vmem:[#allocation2 + $0x8] sm:$0x30]  ;;  %v9619_v3 = vld [vmem:[#allocation8 + $0xc8] sm:$0xf] }
 0x53b   :  { %v4647_v26 = vadd.f32 %v4628_v13, %v4385_v49  ;;  %v4648_v60 = vadd.f32 %v11840_v58, %v4398_v56  ;;  %v10834_v13 = vld [vmem:[#allocation9 + $0xac] sm:$0xf]  ;;  %5438 = vmatpush.bf16.msra.mxu1 %v9496_v8  ;;  %v9459_v58 = vld [vmem:[#allocation9 + $0x88] sm:$0xf]  ;;  %v10817_v8 = vld [vmem:[#allocation9 + $0x24] sm:$0xf] }
 0x53c   :  { %v9460_v49 = vor.u32 %v10832_v14, %v9459_v58  ;;  %v9408_v18 = vor.u32 %v10817_v8, %v9405_v11  ;;  %v10872_v35 = vld [vmem:[#allocation8 + $0xd4] sm:$0xf0]  ;;  %v9595_v8 = vld [vmem:[#allocation8 + $0xa0] sm:$0xf]  ;;  %v10865_v11 = vld [vmem:[#allocation8 + $0xa4] sm:$0xf] }
 0x53e   :  { %5400 = vmatpush.bf16.msrb.mxu2 %v9468_v6  ;;  %5413 = vmatpush.bf16.msrb.mxu3 %v9472_v0  ;;  %v9387_v0 = vld [vmem:[#allocation9] sm:$0xf] }
 0x53f   :  { %v4602_v34 = vpop.f32.mrf.mxu2  ;;  %v4615_v55 = vpop.f32.mrf.mxu3  ;;  %5427 = vmatpush.bf16.msra.mxu0 %v9460_v49  ;;  %v9388_v14 = vor.u32 %v10815_v21, %v9387_v0  ;;  %v10873_v49 = vld [vmem:[#allocation8 + $0xe4] sm:$0xf]  ;;  %v10866_v21 = vld [vmem:[#allocation8 + $0xac] sm:$0xf] }
 0x540   :  { %v4645_v44 = vadd.f32 %v4602_v34, %v4359_v30  ;;  %v4646_v23 = vadd.f32 %v4615_v55, %v4372_v46  ;;  %v9480_v30 = vor.u32 %v10834_v13, %v9477_v41  ;;  %v10825_v34 = vld [vmem:[#allocation9 + $0x64] sm:$0xf]  ;;  %v9404_v41 = vor.u32 %v10819_v62, %v9403_v7 }
 0x541   :  { %v9440_v40 = vor.u32 %v10825_v34, %v9437_v50  ;;  %v9629_v34 = vld [vmem:[#allocation8 + $0xf0] sm:$0xf0]  ;;  %v10876_v50 = vld [vmem:[#allocation8 + $0xf4] sm:$0xf0]  ;;  %v9620_v7 = vor.u32 %v10872_v35, %v9619_v3 }
 0x542   :  { %11137 = vtanh.f32 %v4645_v44  ;;  %v4630_v15 = vpop.f32.mrf.mxu0  ;;  %v4643_v63 = vpop.f32.mrf.mxu1  ;;  %5439 = vmatpush.bf16.msra.mxu1 %v9480_v30  ;;  %v10828_v44 = vld [vmem:[#allocation9 + $0x74] sm:$0xf0]  ;;  %5401 = vmatpush.bf16.msrb.mxu2 %v9452_v25 }
 0x543   :  { %11139 = vtanh.f32 %v4646_v23  ;;  %5414 = vmatpush.bf16.msrb.mxu3 %v9456_v59  ;;  %v9444_v38 = vor.u32 %v10828_v44, %v9443_v17  ;;  %v9448_v15 = vor.u32 %v10826_v37, %v9445_v52  ;;  %v9421_v63 = vld [vmem:[#allocation9 + $0x50] sm:$0xf0]  ;;  %v10875_v59 = vld [vmem:[#allocation8 + $0xec] sm:$0xf0]  ;;  %v10874_v17 = vld [vmem:[#allocation8 + $0xec] sm:$0xf] }
 0x544   :  { %11141 = vtanh.f32 %v4647_v26  ;;  %v10821_v26 = vld [vmem:[#allocation9 + $0x44] sm:$0xf]  ;;  %v9637_v44 = vld [vmem:[#allocation8 + $0xf8] sm:$0xf0]  ;;  %v10856_v35 = vld [vmem:[#allocation8 + $0x54] sm:$0xf0] }
 0x545   :  { %11143 = vtanh.f32 %v4648_v60  ;;  %5428 = vmatpush.bf16.msra.mxu0 %v9444_v38  ;;  %v9424_v61 = vor.u32 %v10821_v26, %v9421_v63  ;;  %v10820_v60 = vld [vmem:[#allocation9 + $0x34] sm:$0xf0]  ;;  %v4914_v26 = vld [vmem:[#allocation2 + $0x20] sm:$0x30]  ;;  %v9613_v63 = vld [vmem:[#allocation8 + $0xd0] sm:$0xf0] }
 0x546   :  { %5440 = vmatpush.bf16.msra.mxu1 %v9464_v42  ;;  %5402 = vmatpush.bf16.msrb.mxu2 %v9436_v16  ;;  %v9632_v42 = vor.u32 %v10873_v49, %v9629_v34  ;;  %v9640_v16 = vor.u32 %v10874_v17, %v9637_v44  ;;  %v9571_v44 = vld [vmem:[#allocation8 + $0x68] sm:$0xf] }
 0x547   :  { %v4604_v22 = vpop.f32.mrf.mxu2  ;;  %v4617_v27 = vpop.f32.mrf.mxu3  ;;  %5415 = vmatpush.bf16.msrb.mxu3 %v9440_v40  ;;  %v10869_v40 = vld [vmem:[#allocation8 + $0xc4] sm:$0xf] }
 0x548   :  { %v11138_v10 = vpop.eup %11137  ;;  %v10818_v22 = vld [vmem:[#allocation9 + $0x2c] sm:$0xf]  ;;  %v9413_v27 = vld [vmem:[#allocation9 + $0x38] sm:$0xf0] }
 0x549   :  { %v11140_v33 = vpop.eup %11139  ;;  %v4653_v39 = vmul.f32 0.5, %v11138_v10  ;;  %5429 = vmatpush.bf16.msra.mxu0 %v9428_v4  ;;  %v9412_v10 = vor.u32 %v10820_v60, %v9411_v12  ;;  %v9416_v58 = vor.u32 %v10818_v22, %v9413_v27  ;;  %v4915_v4 = vld [vmem:[#allocation2 + $0x28] sm:$0x30]  ;;  %v9597_v27 = vld [vmem:[#allocation8 + $0xb0] sm:$0xf0] }
 0x54a   :  { %v4655_v45 = vmul.f32 0.5, %v11140_v33  ;;  %v11142_v53 = vpop.eup %11141  ;;  %5441 = vmatpush.bf16.msra.mxu1 %v9448_v15  ;;  %5403 = vmatpush.bf16.msrb.mxu2 %v9420_v57  ;;  %v9395_v33 = vld [vmem:[#allocation9 + $0x8] sm:$0xf]  ;;  %v10870_v57 = vld [vmem:[#allocation8 + $0xcc] sm:$0xf] }
 0x54b   :  { %v4654_v46 = vadd.f32 0.5, %v4653_v39  ;;  %v11144_v31 = vpop.eup %11143  ;;  %5416 = vmatpush.bf16.msrb.mxu3 %v9424_v61  ;;  %v10816_v39 = vld [vmem:[#allocation9 + $0x14] sm:$0xf0]  ;;  %v9621_v61 = vld [vmem:[#allocation8 + $0xd8] sm:$0xf0] }
 0x54c   :  { %v4656_v28 = vadd.f32 0.5, %v4655_v45  ;;  %v4657_v56 = vmul.f32 0.5, %v11144_v31  ;;  %v9392_v45 = vor.u32 %v10813_v29, %v9389_v32  ;;  %v9396_v24 = vor.u32 %v10816_v39, %v9395_v33  ;;  %v10871_v31 = vld [vmem:[#allocation8 + $0xcc] sm:$0xf0]  ;;  %v9605_v29 = vld [vmem:[#allocation8 + $0xb8] sm:$0xf0] }
 0x54d   :  { %v4660_v55 = vmul.f32 %v11142_v53, %v4654_v46  ;;  %5430 = vmatpush.bf16.msra.mxu0 %v9412_v10  ;;  %v9397_v46 = vld [vmem:[#allocation9 + $0x18] sm:$0xf0]  ;;  %v9624_v62 = vor.u32 %v10870_v57, %v9621_v61  ;;  %v9600_v10 = vor.u32 %v10865_v11, %v9597_v27  ;;  %v9608_v33 = vor.u32 %v10866_v21, %v9605_v29  ;;  %v10863_v39 = vld [vmem:[#allocation8 + $0x8c] sm:$0xf0]  ;;  %v9539_v27 = vld [vmem:[#allocation8 + $0x28] sm:$0xf] }
 0x54e   :  { %v4659_v23 = vmul.f32 %v4656_v28, %v11802_v36  ;;  %v10822_v36 = vld [vmem:[#allocation9 + $0x4c] sm:$0xf]  ;;  %v4658_v13 = vadd.f32 0.5, %v4657_v56  ;;  %5404 = vmatpush.bf16.msrb.mxu2 %v9404_v41  ;;  %v9400_v25 = vor.u32 %v10814_v1, %v9397_v46  ;;  %v9627_v28 = vld [vmem:[#allocation8 + $0xe0] sm:$0xf]  ;;  %v9616_v56 = vor.u32 %v10869_v40, %v9613_v63 }
 0x54f   :  { %v9432_v9 = vor.u32 %v10822_v36, %v9429_v2  ;;  %5417 = vmatpush.bf16.msrb.mxu3 %v9408_v18  ;;  %v9628_v19 = vor.u32 %v10875_v59, %v9627_v28  ;;  %v10868_v18 = vld [vmem:[#allocation8 + $0xb4] sm:$0xf0]  ;;  %v10862_v1 = vld [vmem:[#allocation8 + $0x8c] sm:$0xf]  ;;  %v10859_v28 = vld [vmem:[#allocation8 + $0x6c] sm:$0xf0] }
 0x550   :  { %v11853_v51 = vadd.f32 %v4660_v55, %v4659_v23  ;;  %v9635_v55 = vld [vmem:[#allocation8 + $0xe8] sm:$0xf]  ;;  %v4916_v59 = vld [vmem:[#allocation2 + $0x38] sm:$0x30]  ;;  %v10851_v11 = vld [vmem:[#allocation8 + $0x2c] sm:$0xf0] }
 0x551   :  { %5442 = vmatpush.bf16.msra.mxu1 %v9432_v9  ;;  %5431 = vmatpush.bf16.msra.mxu0 %v9396_v24  ;;  %v9636_v52 = vor.u32 %v10876_v50, %v9635_v55  ;;  %v10867_v9 = vld [vmem:[#allocation8 + $0xac] sm:$0xf0]  ;;  %v10864_v24 = vld [vmem:[#allocation8 + $0x94] sm:$0xf0]  ;;  %v9565_v50 = vld [vmem:[#allocation8 + $0x70] sm:$0xf0] }
 0x552   :  { %11145 = vtanh.f32 %v11853_v51  ;;  %5405 = vmatpush.bf16.msrb.mxu2 %v9388_v14  ;;  %v9596_v22 = vor.u32 %v10867_v9, %v9595_v8  ;;  %v9531_v9 = vld [vmem:[#allocation8 + $0x20] sm:$0xf] }
 0x553   :  { %5418 = vmatpush.bf16.msrb.mxu3 %v9392_v45  ;;  %v9587_v45 = vld [vmem:[#allocation8 + $0x88] sm:$0xf]  ;;  %v9532_v21 = vor.u32 %v10851_v11, %v9531_v9  ;;  %v9725_v11 = vld [vmem:[#allocation11 + $0xb0] sm:$0xf0] }
 0x554   :  { %v9588_v34 = vor.u32 %v10864_v24, %v9587_v45  ;;  %v9523_v45 = vld [vmem:[#allocation8 + $0x8] sm:$0xf]  ;;  %v10848_v24 = vld [vmem:[#allocation8 + $0x14] sm:$0xf0] }
 0x555   :  { %5443 = vmatpush.bf16.msra.mxu1 %v9416_v58  ;;  %v9581_v58 = vld [vmem:[#allocation8 + $0x90] sm:$0xf0] }
 0x558   :  { %v11146_v6 = vpop.eup %11145 }
 0x559   :  { %v4663_v20 = vmul.f32 %v11146_v6, %v4658_v13  ;;  %5444 = vmatpush.bf16.msra.mxu1 %v9400_v25  ;;  %v9603_v6 = vld [vmem:[#allocation8 + $0xa8] sm:$0xf]  ;;  %v9589_v25 = vld [vmem:[#allocation8 + $0x98] sm:$0xf0] }
 0x55a   :  { %v9604_v0 = vor.u32 %v10868_v18, %v9603_v6  ;;  %v9592_v55 = vor.u32 %v10862_v1, %v9589_v25  ;;  %v10852_v18 = vld [vmem:[#allocation8 + $0x34] sm:$0xf0]  ;;  %v10846_v1 = vld [vmem:[#allocation8 + $0xc] sm:$0xf] }
 0x55b   :  { %v4664_v30 = vpack.c.bf16 %v4663_v20, %v4663_v20  ;;  %v9579_v20 = vld [vmem:[#allocation8 + $0x80] sm:$0xf] }
 0x55c   :  { %v9580_v14 = vor.u32 %v10863_v39, %v9579_v20  ;;  %v9540_v39 = vor.u32 %v10852_v18, %v9539_v27  ;;  %v9733_v27 = vld [vmem:[#allocation11 + $0xb8] sm:$0xf0]  ;;  %v9707_v18 = vld [vmem:[#allocation11 + $0x80] sm:$0xf] }
 0x55d   :  { %4665 = vst [vmem:[#allocation3 + $0x4] sm:$0x1] %v4664_v30  ;;  %5162 = vmatmul.bf16.vlgmr.msra.gmra.mxu2 %v4664_v30  ;;  %5175 = vmatmul.bf16.vlgmr.msra.gmra.mxu3 %v4664_v30 }
 0x55e   :  { %5188 = vmatmul.bf16.vlgmr.msrb.gmra.mxu0 %v4664_v30  ;;  %5201 = vmatmul.bf16.vlgmr.msrb.gmra.mxu1 %v4664_v30  ;;  %v10861_v30 = vld [vmem:[#allocation8 + $0x84] sm:$0xf] }
 0x55f   :  { %5669 = vmatpush.bf16.msra.mxu2 %v9628_v19  ;;  %5682 = vmatpush.bf16.msra.mxu3 %v9632_v42  ;;  %v9584_v46 = vor.u32 %v10861_v30, %v9581_v58  ;;  %v10857_v42 = vld [vmem:[#allocation8 + $0x64] sm:$0xf] }
 0x560   :  { %5695 = vmatpush.bf16.msrb.mxu0 %v9636_v52  ;;  %5708 = vmatpush.bf16.msrb.mxu1 %v9640_v16  ;;  %v10858_v52 = vld [vmem:[#allocation8 + $0x6c] sm:$0xf]  ;;  %v10845_v58 = vld [vmem:[#allocation8 + $0x4] sm:$0xf] }
 0x563   :  { %5683 = vmatpush.bf16.msra.mxu3 %v9616_v56  ;;  %v9557_v56 = vld [vmem:[#allocation8 + $0x58] sm:$0xf0] }
 0x564   :  { %5696 = vmatpush.bf16.msrb.mxu0 %v9620_v7  ;;  %5709 = vmatpush.bf16.msrb.mxu1 %v9624_v62  ;;  %v4944_v62 = vrot.slane %v11815_v43, 6 }
 0x567   :  { %5684 = vmatpush.bf16.msra.mxu3 %v9600_v10  ;;  %v10850_v10 = vld [vmem:[#allocation8 + $0x2c] sm:$0xf] }
 0x568   :  { %5697 = vmatpush.bf16.msrb.mxu0 %v9604_v0  ;;  %5710 = vmatpush.bf16.msrb.mxu1 %v9608_v33  ;;  %v9541_v0 = vld [vmem:[#allocation8 + $0x38] sm:$0xf0]  ;;  %v10847_v33 = vld [vmem:[#allocation8 + $0xc] sm:$0xf0] }
 0x569   :  { %v9544_v30 = vor.u32 %v10850_v10, %v9541_v0  ;;  %v10895_v10 = vld [vmem:[#allocation11 + $0x8c] sm:$0xf0]  ;;  %v10893_v0 = vld [vmem:[#allocation11 + $0x84] sm:$0xf] }
 0x56b   :  { %5685 = vmatpush.bf16.msra.mxu3 %v9584_v46  ;;  %v9525_v46 = vld [vmem:[#allocation8 + $0x18] sm:$0xf0] }
 0x56c   :  { %5698 = vmatpush.bf16.msrb.mxu0 %v9588_v34  ;;  %5711 = vmatpush.bf16.msrb.mxu1 %v9592_v55 }
 0x56d   :  { %5406 = vmatmul.bf16.vlgmr.msrb.gmra.mxu2 %v11818_v47  ;;  %5419 = vmatmul.bf16.vlgmr.msrb.gmra.mxu3 %v11818_v47 }
 0x56e   :  { %5432 = vmatmul.bf16.vlgmr.msra.gmra.mxu0 %v11818_v47  ;;  %5445 = vmatmul.bf16.vlgmr.msra.gmra.mxu1 %v11818_v47  ;;  %v9611_v47 = vld [vmem:[#allocation8 + $0xc0] sm:$0xf] }
 0x56f   :  { %v9612_v15 = vor.u32 %v10871_v31, %v9611_v47  ;;  %v9573_v47 = vld [vmem:[#allocation8 + $0x78] sm:$0xf0]  ;;  %v9547_v31 = vld [vmem:[#allocation8 + $0x40] sm:$0xf] }
 0x571   :  { %5670 = vmatpush.bf16.msra.mxu2 %v9612_v15 }
 0x575   :  { %5671 = vmatpush.bf16.msra.mxu2 %v9596_v22  ;;  %v9533_v22 = vld [vmem:[#allocation8 + $0x30] sm:$0xf0] }
 0x579   :  { %5672 = vmatpush.bf16.msra.mxu2 %v9580_v14  ;;  %v9517_v14 = vld [vmem:[#allocation8 + $0x10] sm:$0xf0] }
 0x58a   :  { %v4896_v48 = vpop.f32.mrf.mxu0  ;;  %v11860_v53 = vpop.f32.mrf.mxu1 }
 0x58b   :  { %v4923_v23 = vrot.slane %v4896_v48, 4  ;;  %v4924_v37 = vrot.slane %v11860_v53, 4  ;;  %v9563_v48 = vld [vmem:[#allocation8 + $0x60] sm:$0xf]  ;;  %v9576_v53 = vor.u32 %v10858_v52, %v9573_v47  ;;  %v10905_v52 = vld [vmem:[#allocation11 + $0xe4] sm:$0xf] }
 0x58c   :  { %v9564_v16 = vor.u32 %v10859_v28, %v9563_v48  ;;  %v9520_v28 = vor.u32 %v10845_v58, %v9517_v14  ;;  %v9763_v47 = vld [vmem:[#allocation11 + $0xe8] sm:$0xf]  ;;  %v9717_v58 = vld [vmem:[#allocation11 + $0x98] sm:$0xf0] }
 0x58d   :  { %v4931_v32 = vadd.f32 %v4923_v23, %v4915_v4  ;;  %v4932_v17 = vadd.f32 %v4924_v37, %v4916_v59  ;;  %v10860_v23 = vld [vmem:[#allocation8 + $0x74] sm:$0xf0]  ;;  %v9555_v37 = vld [vmem:[#allocation8 + $0x48] sm:$0xf]  ;;  %5712 = vmatpush.bf16.msrb.mxu1 %v9576_v53  ;;  %v9524_v59 = vor.u32 %v10848_v24, %v9523_v45 }
 0x58e   :  { %v9572_v3 = vor.u32 %v10860_v23, %v9571_v44  ;;  %5673 = vmatpush.bf16.msra.mxu2 %v9564_v16  ;;  %v10907_v44 = vld [vmem:[#allocation11 + $0xec] sm:$0xf0]  ;;  %v9757_v16 = vld [vmem:[#allocation11 + $0xf0] sm:$0xf0] }
 0x58f   :  { %v4870_v38 = vpop.f32.mrf.mxu2  ;;  %v4883_v5 = vpop.f32.mrf.mxu3 }
 0x590   :  { %v4921_v36 = vrot.slane %v4870_v38, 4  ;;  %v4922_v2 = vrot.slane %v4883_v5, 4  ;;  %v9568_v38 = vor.u32 %v10857_v42, %v9565_v50  ;;  %v10853_v5 = vld [vmem:[#allocation8 + $0x44] sm:$0xf]  ;;  %5699 = vmatpush.bf16.msrb.mxu0 %v9572_v3 }
 0x591   :  { %v10901_v3 = vld [vmem:[#allocation11 + $0xc4] sm:$0xf] }
 0x592   :  { %v4929_v12 = vadd.f32 %v4921_v36, %v4913_v54  ;;  %v4930_v60 = vadd.f32 %v4922_v2, %v4914_v26  ;;  %v4898_v13 = vpop.f32.mrf.mxu0  ;;  %v4911_v41 = vpop.f32.mrf.mxu1  ;;  %v10855_v54 = vld [vmem:[#allocation8 + $0x4c] sm:$0xf0]  ;;  %v9549_v26 = vld [vmem:[#allocation8 + $0x50] sm:$0xf0]  ;;  %v10854_v2 = vld [vmem:[#allocation8 + $0x4c] sm:$0xf]  ;;  %5686 = vmatpush.bf16.msra.mxu3 %v9568_v38 }
 0x593   :  { %v9548_v61 = vor.u32 %v10855_v54, %v9547_v31  ;;  %v9552_v8 = vor.u32 %v10853_v5, %v9549_v26  ;;  %v9560_v13 = vor.u32 %v10854_v2, %v9557_v56  ;;  %v10849_v41 = vld [vmem:[#allocation8 + $0x24] sm:$0xf]  ;;  %v9760_v31 = vor.u32 %v10905_v52, %v9757_v16  ;;  %v10906_v38 = vld [vmem:[#allocation11 + $0xec] sm:$0xf]  ;;  %v9765_v54 = vld [vmem:[#allocation11 + $0xf8] sm:$0xf0] }
 0x594   :  { %11147 = vtanh.f32 %v4929_v12  ;;  %v9536_v20 = vor.u32 %v10849_v41, %v9533_v22  ;;  %v9768_v26 = vor.u32 %v10906_v38, %v9765_v54  ;;  %v10898_v22 = vld [vmem:[#allocation11 + $0xac] sm:$0xf]  ;;  %v10892_v52 = vld [vmem:[#allocation11 + $0x74] sm:$0xf0]  ;;  %v9675_v38 = vld [vmem:[#allocation11 + $0x40] sm:$0xf] }
 0x595   :  { %11149 = vtanh.f32 %v4930_v60  ;;  %v9556_v60 = vor.u32 %v10856_v35, %v9555_v37  ;;  %5674 = vmatpush.bf16.msra.mxu2 %v9548_v61  ;;  %5713 = vmatpush.bf16.msrb.mxu1 %v9560_v13  ;;  %v9741_v37 = vld [vmem:[#allocation11 + $0xd0] sm:$0xf0]  ;;  %v9747_v35 = vld [vmem:[#allocation11 + $0xc8] sm:$0xf]  ;;  %v9749_v61 = vld [vmem:[#allocation11 + $0xd8] sm:$0xf0] }
 0x596   :  { %11151 = vtanh.f32 %v4931_v32  ;;  %5687 = vmatpush.bf16.msra.mxu3 %v9552_v8  ;;  %v9515_v32 = vld [vmem:[#allocation8] sm:$0xf]  ;;  %v9744_v2 = vor.u32 %v10901_v3, %v9741_v37  ;;  %v10897_v8 = vld [vmem:[#allocation11 + $0xa4] sm:$0xf]  ;;  %v10888_v37 = vld [vmem:[#allocation11 + $0x54] sm:$0xf0] }
 0x597   :  { %v4872_v49 = vpop.f32.mrf.mxu2  ;;  %v4885_v19 = vpop.f32.mrf.mxu3  ;;  %11153 = vtanh.f32 %v4932_v17  ;;  %5700 = vmatpush.bf16.msrb.mxu0 %v9556_v60  ;;  %v9516_v48 = vor.u32 %v10847_v33, %v9515_v32  ;;  %v9755_v17 = vld [vmem:[#allocation11 + $0xe0] sm:$0xf]  ;;  %v10900_v60 = vld [vmem:[#allocation11 + $0xb4] sm:$0xf0]  ;;  %v9728_v13 = vor.u32 %v10897_v8, %v9725_v11  ;;  %v9661_v8 = vld [vmem:[#allocation11 + $0x30] sm:$0xf0] }
 0x598   :  { %v9528_v49 = vor.u32 %v10846_v1, %v9525_v46  ;;  %v9756_v23 = vor.u32 %v10907_v44, %v9755_v17  ;;  %v10896_v32 = vld [vmem:[#allocation11 + $0x94] sm:$0xf0]  ;;  %v9693_v44 = vld [vmem:[#allocation11 + $0x70] sm:$0xf0] }
 0x599   :  { %5675 = vmatpush.bf16.msra.mxu2 %v9532_v21  ;;  %5714 = vmatpush.bf16.msrb.mxu1 %v9544_v30  ;;  %v9708_v21 = vor.u32 %v10895_v10, %v9707_v18  ;;  %v10894_v30 = vld [vmem:[#allocation11 + $0x8c] sm:$0xf]  ;;  %v11882_v1 = vld [vmem:[%s11974_s7] sm:$0xf]  ;;  %v9643_v18 = vld [vmem:[#allocation11] sm:$0xf] }
 0x59a   :  { %v11148_v40 = vpop.eup %11147  ;;  %5688 = vmatpush.bf16.msra.mxu3 %v9536_v20  ;;  %v9715_v20 = vld [vmem:[#allocation11 + $0x88] sm:$0xf]  ;;  %v9720_v24 = vor.u32 %v10894_v30, %v9717_v58  ;;  %v10879_v10 = vld [vmem:[#allocation11 + $0xc] sm:$0xf0]  ;;  %v9883_v30 = vld [vmem:[#allocation9 + $0xe0] sm:$0xf] }
 0x59b   :  { %v11150_v15 = vpop.eup %11149  ;;  %v4937_v63 = vmul.f32 0.5, %v11148_v40  ;;  %5701 = vmatpush.bf16.msrb.mxu0 %v9540_v39  ;;  %v10908_v40 = vld [vmem:[#allocation11 + $0xf4] sm:$0xf0]  ;;  %v9716_v39 = vor.u32 %v10896_v32, %v9715_v20  ;;  %v9651_v20 = vld [vmem:[#allocation11 + $0x8] sm:$0xf] }
 0x59c   :  { %v4939_v36 = vmul.f32 0.5, %v11150_v15  ;;  %v11152_v4 = vpop.eup %11151  ;;  %v9764_v5 = vor.u32 %v10908_v40, %v9763_v47  ;;  %v9739_v15 = vld [vmem:[#allocation11 + $0xc0] sm:$0xf]  ;;  %v9701_v40 = vld [vmem:[#allocation11 + $0x78] sm:$0xf0] }
 0x59d   :  { %v4938_v57 = vadd.f32 0.5, %v4937_v63  ;;  %v11154_v29 = vpop.eup %11153  ;;  %5676 = vmatpush.bf16.msra.mxu2 %v9516_v48  ;;  %5715 = vmatpush.bf16.msrb.mxu1 %v9528_v49  ;;  %v10903_v63 = vld [vmem:[#allocation11 + $0xcc] sm:$0xf0]  ;;  %v4988_v48 = vperm.slane %v11882_v1, 2  ;;  %v10880_v32 = vld [vmem:[#allocation11 + $0x14] sm:$0xf0] }
 0x59e   :  { %v4940_v7 = vadd.f32 0.5, %v4939_v36  ;;  %v4941_v25 = vmul.f32 0.5, %v11154_v29  ;;  %5689 = vmatpush.bf16.msra.mxu3 %v9520_v28  ;;  %v9740_v53 = vor.u32 %v10903_v63, %v9739_v15  ;;  %v10904_v36 = vld [vmem:[#allocation11 + $0xd4] sm:$0xf0]  ;;  %v9709_v29 = vld [vmem:[#allocation11 + $0x90] sm:$0xf0] }
 0x59f   :  { %v4947_v12 = vmul.f32 %v11152_v4, %v4938_v57  ;;  %5702 = vmatpush.bf16.msrb.mxu0 %v9524_v59  ;;  %v9748_v56 = vor.u32 %v10904_v36, %v9747_v35  ;;  %v10902_v57 = vld [vmem:[#allocation11 + $0xcc] sm:$0xf]  ;;  %v9712_v33 = vor.u32 %v10893_v0, %v9709_v29  ;;  %v4986_v28 = vperm.slane %v11882_v1, 0  ;;  %v9677_v15 = vld [vmem:[#allocation11 + $0x50] sm:$0xf0] }
 0x5a0   :  { %v4946_v6 = vmul.f32 %v4944_v62, %v4940_v7  ;;  %v4942_v19 = vadd.f32 0.5, %v4941_v25  ;;  %v9752_v4 = vor.u32 %v10902_v57, %v9749_v61  ;;  %v9723_v7 = vld [vmem:[#allocation11 + $0xa0] sm:$0xf]  ;;  %v10899_v62 = vld [vmem:[#allocation11 + $0xac] sm:$0xf0]  ;;  %v4987_v59 = vperm.slane %v11882_v1, 1 }
 0x5a1   :  { %5962 = vmatpush.bf16.msrb.mxu2 %v9756_v23  ;;  %6001 = vmatpush.bf16.msra.mxu1 %v9768_v26  ;;  %v9724_v9 = vor.u32 %v10899_v62, %v9723_v7  ;;  %v9699_v23 = vld [vmem:[#allocation11 + $0x68] sm:$0xf]  ;;  %v10885_v26 = vld [vmem:[#allocation11 + $0x44] sm:$0xf]  ;;  %v10886_v35 = vld [vmem:[#allocation11 + $0x4c] sm:$0xf] }
 0x5a2   :  { %v11866_v43 = vadd.f32 %v4947_v12, %v4946_v6  ;;  %5975 = vmatpush.bf16.msrb.mxu3 %v9760_v31  ;;  %v9731_v12 = vld [vmem:[#allocation11 + $0xa8] sm:$0xf]  ;;  %v9736_v6 = vor.u32 %v10898_v22, %v9733_v27  ;;  %v9700_v47 = vor.u32 %v10892_v52, %v9699_v23  ;;  %v10890_v31 = vld [vmem:[#allocation11 + $0x6c] sm:$0xf]  ;;  %v9680_v3 = vor.u32 %v10885_v26, %v9677_v15  ;;  %v9685_v57 = vld [vmem:[#allocation11 + $0x58] sm:$0xf0] }
 0x5a3   :  { %5988 = vmatpush.bf16.msra.mxu0 %v9764_v5  ;;  %v9732_v41 = vor.u32 %v10900_v60, %v9731_v12  ;;  %v9704_v54 = vor.u32 %v10890_v31, %v9701_v40  ;;  %v10887_v5 = vld [vmem:[#allocation11 + $0x4c] sm:$0xf0]  ;;  %v9659_v61 = vld [vmem:[#allocation11 + $0x20] sm:$0xf]  ;;  %v9688_v7 = vor.u32 %v10886_v35, %v9685_v57  ;;  %v10881_v62 = vld [vmem:[#allocation11 + $0x24] sm:$0xf] }
 0x5a4   :  { %11155 = vtanh.f32 %v11866_v43  ;;  %v9676_v63 = vor.u32 %v10887_v5, %v9675_v38  ;;  %v10884_v12 = vld [vmem:[#allocation11 + $0x34] sm:$0xf0]  ;;  %v10882_v60 = vld [vmem:[#allocation11 + $0x2c] sm:$0xf]  ;;  %v9664_v27 = vor.u32 %v10881_v62, %v9661_v8  ;;  %v10877_v0 = vld [vmem:[#allocation11 + $0x4] sm:$0xf] }
 0x5a5   :  { %5963 = vmatpush.bf16.msrb.mxu2 %v9740_v53  ;;  %6002 = vmatpush.bf16.msra.mxu1 %v9752_v4  ;;  %v9683_v53 = vld [vmem:[#allocation11 + $0x48] sm:$0xf]  ;;  %v10883_v4 = vld [vmem:[#allocation11 + $0x2c] sm:$0xf0]  ;;  %v9645_v29 = vld [vmem:[#allocation11 + $0x10] sm:$0xf0] }
 0x5a6   :  { %5976 = vmatpush.bf16.msrb.mxu3 %v9744_v2  ;;  %v9660_v11 = vor.u32 %v10883_v4, %v9659_v61  ;;  %v10940_v23 = vld [vmem:[#allocation9 + $0xf4] sm:$0xf0]  ;;  %v10938_v52 = vld [vmem:[#allocation9 + $0xec] sm:$0xf]  ;;  %v9893_v38 = vld [vmem:[#allocation9 + $0xf8] sm:$0xf0] }
 0x5a7   :  { %5989 = vmatpush.bf16.msra.mxu0 %v9748_v56  ;;  %v9684_v56 = vor.u32 %v10888_v37, %v9683_v53  ;;  %v9867_v26 = vld [vmem:[#allocation9 + $0xc0] sm:$0xf]  ;;  %v10935_v15 = vld [vmem:[#allocation9 + $0xcc] sm:$0xf0]  ;;  %v9869_v53 = vld [vmem:[#allocation9 + $0xd0] sm:$0xf0] }
 0x5a8   :  { %v9875_v37 = vld [vmem:[#allocation9 + $0xc8] sm:$0xf]  ;;  %v10931_v62 = vld [vmem:[#allocation9 + $0xac] sm:$0xf0]  ;;  %v10929_v8 = vld [vmem:[#allocation9 + $0xa4] sm:$0xf] }
 0x5a9   :  { %5964 = vmatpush.bf16.msrb.mxu2 %v9724_v9  ;;  %6003 = vmatpush.bf16.msra.mxu1 %v9736_v6  ;;  %v9667_v9 = vld [vmem:[#allocation11 + $0x28] sm:$0xf] }
 0x5aa   :  { %v11156_v34 = vpop.eup %11155  ;;  %5977 = vmatpush.bf16.msrb.mxu3 %v9728_v13  ;;  %v9669_v13 = vld [vmem:[#allocation11 + $0x38] sm:$0xf0]  ;;  %v9668_v6 = vor.u32 %v10884_v12, %v9667_v9  ;;  %v9859_v12 = vld [vmem:[#allocation9 + $0xa8] sm:$0xf] }
 0x5ab   :  { %v4950_v55 = vmul.f32 %v11156_v34, %v4942_v19  ;;  %5990 = vmatpush.bf16.msra.mxu0 %v9732_v41  ;;  %v9691_v34 = vld [vmem:[#allocation11 + $0x60] sm:$0xf] }
 0x5ad   :  { %v4951_v42 = vpack.c.bf16 %v4950_v55, %v4950_v55  ;;  %5965 = vmatpush.bf16.msrb.mxu2 %v9708_v21  ;;  %6004 = vmatpush.bf16.msra.mxu1 %v9720_v24  ;;  %v10891_v55 = vld [vmem:[#allocation11 + $0x6c] sm:$0xf0]  ;;  %v9672_v21 = vor.u32 %v10882_v60, %v9669_v13  ;;  %v9644_v24 = vor.u32 %v10879_v10, %v9643_v18  ;;  %v10932_v60 = vld [vmem:[#allocation9 + $0xb4] sm:$0xf0]  ;;  %v9835_v10 = vld [vmem:[#allocation9 + $0x80] sm:$0xf] }
 0x5ae   :  { %5978 = vmatpush.bf16.msrb.mxu3 %v9712_v33  ;;  %v9692_v17 = vor.u32 %v10891_v55, %v9691_v34  ;;  %v10878_v33 = vld [vmem:[#allocation11 + $0xc] sm:$0xf]  ;;  %v9885_v34 = vld [vmem:[#allocation9 + $0xf0] sm:$0xf0] }
 0x5af   :  { %v11869_v50 = vrot.slane %v4951_v42, 2  ;;  %5991 = vmatpush.bf16.msra.mxu0 %v9716_v39  ;;  %v10889_v42 = vld [vmem:[#allocation11 + $0x64] sm:$0xf]  ;;  %v9653_v39 = vld [vmem:[#allocation11 + $0x18] sm:$0xf0] }
 0x5b0   :  { %v9696_v16 = vor.u32 %v10889_v42, %v9693_v44  ;;  %v9648_v42 = vor.u32 %v10877_v0, %v9645_v29  ;;  %v9891_v44 = vld [vmem:[#allocation9 + $0xe8] sm:$0xf]  ;;  %v9656_v31 = vor.u32 %v10878_v33, %v9653_v39  ;;  %v9860_v29 = vor.u32 %v10932_v60, %v9859_v12  ;;  %v9837_v33 = vld [vmem:[#allocation9 + $0x90] sm:$0xf0] }
 0x5b1   :  { %5677 = vmatmul.bf16.vlgmr.msra.gmra.mxu2 %v11869_v50  ;;  %5690 = vmatmul.bf16.vlgmr.msra.gmra.mxu3 %v11869_v50  ;;  %v9892_v5 = vor.u32 %v10940_v23, %v9891_v44  ;;  %v9789_v12 = vld [vmem:[#allocation9 + $0x30] sm:$0xf0]  ;;  %v9795_v60 = vld [vmem:[#allocation9 + $0x28] sm:$0xf] }
 0x5b2   :  { %5703 = vmatmul.bf16.vlgmr.msrb.gmra.mxu0 %v11869_v50  ;;  %5716 = vmatmul.bf16.vlgmr.msrb.gmra.mxu1 %v11869_v50 }
 0x5b3   :  { %5966 = vmatpush.bf16.msrb.mxu2 %v9692_v17  ;;  %5979 = vmatpush.bf16.msrb.mxu3 %v9696_v16  ;;  %v9652_v17 = vor.u32 %v10880_v32, %v9651_v20  ;;  %v10927_v20 = vld [vmem:[#allocation9 + $0x8c] sm:$0xf0]  ;;  %v10925_v32 = vld [vmem:[#allocation9 + $0x84] sm:$0xf] }
 0x5b4   :  { %5992 = vmatpush.bf16.msra.mxu0 %v9700_v47  ;;  %6005 = vmatpush.bf16.msra.mxu1 %v9704_v54 }
 0x5b7   :  { %5967 = vmatpush.bf16.msrb.mxu2 %v9676_v63  ;;  %5980 = vmatpush.bf16.msrb.mxu3 %v9680_v3  ;;  %v10933_v63 = vld [vmem:[#allocation9 + $0xc4] sm:$0xf]  ;;  %v9896_v3 = vor.u32 %v10938_v52, %v9893_v38  ;;  %v9840_v52 = vor.u32 %v10925_v32, %v9837_v33  ;;  %v9827_v38 = vld [vmem:[#allocation9 + $0x68] sm:$0xf]  ;;  %v9773_v33 = vld [vmem:[#allocation9 + $0x10] sm:$0xf0] }
 0x5b8   :  { %5993 = vmatpush.bf16.msra.mxu0 %v9684_v56  ;;  %6006 = vmatpush.bf16.msra.mxu1 %v9688_v7  ;;  %v9868_v56 = vor.u32 %v10935_v15, %v9867_v26  ;;  %v9872_v61 = vor.u32 %v10933_v63, %v9869_v53  ;;  %v9851_v7 = vld [vmem:[#allocation9 + $0xa0] sm:$0xf] }
 0x5bb   :  { %5968 = vmatpush.bf16.msrb.mxu2 %v9660_v11  ;;  %5981 = vmatpush.bf16.msrb.mxu3 %v9664_v27  ;;  %v9853_v11 = vld [vmem:[#allocation9 + $0xb0] sm:$0xf0]  ;;  %v9861_v27 = vld [vmem:[#allocation9 + $0xb8] sm:$0xf0] }
 0x5bc   :  { %5994 = vmatpush.bf16.msra.mxu0 %v9668_v6  ;;  %6007 = vmatpush.bf16.msra.mxu1 %v9672_v21  ;;  %v9856_v21 = vor.u32 %v10929_v8, %v9853_v11  ;;  %v10915_v8 = vld [vmem:[#allocation9 + $0x2c] sm:$0xf0] }
 0x5bf   :  { %5969 = vmatpush.bf16.msrb.mxu2 %v9644_v24  ;;  %5982 = vmatpush.bf16.msrb.mxu3 %v9648_v42  ;;  %v10928_v24 = vld [vmem:[#allocation9 + $0x94] sm:$0xf0]  ;;  %v9836_v42 = vor.u32 %v10927_v20, %v9835_v10  ;;  %v10909_v20 = vld [vmem:[#allocation9 + $0x4] sm:$0xf] }
 0x5c0   :  { %5995 = vmatpush.bf16.msra.mxu0 %v9652_v17  ;;  %6008 = vmatpush.bf16.msra.mxu1 %v9656_v31  ;;  %v9819_v17 = vld [vmem:[#allocation9 + $0x60] sm:$0xf] }
 0x5c4   :  { %6232 = vmatpush.bf16.msrb.mxu0 %v9892_v5  ;;  %6245 = vmatpush.bf16.msrb.mxu1 %v9896_v3  ;;  %v9829_v5 = vld [vmem:[#allocation9 + $0x78] sm:$0xf0] }
 0x5db   :  { %v11875_v14 = vpop.f32.mrf.mxu0  ;;  %v11877_v45 = vpop.f32.mrf.mxu1 }
 0x5e0   :  { %v11884_v46 = vpop.f32.mrf.mxu2  ;;  %v11886_v25 = vpop.f32.mrf.mxu3 }
 0x5e1   :  { %v5164_v58 = vadd.f32 %v11884_v46, %v4986_v28  ;;  %v5177_v55 = vadd.f32 %v11886_v25, %v4987_v59  ;;  %v5190_v46 = vadd.f32 %v11875_v14, %v4988_v48  ;;  %v4989_v28 = vperm.slane %v11882_v1, 3  ;;  %v10936_v14 = vld [vmem:[#allocation9 + $0xd4] sm:$0xf0] }
 0x5e2   :  { %v9876_v4 = vor.u32 %v10936_v14, %v9875_v37  ;;  %v9803_v37 = vld [vmem:[#allocation9 + $0x40] sm:$0xf]  ;;  %v10919_v14 = vld [vmem:[#allocation9 + $0x4c] sm:$0xf0] }
 0x5e3   :  { %v5191_v49 = vpop.f32.mrf.mxu0  ;;  %v5204_v19 = vpop.f32.mrf.mxu1  ;;  %v5203_v57 = vadd.f32 %v11877_v45, %v4989_v28  ;;  %v9852_v45 = vor.u32 %v10931_v62, %v9851_v7  ;;  %v10923_v28 = vld [vmem:[#allocation9 + $0x6c] sm:$0xf0]  ;;  %v9787_v62 = vld [vmem:[#allocation9 + $0x20] sm:$0xf] }
 0x5e4   :  { %v10939_v49 = vld [vmem:[#allocation9 + $0xec] sm:$0xf0]  ;;  %v10937_v19 = vld [vmem:[#allocation9 + $0xe4] sm:$0xf]  ;;  %6233 = vmatpush.bf16.msrb.mxu0 %v9876_v4  ;;  %v9820_v26 = vor.u32 %v10923_v28, %v9819_v17 }
 0x5e5   :  { %v9884_v40 = vor.u32 %v10939_v49, %v9883_v30  ;;  %v9888_v54 = vor.u32 %v10937_v19, %v9885_v34  ;;  %v10926_v19 = vld [vmem:[#allocation9 + $0x8c] sm:$0xf]  ;;  %v9845_v34 = vld [vmem:[#allocation9 + $0x98] sm:$0xf0] }
 0x5e6   :  { %v9848_v31 = vor.u32 %v10926_v19, %v9845_v34  ;;  %v10910_v34 = vld [vmem:[#allocation9 + $0xc] sm:$0xf] }
 0x5e7   :  { %6206 = vmatpush.bf16.msra.mxu2 %v9884_v40  ;;  %6219 = vmatpush.bf16.msra.mxu3 %v9888_v54  ;;  %v9821_v40 = vld [vmem:[#allocation9 + $0x70] sm:$0xf0]  ;;  %v10922_v54 = vld [vmem:[#allocation9 + $0x6c] sm:$0xf] }
 0x5e8   :  { %v5165_v36 = vpop.f32.mrf.mxu2  ;;  %v5178_v2 = vpop.f32.mrf.mxu3  ;;  %6234 = vmatpush.bf16.msrb.mxu0 %v9860_v29  ;;  %v10911_v29 = vld [vmem:[#allocation9 + $0xc] sm:$0xf0] }
 0x5e9   :  { %v10934_v36 = vld [vmem:[#allocation9 + $0xcc] sm:$0xf]  ;;  %v9877_v2 = vld [vmem:[#allocation9 + $0xd8] sm:$0xf0] }
 0x5ea   :  { %v9880_v9 = vor.u32 %v10934_v36, %v9877_v2  ;;  %v9811_v36 = vld [vmem:[#allocation9 + $0x48] sm:$0xf]  ;;  %v10920_v2 = vld [vmem:[#allocation9 + $0x54] sm:$0xf0] }
 0x5eb   :  { %v5433_v41 = vpop.f32.mrf.mxu0  ;;  %v11891_v22 = vpop.f32.mrf.mxu1  ;;  %6207 = vmatpush.bf16.msra.mxu2 %v9868_v56  ;;  %6220 = vmatpush.bf16.msra.mxu3 %v9872_v61  ;;  %v9813_v56 = vld [vmem:[#allocation9 + $0x58] sm:$0xf0]  ;;  %v9804_v61 = vor.u32 %v10919_v14, %v9803_v37  ;;  %v9812_v7 = vor.u32 %v10920_v2, %v9811_v36 }
 0x5ec   :  { %v5452_v48 = vadd.f32 %v5433_v41, %v5190_v46  ;;  %v5453_v13 = vadd.f32 %v11891_v22, %v5203_v57  ;;  %v10930_v41 = vld [vmem:[#allocation9 + $0xac] sm:$0xf]  ;;  %6246 = vmatpush.bf16.msrb.mxu1 %v9880_v9  ;;  %v9843_v22 = vld [vmem:[#allocation9 + $0x88] sm:$0xf]  ;;  %v10913_v9 = vld [vmem:[#allocation9 + $0x24] sm:$0xf] }
 0x5ed   :  { %v9844_v46 = vor.u32 %v10928_v24, %v9843_v22  ;;  %v9792_v10 = vor.u32 %v10913_v9, %v9789_v12  ;;  %v10011_v12 = vld [vmem:[#allocation11 + $0xe0] sm:$0xf] }
 0x5ef   :  { %6208 = vmatpush.bf16.msra.mxu2 %v9852_v45  ;;  %6221 = vmatpush.bf16.msra.mxu3 %v9856_v21  ;;  %v9771_v21 = vld [vmem:[#allocation9] sm:$0xf] }
 0x5f0   :  { %v5407_v16 = vpop.f32.mrf.mxu2  ;;  %v5420_v47 = vpop.f32.mrf.mxu3  ;;  %6235 = vmatpush.bf16.msrb.mxu0 %v9844_v46  ;;  %v9772_v24 = vor.u32 %v10911_v29, %v9771_v21  ;;  %v9995_v29 = vld [vmem:[#allocation11 + $0xc0] sm:$0xf] }
 0x5f1   :  { %v5450_v25 = vadd.f32 %v5407_v16, %v5164_v58  ;;  %v5451_v59 = vadd.f32 %v5420_v47, %v5177_v55  ;;  %v9864_v58 = vor.u32 %v10930_v41, %v9861_v27  ;;  %v10921_v16 = vld [vmem:[#allocation9 + $0x64] sm:$0xf]  ;;  %v9788_v27 = vor.u32 %v10915_v8, %v9787_v62 }
 0x5f2   :  { %v9824_v3 = vor.u32 %v10921_v16, %v9821_v40  ;;  %v5722_v40 = vld [vmem:[#allocation2 + $0x20] sm:$0xc0] }
 0x5f3   :  { %11157 = vtanh.f32 %v5450_v25  ;;  %v5435_v1 = vpop.f32.mrf.mxu0  ;;  %v5448_v35 = vpop.f32.mrf.mxu1  ;;  %6247 = vmatpush.bf16.msrb.mxu1 %v9864_v58  ;;  %v10924_v25 = vld [vmem:[#allocation9 + $0x74] sm:$0xf0]  ;;  %6209 = vmatpush.bf16.msra.mxu2 %v9836_v42 }
 0x5f4   :  { %11159 = vtanh.f32 %v5451_v59  ;;  %6222 = vmatpush.bf16.msra.mxu3 %v9840_v52  ;;  %v9828_v53 = vor.u32 %v10924_v25, %v9827_v38  ;;  %v9832_v1 = vor.u32 %v10922_v54, %v9829_v5  ;;  %v9805_v35 = vld [vmem:[#allocation9 + $0x50] sm:$0xf0]  ;;  %v5723_v5 = vld [vmem:[#allocation2 + $0x28] sm:$0xc0] }
 0x5f5   :  { %11161 = vtanh.f32 %v5452_v48  ;;  %v10917_v48 = vld [vmem:[#allocation9 + $0x44] sm:$0xf] }
 0x5f6   :  { %11163 = vtanh.f32 %v5453_v13  ;;  %6236 = vmatpush.bf16.msrb.mxu0 %v9828_v53  ;;  %v9808_v4 = vor.u32 %v10917_v48, %v9805_v35  ;;  %v10916_v13 = vld [vmem:[#allocation9 + $0x34] sm:$0xf0] }
 0x5f7   :  { %6248 = vmatpush.bf16.msrb.mxu1 %v9848_v31  ;;  %6210 = vmatpush.bf16.msra.mxu2 %v9820_v26  ;;  %v5721_v31 = vld [vmem:[#allocation2 + $0x8] sm:$0xc0] }
 0x5f8   :  { %v5409_v6 = vpop.f32.mrf.mxu2  ;;  %v5422_v18 = vpop.f32.mrf.mxu3  ;;  %6223 = vmatpush.bf16.msra.mxu3 %v9824_v3  ;;  %v5724_v3 = vld [vmem:[#allocation2 + $0x38] sm:$0xc0] }
 0x5f9   :  { %v11158_v0 = vpop.eup %11157  ;;  %v10914_v6 = vld [vmem:[#allocation9 + $0x2c] sm:$0xf]  ;;  %v9797_v18 = vld [vmem:[#allocation9 + $0x38] sm:$0xf0] }
 0x5fa   :  { %v11160_v39 = vpop.eup %11159  ;;  %v5458_v30 = vmul.f32 0.5, %v11158_v0  ;;  %6237 = vmatpush.bf16.msrb.mxu0 %v9812_v7  ;;  %v9796_v0 = vor.u32 %v10916_v13, %v9795_v60  ;;  %v9800_v22 = vor.u32 %v10914_v6, %v9797_v18  ;;  %v10971_v60 = vld [vmem:[#allocation11 + $0xec] sm:$0xf0]  ;;  %v10019_v6 = vld [vmem:[#allocation11 + $0xe8] sm:$0xf] }
 0x5fb   :  { %v5460_v49 = vmul.f32 0.5, %v11160_v39  ;;  %v11162_v44 = vpop.eup %11161  ;;  %6249 = vmatpush.bf16.msrb.mxu1 %v9832_v1  ;;  %6211 = vmatpush.bf16.msra.mxu2 %v9804_v61  ;;  %v9779_v39 = vld [vmem:[#allocation9 + $0x8] sm:$0xf]  ;;  %v10012_v13 = vor.u32 %v10971_v60, %v10011_v12  ;;  %v9949_v12 = vld [vmem:[#allocation11 + $0x70] sm:$0xf0] }
 0x5fc   :  { %v5459_v55 = vadd.f32 0.5, %v5458_v30  ;;  %v11164_v15 = vpop.eup %11163  ;;  %6224 = vmatpush.bf16.msra.mxu3 %v9808_v4  ;;  %v10912_v30 = vld [vmem:[#allocation9 + $0x14] sm:$0xf0]  ;;  %v9955_v60 = vld [vmem:[#allocation11 + $0x68] sm:$0xf] }
 0x5fd   :  { %v5461_v23 = vadd.f32 0.5, %v5460_v49  ;;  %v5462_v57 = vmul.f32 0.5, %v11164_v15  ;;  %v9776_v49 = vor.u32 %v10909_v20, %v9773_v33  ;;  %v9780_v19 = vor.u32 %v10912_v30, %v9779_v39  ;;  %v10967_v20 = vld [vmem:[#allocation11 + $0xcc] sm:$0xf0]  ;;  %v9997_v39 = vld [vmem:[#allocation11 + $0xd0] sm:$0xf0] }
 0x5fe   :  { %v5465_v47 = vmul.f32 %v11162_v44, %v5459_v55  ;;  %6238 = vmatpush.bf16.msrb.mxu0 %v9796_v0  ;;  %v9781_v55 = vld [vmem:[#allocation9 + $0x18] sm:$0xf0]  ;;  %v9996_v33 = vor.u32 %v10967_v20, %v9995_v29  ;;  %v10003_v30 = vld [vmem:[#allocation11 + $0xc8] sm:$0xf] }
 0x5ff   :  { %v5464_v59 = vmul.f32 %v5461_v23, %v11853_v51  ;;  %v10918_v51 = vld [vmem:[#allocation9 + $0x4c] sm:$0xf]  ;;  %v5463_v41 = vadd.f32 0.5, %v5462_v57  ;;  %6212 = vmatpush.bf16.msra.mxu2 %v9788_v27  ;;  %v9784_v17 = vor.u32 %v10910_v34, %v9781_v55  ;;  %v10013_v27 = vld [vmem:[#allocation11 + $0xf0] sm:$0xf0] }
 0x600   :  { %v9816_v11 = vor.u32 %v10918_v51, %v9813_v56  ;;  %6225 = vmatpush.bf16.msra.mxu3 %v9792_v10  ;;  %v5752_v56 = vrot.slane %v11866_v43, 6  ;;  %v10970_v10 = vld [vmem:[#allocation11 + $0xec] sm:$0xf]  ;;  %v10021_v43 = vld [vmem:[#allocation11 + $0xf8] sm:$0xf0] }
 0x601   :  { %v11904_v63 = vadd.f32 %v5465_v47, %v5464_v59  ;;  %v10024_v21 = vor.u32 %v10970_v10, %v10021_v43  ;;  %v9979_v55 = vld [vmem:[#allocation11 + $0xa0] sm:$0xf]  ;;  %v10951_v43 = vld [vmem:[#allocation11 + $0x4c] sm:$0xf0] }
 0x602   :  { %6250 = vmatpush.bf16.msrb.mxu1 %v9816_v11  ;;  %6239 = vmatpush.bf16.msrb.mxu0 %v9780_v19  ;;  %v10005_v19 = vld [vmem:[#allocation11 + $0xd8] sm:$0xf0] }
 0x603   :  { %11165 = vtanh.f32 %v11904_v63  ;;  %6213 = vmatpush.bf16.msra.mxu2 %v9772_v24 }
 0x604   :  { %6226 = vmatpush.bf16.msra.mxu3 %v9776_v49  ;;  %v10966_v49 = vld [vmem:[#allocation11 + $0xcc] sm:$0xf] }
 0x605   :  { %v10008_v34 = vor.u32 %v10966_v49, %v10005_v19  ;;  %v9915_v49 = vld [vmem:[#allocation11 + $0x20] sm:$0xf]  ;;  %v10947_v19 = vld [vmem:[#allocation11 + $0x2c] sm:$0xf0] }
 0x606   :  { %6251 = vmatpush.bf16.msrb.mxu1 %v9800_v22 }
 0x609   :  { %v11166_v45 = vpop.eup %11165 }
 0x60a   :  { %v5468_v32 = vmul.f32 %v11166_v45, %v5463_v41  ;;  %6252 = vmatpush.bf16.msrb.mxu1 %v9784_v17  ;;  %v10969_v41 = vld [vmem:[#allocation11 + $0xe4] sm:$0xf]  ;;  %v10972_v45 = vld [vmem:[#allocation11 + $0xf4] sm:$0xf0] }
 0x60b   :  { %v10016_v18 = vor.u32 %v10969_v41, %v10013_v27  ;;  %v10020_v0 = vor.u32 %v10972_v45, %v10019_v6  ;;  %v10961_v17 = vld [vmem:[#allocation11 + $0xa4] sm:$0xf]  ;;  %v10954_v6 = vld [vmem:[#allocation11 + $0x6c] sm:$0xf]  ;;  %v9931_v45 = vld [vmem:[#allocation11 + $0x40] sm:$0xf] }
 0x60c   :  { %v5469_v58 = vpack.c.bf16 %v5468_v32, %v5468_v32  ;;  %v10965_v32 = vld [vmem:[#allocation11 + $0xc4] sm:$0xf]  ;;  %v9932_v29 = vor.u32 %v10951_v43, %v9931_v45  ;;  %v10123_v43 = vld [vmem:[#allocation9 + $0xc0] sm:$0xf] }
 0x60d   :  { %v10000_v22 = vor.u32 %v10965_v32, %v9997_v39  ;;  %v9939_v32 = vld [vmem:[#allocation11 + $0x48] sm:$0xf]  ;;  %v10950_v39 = vld [vmem:[#allocation11 + $0x4c] sm:$0xf] }
 0x60e   :  { %v5471_v42 = vrot.slane %v5469_v58, 7  ;;  %5970 = vmatmul.bf16.vlgmr.msrb.gmra.mxu2 %v5469_v58  ;;  %5983 = vmatmul.bf16.vlgmr.msrb.gmra.mxu3 %v5469_v58 }
 0x60f   :  { %5996 = vmatmul.bf16.vlgmr.msra.gmra.mxu0 %v5469_v58  ;;  %6009 = vmatmul.bf16.vlgmr.msra.gmra.mxu1 %v5469_v58  ;;  %v10968_v58 = vld [vmem:[#allocation11 + $0xd4] sm:$0xf0] }
 0x610   :  { %5473 = vst [vmem:[#allocation3 + $0x4] sm:$0x2] %v5471_v42  ;;  %6484 = vmatpush.bf16.msrb.mxu2 %v10012_v13  ;;  %6497 = vmatpush.bf16.msrb.mxu3 %v10016_v18  ;;  %v10004_v24 = vor.u32 %v10968_v58, %v10003_v30  ;;  %v10963_v42 = vld [vmem:[#allocation11 + $0xac] sm:$0xf0]  ;;  %v10956_v13 = vld [vmem:[#allocation11 + $0x74] sm:$0xf0] }
 0x611   :  { %6510 = vmatpush.bf16.msra.mxu0 %v10020_v0  ;;  %6523 = vmatpush.bf16.msra.mxu1 %v10024_v21  ;;  %v9956_v27 = vor.u32 %v10956_v13, %v9955_v60  ;;  %v9957_v18 = vld [vmem:[#allocation11 + $0x78] sm:$0xf0]  ;;  %v10949_v0 = vld [vmem:[#allocation11 + $0x44] sm:$0xf]  ;;  %v9933_v21 = vld [vmem:[#allocation11 + $0x50] sm:$0xf0] }
 0x612   :  { %v9960_v10 = vor.u32 %v10954_v6, %v9957_v18  ;;  %v9936_v20 = vor.u32 %v10949_v0, %v9933_v21  ;;  %v11002_v60 = vld [vmem:[#allocation9 + $0xec] sm:$0xf]  ;;  %v10149_v18 = vld [vmem:[#allocation9 + $0xf8] sm:$0xf0]  ;;  %v10999_v0 = vld [vmem:[#allocation9 + $0xcc] sm:$0xf0] }
 0x613   :  { %v10997_v21 = vld [vmem:[#allocation9 + $0xc4] sm:$0xf] }
 0x614   :  { %6485 = vmatpush.bf16.msrb.mxu2 %v9996_v33  ;;  %6498 = vmatpush.bf16.msrb.mxu3 %v10000_v22  ;;  %v10952_v33 = vld [vmem:[#allocation11 + $0x54] sm:$0xf0] }
 0x615   :  { %6511 = vmatpush.bf16.msra.mxu0 %v10004_v24  ;;  %6524 = vmatpush.bf16.msra.mxu1 %v10008_v34  ;;  %v9940_v22 = vor.u32 %v10952_v33, %v9939_v32  ;;  %v9941_v24 = vld [vmem:[#allocation11 + $0x58] sm:$0xf0]  ;;  %v10131_v32 = vld [vmem:[#allocation9 + $0xc8] sm:$0xf] }
 0x616   :  { %v9944_v34 = vor.u32 %v10950_v39, %v9941_v24  ;;  %v10998_v39 = vld [vmem:[#allocation9 + $0xcc] sm:$0xf] }
 0x61e   :  { %6214 = vmatmul.bf16.vlgmr.msra.gmra.mxu2 %v11869_v50  ;;  %6227 = vmatmul.bf16.vlgmr.msra.gmra.mxu3 %v11869_v50 }
 0x61f   :  { %6240 = vmatmul.bf16.vlgmr.msrb.gmra.mxu0 %v11869_v50  ;;  %6253 = vmatmul.bf16.vlgmr.msrb.gmra.mxu1 %v11869_v50 }
 0x62f   :  { %v5704_v44 = vpop.f32.mrf.mxu0  ;;  %v5717_v23 = vpop.f32.mrf.mxu1 }
 0x630   :  { %v5731_v28 = vrot.slane %v5704_v44, 2  ;;  %v5732_v15 = vrot.slane %v5717_v23, 2  ;;  %v9980_v44 = vor.u32 %v10963_v42, %v9979_v55  ;;  %v9981_v23 = vld [vmem:[#allocation11 + $0xb0] sm:$0xf0]  ;;  %v10945_v55 = vld [vmem:[#allocation11 + $0x24] sm:$0xf] }
 0x631   :  { %v9917_v42 = vld [vmem:[#allocation11 + $0x30] sm:$0xf0] }
 0x632   :  { %v5739_v26 = vadd.f32 %v5731_v28, %v5723_v5  ;;  %v5740_v37 = vadd.f32 %v5732_v15, %v5724_v3  ;;  %v9984_v28 = vor.u32 %v10961_v17, %v9981_v23  ;;  %6486 = vmatpush.bf16.msrb.mxu2 %v9980_v44  ;;  %v9965_v5 = vld [vmem:[#allocation11 + $0x90] sm:$0xf0]  ;;  %v10960_v15 = vld [vmem:[#allocation11 + $0x94] sm:$0xf0]  ;;  %v9923_v17 = vld [vmem:[#allocation11 + $0x28] sm:$0xf]  ;;  %v9916_v44 = vor.u32 %v10947_v19, %v9915_v49 }
 0x633   :  { %v10948_v23 = vld [vmem:[#allocation11 + $0x34] sm:$0xf0]  ;;  %v10107_v19 = vld [vmem:[#allocation9 + $0xa0] sm:$0xf] }
 0x634   :  { %v5678_v52 = vpop.f32.mrf.mxu2  ;;  %v5691_v46 = vpop.f32.mrf.mxu3  ;;  %6499 = vmatpush.bf16.msrb.mxu3 %v9984_v28 }
 0x635   :  { %v5729_v16 = vrot.slane %v5678_v52, 2  ;;  %v5730_v47 = vrot.slane %v5691_v46, 2  ;;  %v9987_v52 = vld [vmem:[#allocation11 + $0xa8] sm:$0xf]  ;;  %v10964_v46 = vld [vmem:[#allocation11 + $0xb4] sm:$0xf0] }
 0x637   :  { %v5737_v38 = vadd.f32 %v5729_v16, %v5721_v31  ;;  %v5738_v25 = vadd.f32 %v5730_v47, %v5722_v40  ;;  %v5706_v59 = vpop.f32.mrf.mxu0  ;;  %v5719_v54 = vpop.f32.mrf.mxu1  ;;  %v9988_v16 = vor.u32 %v10964_v46, %v9987_v52  ;;  %v10962_v47 = vld [vmem:[#allocation11 + $0xac] sm:$0xf]  ;;  %v9989_v31 = vld [vmem:[#allocation11 + $0xb8] sm:$0xf0] }
 0x638   :  { %v9992_v40 = vor.u32 %v10962_v47, %v9989_v31  ;;  %v10957_v59 = vld [vmem:[#allocation11 + $0x84] sm:$0xf]  ;;  %v10946_v52 = vld [vmem:[#allocation11 + $0x2c] sm:$0xf]  ;;  %v9925_v46 = vld [vmem:[#allocation11 + $0x38] sm:$0xf0]  ;;  %v9920_v47 = vor.u32 %v10945_v55, %v9917_v42  ;;  %v9924_v31 = vor.u32 %v10948_v23, %v9923_v17 }
 0x639   :  { %11167 = vtanh.f32 %v5737_v38  ;;  %6512 = vmatpush.bf16.msra.mxu0 %v9988_v16  ;;  %v9963_v38 = vld [vmem:[#allocation11 + $0x80] sm:$0xf]  ;;  %v9968_v3 = vor.u32 %v10957_v59, %v9965_v5  ;;  %v9928_v59 = vor.u32 %v10946_v52, %v9925_v46  ;;  %v9907_v5 = vld [vmem:[#allocation11 + $0x8] sm:$0xf]  ;;  %v10993_v55 = vld [vmem:[#allocation9 + $0xa4] sm:$0xf] }
 0x63a   :  { %11169 = vtanh.f32 %v5738_v25  ;;  %6525 = vmatpush.bf16.msra.mxu1 %v9992_v40  ;;  %v10959_v25 = vld [vmem:[#allocation11 + $0x8c] sm:$0xf0]  ;;  %v9899_v40 = vld [vmem:[#allocation11] sm:$0xf]  ;;  %v10109_v17 = vld [vmem:[#allocation9 + $0xb0] sm:$0xf0] }
 0x63b   :  { %11171 = vtanh.f32 %v5739_v26  ;;  %v9964_v54 = vor.u32 %v10959_v25, %v9963_v38  ;;  %v9971_v26 = vld [vmem:[#allocation11 + $0x88] sm:$0xf]  ;;  %6500 = vmatpush.bf16.msrb.mxu3 %v9968_v3  ;;  %v10943_v38 = vld [vmem:[#allocation11 + $0xc] sm:$0xf0]  ;;  %v10941_v25 = vld [vmem:[#allocation11 + $0x4] sm:$0xf] }
 0x63c   :  { %v5680_v50 = vpop.f32.mrf.mxu2  ;;  %v5693_v53 = vpop.f32.mrf.mxu3  ;;  %11173 = vtanh.f32 %v5740_v37  ;;  %v9973_v37 = vld [vmem:[#allocation11 + $0x98] sm:$0xf0]  ;;  %v10996_v23 = vld [vmem:[#allocation9 + $0xb4] sm:$0xf0]  ;;  %v10994_v46 = vld [vmem:[#allocation9 + $0xac] sm:$0xf] }
 0x63d   :  { %v9972_v50 = vor.u32 %v10960_v15, %v9971_v26  ;;  %v10958_v53 = vld [vmem:[#allocation11 + $0x8c] sm:$0xf]  ;;  %6487 = vmatpush.bf16.msrb.mxu2 %v9964_v54  ;;  %v9901_v54 = vld [vmem:[#allocation11 + $0x10] sm:$0xf0]  ;;  %v10944_v26 = vld [vmem:[#allocation11 + $0x14] sm:$0xf0] }
 0x63e   :  { %v10942_v15 = vld [vmem:[#allocation11 + $0xc] sm:$0xf]  ;;  %v9909_v3 = vld [vmem:[#allocation11 + $0x18] sm:$0xf0] }
 0x63f   :  { %v11168_v14 = vpop.eup %11167  ;;  %6513 = vmatpush.bf16.msra.mxu0 %v9972_v50  ;;  %v10139_v50 = vld [vmem:[#allocation9 + $0xe0] sm:$0xf] }
 0x640   :  { %v11170_v48 = vpop.eup %11169  ;;  %v5745_v1 = vmul.f32 0.5, %v11168_v14 }
 0x641   :  { %v5747_v35 = vmul.f32 0.5, %v11170_v48  ;;  %v11172_v2 = vpop.eup %11171 }
 0x642   :  { %v5746_v36 = vadd.f32 0.5, %v5745_v1  ;;  %v11174_v4 = vpop.eup %11173  ;;  %v9976_v1 = vor.u32 %v10958_v53, %v9973_v37  ;;  %v9900_v37 = vor.u32 %v10943_v38, %v9899_v40  ;;  %v10091_v40 = vld [vmem:[#allocation9 + $0x80] sm:$0xf] }
 0x643   :  { %v5748_v51 = vadd.f32 0.5, %v5747_v35  ;;  %v5749_v62 = vmul.f32 0.5, %v11174_v4  ;;  %v11921_v35 = vld [vmem:[%s11974_s7] sm:$0xf]  ;;  %6514 = vmatpush.bf16.msra.mxu0 %v9956_v27  ;;  %v9912_v27 = vor.u32 %v10942_v15, %v9909_v3 }
 0x644   :  { %v5755_v57 = vmul.f32 %v11172_v2, %v5746_v36  ;;  %6526 = vmatpush.bf16.msra.mxu1 %v9976_v1  ;;  %v11003_v1 = vld [vmem:[#allocation9 + $0xec] sm:$0xf0] }
 0x645   :  { %v5754_v61 = vmul.f32 %v5752_v56, %v5748_v51  ;;  %v5750_v8 = vadd.f32 0.5, %v5749_v62  ;;  %v5796_v51 = vperm.slane %v11921_v35, 2  ;;  %v5794_v56 = vperm.slane %v11921_v35, 0  ;;  %v10955_v62 = vld [vmem:[#allocation11 + $0x6c] sm:$0xf0] }
 0x646   :  { %v10140_v6 = vor.u32 %v11003_v1, %v10139_v50  ;;  %v10990_v1 = vld [vmem:[#allocation9 + $0x8c] sm:$0xf] }
 0x647   :  { %v5756_v7 = vadd.f32 %v5755_v57, %v5754_v61  ;;  %v5795_v57 = vperm.slane %v11921_v35, 1  ;;  %6515 = vmatpush.bf16.msra.mxu0 %v9940_v22 }
 0x648   :  { %6527 = vmatpush.bf16.msra.mxu1 %v9960_v10 }
 0x649   :  { %11175 = vtanh.f32 %v5756_v7  ;;  %v9947_v7 = vld [vmem:[#allocation11 + $0x60] sm:$0xf] }
 0x64b   :  { %6516 = vmatpush.bf16.msra.mxu0 %v9924_v31 }
 0x64c   :  { %6528 = vmatpush.bf16.msra.mxu1 %v9944_v34  ;;  %v10995_v34 = vld [vmem:[#allocation9 + $0xac] sm:$0xf0] }
 0x64f   :  { %v11176_v9 = vpop.eup %11175 }
 0x650   :  { %v11912_v11 = vmul.f32 %v11176_v9, %v5750_v8  ;;  %v10953_v8 = vld [vmem:[#allocation11 + $0x64] sm:$0xf]  ;;  %v9948_v9 = vor.u32 %v10955_v62, %v9947_v7  ;;  %v9904_v62 = vor.u32 %v10941_v25, %v9901_v54  ;;  %6529 = vmatpush.bf16.msra.mxu1 %v9928_v59  ;;  %v10112_v25 = vor.u32 %v10993_v55, %v10109_v17  ;;  %v10991_v54 = vld [vmem:[#allocation9 + $0x8c] sm:$0xf0]  ;;  %v10045_v17 = vld [vmem:[#allocation9 + $0x30] sm:$0xf0] }
 0x651   :  { %v9952_v41 = vor.u32 %v10953_v8, %v9949_v12  ;;  %v9908_v8 = vor.u32 %v10944_v26, %v9907_v5  ;;  %v11004_v12 = vld [vmem:[#allocation9 + $0xf4] sm:$0xf0]  ;;  %v10989_v5 = vld [vmem:[#allocation9 + $0x84] sm:$0xf]  ;;  %v10093_v26 = vld [vmem:[#allocation9 + $0x90] sm:$0xf0] }
 0x652   :  { %6488 = vmatpush.bf16.msrb.mxu2 %v9948_v9  ;;  %v10147_v9 = vld [vmem:[#allocation9 + $0xe8] sm:$0xf]  ;;  %v10977_v55 = vld [vmem:[#allocation9 + $0x24] sm:$0xf] }
 0x653   :  { %6501 = vmatpush.bf16.msrb.mxu3 %v9952_v41  ;;  %v10148_v10 = vor.u32 %v11004_v12, %v10147_v9  ;;  %6517 = vmatpush.bf16.msra.mxu0 %v9908_v8  ;;  %v10096_v12 = vor.u32 %v10989_v5, %v10093_v26  ;;  %v10029_v5 = vld [vmem:[#allocation9 + $0x10] sm:$0xf0]  ;;  %v10035_v26 = vld [vmem:[#allocation9 + $0x8] sm:$0xf] }
 0x654   :  { %6530 = vmatpush.bf16.msra.mxu1 %v9912_v27  ;;  %v10077_v27 = vld [vmem:[#allocation9 + $0x70] sm:$0xf0] }
 0x656   :  { %6489 = vmatpush.bf16.msrb.mxu2 %v9932_v29  ;;  %v10152_v29 = vor.u32 %v11002_v60, %v10149_v18  ;;  %v10988_v18 = vld [vmem:[#allocation9 + $0x74] sm:$0xf0] }
 0x657   :  { %6502 = vmatpush.bf16.msrb.mxu3 %v9936_v20  ;;  %v10125_v20 = vld [vmem:[#allocation9 + $0xd0] sm:$0xf0]  ;;  %6757 = vmatpush.bf16.msrb.mxu0 %v10148_v10 }
 0x658   :  { %v10128_v24 = vor.u32 %v10997_v21, %v10125_v20  ;;  %6770 = vmatpush.bf16.msrb.mxu1 %v10152_v29  ;;  %v10059_v20 = vld [vmem:[#allocation9 + $0x40] sm:$0xf] }
 0x65a   :  { %6490 = vmatpush.bf16.msrb.mxu2 %v9916_v44  ;;  %v10115_v44 = vld [vmem:[#allocation9 + $0xa8] sm:$0xf] }
 0x65b   :  { %6503 = vmatpush.bf16.msrb.mxu3 %v9920_v47  ;;  %v10116_v59 = vor.u32 %v10996_v23, %v10115_v44  ;;  %v10051_v44 = vld [vmem:[#allocation9 + $0x28] sm:$0xf]  ;;  %v10980_v23 = vld [vmem:[#allocation9 + $0x34] sm:$0xf0] }
 0x65e   :  { %6491 = vmatpush.bf16.msrb.mxu2 %v9900_v37 }
 0x65f   :  { %6504 = vmatpush.bf16.msrb.mxu3 %v9904_v62  ;;  %v10075_v62 = vld [vmem:[#allocation9 + $0x60] sm:$0xf] }
 0x662   :  { %6731 = vmatpush.bf16.msra.mxu2 %v10140_v6  ;;  %v10083_v6 = vld [vmem:[#allocation9 + $0x68] sm:$0xf] }
 0x663   :  { %v10084_v29 = vor.u32 %v10988_v18, %v10083_v6  ;;  %v6314_v6 = vld [vmem:[%s11974_s7] sm:$0xf] }
 0x664   :  { %v6316_v18 = vperm.slane %v6314_v6, 0 }
 0x68c   :  { %v11914_v14 = vpop.f32.mrf.mxu0  ;;  %v11916_v48 = vpop.f32.mrf.mxu1 }
 0x691   :  { %v11923_v36 = vpop.f32.mrf.mxu2  ;;  %v11925_v2 = vpop.f32.mrf.mxu3 }
 0x692   :  { %v5972_v53 = vadd.f32 %v11923_v36, %v5794_v56  ;;  %v5985_v7 = vadd.f32 %v11925_v2, %v5795_v57  ;;  %v5998_v36 = vadd.f32 %v11914_v14, %v5796_v51  ;;  %v5797_v56 = vperm.slane %v11921_v35, 3  ;;  %v11000_v14 = vld [vmem:[#allocation9 + $0xd4] sm:$0xf0] }
 0x693   :  { %v10132_v49 = vor.u32 %v11000_v14, %v10131_v32  ;;  %v10983_v32 = vld [vmem:[#allocation9 + $0x4c] sm:$0xf0]  ;;  %v10981_v14 = vld [vmem:[#allocation9 + $0x44] sm:$0xf] }
 0x694   :  { %v5999_v61 = vpop.f32.mrf.mxu0  ;;  %v6012_v4 = vpop.f32.mrf.mxu1  ;;  %v6011_v22 = vadd.f32 %v11916_v48, %v5797_v56  ;;  %v10108_v48 = vor.u32 %v10995_v34, %v10107_v19  ;;  %v10985_v56 = vld [vmem:[#allocation9 + $0x64] sm:$0xf]  ;;  %v10043_v19 = vld [vmem:[#allocation9 + $0x20] sm:$0xf]  ;;  %v10979_v34 = vld [vmem:[#allocation9 + $0x2c] sm:$0xf0] }
 0x695   :  { %v11001_v61 = vld [vmem:[#allocation9 + $0xe4] sm:$0xf]  ;;  %v10141_v4 = vld [vmem:[#allocation9 + $0xf0] sm:$0xf0]  ;;  %6758 = vmatpush.bf16.msrb.mxu0 %v10132_v49  ;;  %v10080_v21 = vor.u32 %v10985_v56, %v10077_v27 }
 0x696   :  { %v10144_v45 = vor.u32 %v11001_v61, %v10141_v4  ;;  %v10101_v61 = vld [vmem:[#allocation9 + $0x98] sm:$0xf0] }
 0x698   :  { %6744 = vmatpush.bf16.msra.mxu3 %v10144_v45  ;;  %v10085_v45 = vld [vmem:[#allocation9 + $0x78] sm:$0xf0] }
 0x699   :  { %v5973_v30 = vpop.f32.mrf.mxu2  ;;  %v5986_v58 = vpop.f32.mrf.mxu3  ;;  %6759 = vmatpush.bf16.msrb.mxu0 %v10116_v59  ;;  %v10973_v59 = vld [vmem:[#allocation9 + $0x4] sm:$0xf] }
 0x69a   :  { %v10133_v30 = vld [vmem:[#allocation9 + $0xd8] sm:$0xf0]  ;;  %v10124_v58 = vor.u32 %v10999_v0, %v10123_v43 }
 0x69b   :  { %v10136_v42 = vor.u32 %v10998_v39, %v10133_v30  ;;  %v10984_v39 = vld [vmem:[#allocation9 + $0x54] sm:$0xf0]  ;;  %v10069_v30 = vld [vmem:[#allocation9 + $0x58] sm:$0xf0] }
 0x69c   :  { %v6241_v28 = vpop.f32.mrf.mxu0  ;;  %v11930_v16 = vpop.f32.mrf.mxu1  ;;  %6732 = vmatpush.bf16.msra.mxu2 %v10124_v58  ;;  %6745 = vmatpush.bf16.msra.mxu3 %v10128_v24 }
 0x69d   :  { %v6260_v51 = vadd.f32 %v6241_v28, %v5998_v36  ;;  %v6261_v52 = vadd.f32 %v11930_v16, %v6011_v22  ;;  %v10117_v28 = vld [vmem:[#allocation9 + $0xb8] sm:$0xf0]  ;;  %6771 = vmatpush.bf16.msrb.mxu1 %v10136_v42  ;;  %v10099_v16 = vld [vmem:[#allocation9 + $0x88] sm:$0xf]  ;;  %v10987_v36 = vld [vmem:[#allocation9 + $0x6c] sm:$0xf0]  ;;  %v10060_v22 = vor.u32 %v10983_v32, %v10059_v20 }
 0x69e   :  { %v10120_v50 = vor.u32 %v10994_v46, %v10117_v28  ;;  %v10076_v10 = vor.u32 %v10987_v36, %v10075_v62  ;;  %v10044_v46 = vor.u32 %v10979_v34, %v10043_v19  ;;  %v10978_v28 = vld [vmem:[#allocation9 + $0x2c] sm:$0xf]  ;;  %v5759_v62 = vpack.c.bf16 %v11912_v11, %v11912_v11  ;;  %v10215_v32 = vld [vmem:[#allocation12 + $0x70] sm:$0xf] }
 0x69f   :  { %v10209_v19 = vld [vmem:[#allocation12 + $0x68] sm:$0xf0] }
 0x6a0   :  { %6733 = vmatpush.bf16.msra.mxu2 %v10108_v48  ;;  %6746 = vmatpush.bf16.msra.mxu3 %v10112_v25  ;;  %v10048_v48 = vor.u32 %v10977_v55, %v10045_v17  ;;  %v10975_v25 = vld [vmem:[#allocation9 + $0xc] sm:$0xf0] }
 0x6a1   :  { %v6215_v13 = vpop.f32.mrf.mxu2  ;;  %v6228_v41 = vpop.f32.mrf.mxu3  ;;  %6772 = vmatpush.bf16.msrb.mxu1 %v10120_v50 }
 0x6a2   :  { %v6258_v2 = vadd.f32 %v6215_v13, %v5972_v53  ;;  %v6259_v57 = vadd.f32 %v6228_v41, %v5985_v7  ;;  %v10992_v53 = vld [vmem:[#allocation9 + $0x94] sm:$0xf0]  ;;  %v10092_v7 = vor.u32 %v10991_v54, %v10091_v40  ;;  %v10104_v41 = vor.u32 %v10990_v1, %v10101_v61  ;;  %v10974_v1 = vld [vmem:[#allocation9 + $0xc] sm:$0xf]  ;;  %v10037_v61 = vld [vmem:[#allocation9 + $0x18] sm:$0xf0] }
 0x6a3   :  { %v10100_v60 = vor.u32 %v10992_v53, %v10099_v16  ;;  %v10052_v40 = vor.u32 %v10980_v23, %v10051_v44  ;;  %v10032_v53 = vor.u32 %v10973_v59, %v10029_v5  ;;  %v10199_v23 = vld [vmem:[#allocation12 + $0x50] sm:$0xf]  ;;  %v10191_v59 = vld [vmem:[#allocation12 + $0x40] sm:$0xf] }
 0x6a4   :  { %11177 = vtanh.f32 %v6258_v2  ;;  %v6243_v35 = vpop.f32.mrf.mxu0  ;;  %v6256_v33 = vpop.f32.mrf.mxu1  ;;  %6734 = vmatpush.bf16.msra.mxu2 %v10092_v7  ;;  %6747 = vmatpush.bf16.msra.mxu3 %v10096_v12  ;;  %v10040_v7 = vor.u32 %v10974_v1, %v10037_v61  ;;  %v10183_v61 = vld [vmem:[#allocation12 + $0x30] sm:$0xf] }
 0x6a5   :  { %11179 = vtanh.f32 %v6259_v57  ;;  %v10986_v57 = vld [vmem:[#allocation9 + $0x6c] sm:$0xf]  ;;  %6760 = vmatpush.bf16.msrb.mxu0 %v10100_v60  ;;  %6773 = vmatpush.bf16.msrb.mxu1 %v10104_v41  ;;  %v10061_v35 = vld [vmem:[#allocation9 + $0x50] sm:$0xf0]  ;;  %v10067_v33 = vld [vmem:[#allocation9 + $0x48] sm:$0xf] }
 0x6a6   :  { %11181 = vtanh.f32 %v6260_v51  ;;  %v10088_v51 = vor.u32 %v10986_v57, %v10085_v45  ;;  %v10064_v24 = vor.u32 %v10981_v14, %v10061_v35  ;;  %v10068_v49 = vor.u32 %v10984_v39, %v10067_v33  ;;  %v11021_v14 = vld [vmem:[#allocation12 + $0x74] sm:$0xf0] }
 0x6a7   :  { %11183 = vtanh.f32 %v6261_v52  ;;  %v6318_v45 = vperm.slane %v6314_v6, 2 }
 0x6a8   :  { %6735 = vmatpush.bf16.msra.mxu2 %v10076_v10  ;;  %6748 = vmatpush.bf16.msra.mxu3 %v10080_v21  ;;  %v6319_v10 = vperm.slane %v6314_v6, 3 }
 0x6a9   :  { %v6217_v47 = vpop.f32.mrf.mxu2  ;;  %v6230_v31 = vpop.f32.mrf.mxu3  ;;  %6761 = vmatpush.bf16.msrb.mxu0 %v10084_v29  ;;  %6774 = vmatpush.bf16.msrb.mxu1 %v10088_v51  ;;  %v11020_v51 = vld [vmem:[#allocation12 + $0x74] sm:$0xf] }
 0x6aa   :  { %v11178_v38 = vpop.eup %11177  ;;  %v10053_v47 = vld [vmem:[#allocation9 + $0x38] sm:$0xf0] }
 0x6ab   :  { %v11180_v15 = vpop.eup %11179  ;;  %v6266_v3 = vmul.f32 0.5, %v11178_v38  ;;  %v10027_v38 = vld [vmem:[#allocation9] sm:$0xf]  ;;  %v10056_v50 = vor.u32 %v10978_v28, %v10053_v47  ;;  %v11016_v28 = vld [vmem:[#allocation12 + $0x54] sm:$0xf] }
 0x6ac   :  { %v6268_v37 = vmul.f32 0.5, %v11180_v15  ;;  %v11182_v8 = vpop.eup %11181  ;;  %6736 = vmatpush.bf16.msra.mxu2 %v10060_v22  ;;  %6749 = vmatpush.bf16.msra.mxu3 %v10064_v24  ;;  %v10976_v15 = vld [vmem:[#allocation9 + $0x14] sm:$0xf0]  ;;  %v10028_v16 = vor.u32 %v10975_v25, %v10027_v38  ;;  %v11019_v22 = vld [vmem:[#allocation12 + $0x64] sm:$0xf0] }
 0x6ad   :  { %v6267_v4 = vadd.f32 0.5, %v6266_v3  ;;  %v11184_v43 = vpop.eup %11183  ;;  %6762 = vmatpush.bf16.msrb.mxu0 %v10068_v49  ;;  %v11018_v49 = vld [vmem:[#allocation12 + $0x64] sm:$0xf]  ;;  %v10201_v47 = vld [vmem:[#allocation12 + $0x58] sm:$0xf0] }
 0x6ae   :  { %v6269_v9 = vadd.f32 0.5, %v6268_v37  ;;  %v6270_v58 = vmul.f32 0.5, %v11184_v43  ;;  %v10036_v37 = vor.u32 %v10976_v15, %v10035_v26  ;;  %v10212_v44 = vor.u32 %v11018_v49, %v10209_v19  ;;  %v11014_v26 = vld [vmem:[#allocation12 + $0x44] sm:$0xf]  ;;  %v10193_v15 = vld [vmem:[#allocation12 + $0x48] sm:$0xf0] }
 0x6af   :  { %v6273_v13 = vmul.f32 %v11182_v8, %v6267_v4  ;;  %v6569_v8 = vrot.slane %v5759_v62, 3  ;;  %v10204_v25 = vor.u32 %v11016_v28, %v10201_v47  ;;  %v10196_v1 = vor.u32 %v11014_v26, %v10193_v15  ;;  %v6825_v19 = vld [vmem:[%s11976_s9] sm:$0x3] }
 0x6b0   :  { %v6272_v2 = vmul.f32 %v6269_v9, %v11904_v63  ;;  %v10982_v63 = vld [vmem:[#allocation9 + $0x4c] sm:$0xf]  ;;  %v6271_v52 = vadd.f32 0.5, %v6270_v58  ;;  %6737 = vmatpush.bf16.msra.mxu2 %v10044_v46  ;;  %6750 = vmatpush.bf16.msra.mxu3 %v10048_v48  ;;  %v10207_v58 = vld [vmem:[#allocation12 + $0x60] sm:$0xf] }
 0x6b1   :  { %v10072_v42 = vor.u32 %v10982_v63, %v10069_v30  ;;  %6763 = vmatpush.bf16.msrb.mxu0 %v10052_v40  ;;  %v10216_v63 = vor.u32 %v11021_v14, %v10215_v32  ;;  %v10217_v30 = vld [vmem:[#allocation12 + $0x78] sm:$0xf0]  ;;  %v10208_v17 = vor.u32 %v11019_v22, %v10207_v58  ;;  %v10159_v14 = vld [vmem:[#allocation12] sm:$0xf] }
 0x6b2   :  { %v11943_v0 = vadd.f32 %v6273_v13, %v6272_v2  ;;  %v6317_v2 = vperm.slane %v6314_v6, 1  ;;  %v10220_v24 = vor.u32 %v11020_v51, %v10217_v30  ;;  %v11007_v51 = vld [vmem:[#allocation12 + $0x4] sm:$0xf0] }
 0x6b3   :  { %6775 = vmatpush.bf16.msrb.mxu1 %v10072_v42  ;;  %v10160_v30 = vor.u32 %v11007_v51, %v10159_v14 }
 0x6b4   :  { %11185 = vtanh.f32 %v11943_v0  ;;  %6738 = vmatpush.bf16.msra.mxu2 %v10028_v16  ;;  %6751 = vmatpush.bf16.msra.mxu3 %v10032_v53 }
 0x6b5   :  { %6764 = vmatpush.bf16.msrb.mxu0 %v10036_v37 }
 0x6b7   :  { %6776 = vmatpush.bf16.msrb.mxu1 %v10056_v50 }
 0x6ba   :  { %v11186_v31 = vpop.eup %11185 }
 0x6bb   :  { %v6276_v54 = vmul.f32 %v11186_v31, %v6271_v52  ;;  %6777 = vmatpush.bf16.msrb.mxu1 %v10040_v7  ;;  %v11017_v52 = vld [vmem:[#allocation12 + $0x54] sm:$0xf0] }
 0x6bc   :  { %v10200_v48 = vor.u32 %v11017_v52, %v10199_v23 }
 0x6bd   :  { %v6277_v3 = vpack.c.bf16 %v6276_v54, %v6276_v54  ;;  %v11015_v54 = vld [vmem:[#allocation12 + $0x44] sm:$0xf0] }
 0x6be   :  { %v10192_v53 = vor.u32 %v11015_v54, %v10191_v59 }
 0x6bf   :  { %v6279_v4 = vrot.slane %v6277_v3, 6  ;;  %6492 = vmatmul.bf16.vlgmr.msrb.gmra.mxu2 %v6277_v3  ;;  %6505 = vmatmul.bf16.vlgmr.msrb.gmra.mxu3 %v6277_v3 }
 0x6c0   :  { %6518 = vmatmul.bf16.vlgmr.msra.gmra.mxu0 %v6277_v3  ;;  %6531 = vmatmul.bf16.vlgmr.msra.gmra.mxu1 %v6277_v3 }
 0x6c1   :  { %6281 = vst [vmem:[#allocation3 + $0x4] sm:$0x4] %v6279_v4  ;;  %6917 = vmatpush.bf16.msrb.mxu2 %v10216_v63  ;;  %6931 = vmatpush.bf16.msrb.mxu3 %v10220_v24  ;;  %v11013_v4 = vld [vmem:[#allocation12 + $0x34] sm:$0xf0] }
 0x6c5   :  { %6918 = vmatpush.bf16.msrb.mxu2 %v10208_v17  ;;  %6932 = vmatpush.bf16.msrb.mxu3 %v10212_v44 }
 0x6c9   :  { %6919 = vmatpush.bf16.msrb.mxu2 %v10200_v48  ;;  %6933 = vmatpush.bf16.msrb.mxu3 %v10204_v25 }
 0x6cd   :  { %6920 = vmatpush.bf16.msrb.mxu2 %v10192_v53  ;;  %6934 = vmatpush.bf16.msrb.mxu3 %v10196_v1 }
 0x6cf   :  { %6739 = vmatmul.bf16.vlgmr.msra.gmra.mxu2 %v6569_v8  ;;  %6752 = vmatmul.bf16.vlgmr.msra.gmra.mxu3 %v6569_v8 }
 0x6d0   :  { %6765 = vmatmul.bf16.vlgmr.msrb.gmra.mxu0 %v6569_v8  ;;  %6778 = vmatmul.bf16.vlgmr.msrb.gmra.mxu1 %v6569_v8  ;;  %v11012_v8 = vld [vmem:[#allocation12 + $0x34] sm:$0xf] }
 0x73d   :  { %v6519_v9 = vpop.f32.mrf.mxu0  ;;  %v6532_v12 = vpop.f32.mrf.mxu1 }
 0x73e   :  { %v6520_v35 = vadd.f32 %v6519_v9, %v6318_v45  ;;  %v6533_v46 = vadd.f32 %v6532_v12, %v6319_v10  ;;  %v10185_v9 = vld [vmem:[#allocation12 + $0x38] sm:$0xf0]  ;;  %v10167_v10 = vld [vmem:[#allocation12 + $0x10] sm:$0xf] }
 0x742   :  { %v6493_v60 = vpop.f32.mrf.mxu2  ;;  %v6506_v36 = vpop.f32.mrf.mxu3 }
 0x743   :  { %v6494_v43 = vadd.f32 %v6493_v60, %v6316_v18  ;;  %v6507_v21 = vadd.f32 %v6506_v36, %v6317_v2  ;;  %v10184_v36 = vor.u32 %v11013_v4, %v10183_v61  ;;  %v11010_v18 = vld [vmem:[#allocation12 + $0x24] sm:$0xf]  ;;  %v10177_v2 = vld [vmem:[#allocation12 + $0x28] sm:$0xf0] }
 0x744   :  { %v10180_v45 = vor.u32 %v11010_v18, %v10177_v2 }
 0x745   :  { %v6521_v56 = vpop.f32.mrf.mxu0  ;;  %v6534_v13 = vpop.f32.mrf.mxu1  ;;  %6921 = vmatpush.bf16.msrb.mxu2 %v10184_v36 }
 0x746   :  { %v10188_v56 = vor.u32 %v11012_v8, %v10185_v9  ;;  %v10175_v13 = vld [vmem:[#allocation12 + $0x20] sm:$0xf] }
 0x748   :  { %6935 = vmatpush.bf16.msrb.mxu3 %v10188_v56 }
 0x74a   :  { %v6495_v41 = vpop.f32.mrf.mxu2  ;;  %v6508_v27 = vpop.f32.mrf.mxu3 }
 0x74b   :  { %v11011_v41 = vld [vmem:[#allocation12 + $0x24] sm:$0xf0] }
 0x74c   :  { %6936 = vmatpush.bf16.msrb.mxu3 %v10180_v45 }
 0x74d   :  { %v6766_v11 = vpop.f32.mrf.mxu0  ;;  %v6779_v57 = vpop.f32.mrf.mxu1 }
 0x74e   :  { %v6785_v34 = vadd.f32 %v6766_v11, %v6520_v35  ;;  %v6786_v31 = vadd.f32 %v6779_v57, %v6533_v46  ;;  %v10176_v11 = vor.u32 %v11011_v41, %v10175_v13 }
 0x750   :  { %6922 = vmatpush.bf16.msrb.mxu2 %v10176_v11 }
 0x752   :  { %v6740_v29 = vpop.f32.mrf.mxu2  ;;  %v6753_v20 = vpop.f32.mrf.mxu3 }
 0x753   :  { %v6783_v33 = vadd.f32 %v6740_v29, %v6494_v43  ;;  %v6784_v39 = vadd.f32 %v6753_v20, %v6507_v21  ;;  %v11009_v43 = vld [vmem:[#allocation12 + $0x14] sm:$0xf0]  ;;  %v11008_v21 = vld [vmem:[#allocation12 + $0x14] sm:$0xf] }
 0x754   :  { %v10168_v29 = vor.u32 %v11009_v43, %v10167_v10 }
 0x755   :  { %11187 = vtanh.f32 %v6783_v33  ;;  %v6768_v55 = vpop.f32.mrf.mxu0  ;;  %v6781_v42 = vpop.f32.mrf.mxu1  ;;  %v11006_v33 = vld [vmem:[#allocation12 + $0x4] sm:$0xf] }
 0x756   :  { %11189 = vtanh.f32 %v6784_v39  ;;  %v10161_v39 = vld [vmem:[#allocation12 + $0x8] sm:$0xf0]  ;;  %6923 = vmatpush.bf16.msrb.mxu2 %v10168_v29  ;;  %v6828_v55 = vperm.slane %v6825_v19, 1 }
 0x757   :  { %11191 = vtanh.f32 %v6785_v34  ;;  %v10164_v22 = vor.u32 %v11006_v33, %v10161_v39  ;;  %v6827_v34 = vperm.slane %v6825_v19, 0 }
 0x758   :  { %11193 = vtanh.f32 %v6786_v31 }
 0x75a   :  { %v6742_v40 = vpop.f32.mrf.mxu2  ;;  %v6755_v38 = vpop.f32.mrf.mxu3  ;;  %6924 = vmatpush.bf16.msrb.mxu2 %v10160_v30 }
 0x75b   :  { %v11188_v5 = vpop.eup %11187 }
 0x75c   :  { %v11190_v3 = vpop.eup %11189  ;;  %v6791_v50 = vmul.f32 0.5, %v11188_v5 }
 0x75d   :  { %v6793_v16 = vmul.f32 0.5, %v11190_v3  ;;  %v11192_v7 = vpop.eup %11191 }
 0x75e   :  { %v6792_v37 = vadd.f32 0.5, %v6791_v50  ;;  %v11194_v27 = vpop.eup %11193 }
 0x75f   :  { %v6794_v62 = vadd.f32 0.5, %v6793_v16  ;;  %v6795_v57 = vmul.f32 0.5, %v11194_v27 }
 0x760   :  { %v6798_v12 = vmul.f32 %v11192_v7, %v6792_v37 }
 0x761   :  { %v6797_v60 = vmul.f32 %v6794_v62, %v11943_v0  ;;  %v10169_v0 = vld [vmem:[#allocation12 + $0x18] sm:$0xf0]  ;;  %v6796_v20 = vadd.f32 0.5, %v6795_v57 }
 0x762   :  { %v10172_v32 = vor.u32 %v11008_v21, %v10169_v0 }
 0x763   :  { %v6799_v6 = vadd.f32 %v6798_v12, %v6797_v60 }
 0x764   :  { %6937 = vmatpush.bf16.msrb.mxu3 %v10172_v32 }
 0x765   :  { %11195 = vtanh.f32 %v6799_v6 }
 0x768   :  { %6938 = vmatpush.bf16.msrb.mxu3 %v10164_v22 }
 0x76b   :  { %v11196_v35 = vpop.eup %11195 }
 0x76c   :  { %v6801_v63 = vmul.f32 %v11196_v35, %v6796_v20 }
 0x76e   :  { %v6802_v58 = vpack.c.bf16 %v6801_v63, %v6801_v63 }
 0x770   :  { %v6804_v24 = vrot.slane %v6802_v58, 5 }
 0x772   :  { %6806 = vst [vmem:[#allocation3 + $0x4] sm:$0x8] %v6804_v24 }
 0x779   :  { %v11005_v49 = vld [vmem:[#allocation3] sm:$0xff] }
 0x77a   :  { %6925 = vmatmul.bf16.vlgmr.msrb.gmra.mxu2 %v11005_v49  ;;  %6939 = vmatmul.bf16.vlgmr.msrb.gmra.mxu3 %v11005_v49 }
 0x7fd   :  { %v6926_v42 = vpop.f32.mrf.mxu2  ;;  %v6940_v17 = vpop.f32.mrf.mxu3 }
 0x7fe   :  { %v6927_v44 = vadd.f32 %v6926_v42, %v6827_v34  ;;  %v6941_v23 = vadd.f32 %v6940_v17, %v6828_v55 }
 0x800   :  { %v6945_v52 = vmax.f32 %v6927_v44, %v6941_v23 }
 0x802   :  { %6946 = vmax.xlane.f32.xlu1 %v6945_v52 }
 0x805   :  { %v6928_v46 = vpop.f32.mrf.mxu2  ;;  %v6942_v28 = vpop.f32.mrf.mxu3 }
 0x806   :  { %v6929_v47 = vadd.f32 %v6928_v46, %v6827_v34  ;;  %v6943_v31 = vadd.f32 %v6942_v28, %v6828_v55 }
 0x808   :  { %v6948_v48 = vmax.f32 %v6929_v47, %v6943_v31 }
 0x80a   :  { %6949 = vmax.xlane.f32.xlu1 %v6948_v48 }
 0x875   :  { %v6947_v40 = vpop.xlane.xlu1 %6946 }
 0x876   :  { %v6951_v38 = vsub.f32 %v6927_v44, %v6947_v40  ;;  %v6952_v25 = vsub.f32 %v6941_v23, %v6947_v40 }
 0x878   :  { %v6955_v59 = vmul.f32 1.442695, %v6951_v38  ;;  %v6957_v54 = vmul.f32 1.442695, %v6952_v25 }
 0x87a   :  { %11197 = vpow2.f32 %v6955_v59 }
 0x87b   :  { %11199 = vpow2.f32 %v6957_v54 }
 0x87d   :  { %v6950_v5 = vpop.xlane.xlu1 %6949 }
 0x87e   :  { %v6953_v26 = vsub.f32 %v6929_v47, %v6950_v5  ;;  %v6954_v15 = vsub.f32 %v6943_v31, %v6950_v5 }
 0x880   :  { %v11198_v3 = vpop.eup %11197  ;;  %v6959_v50 = vmul.f32 1.442695, %v6953_v26  ;;  %v6961_v16 = vmul.f32 1.442695, %v6954_v15 }
 0x881   :  { %v11200_v53 = vpop.eup %11199 }
 0x882   :  { %11201 = vpow2.f32 %v6959_v50  ;;  %v6963_v37 = vadd.f32 %v11200_v53, %v11198_v3 }
 0x883   :  { %11203 = vpow2.f32 %v6961_v16 }
 0x884   :  { %6964 = vadd.xlane.f32.xlu2 %v6963_v37 }
 0x888   :  { %v11202_v1 = vpop.eup %11201 }
 0x889   :  { %v11204_v61 = vpop.eup %11203 }
 0x88a   :  { %v6966_v4 = vadd.f32 %v11204_v61, %v11202_v1 }
 0x88c   :  { %6967 = vadd.xlane.f32.xlu2 %v6966_v4 }
 0x8f7   :  { %v6965_v7 = vpop.xlane.xlu2 %6964 }
 0x8f8   :  { %11205 = vrcp.f32 %v6965_v7  ;;  %v6980_v60 = vand.u32 2147483648, %v6965_v7  ;;  %v6978_v56 = vand.u32 2147483647, %v6965_v7  ;;  %vm6974_vm7 = vweird.f32 %v6965_v7 }
 0x8fa   :  { %v6981_v27 = vor.u32 1.1754944e-38, %v6980_v60  ;;  %vm6979_vm9 = vcmp.eq.f32.partialorder %v6978_v56, 8.507059e+37 }
 0x8fe   :  { %v11206_v62 = vpop.eup %11205 }
 0x8ff   :  { %v6970_v8 = vmul.f32 %v11206_v62, %v6965_v7  ;;  %v6968_v9 = vpop.xlane.xlu2 %6967  ;;  %vm6975_vm6 = vweird.f32 %v11206_v62 }
 0x900   :  { %11207 = vrcp.f32 %v6968_v9  ;;  %vm6976_vm8 = vmor %vm6974_vm7, %vm6975_vm6  ;;  %v6996_v10 = vand.u32 2147483648, %v6968_v9  ;;  %v6994_v21 = vand.u32 2147483647, %v6968_v9  ;;  %vm6990_vm11 = vweird.f32 %v6968_v9 }
 0x901   :  { %v6971_v12 = vsub.f32 1.0, %v6970_v8 }
 0x902   :  { %v6997_v29 = vor.u32 1.1754944e-38, %v6996_v10  ;;  %vm6995_vm13 = vcmp.eq.f32.partialorder %v6994_v21, 8.507059e+37 }
 0x903   :  { %v6972_v36 = vmul.f32 %v11206_v62, %v6971_v12 }
 0x905   :  { %v6973_v13 = vadd.f32 %v11206_v62, %v6972_v36 }
 0x906   :  { %v11208_v41 = vpop.eup %11207 }
 0x907   :  { %v6977_v6 = vsel %vm6976_vm8, %v11206_v62, %v6973_v13  ;;  %v6986_v18 = vmul.f32 %v11208_v41, %v6968_v9  ;;  %vm6991_vm10 = vweird.f32 %v11208_v41 }
 0x908   :  { %v6982_v2 = vsel %vm6979_vm9, %v6981_v27, %v6977_v6  ;;  %vm6992_vm12 = vmor %vm6990_vm11, %vm6991_vm10 }
 0x909   :  { %v6983_v11 = vmul.f32 %v11198_v3, %v6982_v2  ;;  %v6984_v57 = vmul.f32 %v11200_v53, %v6982_v2  ;;  %v6987_v45 = vsub.f32 1.0, %v6986_v18 }
 0x90b   :  { %7001 = vst [vmem:[%s11977_s10] sm:$0xff] %v6983_v11  ;;  %v6988_v43 = vmul.f32 %v11208_v41, %v6987_v45 }
 0x90c   :  { %7002 = vst [vmem:[%s11977_s10 + $0x8] sm:$0xff] %v6984_v57 }
 0x90d   :  { %v6989_v0 = vadd.f32 %v11208_v41, %v6988_v43 }
 0x90f   :  { %v6993_v20 = vsel %vm6992_vm12, %v11208_v41, %v6989_v0 }
 0x910   :  { %v6998_v32 = vsel %vm6995_vm13, %v6997_v29, %v6993_v20 }
 0x911   :  { %v6999_v14 = vmul.f32 %v11202_v1, %v6998_v32  ;;  %v7000_v51 = vmul.f32 %v11204_v61, %v6998_v32 }
 0x913   :  { %7003 = vst [vmem:[%s11977_s10 + $0x10] sm:$0xff] %v6999_v14 }
 0x914   :  { %7004 = vst [vmem:[%s11977_s10 + $0x18] sm:$0xff] %v7000_v51 }
 0x915   :  { %7009 = vsyncpa [#allocation5], 1 }
 0x916   :  { %7010 = vsyncpa [#allocation7], 1 }
 0x917   :  { %7011 = vsyncpa [#allocation10], 1 }
 0x918   :  { %7012 = vsyncpa [#allocation13], 1 }

</bundles_post_ra>
